<compile_context>
chip_gen: v5e
topology: v5e:2x2
jax: 0.10.0
libtpu: 0.0.40
codegen_flags: <defaults>
</compile_context>

<pallas_src>
import math
import functools

import jax
import jax.numpy as jnp
from jax.experimental import pallas as pl
from jax.experimental.pallas import tpu as pltpu

D_MODEL = 32
N_BLOCKS = 2
VOCAB = 40            # src_vocab == trg_vocab (weights tied in the reference)
VOCAB_PAD = 64        # one-hot / embedding rows padded to 64
N_HEADS = 4
D_FF = 64
D_HEAD = D_MODEL // N_HEADS
DROPOUT_PROBA = 0.1   # identity at inference
LN_EPS = 1e-6
NEG_INF = -1e9
ATTN_SCALE = 1.0 / math.sqrt(D_HEAD)
LOGITS_PAD = 128      # lane-dense padded logits width (>= VOCAB)
MAX_LEN = 64
LANES = 128


# ------------------------------ parameter slabs -------------------------------

def _pad_lanes(a2d):
    k, n = a2d.shape
    return jnp.zeros((k, LANES), jnp.float32).at[:, :n].set(a2d)


class _Packer:
    """Packs 2-D params into one (rows, 128) slab; returns static offsets."""

    def __init__(self):
        self.chunks = []
        self.nrows = 0

    def add(self, a2d):
        a2d = jnp.asarray(a2d, jnp.float32)
        k, n = a2d.shape
        off = (self.nrows, int(k), int(n))
        self.chunks.append(_pad_lanes(a2d))
        self.nrows += int(k)
        return off

    def add_vec(self, v):
        v = jnp.asarray(v, jnp.float32).reshape(1, -1)
        r, _, n = self.add(v)
        return (r, n)

    def build(self, dtype):
        slab = jnp.concatenate(self.chunks, axis=0)
        pad = (-slab.shape[0]) % 8
        if pad:
            slab = jnp.concatenate(
                [slab, jnp.zeros((pad, LANES), jnp.float32)], axis=0)
        return slab.astype(dtype)


# --------------------------- in-kernel math helpers ---------------------------

def _wmat(W_ref, off):
    """Static-slice a matmul weight (bf16) out of the weight slab."""
    r, k, n = off
    return W_ref[pl.ds(r, k), pl.ds(0, n)]


def _vrow(V_ref, off):
    """Static-slice a bias / LN vector (f32, shape (1, n)) out of the vec slab."""
    r, n = off
    return V_ref[pl.ds(r, 1), pl.ds(0, n)]


def _linear(x2, W_ref, V_ref, w_off, b_off):
    """x2 (M,K) f32 -> (M,N) f32. bf16 operands, f32 accumulation, f32 bias."""
    w = _wmat(W_ref, w_off)
    b = _vrow(V_ref, b_off)
    return jnp.dot(x2.astype(jnp.bfloat16), w,
                   preferred_element_type=jnp.float32) + b


def _layernorm(x, g, b):
    xm = x - jnp.mean(x, axis=-1, keepdims=True)
    var = jnp.mean(xm * xm, axis=-1, keepdims=True)
    return xm * jax.lax.rsqrt(var + LN_EPS) * g + b


def _attention(q, k, v, bias, wo, bo):
    """Multi-head attention, output projection folded into the head loop.

    q (B,Sq,D) f32, k/v (B,Sk,D) f32, bias (B,Sq,Sk) f32 additive mask,
    wo (D,D) bf16, bo (1,D) f32.  Returns (B*Sq, D) f32.
    """
    B_, Sq, D_ = q.shape
    qs = (q * ATTN_SCALE).astype(jnp.bfloat16)
    kb = k.astype(jnp.bfloat16)
    vb = v.astype(jnp.bfloat16)
    acc = jnp.zeros((B_ * Sq, D_), jnp.float32)
    for h in range(N_HEADS):
        lo = h * D_HEAD
        s = jnp.einsum('bqd,bkd->bqk', qs[:, :, lo:lo + D_HEAD],
                       kb[:, :, lo:lo + D_HEAD],
                       preferred_element_type=jnp.float32) + bias
        s = s - jnp.max(s, axis=-1, keepdims=True)
        p = jnp.exp(s)
        p = p * pl.reciprocal(jnp.sum(p, axis=-1, keepdims=True), approx=False)
        oh = jnp.einsum('bqk,bkd->bqd', p.astype(jnp.bfloat16),
                        vb[:, :, lo:lo + D_HEAD],
                        preferred_element_type=jnp.float32)
        # attn_out @ wo == sum_h oh @ wo[h*Dh:(h+1)*Dh, :]
        acc = acc + jnp.dot(
            oh.reshape(B_ * Sq, D_HEAD).astype(jnp.bfloat16),
            wo[lo:lo + D_HEAD, :], preferred_element_type=jnp.float32)
    return acc + bo


def _embed(ids_ref, pe_ref, W_ref, emb_off):
    """one_hot(ids) @ (sqrt(d_model)*emb) + positional encoding, on the MXU."""
    ids = ids_ref[...]                                  # (M, 1) int32
    m = ids.shape[0]
    _, kpad, _ = emb_off
    iota = jax.lax.broadcasted_iota(jnp.int32, (m, kpad), 1)
    onehot = (iota == ids).astype(jnp.bfloat16)         # (M, VOCAB_PAD)
    emb_w = _wmat(W_ref, emb_off)                       # (VOCAB_PAD, D) bf16
    return jnp.dot(onehot, emb_w,
                   preferred_element_type=jnp.float32) + pe_ref[...]


def _encoder_block(W, V, o, x, bias):
    B_, S_, D_ = x.shape
    x2 = x.reshape(B_ * S_, D_)
    qkv = _linear(x2, W, V, o["wqkv"], o["bqkv"]).reshape(B_, S_, 3 * D_)
    a2 = _attention(qkv[..., :D_], qkv[..., D_:2 * D_], qkv[..., 2 * D_:],
                    bias, _wmat(W, o["wo"]), _vrow(V, o["bo"]))
    x2 = _layernorm(x2 + a2, _vrow(V, o["ln1_g"]), _vrow(V, o["ln1_b"]))
    h = jnp.maximum(_linear(x2, W, V, o["w1"], o["b1"]), 0.0)   # ReLU
    f = _linear(h, W, V, o["w2"], o["b2"])
    x2 = _layernorm(x2 + f, _vrow(V, o["ln2_g"]), _vrow(V, o["ln2_b"]))
    return x2.reshape(B_, S_, D_)


def _decoder_block(W, V, o, x, enc, sbias, tbias):
    B_, S_, D_ = x.shape
    Se = enc.shape[1]
    x2 = x.reshape(B_ * S_, D_)

    # masked self-attention
    qkv = _linear(x2, W, V, o["wqkv"], o["bqkv"]).reshape(B_, S_, 3 * D_)
    a2 = _attention(qkv[..., :D_], qkv[..., D_:2 * D_], qkv[..., 2 * D_:],
                    tbias, _wmat(W, o["wo_s"]), _vrow(V, o["bo_s"]))
    x2 = _layernorm(x2 + a2, _vrow(V, o["ln1_g"]), _vrow(V, o["ln1_b"]))

    # cross-attention: queries from decoder, keys/values from encoder output
    q = _linear(x2, W, V, o["wq_c"], o["bq_c"]).reshape(B_, S_, D_)
    kv = _linear(enc.reshape(B_ * Se, D_), W, V,
                 o["wkv_c"], o["bkv_c"]).reshape(B_, Se, 2 * D_)
    c2 = _attention(q, kv[..., :D_], kv[..., D_:],
                    sbias, _wmat(W, o["wo_c"]), _vrow(V, o["bo_c"]))
    x2 = _layernorm(x2 + c2, _vrow(V, o["ln2_g"]), _vrow(V, o["ln2_b"]))

    # position-wise feed-forward
    h = jnp.maximum(_linear(x2, W, V, o["w1"], o["b1"]), 0.0)
    f = _linear(h, W, V, o["w2"], o["b2"])
    x2 = _layernorm(x2 + f, _vrow(V, o["ln3_g"]), _vrow(V, o["ln3_b"]))
    return x2.reshape(B_, S_, D_)


# ------------------------------- fused kernel ---------------------------------

def _fused_fwd_kernel(off, dims,
                      src_ids_ref, trg_ids_ref, pe_src_ref, pe_trg_ref,
                      senc_ref, sdec_ref, tbias_ref, W_ref, V_ref, out_ref):
    B, Ss, St = dims

    # ---- encode ----
    x = _embed(src_ids_ref, pe_src_ref, W_ref, off["emb"]).reshape(B, Ss, D_MODEL)
    senc = senc_ref[...]
    for o in off["enc"]:
        x = _encoder_block(W_ref, V_ref, o, x, senc)
    enc = x

    # ---- decode ----
    y = _embed(trg_ids_ref, pe_trg_ref, W_ref, off["emb"]).reshape(B, St, D_MODEL)
    sdec = sdec_ref[...]
    tb = tbias_ref[...]
    for o in off["dec"]:
        y = _decoder_block(W_ref, V_ref, o, y, enc, sdec, tb)

    # ---- tied output projection (vocab padded to 128 lanes) ----
    y2 = y.reshape(B * St, D_MODEL)
    logits = jnp.dot(y2.astype(jnp.bfloat16), _wmat(W_ref, off["wout"]),
                     preferred_element_type=jnp.float32) + _vrow(V_ref, off["bout"])
    out_ref[...] = logits.astype(out_ref.dtype)


# ------------------------------- model wrapper --------------------------------

def positional_encoding(max_len, d_model):
    pos = jnp.arange(max_len, dtype=jnp.float32)[:, None]
    idx = jnp.arange(0, d_model, 2, dtype=jnp.float32)
    div = jnp.exp(-math.log(10000.0) * idx / d_model)
    pe = jnp.zeros((max_len, d_model), dtype=jnp.float32)
    pe = pe.at[:, 0::2].set(jnp.sin(pos * div))
    pe = pe.at[:, 1::2].set(jnp.cos(pos * div))
    return pe


def prepare_params(params, max_len=MAX_LEN):
    """One-time prep: pack all params into a bf16 weight slab + f32 vector slab."""
    emb = jnp.asarray(params["embedding"], jnp.float32)
    Wp, Vp = _Packer(), _Packer()
    off = {}

    # embedding lookup weight, pre-scaled by sqrt(d_model), vocab padded to 64
    emb_scaled = jnp.zeros((VOCAB_PAD, D_MODEL), jnp.float32).at[:VOCAB].set(
        emb * math.sqrt(D_MODEL))
    off["emb"] = Wp.add(emb_scaled)

    # tied output projection: logits = x @ emb.T + bias, padded to 128 lanes
    wout = jnp.zeros((D_MODEL, LOGITS_PAD), jnp.float32).at[:, :VOCAB].set(emb.T)
    off["wout"] = Wp.add(wout)
    bout = jnp.zeros((LOGITS_PAD,), jnp.float32).at[:VOCAB].set(params["out_bias"])
    off["bout"] = Vp.add_vec(bout)

    def pack_attn(p):
        wqkv = jnp.concatenate([p["wq"], p["wk"], p["wv"]], axis=1)   # (D,3D)
        bqkv = jnp.concatenate([p["bq"], p["bk"], p["bv"]])           # (3D,)
        return Wp.add(wqkv), Vp.add_vec(bqkv), Wp.add(p["wo"]), Vp.add_vec(p["bo"])

    enc_offs = []
    for b in params["encoder"]:
        wqkv, bqkv, wo, bo = pack_attn(b["attn"])
        enc_offs.append({
            "wqkv": wqkv, "bqkv": bqkv, "wo": wo, "bo": bo,
            "ln1_g": Vp.add_vec(b["ln1_g"]), "ln1_b": Vp.add_vec(b["ln1_b"]),
            "w1": Wp.add(b["w1"]), "b1": Vp.add_vec(b["b1"]),
            "w2": Wp.add(b["w2"]), "b2": Vp.add_vec(b["b2"]),
            "ln2_g": Vp.add_vec(b["ln2_g"]), "ln2_b": Vp.add_vec(b["ln2_b"])})
    off["enc"] = enc_offs

    dec_offs = []
    for b in params["decoder"]:
        wqkv, bqkv, wo_s, bo_s = pack_attn(b["self_attn"])
        c = b["cross_attn"]
        wkv = jnp.concatenate([c["wk"], c["wv"]], axis=1)             # (D,2D)
        bkv = jnp.concatenate([c["bk"], c["bv"]])
        dec_offs.append({
            "wqkv": wqkv, "bqkv": bqkv, "wo_s": wo_s, "bo_s": bo_s,
            "wq_c": Wp.add(c["wq"]), "bq_c": Vp.add_vec(c["bq"]),
            "wkv_c": Wp.add(wkv), "bkv_c": Vp.add_vec(bkv),
            "wo_c": Wp.add(c["wo"]), "bo_c": Vp.add_vec(c["bo"]),
            "ln1_g": Vp.add_vec(b["ln1_g"]), "ln1_b": Vp.add_vec(b["ln1_b"]),
            "ln2_g": Vp.add_vec(b["ln2_g"]), "ln2_b": Vp.add_vec(b["ln2_b"]),
            "ln3_g": Vp.add_vec(b["ln3_g"]), "ln3_b": Vp.add_vec(b["ln3_b"]),
            "w1": Wp.add(b["w1"]), "b1": Vp.add_vec(b["b1"]),
            "w2": Wp.add(b["w2"]), "b2": Vp.add_vec(b["b2"])})
    off["dec"] = dec_offs

    return {"Wslab": Wp.build(jnp.bfloat16),   # (~928, 128) bf16 matmul weights
            "Vslab": Vp.build(jnp.float32),    # (~48, 128)  f32 biases / LN
            "off": off,                        # static offsets (Python ints)
            "pe": positional_encoding(max_len, D_MODEL)}


def encoder_decoder_forward(prep, src_ids, trg_ids, src_mask, trg_mask):
    Wslab, Vslab, off, pe = prep["Wslab"], prep["Vslab"], prep["off"], prep["pe"]
    B, Ss = src_ids.shape
    _, St = trg_ids.shape

    # token ids (kernel builds one-hot on the MXU) and batch-tiled PE
    src_ids2 = src_ids.reshape(B * Ss, 1).astype(jnp.int32)
    trg_ids2 = trg_ids.reshape(B * St, 1).astype(jnp.int32)
    pe_src = jnp.tile(pe[:Ss], (B, 1))                    # (B*Ss, D)
    pe_trg = jnp.tile(pe[:St], (B, 1))                    # (B*St, D)

    # additive attention biases (no in-kernel compare/select/broadcast)
    sm = jnp.asarray(src_mask, jnp.float32).reshape(B, 1, Ss)
    tm = jnp.asarray(trg_mask, jnp.float32).reshape(B, St, St)
    sbias = (1.0 - sm) * NEG_INF
    sbias_enc = jnp.broadcast_to(sbias, (B, Ss, Ss))
    sbias_dec = jnp.broadcast_to(sbias, (B, St, Ss))
    tbias = (1.0 - tm) * NEG_INF

    ins = [src_ids2, trg_ids2, pe_src, pe_trg, sbias_enc, sbias_dec, tbias,
           Wslab, Vslab]

    def full_vmem_spec(a):
        return pl.BlockSpec(a.shape, lambda i, _nd=a.ndim: (0,) * _nd)

    out = pl.pallas_call(
        functools.partial(_fused_fwd_kernel, off, (B, Ss, St)),
        out_shape=jax.ShapeDtypeStruct((B * St, LOGITS_PAD), jnp.float32),
        grid=(1,),
        in_specs=[full_vmem_spec(a) for a in ins],
        out_specs=pl.BlockSpec((B * St, LOGITS_PAD), lambda i: (0, 0)),
        compiler_params=pltpu.CompilerParams(
            dimension_semantics=("arbitrary",),
            vmem_limit_bytes=16 * 1024 * 1024),
        cost_estimate=pl.CostEstimate(flops=2_000_000, transcendentals=4_000,
                                      bytes_accessed=400_000),
    )(*ins)

    return out[:, :VOCAB].reshape(B, St, VOCAB)


# ------------------------------ initialization --------------------------------

def init_params(seed=0):
    key = jax.random.PRNGKey(seed)

    def nxt():
        nonlocal key
        key, sub = jax.random.split(key)
        return sub

    def xavier(shape):
        bound = math.sqrt(6.0 / (shape[0] + shape[1]))
        return jax.random.uniform(nxt(), shape, jnp.float32, -bound, bound)

    def attn_params():
        return {"wq": xavier((D_MODEL, D_MODEL)), "bq": jnp.zeros((D_MODEL,), jnp.float32),
                "wk": xavier((D_MODEL, D_MODEL)), "bk": jnp.zeros((D_MODEL,), jnp.float32),
                "wv": xavier((D_MODEL, D_MODEL)), "bv": jnp.zeros((D_MODEL,), jnp.float32),
                "wo": xavier((D_MODEL, D_MODEL)), "bo": jnp.zeros((D_MODEL,), jnp.float32)}

    def enc_block_params():
        return {"attn": attn_params(),
                "ln1_g": jnp.ones((D_MODEL,), jnp.float32), "ln1_b": jnp.zeros((D_MODEL,), jnp.float32),
                "w1": xavier((D_MODEL, D_FF)), "b1": jnp.zeros((D_FF,), jnp.float32),
                "w2": xavier((D_FF, D_MODEL)), "b2": jnp.zeros((D_MODEL,), jnp.float32),
                "ln2_g": jnp.ones((D_MODEL,), jnp.float32), "ln2_b": jnp.zeros((D_MODEL,), jnp.float32)}

    def dec_block_params():
        return {"self_attn": attn_params(), "cross_attn": attn_params(),
                "ln1_g": jnp.ones((D_MODEL,), jnp.float32), "ln1_b": jnp.zeros((D_MODEL,), jnp.float32),
                "ln2_g": jnp.ones((D_MODEL,), jnp.float32), "ln2_b": jnp.zeros((D_MODEL,), jnp.float32),
                "w1": xavier((D_MODEL, D_FF)), "b1": jnp.zeros((D_FF,), jnp.float32),
                "w2": xavier((D_FF, D_MODEL)), "b2": jnp.zeros((D_MODEL,), jnp.float32),
                "ln3_g": jnp.ones((D_MODEL,), jnp.float32), "ln3_b": jnp.zeros((D_MODEL,), jnp.float32)}

    return {"embedding": xavier((VOCAB, D_MODEL)),       # shared src / trg / output weight
            "out_bias": jnp.zeros((VOCAB,), jnp.float32),
            "encoder": [enc_block_params() for _ in range(N_BLOCKS)],
            "decoder": [dec_block_params() for _ in range(N_BLOCKS)]}


# ------------------------------------ main ------------------------------------

if __name__ == "__main__":
    params = init_params(0)
    prep = prepare_params(params)          # slab packing / padding done once

    key = jax.random.PRNGKey(0)
    k1, k2 = jax.random.split(key)
    B, S_SRC, S_TRG = 2, 8, 8
    src_ids = jax.random.randint(k1, (B, S_SRC), 0, VOCAB, dtype=jnp.int32)
    trg_ids = jax.random.randint(k2, (B, S_TRG), 0, VOCAB, dtype=jnp.int32)

    # src_mask: all tokens visible; trg_mask: causal.
    src_mask = jnp.ones((B, 1, 1, S_SRC), dtype=jnp.float32)
    causal = jnp.tril(jnp.ones((S_TRG, S_TRG), dtype=jnp.float32))
    trg_mask = jnp.broadcast_to(causal[None, None], (B, 1, S_TRG, S_TRG))

    # prep is closed over (its static slab offsets must stay Python ints).
    fwd = jax.jit(functools.partial(encoder_decoder_forward, prep))
    logits = fwd(src_ids, trg_ids, src_mask, trg_mask)
    logits = jax.block_until_ready(logits)

    assert logits.shape == (B, S_TRG, VOCAB), logits.shape
    assert bool(jnp.all(jnp.isfinite(logits)))
    print("KERNEL_OK")
</pallas_src>

<mosaic_0001>
module attributes {stable_mosaic.version = 11 : i64} {
  func.func @_fused_fwd_kernel(%arg0: i32, %arg1: memref<16x1xi32, #tpu.memory_space<vmem>>, %arg2: memref<16x1xi32, #tpu.memory_space<vmem>>, %arg3: memref<16x32xf32, #tpu.memory_space<vmem>>, %arg4: memref<16x32xf32, #tpu.memory_space<vmem>>, %arg5: memref<2x8x8xf32, #tpu.memory_space<vmem>>, %arg6: memref<2x8x8xf32, #tpu.memory_space<vmem>>, %arg7: memref<2x8x8xf32, #tpu.memory_space<vmem>>, %arg8: memref<928x128xbf16, #tpu.memory_space<vmem>>, %arg9: memref<48x128xf32, #tpu.memory_space<vmem>>, %arg10: memref<16x128xf32, #tpu.memory_space<vmem>>) attributes {dimension_semantics = [#tpu.dimension_semantics<arbitrary>], iteration_bounds = array<i64: 1>, scalar_prefetch = 0 : i64, scratch_operands = 0 : i64, tpu.core_type = #tpu.core_type<tc>, window_params = [{pipeline_mode = #tpu.pipeline_mode<synchronous>, transform_indices = @transform_0, window_bounds = array<i64: 16, 1>}, {pipeline_mode = #tpu.pipeline_mode<synchronous>, transform_indices = @transform_1, window_bounds = array<i64: 16, 1>}, {pipeline_mode = #tpu.pipeline_mode<synchronous>, transform_indices = @transform_2, window_bounds = array<i64: 16, 32>}, {pipeline_mode = #tpu.pipeline_mode<synchronous>, transform_indices = @transform_3, window_bounds = array<i64: 16, 32>}, {pipeline_mode = #tpu.pipeline_mode<synchronous>, transform_indices = @transform_4, window_bounds = array<i64: 2, 8, 8>}, {pipeline_mode = #tpu.pipeline_mode<synchronous>, transform_indices = @transform_5, window_bounds = array<i64: 2, 8, 8>}, {pipeline_mode = #tpu.pipeline_mode<synchronous>, transform_indices = @transform_6, window_bounds = array<i64: 2, 8, 8>}, {pipeline_mode = #tpu.pipeline_mode<synchronous>, transform_indices = @transform_7, window_bounds = array<i64: 928, 128>}, {pipeline_mode = #tpu.pipeline_mode<synchronous>, transform_indices = @transform_8, window_bounds = array<i64: 48, 128>}, {pipeline_mode = #tpu.pipeline_mode<synchronous>, transform_indices = @transform_9, window_bounds = array<i64: 16, 128>}]} {
    %c0 = arith.constant 0 : index
    %c0_0 = arith.constant 0 : index
    %0 = vector.load %arg1[%c0, %c0_0] : memref<16x1xi32, #tpu.memory_space<vmem>>, vector<16x1xi32>
    %1 = tpu.iota {dimensions = array<i32: 1>} : vector<16x64xi32>
    %2 = vector.broadcast %0 : vector<16x1xi32> to vector<16x64xi32>
    %3 = arith.cmpi eq, %1, %2 : vector<16x64xi32>
    %4 = arith.extui %3 : vector<16x64xi1> to vector<16x64xi32>
    %5 = arith.sitofp %4 : vector<16x64xi32> to vector<16x64xf32>
    %6 = arith.truncf %5 : vector<16x64xf32> to vector<16x64xbf16>
    %c0_1 = arith.constant 0 : index
    %c0_2 = arith.constant 0 : index
    %7 = vector.load %arg8[%c0_1, %c0_2] : memref<928x128xbf16, #tpu.memory_space<vmem>>, vector<64x32xbf16>
    %cst = arith.constant dense<0.000000e+00> : vector<16x32xf32>
    %8 = tpu.matmul %6, %7, %cst {dimension_numbers = #tpu.dot_dimension_numbers<[1], [0], [0], [1], [0, 0, 1, 1], [], []>} : vector<16x64xbf16>, vector<64x32xbf16>, vector<16x32xf32> -> vector<16x32xf32>
    %c0_3 = arith.constant 0 : index
    %c0_4 = arith.constant 0 : index
    %9 = vector.load %arg3[%c0_3, %c0_4] : memref<16x32xf32, #tpu.memory_space<vmem>>, vector<16x32xf32>
    %10 = arith.addf %8, %9 : vector<16x32xf32>
    %11 = vector.shape_cast %10 : vector<16x32xf32> to vector<2x8x32xf32>
    %c0_5 = arith.constant 0 : index
    %c0_6 = arith.constant 0 : index
    %c0_7 = arith.constant 0 : index
    %12 = vector.load %arg5[%c0_5, %c0_6, %c0_7] : memref<2x8x8xf32, #tpu.memory_space<vmem>>, vector<2x8x8xf32>
    %13 = vector.shape_cast %11 : vector<2x8x32xf32> to vector<16x32xf32>
    %c96 = arith.constant 96 : index
    %c0_8 = arith.constant 0 : index
    %14 = vector.load %arg8[%c96, %c0_8] : memref<928x128xbf16, #tpu.memory_space<vmem>>, vector<32x96xbf16>
    %c1 = arith.constant 1 : index
    %c0_9 = arith.constant 0 : index
    %15 = vector.load %arg9[%c1, %c0_9] : memref<48x128xf32, #tpu.memory_space<vmem>>, vector<1x96xf32>
    %16 = arith.truncf %13 : vector<16x32xf32> to vector<16x32xbf16>
    %cst_10 = arith.constant dense<0.000000e+00> : vector<16x96xf32>
    %17 = tpu.matmul %16, %14, %cst_10 {dimension_numbers = #tpu.dot_dimension_numbers<[1], [0], [0], [1], [0, 0, 1, 1], [], []>} : vector<16x32xbf16>, vector<32x96xbf16>, vector<16x96xf32> -> vector<16x96xf32>
    %18 = vector.broadcast %15 : vector<1x96xf32> to vector<16x96xf32>
    %19 = arith.addf %17, %18 : vector<16x96xf32>
    %20 = vector.shape_cast %19 : vector<16x96xf32> to vector<2x8x96xf32>
    %21 = vector.extract_strided_slice %20 {offsets = [0, 0, 0], sizes = [2, 8, 32], strides = [1, 1, 1]} : vector<2x8x96xf32> to vector<2x8x32xf32>
    %22 = vector.extract_strided_slice %20 {offsets = [0, 0, 32], sizes = [2, 8, 32], strides = [1, 1, 1]} : vector<2x8x96xf32> to vector<2x8x32xf32>
    %23 = vector.extract_strided_slice %20 {offsets = [0, 0, 64], sizes = [2, 8, 32], strides = [1, 1, 1]} : vector<2x8x96xf32> to vector<2x8x32xf32>
    %c128 = arith.constant 128 : index
    %c0_11 = arith.constant 0 : index
    %24 = vector.load %arg8[%c128, %c0_11] : memref<928x128xbf16, #tpu.memory_space<vmem>>, vector<32x32xbf16>
    %c2 = arith.constant 2 : index
    %c0_12 = arith.constant 0 : index
    %25 = vector.load %arg9[%c2, %c0_12] : memref<48x128xf32, #tpu.memory_space<vmem>>, vector<1x32xf32>
    %cst_13 = arith.constant 0.353553385 : f32
    %26 = vector.broadcast %cst_13 : f32 to vector<2x8x32xf32>
    %27 = arith.mulf %21, %26 : vector<2x8x32xf32>
    %28 = arith.truncf %27 : vector<2x8x32xf32> to vector<2x8x32xbf16>
    %29 = arith.truncf %22 : vector<2x8x32xf32> to vector<2x8x32xbf16>
    %30 = arith.truncf %23 : vector<2x8x32xf32> to vector<2x8x32xbf16>
    %cst_14 = arith.constant 0.000000e+00 : f32
    %31 = vector.broadcast %cst_14 : f32 to vector<16x32xf32>
    %32 = vector.extract_strided_slice %28 {offsets = [0, 0, 0], sizes = [2, 8, 8], strides = [1, 1, 1]} : vector<2x8x32xbf16> to vector<2x8x8xbf16>
    %33 = vector.extract_strided_slice %29 {offsets = [0, 0, 0], sizes = [2, 8, 8], strides = [1, 1, 1]} : vector<2x8x32xbf16> to vector<2x8x8xbf16>
    "tpu.trace_start"() <{level = 10 : i32, message = "bqd,bkd->bqk"}> : () -> ()
    %cst_15 = arith.constant dense<0.000000e+00> : vector<2x8x8xf32>
    %34 = tpu.matmul %32, %33, %cst_15 {dimension_numbers = #tpu.dot_dimension_numbers<[2], [2], [1], [1], [0, 0, 0, 1, 1, 1], [0], [0]>} : vector<2x8x8xbf16>, vector<2x8x8xbf16>, vector<2x8x8xf32> -> vector<2x8x8xf32>
    "tpu.trace_stop"() : () -> ()
    %35 = arith.addf %34, %12 : vector<2x8x8xf32>
    %cst_16 = arith.constant dense<0xFF800000> : vector<2x8xf32>
    %36 = vector.multi_reduction <maximumf>, %35, %cst_16 [2] : vector<2x8x8xf32> to vector<2x8xf32>
    %37 = vector.shape_cast %36 : vector<2x8xf32> to vector<2x8x1xf32>
    %38 = vector.broadcast %37 : vector<2x8x1xf32> to vector<2x8x8xf32>
    %39 = arith.subf %35, %38 : vector<2x8x8xf32>
    %40 = math.exp %39 : vector<2x8x8xf32>
    %cst_17 = arith.constant dense<0.000000e+00> : vector<2x8xf32>
    %41 = vector.multi_reduction <add>, %40, %cst_17 [2] : vector<2x8x8xf32> to vector<2x8xf32>
    %42 = vector.shape_cast %41 : vector<2x8xf32> to vector<2x8x1xf32>
    %43 = tpu.reciprocal %42 : vector<2x8x1xf32> -> vector<2x8x1xf32>
    %44 = vector.broadcast %43 : vector<2x8x1xf32> to vector<2x8x8xf32>
    %45 = arith.mulf %40, %44 : vector<2x8x8xf32>
    %46 = arith.truncf %45 : vector<2x8x8xf32> to vector<2x8x8xbf16>
    %47 = vector.extract_strided_slice %30 {offsets = [0, 0, 0], sizes = [2, 8, 8], strides = [1, 1, 1]} : vector<2x8x32xbf16> to vector<2x8x8xbf16>
    "tpu.trace_start"() <{level = 10 : i32, message = "bqk,bkd->bqd"}> : () -> ()
    %cst_18 = arith.constant dense<0.000000e+00> : vector<2x8x8xf32>
    %48 = tpu.matmul %46, %47, %cst_18 {dimension_numbers = #tpu.dot_dimension_numbers<[2], [1], [1], [2], [0, 0, 0, 1, 1, 2], [0], [0]>} : vector<2x8x8xbf16>, vector<2x8x8xbf16>, vector<2x8x8xf32> -> vector<2x8x8xf32>
    "tpu.trace_stop"() : () -> ()
    %49 = vector.shape_cast %48 : vector<2x8x8xf32> to vector<16x8xf32>
    %50 = arith.truncf %49 : vector<16x8xf32> to vector<16x8xbf16>
    %51 = vector.extract_strided_slice %24 {offsets = [0, 0], sizes = [8, 32], strides = [1, 1]} : vector<32x32xbf16> to vector<8x32xbf16>
    %cst_19 = arith.constant dense<0.000000e+00> : vector<16x32xf32>
    %52 = tpu.matmul %50, %51, %cst_19 {dimension_numbers = #tpu.dot_dimension_numbers<[1], [0], [0], [1], [0, 0, 1, 1], [], []>} : vector<16x8xbf16>, vector<8x32xbf16>, vector<16x32xf32> -> vector<16x32xf32>
    %53 = arith.addf %31, %52 : vector<16x32xf32>
    %54 = vector.extract_strided_slice %28 {offsets = [0, 0, 8], sizes = [2, 8, 8], strides = [1, 1, 1]} : vector<2x8x32xbf16> to vector<2x8x8xbf16>
    %55 = vector.extract_strided_slice %29 {offsets = [0, 0, 8], sizes = [2, 8, 8], strides = [1, 1, 1]} : vector<2x8x32xbf16> to vector<2x8x8xbf16>
    "tpu.trace_start"() <{level = 10 : i32, message = "bqd,bkd->bqk"}> : () -> ()
    %cst_20 = arith.constant dense<0.000000e+00> : vector<2x8x8xf32>
    %56 = tpu.matmul %54, %55, %cst_20 {dimension_numbers = #tpu.dot_dimension_numbers<[2], [2], [1], [1], [0, 0, 0, 1, 1, 1], [0], [0]>} : vector<2x8x8xbf16>, vector<2x8x8xbf16>, vector<2x8x8xf32> -> vector<2x8x8xf32>
    "tpu.trace_stop"() : () -> ()
    %57 = arith.addf %56, %12 : vector<2x8x8xf32>
    %cst_21 = arith.constant dense<0xFF800000> : vector<2x8xf32>
    %58 = vector.multi_reduction <maximumf>, %57, %cst_21 [2] : vector<2x8x8xf32> to vector<2x8xf32>
    %59 = vector.shape_cast %58 : vector<2x8xf32> to vector<2x8x1xf32>
    %60 = vector.broadcast %59 : vector<2x8x1xf32> to vector<2x8x8xf32>
    %61 = arith.subf %57, %60 : vector<2x8x8xf32>
    %62 = math.exp %61 : vector<2x8x8xf32>
    %cst_22 = arith.constant dense<0.000000e+00> : vector<2x8xf32>
    %63 = vector.multi_reduction <add>, %62, %cst_22 [2] : vector<2x8x8xf32> to vector<2x8xf32>
    %64 = vector.shape_cast %63 : vector<2x8xf32> to vector<2x8x1xf32>
    %65 = tpu.reciprocal %64 : vector<2x8x1xf32> -> vector<2x8x1xf32>
    %66 = vector.broadcast %65 : vector<2x8x1xf32> to vector<2x8x8xf32>
    %67 = arith.mulf %62, %66 : vector<2x8x8xf32>
    %68 = arith.truncf %67 : vector<2x8x8xf32> to vector<2x8x8xbf16>
    %69 = vector.extract_strided_slice %30 {offsets = [0, 0, 8], sizes = [2, 8, 8], strides = [1, 1, 1]} : vector<2x8x32xbf16> to vector<2x8x8xbf16>
    "tpu.trace_start"() <{level = 10 : i32, message = "bqk,bkd->bqd"}> : () -> ()
    %cst_23 = arith.constant dense<0.000000e+00> : vector<2x8x8xf32>
    %70 = tpu.matmul %68, %69, %cst_23 {dimension_numbers = #tpu.dot_dimension_numbers<[2], [1], [1], [2], [0, 0, 0, 1, 1, 2], [0], [0]>} : vector<2x8x8xbf16>, vector<2x8x8xbf16>, vector<2x8x8xf32> -> vector<2x8x8xf32>
    "tpu.trace_stop"() : () -> ()
    %71 = vector.shape_cast %70 : vector<2x8x8xf32> to vector<16x8xf32>
    %72 = arith.truncf %71 : vector<16x8xf32> to vector<16x8xbf16>
    %73 = vector.extract_strided_slice %24 {offsets = [8, 0], sizes = [8, 32], strides = [1, 1]} : vector<32x32xbf16> to vector<8x32xbf16>
    %cst_24 = arith.constant dense<0.000000e+00> : vector<16x32xf32>
    %74 = tpu.matmul %72, %73, %cst_24 {dimension_numbers = #tpu.dot_dimension_numbers<[1], [0], [0], [1], [0, 0, 1, 1], [], []>} : vector<16x8xbf16>, vector<8x32xbf16>, vector<16x32xf32> -> vector<16x32xf32>
    %75 = arith.addf %53, %74 : vector<16x32xf32>
    %76 = vector.extract_strided_slice %28 {offsets = [0, 0, 16], sizes = [2, 8, 8], strides = [1, 1, 1]} : vector<2x8x32xbf16> to vector<2x8x8xbf16>
    %77 = vector.extract_strided_slice %29 {offsets = [0, 0, 16], sizes = [2, 8, 8], strides = [1, 1, 1]} : vector<2x8x32xbf16> to vector<2x8x8xbf16>
    "tpu.trace_start"() <{level = 10 : i32, message = "bqd,bkd->bqk"}> : () -> ()
    %cst_25 = arith.constant dense<0.000000e+00> : vector<2x8x8xf32>
    %78 = tpu.matmul %76, %77, %cst_25 {dimension_numbers = #tpu.dot_dimension_numbers<[2], [2], [1], [1], [0, 0, 0, 1, 1, 1], [0], [0]>} : vector<2x8x8xbf16>, vector<2x8x8xbf16>, vector<2x8x8xf32> -> vector<2x8x8xf32>
    "tpu.trace_stop"() : () -> ()
    %79 = arith.addf %78, %12 : vector<2x8x8xf32>
    %cst_26 = arith.constant dense<0xFF800000> : vector<2x8xf32>
    %80 = vector.multi_reduction <maximumf>, %79, %cst_26 [2] : vector<2x8x8xf32> to vector<2x8xf32>
    %81 = vector.shape_cast %80 : vector<2x8xf32> to vector<2x8x1xf32>
    %82 = vector.broadcast %81 : vector<2x8x1xf32> to vector<2x8x8xf32>
    %83 = arith.subf %79, %82 : vector<2x8x8xf32>
    %84 = math.exp %83 : vector<2x8x8xf32>
    %cst_27 = arith.constant dense<0.000000e+00> : vector<2x8xf32>
    %85 = vector.multi_reduction <add>, %84, %cst_27 [2] : vector<2x8x8xf32> to vector<2x8xf32>
    %86 = vector.shape_cast %85 : vector<2x8xf32> to vector<2x8x1xf32>
    %87 = tpu.reciprocal %86 : vector<2x8x1xf32> -> vector<2x8x1xf32>
    %88 = vector.broadcast %87 : vector<2x8x1xf32> to vector<2x8x8xf32>
    %89 = arith.mulf %84, %88 : vector<2x8x8xf32>
    %90 = arith.truncf %89 : vector<2x8x8xf32> to vector<2x8x8xbf16>
    %91 = vector.extract_strided_slice %30 {offsets = [0, 0, 16], sizes = [2, 8, 8], strides = [1, 1, 1]} : vector<2x8x32xbf16> to vector<2x8x8xbf16>
    "tpu.trace_start"() <{level = 10 : i32, message = "bqk,bkd->bqd"}> : () -> ()
    %cst_28 = arith.constant dense<0.000000e+00> : vector<2x8x8xf32>
    %92 = tpu.matmul %90, %91, %cst_28 {dimension_numbers = #tpu.dot_dimension_numbers<[2], [1], [1], [2], [0, 0, 0, 1, 1, 2], [0], [0]>} : vector<2x8x8xbf16>, vector<2x8x8xbf16>, vector<2x8x8xf32> -> vector<2x8x8xf32>
    "tpu.trace_stop"() : () -> ()
    %93 = vector.shape_cast %92 : vector<2x8x8xf32> to vector<16x8xf32>
    %94 = arith.truncf %93 : vector<16x8xf32> to vector<16x8xbf16>
    %95 = vector.extract_strided_slice %24 {offsets = [16, 0], sizes = [8, 32], strides = [1, 1]} : vector<32x32xbf16> to vector<8x32xbf16>
    %cst_29 = arith.constant dense<0.000000e+00> : vector<16x32xf32>
    %96 = tpu.matmul %94, %95, %cst_29 {dimension_numbers = #tpu.dot_dimension_numbers<[1], [0], [0], [1], [0, 0, 1, 1], [], []>} : vector<16x8xbf16>, vector<8x32xbf16>, vector<16x32xf32> -> vector<16x32xf32>
    %97 = arith.addf %75, %96 : vector<16x32xf32>
    %98 = vector.extract_strided_slice %28 {offsets = [0, 0, 24], sizes = [2, 8, 8], strides = [1, 1, 1]} : vector<2x8x32xbf16> to vector<2x8x8xbf16>
    %99 = vector.extract_strided_slice %29 {offsets = [0, 0, 24], sizes = [2, 8, 8], strides = [1, 1, 1]} : vector<2x8x32xbf16> to vector<2x8x8xbf16>
    "tpu.trace_start"() <{level = 10 : i32, message = "bqd,bkd->bqk"}> : () -> ()
    %cst_30 = arith.constant dense<0.000000e+00> : vector<2x8x8xf32>
    %100 = tpu.matmul %98, %99, %cst_30 {dimension_numbers = #tpu.dot_dimension_numbers<[2], [2], [1], [1], [0, 0, 0, 1, 1, 1], [0], [0]>} : vector<2x8x8xbf16>, vector<2x8x8xbf16>, vector<2x8x8xf32> -> vector<2x8x8xf32>
    "tpu.trace_stop"() : () -> ()
    %101 = arith.addf %100, %12 : vector<2x8x8xf32>
    %cst_31 = arith.constant dense<0xFF800000> : vector<2x8xf32>
    %102 = vector.multi_reduction <maximumf>, %101, %cst_31 [2] : vector<2x8x8xf32> to vector<2x8xf32>
    %103 = vector.shape_cast %102 : vector<2x8xf32> to vector<2x8x1xf32>
    %104 = vector.broadcast %103 : vector<2x8x1xf32> to vector<2x8x8xf32>
    %105 = arith.subf %101, %104 : vector<2x8x8xf32>
    %106 = math.exp %105 : vector<2x8x8xf32>
    %cst_32 = arith.constant dense<0.000000e+00> : vector<2x8xf32>
    %107 = vector.multi_reduction <add>, %106, %cst_32 [2] : vector<2x8x8xf32> to vector<2x8xf32>
    %108 = vector.shape_cast %107 : vector<2x8xf32> to vector<2x8x1xf32>
    %109 = tpu.reciprocal %108 : vector<2x8x1xf32> -> vector<2x8x1xf32>
    %110 = vector.broadcast %109 : vector<2x8x1xf32> to vector<2x8x8xf32>
    %111 = arith.mulf %106, %110 : vector<2x8x8xf32>
    %112 = arith.truncf %111 : vector<2x8x8xf32> to vector<2x8x8xbf16>
    %113 = vector.extract_strided_slice %30 {offsets = [0, 0, 24], sizes = [2, 8, 8], strides = [1, 1, 1]} : vector<2x8x32xbf16> to vector<2x8x8xbf16>
    "tpu.trace_start"() <{level = 10 : i32, message = "bqk,bkd->bqd"}> : () -> ()
    %cst_33 = arith.constant dense<0.000000e+00> : vector<2x8x8xf32>
    %114 = tpu.matmul %112, %113, %cst_33 {dimension_numbers = #tpu.dot_dimension_numbers<[2], [1], [1], [2], [0, 0, 0, 1, 1, 2], [0], [0]>} : vector<2x8x8xbf16>, vector<2x8x8xbf16>, vector<2x8x8xf32> -> vector<2x8x8xf32>
    "tpu.trace_stop"() : () -> ()
    %115 = vector.shape_cast %114 : vector<2x8x8xf32> to vector<16x8xf32>
    %116 = arith.truncf %115 : vector<16x8xf32> to vector<16x8xbf16>
    %117 = vector.extract_strided_slice %24 {offsets = [24, 0], sizes = [8, 32], strides = [1, 1]} : vector<32x32xbf16> to vector<8x32xbf16>
    %cst_34 = arith.constant dense<0.000000e+00> : vector<16x32xf32>
    %118 = tpu.matmul %116, %117, %cst_34 {dimension_numbers = #tpu.dot_dimension_numbers<[1], [0], [0], [1], [0, 0, 1, 1], [], []>} : vector<16x8xbf16>, vector<8x32xbf16>, vector<16x32xf32> -> vector<16x32xf32>
    %119 = arith.addf %97, %118 : vector<16x32xf32>
    %120 = vector.broadcast %25 : vector<1x32xf32> to vector<16x32xf32>
    %121 = arith.addf %119, %120 : vector<16x32xf32>
    %122 = arith.addf %13, %121 : vector<16x32xf32>
    %c3 = arith.constant 3 : index
    %c0_35 = arith.constant 0 : index
    %123 = vector.load %arg9[%c3, %c0_35] : memref<48x128xf32, #tpu.memory_space<vmem>>, vector<1x32xf32>
    %c4 = arith.constant 4 : index
    %c0_36 = arith.constant 0 : index
    %124 = vector.load %arg9[%c4, %c0_36] : memref<48x128xf32, #tpu.memory_space<vmem>>, vector<1x32xf32>
    %cst_37 = arith.constant dense<0.000000e+00> : vector<16xf32>
    %125 = vector.multi_reduction <add>, %122, %cst_37 [1] : vector<16x32xf32> to vector<16xf32>
    %126 = vector.shape_cast %125 : vector<16xf32> to vector<16x1xf32>
    %cst_38 = arith.constant 3.200000e+01 : f32
    %127 = vector.broadcast %cst_38 : f32 to vector<16x1xf32>
    %128 = arith.divf %126, %127 : vector<16x1xf32>
    %129 = vector.broadcast %128 : vector<16x1xf32> to vector<16x32xf32>
    %130 = arith.subf %122, %129 : vector<16x32xf32>
    %131 = arith.mulf %130, %130 : vector<16x32xf32>
    %cst_39 = arith.constant dense<0.000000e+00> : vector<16xf32>
    %132 = vector.multi_reduction <add>, %131, %cst_39 [1] : vector<16x32xf32> to vector<16xf32>
    %133 = vector.shape_cast %132 : vector<16xf32> to vector<16x1xf32>
    %cst_40 = arith.constant 3.200000e+01 : f32
    %134 = vector.broadcast %cst_40 : f32 to vector<16x1xf32>
    %135 = arith.divf %133, %134 : vector<16x1xf32>
    %cst_41 = arith.constant 9.99999997E-7 : f32
    %136 = vector.broadcast %cst_41 : f32 to vector<16x1xf32>
    %137 = arith.addf %135, %136 : vector<16x1xf32>
    %138 = math.rsqrt %137 : vector<16x1xf32>
    %139 = vector.broadcast %138 : vector<16x1xf32> to vector<16x32xf32>
    %140 = arith.mulf %130, %139 : vector<16x32xf32>
    %141 = vector.broadcast %123 : vector<1x32xf32> to vector<16x32xf32>
    %142 = arith.mulf %140, %141 : vector<16x32xf32>
    %143 = vector.broadcast %124 : vector<1x32xf32> to vector<16x32xf32>
    %144 = arith.addf %142, %143 : vector<16x32xf32>
    %c160 = arith.constant 160 : index
    %c0_42 = arith.constant 0 : index
    %145 = vector.load %arg8[%c160, %c0_42] : memref<928x128xbf16, #tpu.memory_space<vmem>>, vector<32x64xbf16>
    %c5 = arith.constant 5 : index
    %c0_43 = arith.constant 0 : index
    %146 = vector.load %arg9[%c5, %c0_43] : memref<48x128xf32, #tpu.memory_space<vmem>>, vector<1x64xf32>
    %147 = arith.truncf %144 : vector<16x32xf32> to vector<16x32xbf16>
    %cst_44 = arith.constant dense<0.000000e+00> : vector<16x64xf32>
    %148 = tpu.matmul %147, %145, %cst_44 {dimension_numbers = #tpu.dot_dimension_numbers<[1], [0], [0], [1], [0, 0, 1, 1], [], []>} : vector<16x32xbf16>, vector<32x64xbf16>, vector<16x64xf32> -> vector<16x64xf32>
    %149 = vector.broadcast %146 : vector<1x64xf32> to vector<16x64xf32>
    %150 = arith.addf %148, %149 : vector<16x64xf32>
    %cst_45 = arith.constant 0.000000e+00 : f32
    %151 = vector.broadcast %cst_45 : f32 to vector<16x64xf32>
    %152 = arith.maximumf %150, %151 : vector<16x64xf32>
    %c192 = arith.constant 192 : index
    %c0_46 = arith.constant 0 : index
    %153 = vector.load %arg8[%c192, %c0_46] : memref<928x128xbf16, #tpu.memory_space<vmem>>, vector<64x32xbf16>
    %c6 = arith.constant 6 : index
    %c0_47 = arith.constant 0 : index
    %154 = vector.load %arg9[%c6, %c0_47] : memref<48x128xf32, #tpu.memory_space<vmem>>, vector<1x32xf32>
    %155 = arith.truncf %152 : vector<16x64xf32> to vector<16x64xbf16>
    %cst_48 = arith.constant dense<0.000000e+00> : vector<16x32xf32>
    %156 = tpu.matmul %155, %153, %cst_48 {dimension_numbers = #tpu.dot_dimension_numbers<[1], [0], [0], [1], [0, 0, 1, 1], [], []>} : vector<16x64xbf16>, vector<64x32xbf16>, vector<16x32xf32> -> vector<16x32xf32>
    %157 = vector.broadcast %154 : vector<1x32xf32> to vector<16x32xf32>
    %158 = arith.addf %156, %157 : vector<16x32xf32>
    %159 = arith.addf %144, %158 : vector<16x32xf32>
    %c7 = arith.constant 7 : index
    %c0_49 = arith.constant 0 : index
    %160 = vector.load %arg9[%c7, %c0_49] : memref<48x128xf32, #tpu.memory_space<vmem>>, vector<1x32xf32>
    %c8 = arith.constant 8 : index
    %c0_50 = arith.constant 0 : index
    %161 = vector.load %arg9[%c8, %c0_50] : memref<48x128xf32, #tpu.memory_space<vmem>>, vector<1x32xf32>
    %cst_51 = arith.constant dense<0.000000e+00> : vector<16xf32>
    %162 = vector.multi_reduction <add>, %159, %cst_51 [1] : vector<16x32xf32> to vector<16xf32>
    %163 = vector.shape_cast %162 : vector<16xf32> to vector<16x1xf32>
    %cst_52 = arith.constant 3.200000e+01 : f32
    %164 = vector.broadcast %cst_52 : f32 to vector<16x1xf32>
    %165 = arith.divf %163, %164 : vector<16x1xf32>
    %166 = vector.broadcast %165 : vector<16x1xf32> to vector<16x32xf32>
    %167 = arith.subf %159, %166 : vector<16x32xf32>
    %168 = arith.mulf %167, %167 : vector<16x32xf32>
    %cst_53 = arith.constant dense<0.000000e+00> : vector<16xf32>
    %169 = vector.multi_reduction <add>, %168, %cst_53 [1] : vector<16x32xf32> to vector<16xf32>
    %170 = vector.shape_cast %169 : vector<16xf32> to vector<16x1xf32>
    %cst_54 = arith.constant 3.200000e+01 : f32
    %171 = vector.broadcast %cst_54 : f32 to vector<16x1xf32>
    %172 = arith.divf %170, %171 : vector<16x1xf32>
    %cst_55 = arith.constant 9.99999997E-7 : f32
    %173 = vector.broadcast %cst_55 : f32 to vector<16x1xf32>
    %174 = arith.addf %172, %173 : vector<16x1xf32>
    %175 = math.rsqrt %174 : vector<16x1xf32>
    %176 = vector.broadcast %175 : vector<16x1xf32> to vector<16x32xf32>
    %177 = arith.mulf %167, %176 : vector<16x32xf32>
    %178 = vector.broadcast %160 : vector<1x32xf32> to vector<16x32xf32>
    %179 = arith.mulf %177, %178 : vector<16x32xf32>
    %180 = vector.broadcast %161 : vector<1x32xf32> to vector<16x32xf32>
    %181 = arith.addf %179, %180 : vector<16x32xf32>
    %182 = vector.shape_cast %181 : vector<16x32xf32> to vector<2x8x32xf32>
    %183 = vector.shape_cast %182 : vector<2x8x32xf32> to vector<16x32xf32>
    %c256 = arith.constant 256 : index
    %c0_56 = arith.constant 0 : index
    %184 = vector.load %arg8[%c256, %c0_56] : memref<928x128xbf16, #tpu.memory_space<vmem>>, vector<32x96xbf16>
    %c9 = arith.constant 9 : index
    %c0_57 = arith.constant 0 : index
    %185 = vector.load %arg9[%c9, %c0_57] : memref<48x128xf32, #tpu.memory_space<vmem>>, vector<1x96xf32>
    %186 = arith.truncf %183 : vector<16x32xf32> to vector<16x32xbf16>
    %cst_58 = arith.constant dense<0.000000e+00> : vector<16x96xf32>
    %187 = tpu.matmul %186, %184, %cst_58 {dimension_numbers = #tpu.dot_dimension_numbers<[1], [0], [0], [1], [0, 0, 1, 1], [], []>} : vector<16x32xbf16>, vector<32x96xbf16>, vector<16x96xf32> -> vector<16x96xf32>
    %188 = vector.broadcast %185 : vector<1x96xf32> to vector<16x96xf32>
    %189 = arith.addf %187, %188 : vector<16x96xf32>
    %190 = vector.shape_cast %189 : vector<16x96xf32> to vector<2x8x96xf32>
    %191 = vector.extract_strided_slice %190 {offsets = [0, 0, 0], sizes = [2, 8, 32], strides = [1, 1, 1]} : vector<2x8x96xf32> to vector<2x8x32xf32>
    %192 = vector.extract_strided_slice %190 {offsets = [0, 0, 32], sizes = [2, 8, 32], strides = [1, 1, 1]} : vector<2x8x96xf32> to vector<2x8x32xf32>
    %193 = vector.extract_strided_slice %190 {offsets = [0, 0, 64], sizes = [2, 8, 32], strides = [1, 1, 1]} : vector<2x8x96xf32> to vector<2x8x32xf32>
    %c288 = arith.constant 288 : index
    %c0_59 = arith.constant 0 : index
    %194 = vector.load %arg8[%c288, %c0_59] : memref<928x128xbf16, #tpu.memory_space<vmem>>, vector<32x32xbf16>
    %c10 = arith.constant 10 : index
    %c0_60 = arith.constant 0 : index
    %195 = vector.load %arg9[%c10, %c0_60] : memref<48x128xf32, #tpu.memory_space<vmem>>, vector<1x32xf32>
    %cst_61 = arith.constant 0.353553385 : f32
    %196 = vector.broadcast %cst_61 : f32 to vector<2x8x32xf32>
    %197 = arith.mulf %191, %196 : vector<2x8x32xf32>
    %198 = arith.truncf %197 : vector<2x8x32xf32> to vector<2x8x32xbf16>
    %199 = arith.truncf %192 : vector<2x8x32xf32> to vector<2x8x32xbf16>
    %200 = arith.truncf %193 : vector<2x8x32xf32> to vector<2x8x32xbf16>
    %cst_62 = arith.constant 0.000000e+00 : f32
    %201 = vector.broadcast %cst_62 : f32 to vector<16x32xf32>
    %202 = vector.extract_strided_slice %198 {offsets = [0, 0, 0], sizes = [2, 8, 8], strides = [1, 1, 1]} : vector<2x8x32xbf16> to vector<2x8x8xbf16>
    %203 = vector.extract_strided_slice %199 {offsets = [0, 0, 0], sizes = [2, 8, 8], strides = [1, 1, 1]} : vector<2x8x32xbf16> to vector<2x8x8xbf16>
    "tpu.trace_start"() <{level = 10 : i32, message = "bqd,bkd->bqk"}> : () -> ()
    %cst_63 = arith.constant dense<0.000000e+00> : vector<2x8x8xf32>
    %204 = tpu.matmul %202, %203, %cst_63 {dimension_numbers = #tpu.dot_dimension_numbers<[2], [2], [1], [1], [0, 0, 0, 1, 1, 1], [0], [0]>} : vector<2x8x8xbf16>, vector<2x8x8xbf16>, vector<2x8x8xf32> -> vector<2x8x8xf32>
    "tpu.trace_stop"() : () -> ()
    %205 = arith.addf %204, %12 : vector<2x8x8xf32>
    %cst_64 = arith.constant dense<0xFF800000> : vector<2x8xf32>
    %206 = vector.multi_reduction <maximumf>, %205, %cst_64 [2] : vector<2x8x8xf32> to vector<2x8xf32>
    %207 = vector.shape_cast %206 : vector<2x8xf32> to vector<2x8x1xf32>
    %208 = vector.broadcast %207 : vector<2x8x1xf32> to vector<2x8x8xf32>
    %209 = arith.subf %205, %208 : vector<2x8x8xf32>
    %210 = math.exp %209 : vector<2x8x8xf32>
    %cst_65 = arith.constant dense<0.000000e+00> : vector<2x8xf32>
    %211 = vector.multi_reduction <add>, %210, %cst_65 [2] : vector<2x8x8xf32> to vector<2x8xf32>
    %212 = vector.shape_cast %211 : vector<2x8xf32> to vector<2x8x1xf32>
    %213 = tpu.reciprocal %212 : vector<2x8x1xf32> -> vector<2x8x1xf32>
    %214 = vector.broadcast %213 : vector<2x8x1xf32> to vector<2x8x8xf32>
    %215 = arith.mulf %210, %214 : vector<2x8x8xf32>
    %216 = arith.truncf %215 : vector<2x8x8xf32> to vector<2x8x8xbf16>
    %217 = vector.extract_strided_slice %200 {offsets = [0, 0, 0], sizes = [2, 8, 8], strides = [1, 1, 1]} : vector<2x8x32xbf16> to vector<2x8x8xbf16>
    "tpu.trace_start"() <{level = 10 : i32, message = "bqk,bkd->bqd"}> : () -> ()
    %cst_66 = arith.constant dense<0.000000e+00> : vector<2x8x8xf32>
    %218 = tpu.matmul %216, %217, %cst_66 {dimension_numbers = #tpu.dot_dimension_numbers<[2], [1], [1], [2], [0, 0, 0, 1, 1, 2], [0], [0]>} : vector<2x8x8xbf16>, vector<2x8x8xbf16>, vector<2x8x8xf32> -> vector<2x8x8xf32>
    "tpu.trace_stop"() : () -> ()
    %219 = vector.shape_cast %218 : vector<2x8x8xf32> to vector<16x8xf32>
    %220 = arith.truncf %219 : vector<16x8xf32> to vector<16x8xbf16>
    %221 = vector.extract_strided_slice %194 {offsets = [0, 0], sizes = [8, 32], strides = [1, 1]} : vector<32x32xbf16> to vector<8x32xbf16>
    %cst_67 = arith.constant dense<0.000000e+00> : vector<16x32xf32>
    %222 = tpu.matmul %220, %221, %cst_67 {dimension_numbers = #tpu.dot_dimension_numbers<[1], [0], [0], [1], [0, 0, 1, 1], [], []>} : vector<16x8xbf16>, vector<8x32xbf16>, vector<16x32xf32> -> vector<16x32xf32>
    %223 = arith.addf %201, %222 : vector<16x32xf32>
    %224 = vector.extract_strided_slice %198 {offsets = [0, 0, 8], sizes = [2, 8, 8], strides = [1, 1, 1]} : vector<2x8x32xbf16> to vector<2x8x8xbf16>
    %225 = vector.extract_strided_slice %199 {offsets = [0, 0, 8], sizes = [2, 8, 8], strides = [1, 1, 1]} : vector<2x8x32xbf16> to vector<2x8x8xbf16>
    "tpu.trace_start"() <{level = 10 : i32, message = "bqd,bkd->bqk"}> : () -> ()
    %cst_68 = arith.constant dense<0.000000e+00> : vector<2x8x8xf32>
    %226 = tpu.matmul %224, %225, %cst_68 {dimension_numbers = #tpu.dot_dimension_numbers<[2], [2], [1], [1], [0, 0, 0, 1, 1, 1], [0], [0]>} : vector<2x8x8xbf16>, vector<2x8x8xbf16>, vector<2x8x8xf32> -> vector<2x8x8xf32>
    "tpu.trace_stop"() : () -> ()
    %227 = arith.addf %226, %12 : vector<2x8x8xf32>
    %cst_69 = arith.constant dense<0xFF800000> : vector<2x8xf32>
    %228 = vector.multi_reduction <maximumf>, %227, %cst_69 [2] : vector<2x8x8xf32> to vector<2x8xf32>
    %229 = vector.shape_cast %228 : vector<2x8xf32> to vector<2x8x1xf32>
    %230 = vector.broadcast %229 : vector<2x8x1xf32> to vector<2x8x8xf32>
    %231 = arith.subf %227, %230 : vector<2x8x8xf32>
    %232 = math.exp %231 : vector<2x8x8xf32>
    %cst_70 = arith.constant dense<0.000000e+00> : vector<2x8xf32>
    %233 = vector.multi_reduction <add>, %232, %cst_70 [2] : vector<2x8x8xf32> to vector<2x8xf32>
    %234 = vector.shape_cast %233 : vector<2x8xf32> to vector<2x8x1xf32>
    %235 = tpu.reciprocal %234 : vector<2x8x1xf32> -> vector<2x8x1xf32>
    %236 = vector.broadcast %235 : vector<2x8x1xf32> to vector<2x8x8xf32>
    %237 = arith.mulf %232, %236 : vector<2x8x8xf32>
    %238 = arith.truncf %237 : vector<2x8x8xf32> to vector<2x8x8xbf16>
    %239 = vector.extract_strided_slice %200 {offsets = [0, 0, 8], sizes = [2, 8, 8], strides = [1, 1, 1]} : vector<2x8x32xbf16> to vector<2x8x8xbf16>
    "tpu.trace_start"() <{level = 10 : i32, message = "bqk,bkd->bqd"}> : () -> ()
    %cst_71 = arith.constant dense<0.000000e+00> : vector<2x8x8xf32>
    %240 = tpu.matmul %238, %239, %cst_71 {dimension_numbers = #tpu.dot_dimension_numbers<[2], [1], [1], [2], [0, 0, 0, 1, 1, 2], [0], [0]>} : vector<2x8x8xbf16>, vector<2x8x8xbf16>, vector<2x8x8xf32> -> vector<2x8x8xf32>
    "tpu.trace_stop"() : () -> ()
    %241 = vector.shape_cast %240 : vector<2x8x8xf32> to vector<16x8xf32>
    %242 = arith.truncf %241 : vector<16x8xf32> to vector<16x8xbf16>
    %243 = vector.extract_strided_slice %194 {offsets = [8, 0], sizes = [8, 32], strides = [1, 1]} : vector<32x32xbf16> to vector<8x32xbf16>
    %cst_72 = arith.constant dense<0.000000e+00> : vector<16x32xf32>
    %244 = tpu.matmul %242, %243, %cst_72 {dimension_numbers = #tpu.dot_dimension_numbers<[1], [0], [0], [1], [0, 0, 1, 1], [], []>} : vector<16x8xbf16>, vector<8x32xbf16>, vector<16x32xf32> -> vector<16x32xf32>
    %245 = arith.addf %223, %244 : vector<16x32xf32>
    %246 = vector.extract_strided_slice %198 {offsets = [0, 0, 16], sizes = [2, 8, 8], strides = [1, 1, 1]} : vector<2x8x32xbf16> to vector<2x8x8xbf16>
    %247 = vector.extract_strided_slice %199 {offsets = [0, 0, 16], sizes = [2, 8, 8], strides = [1, 1, 1]} : vector<2x8x32xbf16> to vector<2x8x8xbf16>
    "tpu.trace_start"() <{level = 10 : i32, message = "bqd,bkd->bqk"}> : () -> ()
    %cst_73 = arith.constant dense<0.000000e+00> : vector<2x8x8xf32>
    %248 = tpu.matmul %246, %247, %cst_73 {dimension_numbers = #tpu.dot_dimension_numbers<[2], [2], [1], [1], [0, 0, 0, 1, 1, 1], [0], [0]>} : vector<2x8x8xbf16>, vector<2x8x8xbf16>, vector<2x8x8xf32> -> vector<2x8x8xf32>
    "tpu.trace_stop"() : () -> ()
    %249 = arith.addf %248, %12 : vector<2x8x8xf32>
    %cst_74 = arith.constant dense<0xFF800000> : vector<2x8xf32>
    %250 = vector.multi_reduction <maximumf>, %249, %cst_74 [2] : vector<2x8x8xf32> to vector<2x8xf32>
    %251 = vector.shape_cast %250 : vector<2x8xf32> to vector<2x8x1xf32>
    %252 = vector.broadcast %251 : vector<2x8x1xf32> to vector<2x8x8xf32>
    %253 = arith.subf %249, %252 : vector<2x8x8xf32>
    %254 = math.exp %253 : vector<2x8x8xf32>
    %cst_75 = arith.constant dense<0.000000e+00> : vector<2x8xf32>
    %255 = vector.multi_reduction <add>, %254, %cst_75 [2] : vector<2x8x8xf32> to vector<2x8xf32>
    %256 = vector.shape_cast %255 : vector<2x8xf32> to vector<2x8x1xf32>
    %257 = tpu.reciprocal %256 : vector<2x8x1xf32> -> vector<2x8x1xf32>
    %258 = vector.broadcast %257 : vector<2x8x1xf32> to vector<2x8x8xf32>
    %259 = arith.mulf %254, %258 : vector<2x8x8xf32>
    %260 = arith.truncf %259 : vector<2x8x8xf32> to vector<2x8x8xbf16>
    %261 = vector.extract_strided_slice %200 {offsets = [0, 0, 16], sizes = [2, 8, 8], strides = [1, 1, 1]} : vector<2x8x32xbf16> to vector<2x8x8xbf16>
    "tpu.trace_start"() <{level = 10 : i32, message = "bqk,bkd->bqd"}> : () -> ()
    %cst_76 = arith.constant dense<0.000000e+00> : vector<2x8x8xf32>
    %262 = tpu.matmul %260, %261, %cst_76 {dimension_numbers = #tpu.dot_dimension_numbers<[2], [1], [1], [2], [0, 0, 0, 1, 1, 2], [0], [0]>} : vector<2x8x8xbf16>, vector<2x8x8xbf16>, vector<2x8x8xf32> -> vector<2x8x8xf32>
    "tpu.trace_stop"() : () -> ()
    %263 = vector.shape_cast %262 : vector<2x8x8xf32> to vector<16x8xf32>
    %264 = arith.truncf %263 : vector<16x8xf32> to vector<16x8xbf16>
    %265 = vector.extract_strided_slice %194 {offsets = [16, 0], sizes = [8, 32], strides = [1, 1]} : vector<32x32xbf16> to vector<8x32xbf16>
    %cst_77 = arith.constant dense<0.000000e+00> : vector<16x32xf32>
    %266 = tpu.matmul %264, %265, %cst_77 {dimension_numbers = #tpu.dot_dimension_numbers<[1], [0], [0], [1], [0, 0, 1, 1], [], []>} : vector<16x8xbf16>, vector<8x32xbf16>, vector<16x32xf32> -> vector<16x32xf32>
    %267 = arith.addf %245, %266 : vector<16x32xf32>
    %268 = vector.extract_strided_slice %198 {offsets = [0, 0, 24], sizes = [2, 8, 8], strides = [1, 1, 1]} : vector<2x8x32xbf16> to vector<2x8x8xbf16>
    %269 = vector.extract_strided_slice %199 {offsets = [0, 0, 24], sizes = [2, 8, 8], strides = [1, 1, 1]} : vector<2x8x32xbf16> to vector<2x8x8xbf16>
    "tpu.trace_start"() <{level = 10 : i32, message = "bqd,bkd->bqk"}> : () -> ()
    %cst_78 = arith.constant dense<0.000000e+00> : vector<2x8x8xf32>
    %270 = tpu.matmul %268, %269, %cst_78 {dimension_numbers = #tpu.dot_dimension_numbers<[2], [2], [1], [1], [0, 0, 0, 1, 1, 1], [0], [0]>} : vector<2x8x8xbf16>, vector<2x8x8xbf16>, vector<2x8x8xf32> -> vector<2x8x8xf32>
    "tpu.trace_stop"() : () -> ()
    %271 = arith.addf %270, %12 : vector<2x8x8xf32>
    %cst_79 = arith.constant dense<0xFF800000> : vector<2x8xf32>
    %272 = vector.multi_reduction <maximumf>, %271, %cst_79 [2] : vector<2x8x8xf32> to vector<2x8xf32>
    %273 = vector.shape_cast %272 : vector<2x8xf32> to vector<2x8x1xf32>
    %274 = vector.broadcast %273 : vector<2x8x1xf32> to vector<2x8x8xf32>
    %275 = arith.subf %271, %274 : vector<2x8x8xf32>
    %276 = math.exp %275 : vector<2x8x8xf32>
    %cst_80 = arith.constant dense<0.000000e+00> : vector<2x8xf32>
    %277 = vector.multi_reduction <add>, %276, %cst_80 [2] : vector<2x8x8xf32> to vector<2x8xf32>
    %278 = vector.shape_cast %277 : vector<2x8xf32> to vector<2x8x1xf32>
    %279 = tpu.reciprocal %278 : vector<2x8x1xf32> -> vector<2x8x1xf32>
    %280 = vector.broadcast %279 : vector<2x8x1xf32> to vector<2x8x8xf32>
    %281 = arith.mulf %276, %280 : vector<2x8x8xf32>
    %282 = arith.truncf %281 : vector<2x8x8xf32> to vector<2x8x8xbf16>
    %283 = vector.extract_strided_slice %200 {offsets = [0, 0, 24], sizes = [2, 8, 8], strides = [1, 1, 1]} : vector<2x8x32xbf16> to vector<2x8x8xbf16>
    "tpu.trace_start"() <{level = 10 : i32, message = "bqk,bkd->bqd"}> : () -> ()
    %cst_81 = arith.constant dense<0.000000e+00> : vector<2x8x8xf32>
    %284 = tpu.matmul %282, %283, %cst_81 {dimension_numbers = #tpu.dot_dimension_numbers<[2], [1], [1], [2], [0, 0, 0, 1, 1, 2], [0], [0]>} : vector<2x8x8xbf16>, vector<2x8x8xbf16>, vector<2x8x8xf32> -> vector<2x8x8xf32>
    "tpu.trace_stop"() : () -> ()
    %285 = vector.shape_cast %284 : vector<2x8x8xf32> to vector<16x8xf32>
    %286 = arith.truncf %285 : vector<16x8xf32> to vector<16x8xbf16>
    %287 = vector.extract_strided_slice %194 {offsets = [24, 0], sizes = [8, 32], strides = [1, 1]} : vector<32x32xbf16> to vector<8x32xbf16>
    %cst_82 = arith.constant dense<0.000000e+00> : vector<16x32xf32>
    %288 = tpu.matmul %286, %287, %cst_82 {dimension_numbers = #tpu.dot_dimension_numbers<[1], [0], [0], [1], [0, 0, 1, 1], [], []>} : vector<16x8xbf16>, vector<8x32xbf16>, vector<16x32xf32> -> vector<16x32xf32>
    %289 = arith.addf %267, %288 : vector<16x32xf32>
    %290 = vector.broadcast %195 : vector<1x32xf32> to vector<16x32xf32>
    %291 = arith.addf %289, %290 : vector<16x32xf32>
    %292 = arith.addf %183, %291 : vector<16x32xf32>
    %c11 = arith.constant 11 : index
    %c0_83 = arith.constant 0 : index
    %293 = vector.load %arg9[%c11, %c0_83] : memref<48x128xf32, #tpu.memory_space<vmem>>, vector<1x32xf32>
    %c12 = arith.constant 12 : index
    %c0_84 = arith.constant 0 : index
    %294 = vector.load %arg9[%c12, %c0_84] : memref<48x128xf32, #tpu.memory_space<vmem>>, vector<1x32xf32>
    %cst_85 = arith.constant dense<0.000000e+00> : vector<16xf32>
    %295 = vector.multi_reduction <add>, %292, %cst_85 [1] : vector<16x32xf32> to vector<16xf32>
    %296 = vector.shape_cast %295 : vector<16xf32> to vector<16x1xf32>
    %cst_86 = arith.constant 3.200000e+01 : f32
    %297 = vector.broadcast %cst_86 : f32 to vector<16x1xf32>
    %298 = arith.divf %296, %297 : vector<16x1xf32>
    %299 = vector.broadcast %298 : vector<16x1xf32> to vector<16x32xf32>
    %300 = arith.subf %292, %299 : vector<16x32xf32>
    %301 = arith.mulf %300, %300 : vector<16x32xf32>
    %cst_87 = arith.constant dense<0.000000e+00> : vector<16xf32>
    %302 = vector.multi_reduction <add>, %301, %cst_87 [1] : vector<16x32xf32> to vector<16xf32>
    %303 = vector.shape_cast %302 : vector<16xf32> to vector<16x1xf32>
    %cst_88 = arith.constant 3.200000e+01 : f32
    %304 = vector.broadcast %cst_88 : f32 to vector<16x1xf32>
    %305 = arith.divf %303, %304 : vector<16x1xf32>
    %cst_89 = arith.constant 9.99999997E-7 : f32
    %306 = vector.broadcast %cst_89 : f32 to vector<16x1xf32>
    %307 = arith.addf %305, %306 : vector<16x1xf32>
    %308 = math.rsqrt %307 : vector<16x1xf32>
    %309 = vector.broadcast %308 : vector<16x1xf32> to vector<16x32xf32>
    %310 = arith.mulf %300, %309 : vector<16x32xf32>
    %311 = vector.broadcast %293 : vector<1x32xf32> to vector<16x32xf32>
    %312 = arith.mulf %310, %311 : vector<16x32xf32>
    %313 = vector.broadcast %294 : vector<1x32xf32> to vector<16x32xf32>
    %314 = arith.addf %312, %313 : vector<16x32xf32>
    %c320 = arith.constant 320 : index
    %c0_90 = arith.constant 0 : index
    %315 = vector.load %arg8[%c320, %c0_90] : memref<928x128xbf16, #tpu.memory_space<vmem>>, vector<32x64xbf16>
    %c13 = arith.constant 13 : index
    %c0_91 = arith.constant 0 : index
    %316 = vector.load %arg9[%c13, %c0_91] : memref<48x128xf32, #tpu.memory_space<vmem>>, vector<1x64xf32>
    %317 = arith.truncf %314 : vector<16x32xf32> to vector<16x32xbf16>
    %cst_92 = arith.constant dense<0.000000e+00> : vector<16x64xf32>
    %318 = tpu.matmul %317, %315, %cst_92 {dimension_numbers = #tpu.dot_dimension_numbers<[1], [0], [0], [1], [0, 0, 1, 1], [], []>} : vector<16x32xbf16>, vector<32x64xbf16>, vector<16x64xf32> -> vector<16x64xf32>
    %319 = vector.broadcast %316 : vector<1x64xf32> to vector<16x64xf32>
    %320 = arith.addf %318, %319 : vector<16x64xf32>
    %cst_93 = arith.constant 0.000000e+00 : f32
    %321 = vector.broadcast %cst_93 : f32 to vector<16x64xf32>
    %322 = arith.maximumf %320, %321 : vector<16x64xf32>
    %c352 = arith.constant 352 : index
    %c0_94 = arith.constant 0 : index
    %323 = vector.load %arg8[%c352, %c0_94] : memref<928x128xbf16, #tpu.memory_space<vmem>>, vector<64x32xbf16>
    %c14 = arith.constant 14 : index
    %c0_95 = arith.constant 0 : index
    %324 = vector.load %arg9[%c14, %c0_95] : memref<48x128xf32, #tpu.memory_space<vmem>>, vector<1x32xf32>
    %325 = arith.truncf %322 : vector<16x64xf32> to vector<16x64xbf16>
    %cst_96 = arith.constant dense<0.000000e+00> : vector<16x32xf32>
    %326 = tpu.matmul %325, %323, %cst_96 {dimension_numbers = #tpu.dot_dimension_numbers<[1], [0], [0], [1], [0, 0, 1, 1], [], []>} : vector<16x64xbf16>, vector<64x32xbf16>, vector<16x32xf32> -> vector<16x32xf32>
    %327 = vector.broadcast %324 : vector<1x32xf32> to vector<16x32xf32>
    %328 = arith.addf %326, %327 : vector<16x32xf32>
    %329 = arith.addf %314, %328 : vector<16x32xf32>
    %c15 = arith.constant 15 : index
    %c0_97 = arith.constant 0 : index
    %330 = vector.load %arg9[%c15, %c0_97] : memref<48x128xf32, #tpu.memory_space<vmem>>, vector<1x32xf32>
    %c16 = arith.constant 16 : index
    %c0_98 = arith.constant 0 : index
    %331 = vector.load %arg9[%c16, %c0_98] : memref<48x128xf32, #tpu.memory_space<vmem>>, vector<1x32xf32>
    %cst_99 = arith.constant dense<0.000000e+00> : vector<16xf32>
    %332 = vector.multi_reduction <add>, %329, %cst_99 [1] : vector<16x32xf32> to vector<16xf32>
    %333 = vector.shape_cast %332 : vector<16xf32> to vector<16x1xf32>
    %cst_100 = arith.constant 3.200000e+01 : f32
    %334 = vector.broadcast %cst_100 : f32 to vector<16x1xf32>
    %335 = arith.divf %333, %334 : vector<16x1xf32>
    %336 = vector.broadcast %335 : vector<16x1xf32> to vector<16x32xf32>
    %337 = arith.subf %329, %336 : vector<16x32xf32>
    %338 = arith.mulf %337, %337 : vector<16x32xf32>
    %cst_101 = arith.constant dense<0.000000e+00> : vector<16xf32>
    %339 = vector.multi_reduction <add>, %338, %cst_101 [1] : vector<16x32xf32> to vector<16xf32>
    %340 = vector.shape_cast %339 : vector<16xf32> to vector<16x1xf32>
    %cst_102 = arith.constant 3.200000e+01 : f32
    %341 = vector.broadcast %cst_102 : f32 to vector<16x1xf32>
    %342 = arith.divf %340, %341 : vector<16x1xf32>
    %cst_103 = arith.constant 9.99999997E-7 : f32
    %343 = vector.broadcast %cst_103 : f32 to vector<16x1xf32>
    %344 = arith.addf %342, %343 : vector<16x1xf32>
    %345 = math.rsqrt %344 : vector<16x1xf32>
    %346 = vector.broadcast %345 : vector<16x1xf32> to vector<16x32xf32>
    %347 = arith.mulf %337, %346 : vector<16x32xf32>
    %348 = vector.broadcast %330 : vector<1x32xf32> to vector<16x32xf32>
    %349 = arith.mulf %347, %348 : vector<16x32xf32>
    %350 = vector.broadcast %331 : vector<1x32xf32> to vector<16x32xf32>
    %351 = arith.addf %349, %350 : vector<16x32xf32>
    %352 = vector.shape_cast %351 : vector<16x32xf32> to vector<2x8x32xf32>
    %c0_104 = arith.constant 0 : index
    %c0_105 = arith.constant 0 : index
    %353 = vector.load %arg2[%c0_104, %c0_105] : memref<16x1xi32, #tpu.memory_space<vmem>>, vector<16x1xi32>
    %354 = tpu.iota {dimensions = array<i32: 1>} : vector<16x64xi32>
    %355 = vector.broadcast %353 : vector<16x1xi32> to vector<16x64xi32>
    %356 = arith.cmpi eq, %354, %355 : vector<16x64xi32>
    %357 = arith.extui %356 : vector<16x64xi1> to vector<16x64xi32>
    %358 = arith.sitofp %357 : vector<16x64xi32> to vector<16x64xf32>
    %359 = arith.truncf %358 : vector<16x64xf32> to vector<16x64xbf16>
    %c0_106 = arith.constant 0 : index
    %c0_107 = arith.constant 0 : index
    %360 = vector.load %arg8[%c0_106, %c0_107] : memref<928x128xbf16, #tpu.memory_space<vmem>>, vector<64x32xbf16>
    %cst_108 = arith.constant dense<0.000000e+00> : vector<16x32xf32>
    %361 = tpu.matmul %359, %360, %cst_108 {dimension_numbers = #tpu.dot_dimension_numbers<[1], [0], [0], [1], [0, 0, 1, 1], [], []>} : vector<16x64xbf16>, vector<64x32xbf16>, vector<16x32xf32> -> vector<16x32xf32>
    %c0_109 = arith.constant 0 : index
    %c0_110 = arith.constant 0 : index
    %362 = vector.load %arg4[%c0_109, %c0_110] : memref<16x32xf32, #tpu.memory_space<vmem>>, vector<16x32xf32>
    %363 = arith.addf %361, %362 : vector<16x32xf32>
    %364 = vector.shape_cast %363 : vector<16x32xf32> to vector<2x8x32xf32>
    %c0_111 = arith.constant 0 : index
    %c0_112 = arith.constant 0 : index
    %c0_113 = arith.constant 0 : index
    %365 = vector.load %arg6[%c0_111, %c0_112, %c0_113] : memref<2x8x8xf32, #tpu.memory_space<vmem>>, vector<2x8x8xf32>
    %c0_114 = arith.constant 0 : index
    %c0_115 = arith.constant 0 : index
    %c0_116 = arith.constant 0 : index
    %366 = vector.load %arg7[%c0_114, %c0_115, %c0_116] : memref<2x8x8xf32, #tpu.memory_space<vmem>>, vector<2x8x8xf32>
    %367 = vector.shape_cast %364 : vector<2x8x32xf32> to vector<16x32xf32>
    %c416 = arith.constant 416 : index
    %c0_117 = arith.constant 0 : index
    %368 = vector.load %arg8[%c416, %c0_117] : memref<928x128xbf16, #tpu.memory_space<vmem>>, vector<32x96xbf16>
    %c17 = arith.constant 17 : index
    %c0_118 = arith.constant 0 : index
    %369 = vector.load %arg9[%c17, %c0_118] : memref<48x128xf32, #tpu.memory_space<vmem>>, vector<1x96xf32>
    %370 = arith.truncf %367 : vector<16x32xf32> to vector<16x32xbf16>
    %cst_119 = arith.constant dense<0.000000e+00> : vector<16x96xf32>
    %371 = tpu.matmul %370, %368, %cst_119 {dimension_numbers = #tpu.dot_dimension_numbers<[1], [0], [0], [1], [0, 0, 1, 1], [], []>} : vector<16x32xbf16>, vector<32x96xbf16>, vector<16x96xf32> -> vector<16x96xf32>
    %372 = vector.broadcast %369 : vector<1x96xf32> to vector<16x96xf32>
    %373 = arith.addf %371, %372 : vector<16x96xf32>
    %374 = vector.shape_cast %373 : vector<16x96xf32> to vector<2x8x96xf32>
    %375 = vector.extract_strided_slice %374 {offsets = [0, 0, 0], sizes = [2, 8, 32], strides = [1, 1, 1]} : vector<2x8x96xf32> to vector<2x8x32xf32>
    %376 = vector.extract_strided_slice %374 {offsets = [0, 0, 32], sizes = [2, 8, 32], strides = [1, 1, 1]} : vector<2x8x96xf32> to vector<2x8x32xf32>
    %377 = vector.extract_strided_slice %374 {offsets = [0, 0, 64], sizes = [2, 8, 32], strides = [1, 1, 1]} : vector<2x8x96xf32> to vector<2x8x32xf32>
    %c448 = arith.constant 448 : index
    %c0_120 = arith.constant 0 : index
    %378 = vector.load %arg8[%c448, %c0_120] : memref<928x128xbf16, #tpu.memory_space<vmem>>, vector<32x32xbf16>
    %c18 = arith.constant 18 : index
    %c0_121 = arith.constant 0 : index
    %379 = vector.load %arg9[%c18, %c0_121] : memref<48x128xf32, #tpu.memory_space<vmem>>, vector<1x32xf32>
    %cst_122 = arith.constant 0.353553385 : f32
    %380 = vector.broadcast %cst_122 : f32 to vector<2x8x32xf32>
    %381 = arith.mulf %375, %380 : vector<2x8x32xf32>
    %382 = arith.truncf %381 : vector<2x8x32xf32> to vector<2x8x32xbf16>
    %383 = arith.truncf %376 : vector<2x8x32xf32> to vector<2x8x32xbf16>
    %384 = arith.truncf %377 : vector<2x8x32xf32> to vector<2x8x32xbf16>
    %cst_123 = arith.constant 0.000000e+00 : f32
    %385 = vector.broadcast %cst_123 : f32 to vector<16x32xf32>
    %386 = vector.extract_strided_slice %382 {offsets = [0, 0, 0], sizes = [2, 8, 8], strides = [1, 1, 1]} : vector<2x8x32xbf16> to vector<2x8x8xbf16>
    %387 = vector.extract_strided_slice %383 {offsets = [0, 0, 0], sizes = [2, 8, 8], strides = [1, 1, 1]} : vector<2x8x32xbf16> to vector<2x8x8xbf16>
    "tpu.trace_start"() <{level = 10 : i32, message = "bqd,bkd->bqk"}> : () -> ()
    %cst_124 = arith.constant dense<0.000000e+00> : vector<2x8x8xf32>
    %388 = tpu.matmul %386, %387, %cst_124 {dimension_numbers = #tpu.dot_dimension_numbers<[2], [2], [1], [1], [0, 0, 0, 1, 1, 1], [0], [0]>} : vector<2x8x8xbf16>, vector<2x8x8xbf16>, vector<2x8x8xf32> -> vector<2x8x8xf32>
    "tpu.trace_stop"() : () -> ()
    %389 = arith.addf %388, %366 : vector<2x8x8xf32>
    %cst_125 = arith.constant dense<0xFF800000> : vector<2x8xf32>
    %390 = vector.multi_reduction <maximumf>, %389, %cst_125 [2] : vector<2x8x8xf32> to vector<2x8xf32>
    %391 = vector.shape_cast %390 : vector<2x8xf32> to vector<2x8x1xf32>
    %392 = vector.broadcast %391 : vector<2x8x1xf32> to vector<2x8x8xf32>
    %393 = arith.subf %389, %392 : vector<2x8x8xf32>
    %394 = math.exp %393 : vector<2x8x8xf32>
    %cst_126 = arith.constant dense<0.000000e+00> : vector<2x8xf32>
    %395 = vector.multi_reduction <add>, %394, %cst_126 [2] : vector<2x8x8xf32> to vector<2x8xf32>
    %396 = vector.shape_cast %395 : vector<2x8xf32> to vector<2x8x1xf32>
    %397 = tpu.reciprocal %396 : vector<2x8x1xf32> -> vector<2x8x1xf32>
    %398 = vector.broadcast %397 : vector<2x8x1xf32> to vector<2x8x8xf32>
    %399 = arith.mulf %394, %398 : vector<2x8x8xf32>
    %400 = arith.truncf %399 : vector<2x8x8xf32> to vector<2x8x8xbf16>
    %401 = vector.extract_strided_slice %384 {offsets = [0, 0, 0], sizes = [2, 8, 8], strides = [1, 1, 1]} : vector<2x8x32xbf16> to vector<2x8x8xbf16>
    "tpu.trace_start"() <{level = 10 : i32, message = "bqk,bkd->bqd"}> : () -> ()
    %cst_127 = arith.constant dense<0.000000e+00> : vector<2x8x8xf32>
    %402 = tpu.matmul %400, %401, %cst_127 {dimension_numbers = #tpu.dot_dimension_numbers<[2], [1], [1], [2], [0, 0, 0, 1, 1, 2], [0], [0]>} : vector<2x8x8xbf16>, vector<2x8x8xbf16>, vector<2x8x8xf32> -> vector<2x8x8xf32>
    "tpu.trace_stop"() : () -> ()
    %403 = vector.shape_cast %402 : vector<2x8x8xf32> to vector<16x8xf32>
    %404 = arith.truncf %403 : vector<16x8xf32> to vector<16x8xbf16>
    %405 = vector.extract_strided_slice %378 {offsets = [0, 0], sizes = [8, 32], strides = [1, 1]} : vector<32x32xbf16> to vector<8x32xbf16>
    %cst_128 = arith.constant dense<0.000000e+00> : vector<16x32xf32>
    %406 = tpu.matmul %404, %405, %cst_128 {dimension_numbers = #tpu.dot_dimension_numbers<[1], [0], [0], [1], [0, 0, 1, 1], [], []>} : vector<16x8xbf16>, vector<8x32xbf16>, vector<16x32xf32> -> vector<16x32xf32>
    %407 = arith.addf %385, %406 : vector<16x32xf32>
    %408 = vector.extract_strided_slice %382 {offsets = [0, 0, 8], sizes = [2, 8, 8], strides = [1, 1, 1]} : vector<2x8x32xbf16> to vector<2x8x8xbf16>
    %409 = vector.extract_strided_slice %383 {offsets = [0, 0, 8], sizes = [2, 8, 8], strides = [1, 1, 1]} : vector<2x8x32xbf16> to vector<2x8x8xbf16>
    "tpu.trace_start"() <{level = 10 : i32, message = "bqd,bkd->bqk"}> : () -> ()
    %cst_129 = arith.constant dense<0.000000e+00> : vector<2x8x8xf32>
    %410 = tpu.matmul %408, %409, %cst_129 {dimension_numbers = #tpu.dot_dimension_numbers<[2], [2], [1], [1], [0, 0, 0, 1, 1, 1], [0], [0]>} : vector<2x8x8xbf16>, vector<2x8x8xbf16>, vector<2x8x8xf32> -> vector<2x8x8xf32>
    "tpu.trace_stop"() : () -> ()
    %411 = arith.addf %410, %366 : vector<2x8x8xf32>
    %cst_130 = arith.constant dense<0xFF800000> : vector<2x8xf32>
    %412 = vector.multi_reduction <maximumf>, %411, %cst_130 [2] : vector<2x8x8xf32> to vector<2x8xf32>
    %413 = vector.shape_cast %412 : vector<2x8xf32> to vector<2x8x1xf32>
    %414 = vector.broadcast %413 : vector<2x8x1xf32> to vector<2x8x8xf32>
    %415 = arith.subf %411, %414 : vector<2x8x8xf32>
    %416 = math.exp %415 : vector<2x8x8xf32>
    %cst_131 = arith.constant dense<0.000000e+00> : vector<2x8xf32>
    %417 = vector.multi_reduction <add>, %416, %cst_131 [2] : vector<2x8x8xf32> to vector<2x8xf32>
    %418 = vector.shape_cast %417 : vector<2x8xf32> to vector<2x8x1xf32>
    %419 = tpu.reciprocal %418 : vector<2x8x1xf32> -> vector<2x8x1xf32>
    %420 = vector.broadcast %419 : vector<2x8x1xf32> to vector<2x8x8xf32>
    %421 = arith.mulf %416, %420 : vector<2x8x8xf32>
    %422 = arith.truncf %421 : vector<2x8x8xf32> to vector<2x8x8xbf16>
    %423 = vector.extract_strided_slice %384 {offsets = [0, 0, 8], sizes = [2, 8, 8], strides = [1, 1, 1]} : vector<2x8x32xbf16> to vector<2x8x8xbf16>
    "tpu.trace_start"() <{level = 10 : i32, message = "bqk,bkd->bqd"}> : () -> ()
    %cst_132 = arith.constant dense<0.000000e+00> : vector<2x8x8xf32>
    %424 = tpu.matmul %422, %423, %cst_132 {dimension_numbers = #tpu.dot_dimension_numbers<[2], [1], [1], [2], [0, 0, 0, 1, 1, 2], [0], [0]>} : vector<2x8x8xbf16>, vector<2x8x8xbf16>, vector<2x8x8xf32> -> vector<2x8x8xf32>
    "tpu.trace_stop"() : () -> ()
    %425 = vector.shape_cast %424 : vector<2x8x8xf32> to vector<16x8xf32>
    %426 = arith.truncf %425 : vector<16x8xf32> to vector<16x8xbf16>
    %427 = vector.extract_strided_slice %378 {offsets = [8, 0], sizes = [8, 32], strides = [1, 1]} : vector<32x32xbf16> to vector<8x32xbf16>
    %cst_133 = arith.constant dense<0.000000e+00> : vector<16x32xf32>
    %428 = tpu.matmul %426, %427, %cst_133 {dimension_numbers = #tpu.dot_dimension_numbers<[1], [0], [0], [1], [0, 0, 1, 1], [], []>} : vector<16x8xbf16>, vector<8x32xbf16>, vector<16x32xf32> -> vector<16x32xf32>
    %429 = arith.addf %407, %428 : vector<16x32xf32>
    %430 = vector.extract_strided_slice %382 {offsets = [0, 0, 16], sizes = [2, 8, 8], strides = [1, 1, 1]} : vector<2x8x32xbf16> to vector<2x8x8xbf16>
    %431 = vector.extract_strided_slice %383 {offsets = [0, 0, 16], sizes = [2, 8, 8], strides = [1, 1, 1]} : vector<2x8x32xbf16> to vector<2x8x8xbf16>
    "tpu.trace_start"() <{level = 10 : i32, message = "bqd,bkd->bqk"}> : () -> ()
    %cst_134 = arith.constant dense<0.000000e+00> : vector<2x8x8xf32>
    %432 = tpu.matmul %430, %431, %cst_134 {dimension_numbers = #tpu.dot_dimension_numbers<[2], [2], [1], [1], [0, 0, 0, 1, 1, 1], [0], [0]>} : vector<2x8x8xbf16>, vector<2x8x8xbf16>, vector<2x8x8xf32> -> vector<2x8x8xf32>
    "tpu.trace_stop"() : () -> ()
    %433 = arith.addf %432, %366 : vector<2x8x8xf32>
    %cst_135 = arith.constant dense<0xFF800000> : vector<2x8xf32>
    %434 = vector.multi_reduction <maximumf>, %433, %cst_135 [2] : vector<2x8x8xf32> to vector<2x8xf32>
    %435 = vector.shape_cast %434 : vector<2x8xf32> to vector<2x8x1xf32>
    %436 = vector.broadcast %435 : vector<2x8x1xf32> to vector<2x8x8xf32>
    %437 = arith.subf %433, %436 : vector<2x8x8xf32>
    %438 = math.exp %437 : vector<2x8x8xf32>
    %cst_136 = arith.constant dense<0.000000e+00> : vector<2x8xf32>
    %439 = vector.multi_reduction <add>, %438, %cst_136 [2] : vector<2x8x8xf32> to vector<2x8xf32>
    %440 = vector.shape_cast %439 : vector<2x8xf32> to vector<2x8x1xf32>
    %441 = tpu.reciprocal %440 : vector<2x8x1xf32> -> vector<2x8x1xf32>
    %442 = vector.broadcast %441 : vector<2x8x1xf32> to vector<2x8x8xf32>
    %443 = arith.mulf %438, %442 : vector<2x8x8xf32>
    %444 = arith.truncf %443 : vector<2x8x8xf32> to vector<2x8x8xbf16>
    %445 = vector.extract_strided_slice %384 {offsets = [0, 0, 16], sizes = [2, 8, 8], strides = [1, 1, 1]} : vector<2x8x32xbf16> to vector<2x8x8xbf16>
    "tpu.trace_start"() <{level = 10 : i32, message = "bqk,bkd->bqd"}> : () -> ()
    %cst_137 = arith.constant dense<0.000000e+00> : vector<2x8x8xf32>
    %446 = tpu.matmul %444, %445, %cst_137 {dimension_numbers = #tpu.dot_dimension_numbers<[2], [1], [1], [2], [0, 0, 0, 1, 1, 2], [0], [0]>} : vector<2x8x8xbf16>, vector<2x8x8xbf16>, vector<2x8x8xf32> -> vector<2x8x8xf32>
    "tpu.trace_stop"() : () -> ()
    %447 = vector.shape_cast %446 : vector<2x8x8xf32> to vector<16x8xf32>
    %448 = arith.truncf %447 : vector<16x8xf32> to vector<16x8xbf16>
    %449 = vector.extract_strided_slice %378 {offsets = [16, 0], sizes = [8, 32], strides = [1, 1]} : vector<32x32xbf16> to vector<8x32xbf16>
    %cst_138 = arith.constant dense<0.000000e+00> : vector<16x32xf32>
    %450 = tpu.matmul %448, %449, %cst_138 {dimension_numbers = #tpu.dot_dimension_numbers<[1], [0], [0], [1], [0, 0, 1, 1], [], []>} : vector<16x8xbf16>, vector<8x32xbf16>, vector<16x32xf32> -> vector<16x32xf32>
    %451 = arith.addf %429, %450 : vector<16x32xf32>
    %452 = vector.extract_strided_slice %382 {offsets = [0, 0, 24], sizes = [2, 8, 8], strides = [1, 1, 1]} : vector<2x8x32xbf16> to vector<2x8x8xbf16>
    %453 = vector.extract_strided_slice %383 {offsets = [0, 0, 24], sizes = [2, 8, 8], strides = [1, 1, 1]} : vector<2x8x32xbf16> to vector<2x8x8xbf16>
    "tpu.trace_start"() <{level = 10 : i32, message = "bqd,bkd->bqk"}> : () -> ()
    %cst_139 = arith.constant dense<0.000000e+00> : vector<2x8x8xf32>
    %454 = tpu.matmul %452, %453, %cst_139 {dimension_numbers = #tpu.dot_dimension_numbers<[2], [2], [1], [1], [0, 0, 0, 1, 1, 1], [0], [0]>} : vector<2x8x8xbf16>, vector<2x8x8xbf16>, vector<2x8x8xf32> -> vector<2x8x8xf32>
    "tpu.trace_stop"() : () -> ()
    %455 = arith.addf %454, %366 : vector<2x8x8xf32>
    %cst_140 = arith.constant dense<0xFF800000> : vector<2x8xf32>
    %456 = vector.multi_reduction <maximumf>, %455, %cst_140 [2] : vector<2x8x8xf32> to vector<2x8xf32>
    %457 = vector.shape_cast %456 : vector<2x8xf32> to vector<2x8x1xf32>
    %458 = vector.broadcast %457 : vector<2x8x1xf32> to vector<2x8x8xf32>
    %459 = arith.subf %455, %458 : vector<2x8x8xf32>
    %460 = math.exp %459 : vector<2x8x8xf32>
    %cst_141 = arith.constant dense<0.000000e+00> : vector<2x8xf32>
    %461 = vector.multi_reduction <add>, %460, %cst_141 [2] : vector<2x8x8xf32> to vector<2x8xf32>
    %462 = vector.shape_cast %461 : vector<2x8xf32> to vector<2x8x1xf32>
    %463 = tpu.reciprocal %462 : vector<2x8x1xf32> -> vector<2x8x1xf32>
    %464 = vector.broadcast %463 : vector<2x8x1xf32> to vector<2x8x8xf32>
    %465 = arith.mulf %460, %464 : vector<2x8x8xf32>
    %466 = arith.truncf %465 : vector<2x8x8xf32> to vector<2x8x8xbf16>
    %467 = vector.extract_strided_slice %384 {offsets = [0, 0, 24], sizes = [2, 8, 8], strides = [1, 1, 1]} : vector<2x8x32xbf16> to vector<2x8x8xbf16>
    "tpu.trace_start"() <{level = 10 : i32, message = "bqk,bkd->bqd"}> : () -> ()
    %cst_142 = arith.constant dense<0.000000e+00> : vector<2x8x8xf32>
    %468 = tpu.matmul %466, %467, %cst_142 {dimension_numbers = #tpu.dot_dimension_numbers<[2], [1], [1], [2], [0, 0, 0, 1, 1, 2], [0], [0]>} : vector<2x8x8xbf16>, vector<2x8x8xbf16>, vector<2x8x8xf32> -> vector<2x8x8xf32>
    "tpu.trace_stop"() : () -> ()
    %469 = vector.shape_cast %468 : vector<2x8x8xf32> to vector<16x8xf32>
    %470 = arith.truncf %469 : vector<16x8xf32> to vector<16x8xbf16>
    %471 = vector.extract_strided_slice %378 {offsets = [24, 0], sizes = [8, 32], strides = [1, 1]} : vector<32x32xbf16> to vector<8x32xbf16>
    %cst_143 = arith.constant dense<0.000000e+00> : vector<16x32xf32>
    %472 = tpu.matmul %470, %471, %cst_143 {dimension_numbers = #tpu.dot_dimension_numbers<[1], [0], [0], [1], [0, 0, 1, 1], [], []>} : vector<16x8xbf16>, vector<8x32xbf16>, vector<16x32xf32> -> vector<16x32xf32>
    %473 = arith.addf %451, %472 : vector<16x32xf32>
    %474 = vector.broadcast %379 : vector<1x32xf32> to vector<16x32xf32>
    %475 = arith.addf %473, %474 : vector<16x32xf32>
    %476 = arith.addf %367, %475 : vector<16x32xf32>
    %c22 = arith.constant 22 : index
    %c0_144 = arith.constant 0 : index
    %477 = vector.load %arg9[%c22, %c0_144] : memref<48x128xf32, #tpu.memory_space<vmem>>, vector<1x32xf32>
    %c23 = arith.constant 23 : index
    %c0_145 = arith.constant 0 : index
    %478 = vector.load %arg9[%c23, %c0_145] : memref<48x128xf32, #tpu.memory_space<vmem>>, vector<1x32xf32>
    %cst_146 = arith.constant dense<0.000000e+00> : vector<16xf32>
    %479 = vector.multi_reduction <add>, %476, %cst_146 [1] : vector<16x32xf32> to vector<16xf32>
    %480 = vector.shape_cast %479 : vector<16xf32> to vector<16x1xf32>
    %cst_147 = arith.constant 3.200000e+01 : f32
    %481 = vector.broadcast %cst_147 : f32 to vector<16x1xf32>
    %482 = arith.divf %480, %481 : vector<16x1xf32>
    %483 = vector.broadcast %482 : vector<16x1xf32> to vector<16x32xf32>
    %484 = arith.subf %476, %483 : vector<16x32xf32>
    %485 = arith.mulf %484, %484 : vector<16x32xf32>
    %cst_148 = arith.constant dense<0.000000e+00> : vector<16xf32>
    %486 = vector.multi_reduction <add>, %485, %cst_148 [1] : vector<16x32xf32> to vector<16xf32>
    %487 = vector.shape_cast %486 : vector<16xf32> to vector<16x1xf32>
    %cst_149 = arith.constant 3.200000e+01 : f32
    %488 = vector.broadcast %cst_149 : f32 to vector<16x1xf32>
    %489 = arith.divf %487, %488 : vector<16x1xf32>
    %cst_150 = arith.constant 9.99999997E-7 : f32
    %490 = vector.broadcast %cst_150 : f32 to vector<16x1xf32>
    %491 = arith.addf %489, %490 : vector<16x1xf32>
    %492 = math.rsqrt %491 : vector<16x1xf32>
    %493 = vector.broadcast %492 : vector<16x1xf32> to vector<16x32xf32>
    %494 = arith.mulf %484, %493 : vector<16x32xf32>
    %495 = vector.broadcast %477 : vector<1x32xf32> to vector<16x32xf32>
    %496 = arith.mulf %494, %495 : vector<16x32xf32>
    %497 = vector.broadcast %478 : vector<1x32xf32> to vector<16x32xf32>
    %498 = arith.addf %496, %497 : vector<16x32xf32>
    %c480 = arith.constant 480 : index
    %c0_151 = arith.constant 0 : index
    %499 = vector.load %arg8[%c480, %c0_151] : memref<928x128xbf16, #tpu.memory_space<vmem>>, vector<32x32xbf16>
    %c19 = arith.constant 19 : index
    %c0_152 = arith.constant 0 : index
    %500 = vector.load %arg9[%c19, %c0_152] : memref<48x128xf32, #tpu.memory_space<vmem>>, vector<1x32xf32>
    %501 = arith.truncf %498 : vector<16x32xf32> to vector<16x32xbf16>
    %cst_153 = arith.constant dense<0.000000e+00> : vector<16x32xf32>
    %502 = tpu.matmul %501, %499, %cst_153 {dimension_numbers = #tpu.dot_dimension_numbers<[1], [0], [0], [1], [0, 0, 1, 1], [], []>} : vector<16x32xbf16>, vector<32x32xbf16>, vector<16x32xf32> -> vector<16x32xf32>
    %503 = vector.broadcast %500 : vector<1x32xf32> to vector<16x32xf32>
    %504 = arith.addf %502, %503 : vector<16x32xf32>
    %505 = vector.shape_cast %504 : vector<16x32xf32> to vector<2x8x32xf32>
    %506 = vector.shape_cast %352 : vector<2x8x32xf32> to vector<16x32xf32>
    %c512 = arith.constant 512 : index
    %c0_154 = arith.constant 0 : index
    %507 = vector.load %arg8[%c512, %c0_154] : memref<928x128xbf16, #tpu.memory_space<vmem>>, vector<32x64xbf16>
    %c20 = arith.constant 20 : index
    %c0_155 = arith.constant 0 : index
    %508 = vector.load %arg9[%c20, %c0_155] : memref<48x128xf32, #tpu.memory_space<vmem>>, vector<1x64xf32>
    %509 = arith.truncf %506 : vector<16x32xf32> to vector<16x32xbf16>
    %cst_156 = arith.constant dense<0.000000e+00> : vector<16x64xf32>
    %510 = tpu.matmul %509, %507, %cst_156 {dimension_numbers = #tpu.dot_dimension_numbers<[1], [0], [0], [1], [0, 0, 1, 1], [], []>} : vector<16x32xbf16>, vector<32x64xbf16>, vector<16x64xf32> -> vector<16x64xf32>
    %511 = vector.broadcast %508 : vector<1x64xf32> to vector<16x64xf32>
    %512 = arith.addf %510, %511 : vector<16x64xf32>
    %513 = vector.shape_cast %512 : vector<16x64xf32> to vector<2x8x64xf32>
    %514 = vector.extract_strided_slice %513 {offsets = [0, 0, 0], sizes = [2, 8, 32], strides = [1, 1, 1]} : vector<2x8x64xf32> to vector<2x8x32xf32>
    %515 = vector.extract_strided_slice %513 {offsets = [0, 0, 32], sizes = [2, 8, 32], strides = [1, 1, 1]} : vector<2x8x64xf32> to vector<2x8x32xf32>
    %c544 = arith.constant 544 : index
    %c0_157 = arith.constant 0 : index
    %516 = vector.load %arg8[%c544, %c0_157] : memref<928x128xbf16, #tpu.memory_space<vmem>>, vector<32x32xbf16>
    %c21 = arith.constant 21 : index
    %c0_158 = arith.constant 0 : index
    %517 = vector.load %arg9[%c21, %c0_158] : memref<48x128xf32, #tpu.memory_space<vmem>>, vector<1x32xf32>
    %cst_159 = arith.constant 0.353553385 : f32
    %518 = vector.broadcast %cst_159 : f32 to vector<2x8x32xf32>
    %519 = arith.mulf %505, %518 : vector<2x8x32xf32>
    %520 = arith.truncf %519 : vector<2x8x32xf32> to vector<2x8x32xbf16>
    %521 = arith.truncf %514 : vector<2x8x32xf32> to vector<2x8x32xbf16>
    %522 = arith.truncf %515 : vector<2x8x32xf32> to vector<2x8x32xbf16>
    %cst_160 = arith.constant 0.000000e+00 : f32
    %523 = vector.broadcast %cst_160 : f32 to vector<16x32xf32>
    %524 = vector.extract_strided_slice %520 {offsets = [0, 0, 0], sizes = [2, 8, 8], strides = [1, 1, 1]} : vector<2x8x32xbf16> to vector<2x8x8xbf16>
    %525 = vector.extract_strided_slice %521 {offsets = [0, 0, 0], sizes = [2, 8, 8], strides = [1, 1, 1]} : vector<2x8x32xbf16> to vector<2x8x8xbf16>
    "tpu.trace_start"() <{level = 10 : i32, message = "bqd,bkd->bqk"}> : () -> ()
    %cst_161 = arith.constant dense<0.000000e+00> : vector<2x8x8xf32>
    %526 = tpu.matmul %524, %525, %cst_161 {dimension_numbers = #tpu.dot_dimension_numbers<[2], [2], [1], [1], [0, 0, 0, 1, 1, 1], [0], [0]>} : vector<2x8x8xbf16>, vector<2x8x8xbf16>, vector<2x8x8xf32> -> vector<2x8x8xf32>
    "tpu.trace_stop"() : () -> ()
    %527 = arith.addf %526, %365 : vector<2x8x8xf32>
    %cst_162 = arith.constant dense<0xFF800000> : vector<2x8xf32>
    %528 = vector.multi_reduction <maximumf>, %527, %cst_162 [2] : vector<2x8x8xf32> to vector<2x8xf32>
    %529 = vector.shape_cast %528 : vector<2x8xf32> to vector<2x8x1xf32>
    %530 = vector.broadcast %529 : vector<2x8x1xf32> to vector<2x8x8xf32>
    %531 = arith.subf %527, %530 : vector<2x8x8xf32>
    %532 = math.exp %531 : vector<2x8x8xf32>
    %cst_163 = arith.constant dense<0.000000e+00> : vector<2x8xf32>
    %533 = vector.multi_reduction <add>, %532, %cst_163 [2] : vector<2x8x8xf32> to vector<2x8xf32>
    %534 = vector.shape_cast %533 : vector<2x8xf32> to vector<2x8x1xf32>
    %535 = tpu.reciprocal %534 : vector<2x8x1xf32> -> vector<2x8x1xf32>
    %536 = vector.broadcast %535 : vector<2x8x1xf32> to vector<2x8x8xf32>
    %537 = arith.mulf %532, %536 : vector<2x8x8xf32>
    %538 = arith.truncf %537 : vector<2x8x8xf32> to vector<2x8x8xbf16>
    %539 = vector.extract_strided_slice %522 {offsets = [0, 0, 0], sizes = [2, 8, 8], strides = [1, 1, 1]} : vector<2x8x32xbf16> to vector<2x8x8xbf16>
    "tpu.trace_start"() <{level = 10 : i32, message = "bqk,bkd->bqd"}> : () -> ()
    %cst_164 = arith.constant dense<0.000000e+00> : vector<2x8x8xf32>
    %540 = tpu.matmul %538, %539, %cst_164 {dimension_numbers = #tpu.dot_dimension_numbers<[2], [1], [1], [2], [0, 0, 0, 1, 1, 2], [0], [0]>} : vector<2x8x8xbf16>, vector<2x8x8xbf16>, vector<2x8x8xf32> -> vector<2x8x8xf32>
    "tpu.trace_stop"() : () -> ()
    %541 = vector.shape_cast %540 : vector<2x8x8xf32> to vector<16x8xf32>
    %542 = arith.truncf %541 : vector<16x8xf32> to vector<16x8xbf16>
    %543 = vector.extract_strided_slice %516 {offsets = [0, 0], sizes = [8, 32], strides = [1, 1]} : vector<32x32xbf16> to vector<8x32xbf16>
    %cst_165 = arith.constant dense<0.000000e+00> : vector<16x32xf32>
    %544 = tpu.matmul %542, %543, %cst_165 {dimension_numbers = #tpu.dot_dimension_numbers<[1], [0], [0], [1], [0, 0, 1, 1], [], []>} : vector<16x8xbf16>, vector<8x32xbf16>, vector<16x32xf32> -> vector<16x32xf32>
    %545 = arith.addf %523, %544 : vector<16x32xf32>
    %546 = vector.extract_strided_slice %520 {offsets = [0, 0, 8], sizes = [2, 8, 8], strides = [1, 1, 1]} : vector<2x8x32xbf16> to vector<2x8x8xbf16>
    %547 = vector.extract_strided_slice %521 {offsets = [0, 0, 8], sizes = [2, 8, 8], strides = [1, 1, 1]} : vector<2x8x32xbf16> to vector<2x8x8xbf16>
    "tpu.trace_start"() <{level = 10 : i32, message = "bqd,bkd->bqk"}> : () -> ()
    %cst_166 = arith.constant dense<0.000000e+00> : vector<2x8x8xf32>
    %548 = tpu.matmul %546, %547, %cst_166 {dimension_numbers = #tpu.dot_dimension_numbers<[2], [2], [1], [1], [0, 0, 0, 1, 1, 1], [0], [0]>} : vector<2x8x8xbf16>, vector<2x8x8xbf16>, vector<2x8x8xf32> -> vector<2x8x8xf32>
    "tpu.trace_stop"() : () -> ()
    %549 = arith.addf %548, %365 : vector<2x8x8xf32>
    %cst_167 = arith.constant dense<0xFF800000> : vector<2x8xf32>
    %550 = vector.multi_reduction <maximumf>, %549, %cst_167 [2] : vector<2x8x8xf32> to vector<2x8xf32>
    %551 = vector.shape_cast %550 : vector<2x8xf32> to vector<2x8x1xf32>
    %552 = vector.broadcast %551 : vector<2x8x1xf32> to vector<2x8x8xf32>
    %553 = arith.subf %549, %552 : vector<2x8x8xf32>
    %554 = math.exp %553 : vector<2x8x8xf32>
    %cst_168 = arith.constant dense<0.000000e+00> : vector<2x8xf32>
    %555 = vector.multi_reduction <add>, %554, %cst_168 [2] : vector<2x8x8xf32> to vector<2x8xf32>
    %556 = vector.shape_cast %555 : vector<2x8xf32> to vector<2x8x1xf32>
    %557 = tpu.reciprocal %556 : vector<2x8x1xf32> -> vector<2x8x1xf32>
    %558 = vector.broadcast %557 : vector<2x8x1xf32> to vector<2x8x8xf32>
    %559 = arith.mulf %554, %558 : vector<2x8x8xf32>
    %560 = arith.truncf %559 : vector<2x8x8xf32> to vector<2x8x8xbf16>
    %561 = vector.extract_strided_slice %522 {offsets = [0, 0, 8], sizes = [2, 8, 8], strides = [1, 1, 1]} : vector<2x8x32xbf16> to vector<2x8x8xbf16>
    "tpu.trace_start"() <{level = 10 : i32, message = "bqk,bkd->bqd"}> : () -> ()
    %cst_169 = arith.constant dense<0.000000e+00> : vector<2x8x8xf32>
    %562 = tpu.matmul %560, %561, %cst_169 {dimension_numbers = #tpu.dot_dimension_numbers<[2], [1], [1], [2], [0, 0, 0, 1, 1, 2], [0], [0]>} : vector<2x8x8xbf16>, vector<2x8x8xbf16>, vector<2x8x8xf32> -> vector<2x8x8xf32>
    "tpu.trace_stop"() : () -> ()
    %563 = vector.shape_cast %562 : vector<2x8x8xf32> to vector<16x8xf32>
    %564 = arith.truncf %563 : vector<16x8xf32> to vector<16x8xbf16>
    %565 = vector.extract_strided_slice %516 {offsets = [8, 0], sizes = [8, 32], strides = [1, 1]} : vector<32x32xbf16> to vector<8x32xbf16>
    %cst_170 = arith.constant dense<0.000000e+00> : vector<16x32xf32>
    %566 = tpu.matmul %564, %565, %cst_170 {dimension_numbers = #tpu.dot_dimension_numbers<[1], [0], [0], [1], [0, 0, 1, 1], [], []>} : vector<16x8xbf16>, vector<8x32xbf16>, vector<16x32xf32> -> vector<16x32xf32>
    %567 = arith.addf %545, %566 : vector<16x32xf32>
    %568 = vector.extract_strided_slice %520 {offsets = [0, 0, 16], sizes = [2, 8, 8], strides = [1, 1, 1]} : vector<2x8x32xbf16> to vector<2x8x8xbf16>
    %569 = vector.extract_strided_slice %521 {offsets = [0, 0, 16], sizes = [2, 8, 8], strides = [1, 1, 1]} : vector<2x8x32xbf16> to vector<2x8x8xbf16>
    "tpu.trace_start"() <{level = 10 : i32, message = "bqd,bkd->bqk"}> : () -> ()
    %cst_171 = arith.constant dense<0.000000e+00> : vector<2x8x8xf32>
    %570 = tpu.matmul %568, %569, %cst_171 {dimension_numbers = #tpu.dot_dimension_numbers<[2], [2], [1], [1], [0, 0, 0, 1, 1, 1], [0], [0]>} : vector<2x8x8xbf16>, vector<2x8x8xbf16>, vector<2x8x8xf32> -> vector<2x8x8xf32>
    "tpu.trace_stop"() : () -> ()
    %571 = arith.addf %570, %365 : vector<2x8x8xf32>
    %cst_172 = arith.constant dense<0xFF800000> : vector<2x8xf32>
    %572 = vector.multi_reduction <maximumf>, %571, %cst_172 [2] : vector<2x8x8xf32> to vector<2x8xf32>
    %573 = vector.shape_cast %572 : vector<2x8xf32> to vector<2x8x1xf32>
    %574 = vector.broadcast %573 : vector<2x8x1xf32> to vector<2x8x8xf32>
    %575 = arith.subf %571, %574 : vector<2x8x8xf32>
    %576 = math.exp %575 : vector<2x8x8xf32>
    %cst_173 = arith.constant dense<0.000000e+00> : vector<2x8xf32>
    %577 = vector.multi_reduction <add>, %576, %cst_173 [2] : vector<2x8x8xf32> to vector<2x8xf32>
    %578 = vector.shape_cast %577 : vector<2x8xf32> to vector<2x8x1xf32>
    %579 = tpu.reciprocal %578 : vector<2x8x1xf32> -> vector<2x8x1xf32>
    %580 = vector.broadcast %579 : vector<2x8x1xf32> to vector<2x8x8xf32>
    %581 = arith.mulf %576, %580 : vector<2x8x8xf32>
    %582 = arith.truncf %581 : vector<2x8x8xf32> to vector<2x8x8xbf16>
    %583 = vector.extract_strided_slice %522 {offsets = [0, 0, 16], sizes = [2, 8, 8], strides = [1, 1, 1]} : vector<2x8x32xbf16> to vector<2x8x8xbf16>
    "tpu.trace_start"() <{level = 10 : i32, message = "bqk,bkd->bqd"}> : () -> ()
    %cst_174 = arith.constant dense<0.000000e+00> : vector<2x8x8xf32>
    %584 = tpu.matmul %582, %583, %cst_174 {dimension_numbers = #tpu.dot_dimension_numbers<[2], [1], [1], [2], [0, 0, 0, 1, 1, 2], [0], [0]>} : vector<2x8x8xbf16>, vector<2x8x8xbf16>, vector<2x8x8xf32> -> vector<2x8x8xf32>
    "tpu.trace_stop"() : () -> ()
    %585 = vector.shape_cast %584 : vector<2x8x8xf32> to vector<16x8xf32>
    %586 = arith.truncf %585 : vector<16x8xf32> to vector<16x8xbf16>
    %587 = vector.extract_strided_slice %516 {offsets = [16, 0], sizes = [8, 32], strides = [1, 1]} : vector<32x32xbf16> to vector<8x32xbf16>
    %cst_175 = arith.constant dense<0.000000e+00> : vector<16x32xf32>
    %588 = tpu.matmul %586, %587, %cst_175 {dimension_numbers = #tpu.dot_dimension_numbers<[1], [0], [0], [1], [0, 0, 1, 1], [], []>} : vector<16x8xbf16>, vector<8x32xbf16>, vector<16x32xf32> -> vector<16x32xf32>
    %589 = arith.addf %567, %588 : vector<16x32xf32>
    %590 = vector.extract_strided_slice %520 {offsets = [0, 0, 24], sizes = [2, 8, 8], strides = [1, 1, 1]} : vector<2x8x32xbf16> to vector<2x8x8xbf16>
    %591 = vector.extract_strided_slice %521 {offsets = [0, 0, 24], sizes = [2, 8, 8], strides = [1, 1, 1]} : vector<2x8x32xbf16> to vector<2x8x8xbf16>
    "tpu.trace_start"() <{level = 10 : i32, message = "bqd,bkd->bqk"}> : () -> ()
    %cst_176 = arith.constant dense<0.000000e+00> : vector<2x8x8xf32>
    %592 = tpu.matmul %590, %591, %cst_176 {dimension_numbers = #tpu.dot_dimension_numbers<[2], [2], [1], [1], [0, 0, 0, 1, 1, 1], [0], [0]>} : vector<2x8x8xbf16>, vector<2x8x8xbf16>, vector<2x8x8xf32> -> vector<2x8x8xf32>
    "tpu.trace_stop"() : () -> ()
    %593 = arith.addf %592, %365 : vector<2x8x8xf32>
    %cst_177 = arith.constant dense<0xFF800000> : vector<2x8xf32>
    %594 = vector.multi_reduction <maximumf>, %593, %cst_177 [2] : vector<2x8x8xf32> to vector<2x8xf32>
    %595 = vector.shape_cast %594 : vector<2x8xf32> to vector<2x8x1xf32>
    %596 = vector.broadcast %595 : vector<2x8x1xf32> to vector<2x8x8xf32>
    %597 = arith.subf %593, %596 : vector<2x8x8xf32>
    %598 = math.exp %597 : vector<2x8x8xf32>
    %cst_178 = arith.constant dense<0.000000e+00> : vector<2x8xf32>
    %599 = vector.multi_reduction <add>, %598, %cst_178 [2] : vector<2x8x8xf32> to vector<2x8xf32>
    %600 = vector.shape_cast %599 : vector<2x8xf32> to vector<2x8x1xf32>
    %601 = tpu.reciprocal %600 : vector<2x8x1xf32> -> vector<2x8x1xf32>
    %602 = vector.broadcast %601 : vector<2x8x1xf32> to vector<2x8x8xf32>
    %603 = arith.mulf %598, %602 : vector<2x8x8xf32>
    %604 = arith.truncf %603 : vector<2x8x8xf32> to vector<2x8x8xbf16>
    %605 = vector.extract_strided_slice %522 {offsets = [0, 0, 24], sizes = [2, 8, 8], strides = [1, 1, 1]} : vector<2x8x32xbf16> to vector<2x8x8xbf16>
    "tpu.trace_start"() <{level = 10 : i32, message = "bqk,bkd->bqd"}> : () -> ()
    %cst_179 = arith.constant dense<0.000000e+00> : vector<2x8x8xf32>
    %606 = tpu.matmul %604, %605, %cst_179 {dimension_numbers = #tpu.dot_dimension_numbers<[2], [1], [1], [2], [0, 0, 0, 1, 1, 2], [0], [0]>} : vector<2x8x8xbf16>, vector<2x8x8xbf16>, vector<2x8x8xf32> -> vector<2x8x8xf32>
    "tpu.trace_stop"() : () -> ()
    %607 = vector.shape_cast %606 : vector<2x8x8xf32> to vector<16x8xf32>
    %608 = arith.truncf %607 : vector<16x8xf32> to vector<16x8xbf16>
    %609 = vector.extract_strided_slice %516 {offsets = [24, 0], sizes = [8, 32], strides = [1, 1]} : vector<32x32xbf16> to vector<8x32xbf16>
    %cst_180 = arith.constant dense<0.000000e+00> : vector<16x32xf32>
    %610 = tpu.matmul %608, %609, %cst_180 {dimension_numbers = #tpu.dot_dimension_numbers<[1], [0], [0], [1], [0, 0, 1, 1], [], []>} : vector<16x8xbf16>, vector<8x32xbf16>, vector<16x32xf32> -> vector<16x32xf32>
    %611 = arith.addf %589, %610 : vector<16x32xf32>
    %612 = vector.broadcast %517 : vector<1x32xf32> to vector<16x32xf32>
    %613 = arith.addf %611, %612 : vector<16x32xf32>
    %614 = arith.addf %498, %613 : vector<16x32xf32>
    %c24 = arith.constant 24 : index
    %c0_181 = arith.constant 0 : index
    %615 = vector.load %arg9[%c24, %c0_181] : memref<48x128xf32, #tpu.memory_space<vmem>>, vector<1x32xf32>
    %c25 = arith.constant 25 : index
    %c0_182 = arith.constant 0 : index
    %616 = vector.load %arg9[%c25, %c0_182] : memref<48x128xf32, #tpu.memory_space<vmem>>, vector<1x32xf32>
    %cst_183 = arith.constant dense<0.000000e+00> : vector<16xf32>
    %617 = vector.multi_reduction <add>, %614, %cst_183 [1] : vector<16x32xf32> to vector<16xf32>
    %618 = vector.shape_cast %617 : vector<16xf32> to vector<16x1xf32>
    %cst_184 = arith.constant 3.200000e+01 : f32
    %619 = vector.broadcast %cst_184 : f32 to vector<16x1xf32>
    %620 = arith.divf %618, %619 : vector<16x1xf32>
    %621 = vector.broadcast %620 : vector<16x1xf32> to vector<16x32xf32>
    %622 = arith.subf %614, %621 : vector<16x32xf32>
    %623 = arith.mulf %622, %622 : vector<16x32xf32>
    %cst_185 = arith.constant dense<0.000000e+00> : vector<16xf32>
    %624 = vector.multi_reduction <add>, %623, %cst_185 [1] : vector<16x32xf32> to vector<16xf32>
    %625 = vector.shape_cast %624 : vector<16xf32> to vector<16x1xf32>
    %cst_186 = arith.constant 3.200000e+01 : f32
    %626 = vector.broadcast %cst_186 : f32 to vector<16x1xf32>
    %627 = arith.divf %625, %626 : vector<16x1xf32>
    %cst_187 = arith.constant 9.99999997E-7 : f32
    %628 = vector.broadcast %cst_187 : f32 to vector<16x1xf32>
    %629 = arith.addf %627, %628 : vector<16x1xf32>
    %630 = math.rsqrt %629 : vector<16x1xf32>
    %631 = vector.broadcast %630 : vector<16x1xf32> to vector<16x32xf32>
    %632 = arith.mulf %622, %631 : vector<16x32xf32>
    %633 = vector.broadcast %615 : vector<1x32xf32> to vector<16x32xf32>
    %634 = arith.mulf %632, %633 : vector<16x32xf32>
    %635 = vector.broadcast %616 : vector<1x32xf32> to vector<16x32xf32>
    %636 = arith.addf %634, %635 : vector<16x32xf32>
    %c576 = arith.constant 576 : index
    %c0_188 = arith.constant 0 : index
    %637 = vector.load %arg8[%c576, %c0_188] : memref<928x128xbf16, #tpu.memory_space<vmem>>, vector<32x64xbf16>
    %c28 = arith.constant 28 : index
    %c0_189 = arith.constant 0 : index
    %638 = vector.load %arg9[%c28, %c0_189] : memref<48x128xf32, #tpu.memory_space<vmem>>, vector<1x64xf32>
    %639 = arith.truncf %636 : vector<16x32xf32> to vector<16x32xbf16>
    %cst_190 = arith.constant dense<0.000000e+00> : vector<16x64xf32>
    %640 = tpu.matmul %639, %637, %cst_190 {dimension_numbers = #tpu.dot_dimension_numbers<[1], [0], [0], [1], [0, 0, 1, 1], [], []>} : vector<16x32xbf16>, vector<32x64xbf16>, vector<16x64xf32> -> vector<16x64xf32>
    %641 = vector.broadcast %638 : vector<1x64xf32> to vector<16x64xf32>
    %642 = arith.addf %640, %641 : vector<16x64xf32>
    %cst_191 = arith.constant 0.000000e+00 : f32
    %643 = vector.broadcast %cst_191 : f32 to vector<16x64xf32>
    %644 = arith.maximumf %642, %643 : vector<16x64xf32>
    %c608 = arith.constant 608 : index
    %c0_192 = arith.constant 0 : index
    %645 = vector.load %arg8[%c608, %c0_192] : memref<928x128xbf16, #tpu.memory_space<vmem>>, vector<64x32xbf16>
    %c29 = arith.constant 29 : index
    %c0_193 = arith.constant 0 : index
    %646 = vector.load %arg9[%c29, %c0_193] : memref<48x128xf32, #tpu.memory_space<vmem>>, vector<1x32xf32>
    %647 = arith.truncf %644 : vector<16x64xf32> to vector<16x64xbf16>
    %cst_194 = arith.constant dense<0.000000e+00> : vector<16x32xf32>
    %648 = tpu.matmul %647, %645, %cst_194 {dimension_numbers = #tpu.dot_dimension_numbers<[1], [0], [0], [1], [0, 0, 1, 1], [], []>} : vector<16x64xbf16>, vector<64x32xbf16>, vector<16x32xf32> -> vector<16x32xf32>
    %649 = vector.broadcast %646 : vector<1x32xf32> to vector<16x32xf32>
    %650 = arith.addf %648, %649 : vector<16x32xf32>
    %651 = arith.addf %636, %650 : vector<16x32xf32>
    %c26 = arith.constant 26 : index
    %c0_195 = arith.constant 0 : index
    %652 = vector.load %arg9[%c26, %c0_195] : memref<48x128xf32, #tpu.memory_space<vmem>>, vector<1x32xf32>
    %c27 = arith.constant 27 : index
    %c0_196 = arith.constant 0 : index
    %653 = vector.load %arg9[%c27, %c0_196] : memref<48x128xf32, #tpu.memory_space<vmem>>, vector<1x32xf32>
    %cst_197 = arith.constant dense<0.000000e+00> : vector<16xf32>
    %654 = vector.multi_reduction <add>, %651, %cst_197 [1] : vector<16x32xf32> to vector<16xf32>
    %655 = vector.shape_cast %654 : vector<16xf32> to vector<16x1xf32>
    %cst_198 = arith.constant 3.200000e+01 : f32
    %656 = vector.broadcast %cst_198 : f32 to vector<16x1xf32>
    %657 = arith.divf %655, %656 : vector<16x1xf32>
    %658 = vector.broadcast %657 : vector<16x1xf32> to vector<16x32xf32>
    %659 = arith.subf %651, %658 : vector<16x32xf32>
    %660 = arith.mulf %659, %659 : vector<16x32xf32>
    %cst_199 = arith.constant dense<0.000000e+00> : vector<16xf32>
    %661 = vector.multi_reduction <add>, %660, %cst_199 [1] : vector<16x32xf32> to vector<16xf32>
    %662 = vector.shape_cast %661 : vector<16xf32> to vector<16x1xf32>
    %cst_200 = arith.constant 3.200000e+01 : f32
    %663 = vector.broadcast %cst_200 : f32 to vector<16x1xf32>
    %664 = arith.divf %662, %663 : vector<16x1xf32>
    %cst_201 = arith.constant 9.99999997E-7 : f32
    %665 = vector.broadcast %cst_201 : f32 to vector<16x1xf32>
    %666 = arith.addf %664, %665 : vector<16x1xf32>
    %667 = math.rsqrt %666 : vector<16x1xf32>
    %668 = vector.broadcast %667 : vector<16x1xf32> to vector<16x32xf32>
    %669 = arith.mulf %659, %668 : vector<16x32xf32>
    %670 = vector.broadcast %652 : vector<1x32xf32> to vector<16x32xf32>
    %671 = arith.mulf %669, %670 : vector<16x32xf32>
    %672 = vector.broadcast %653 : vector<1x32xf32> to vector<16x32xf32>
    %673 = arith.addf %671, %672 : vector<16x32xf32>
    %674 = vector.shape_cast %673 : vector<16x32xf32> to vector<2x8x32xf32>
    %675 = vector.shape_cast %674 : vector<2x8x32xf32> to vector<16x32xf32>
    %c672 = arith.constant 672 : index
    %c0_202 = arith.constant 0 : index
    %676 = vector.load %arg8[%c672, %c0_202] : memref<928x128xbf16, #tpu.memory_space<vmem>>, vector<32x96xbf16>
    %c30 = arith.constant 30 : index
    %c0_203 = arith.constant 0 : index
    %677 = vector.load %arg9[%c30, %c0_203] : memref<48x128xf32, #tpu.memory_space<vmem>>, vector<1x96xf32>
    %678 = arith.truncf %675 : vector<16x32xf32> to vector<16x32xbf16>
    %cst_204 = arith.constant dense<0.000000e+00> : vector<16x96xf32>
    %679 = tpu.matmul %678, %676, %cst_204 {dimension_numbers = #tpu.dot_dimension_numbers<[1], [0], [0], [1], [0, 0, 1, 1], [], []>} : vector<16x32xbf16>, vector<32x96xbf16>, vector<16x96xf32> -> vector<16x96xf32>
    %680 = vector.broadcast %677 : vector<1x96xf32> to vector<16x96xf32>
    %681 = arith.addf %679, %680 : vector<16x96xf32>
    %682 = vector.shape_cast %681 : vector<16x96xf32> to vector<2x8x96xf32>
    %683 = vector.extract_strided_slice %682 {offsets = [0, 0, 0], sizes = [2, 8, 32], strides = [1, 1, 1]} : vector<2x8x96xf32> to vector<2x8x32xf32>
    %684 = vector.extract_strided_slice %682 {offsets = [0, 0, 32], sizes = [2, 8, 32], strides = [1, 1, 1]} : vector<2x8x96xf32> to vector<2x8x32xf32>
    %685 = vector.extract_strided_slice %682 {offsets = [0, 0, 64], sizes = [2, 8, 32], strides = [1, 1, 1]} : vector<2x8x96xf32> to vector<2x8x32xf32>
    %c704 = arith.constant 704 : index
    %c0_205 = arith.constant 0 : index
    %686 = vector.load %arg8[%c704, %c0_205] : memref<928x128xbf16, #tpu.memory_space<vmem>>, vector<32x32xbf16>
    %c31 = arith.constant 31 : index
    %c0_206 = arith.constant 0 : index
    %687 = vector.load %arg9[%c31, %c0_206] : memref<48x128xf32, #tpu.memory_space<vmem>>, vector<1x32xf32>
    %cst_207 = arith.constant 0.353553385 : f32
    %688 = vector.broadcast %cst_207 : f32 to vector<2x8x32xf32>
    %689 = arith.mulf %683, %688 : vector<2x8x32xf32>
    %690 = arith.truncf %689 : vector<2x8x32xf32> to vector<2x8x32xbf16>
    %691 = arith.truncf %684 : vector<2x8x32xf32> to vector<2x8x32xbf16>
    %692 = arith.truncf %685 : vector<2x8x32xf32> to vector<2x8x32xbf16>
    %cst_208 = arith.constant 0.000000e+00 : f32
    %693 = vector.broadcast %cst_208 : f32 to vector<16x32xf32>
    %694 = vector.extract_strided_slice %690 {offsets = [0, 0, 0], sizes = [2, 8, 8], strides = [1, 1, 1]} : vector<2x8x32xbf16> to vector<2x8x8xbf16>
    %695 = vector.extract_strided_slice %691 {offsets = [0, 0, 0], sizes = [2, 8, 8], strides = [1, 1, 1]} : vector<2x8x32xbf16> to vector<2x8x8xbf16>
    "tpu.trace_start"() <{level = 10 : i32, message = "bqd,bkd->bqk"}> : () -> ()
    %cst_209 = arith.constant dense<0.000000e+00> : vector<2x8x8xf32>
    %696 = tpu.matmul %694, %695, %cst_209 {dimension_numbers = #tpu.dot_dimension_numbers<[2], [2], [1], [1], [0, 0, 0, 1, 1, 1], [0], [0]>} : vector<2x8x8xbf16>, vector<2x8x8xbf16>, vector<2x8x8xf32> -> vector<2x8x8xf32>
    "tpu.trace_stop"() : () -> ()
    %697 = arith.addf %696, %366 : vector<2x8x8xf32>
    %cst_210 = arith.constant dense<0xFF800000> : vector<2x8xf32>
    %698 = vector.multi_reduction <maximumf>, %697, %cst_210 [2] : vector<2x8x8xf32> to vector<2x8xf32>
    %699 = vector.shape_cast %698 : vector<2x8xf32> to vector<2x8x1xf32>
    %700 = vector.broadcast %699 : vector<2x8x1xf32> to vector<2x8x8xf32>
    %701 = arith.subf %697, %700 : vector<2x8x8xf32>
    %702 = math.exp %701 : vector<2x8x8xf32>
    %cst_211 = arith.constant dense<0.000000e+00> : vector<2x8xf32>
    %703 = vector.multi_reduction <add>, %702, %cst_211 [2] : vector<2x8x8xf32> to vector<2x8xf32>
    %704 = vector.shape_cast %703 : vector<2x8xf32> to vector<2x8x1xf32>
    %705 = tpu.reciprocal %704 : vector<2x8x1xf32> -> vector<2x8x1xf32>
    %706 = vector.broadcast %705 : vector<2x8x1xf32> to vector<2x8x8xf32>
    %707 = arith.mulf %702, %706 : vector<2x8x8xf32>
    %708 = arith.truncf %707 : vector<2x8x8xf32> to vector<2x8x8xbf16>
    %709 = vector.extract_strided_slice %692 {offsets = [0, 0, 0], sizes = [2, 8, 8], strides = [1, 1, 1]} : vector<2x8x32xbf16> to vector<2x8x8xbf16>
    "tpu.trace_start"() <{level = 10 : i32, message = "bqk,bkd->bqd"}> : () -> ()
    %cst_212 = arith.constant dense<0.000000e+00> : vector<2x8x8xf32>
    %710 = tpu.matmul %708, %709, %cst_212 {dimension_numbers = #tpu.dot_dimension_numbers<[2], [1], [1], [2], [0, 0, 0, 1, 1, 2], [0], [0]>} : vector<2x8x8xbf16>, vector<2x8x8xbf16>, vector<2x8x8xf32> -> vector<2x8x8xf32>
    "tpu.trace_stop"() : () -> ()
    %711 = vector.shape_cast %710 : vector<2x8x8xf32> to vector<16x8xf32>
    %712 = arith.truncf %711 : vector<16x8xf32> to vector<16x8xbf16>
    %713 = vector.extract_strided_slice %686 {offsets = [0, 0], sizes = [8, 32], strides = [1, 1]} : vector<32x32xbf16> to vector<8x32xbf16>
    %cst_213 = arith.constant dense<0.000000e+00> : vector<16x32xf32>
    %714 = tpu.matmul %712, %713, %cst_213 {dimension_numbers = #tpu.dot_dimension_numbers<[1], [0], [0], [1], [0, 0, 1, 1], [], []>} : vector<16x8xbf16>, vector<8x32xbf16>, vector<16x32xf32> -> vector<16x32xf32>
    %715 = arith.addf %693, %714 : vector<16x32xf32>
    %716 = vector.extract_strided_slice %690 {offsets = [0, 0, 8], sizes = [2, 8, 8], strides = [1, 1, 1]} : vector<2x8x32xbf16> to vector<2x8x8xbf16>
    %717 = vector.extract_strided_slice %691 {offsets = [0, 0, 8], sizes = [2, 8, 8], strides = [1, 1, 1]} : vector<2x8x32xbf16> to vector<2x8x8xbf16>
    "tpu.trace_start"() <{level = 10 : i32, message = "bqd,bkd->bqk"}> : () -> ()
    %cst_214 = arith.constant dense<0.000000e+00> : vector<2x8x8xf32>
    %718 = tpu.matmul %716, %717, %cst_214 {dimension_numbers = #tpu.dot_dimension_numbers<[2], [2], [1], [1], [0, 0, 0, 1, 1, 1], [0], [0]>} : vector<2x8x8xbf16>, vector<2x8x8xbf16>, vector<2x8x8xf32> -> vector<2x8x8xf32>
    "tpu.trace_stop"() : () -> ()
    %719 = arith.addf %718, %366 : vector<2x8x8xf32>
    %cst_215 = arith.constant dense<0xFF800000> : vector<2x8xf32>
    %720 = vector.multi_reduction <maximumf>, %719, %cst_215 [2] : vector<2x8x8xf32> to vector<2x8xf32>
    %721 = vector.shape_cast %720 : vector<2x8xf32> to vector<2x8x1xf32>
    %722 = vector.broadcast %721 : vector<2x8x1xf32> to vector<2x8x8xf32>
    %723 = arith.subf %719, %722 : vector<2x8x8xf32>
    %724 = math.exp %723 : vector<2x8x8xf32>
    %cst_216 = arith.constant dense<0.000000e+00> : vector<2x8xf32>
    %725 = vector.multi_reduction <add>, %724, %cst_216 [2] : vector<2x8x8xf32> to vector<2x8xf32>
    %726 = vector.shape_cast %725 : vector<2x8xf32> to vector<2x8x1xf32>
    %727 = tpu.reciprocal %726 : vector<2x8x1xf32> -> vector<2x8x1xf32>
    %728 = vector.broadcast %727 : vector<2x8x1xf32> to vector<2x8x8xf32>
    %729 = arith.mulf %724, %728 : vector<2x8x8xf32>
    %730 = arith.truncf %729 : vector<2x8x8xf32> to vector<2x8x8xbf16>
    %731 = vector.extract_strided_slice %692 {offsets = [0, 0, 8], sizes = [2, 8, 8], strides = [1, 1, 1]} : vector<2x8x32xbf16> to vector<2x8x8xbf16>
    "tpu.trace_start"() <{level = 10 : i32, message = "bqk,bkd->bqd"}> : () -> ()
    %cst_217 = arith.constant dense<0.000000e+00> : vector<2x8x8xf32>
    %732 = tpu.matmul %730, %731, %cst_217 {dimension_numbers = #tpu.dot_dimension_numbers<[2], [1], [1], [2], [0, 0, 0, 1, 1, 2], [0], [0]>} : vector<2x8x8xbf16>, vector<2x8x8xbf16>, vector<2x8x8xf32> -> vector<2x8x8xf32>
    "tpu.trace_stop"() : () -> ()
    %733 = vector.shape_cast %732 : vector<2x8x8xf32> to vector<16x8xf32>
    %734 = arith.truncf %733 : vector<16x8xf32> to vector<16x8xbf16>
    %735 = vector.extract_strided_slice %686 {offsets = [8, 0], sizes = [8, 32], strides = [1, 1]} : vector<32x32xbf16> to vector<8x32xbf16>
    %cst_218 = arith.constant dense<0.000000e+00> : vector<16x32xf32>
    %736 = tpu.matmul %734, %735, %cst_218 {dimension_numbers = #tpu.dot_dimension_numbers<[1], [0], [0], [1], [0, 0, 1, 1], [], []>} : vector<16x8xbf16>, vector<8x32xbf16>, vector<16x32xf32> -> vector<16x32xf32>
    %737 = arith.addf %715, %736 : vector<16x32xf32>
    %738 = vector.extract_strided_slice %690 {offsets = [0, 0, 16], sizes = [2, 8, 8], strides = [1, 1, 1]} : vector<2x8x32xbf16> to vector<2x8x8xbf16>
    %739 = vector.extract_strided_slice %691 {offsets = [0, 0, 16], sizes = [2, 8, 8], strides = [1, 1, 1]} : vector<2x8x32xbf16> to vector<2x8x8xbf16>
    "tpu.trace_start"() <{level = 10 : i32, message = "bqd,bkd->bqk"}> : () -> ()
    %cst_219 = arith.constant dense<0.000000e+00> : vector<2x8x8xf32>
    %740 = tpu.matmul %738, %739, %cst_219 {dimension_numbers = #tpu.dot_dimension_numbers<[2], [2], [1], [1], [0, 0, 0, 1, 1, 1], [0], [0]>} : vector<2x8x8xbf16>, vector<2x8x8xbf16>, vector<2x8x8xf32> -> vector<2x8x8xf32>
    "tpu.trace_stop"() : () -> ()
    %741 = arith.addf %740, %366 : vector<2x8x8xf32>
    %cst_220 = arith.constant dense<0xFF800000> : vector<2x8xf32>
    %742 = vector.multi_reduction <maximumf>, %741, %cst_220 [2] : vector<2x8x8xf32> to vector<2x8xf32>
    %743 = vector.shape_cast %742 : vector<2x8xf32> to vector<2x8x1xf32>
    %744 = vector.broadcast %743 : vector<2x8x1xf32> to vector<2x8x8xf32>
    %745 = arith.subf %741, %744 : vector<2x8x8xf32>
    %746 = math.exp %745 : vector<2x8x8xf32>
    %cst_221 = arith.constant dense<0.000000e+00> : vector<2x8xf32>
    %747 = vector.multi_reduction <add>, %746, %cst_221 [2] : vector<2x8x8xf32> to vector<2x8xf32>
    %748 = vector.shape_cast %747 : vector<2x8xf32> to vector<2x8x1xf32>
    %749 = tpu.reciprocal %748 : vector<2x8x1xf32> -> vector<2x8x1xf32>
    %750 = vector.broadcast %749 : vector<2x8x1xf32> to vector<2x8x8xf32>
    %751 = arith.mulf %746, %750 : vector<2x8x8xf32>
    %752 = arith.truncf %751 : vector<2x8x8xf32> to vector<2x8x8xbf16>
    %753 = vector.extract_strided_slice %692 {offsets = [0, 0, 16], sizes = [2, 8, 8], strides = [1, 1, 1]} : vector<2x8x32xbf16> to vector<2x8x8xbf16>
    "tpu.trace_start"() <{level = 10 : i32, message = "bqk,bkd->bqd"}> : () -> ()
    %cst_222 = arith.constant dense<0.000000e+00> : vector<2x8x8xf32>
    %754 = tpu.matmul %752, %753, %cst_222 {dimension_numbers = #tpu.dot_dimension_numbers<[2], [1], [1], [2], [0, 0, 0, 1, 1, 2], [0], [0]>} : vector<2x8x8xbf16>, vector<2x8x8xbf16>, vector<2x8x8xf32> -> vector<2x8x8xf32>
    "tpu.trace_stop"() : () -> ()
    %755 = vector.shape_cast %754 : vector<2x8x8xf32> to vector<16x8xf32>
    %756 = arith.truncf %755 : vector<16x8xf32> to vector<16x8xbf16>
    %757 = vector.extract_strided_slice %686 {offsets = [16, 0], sizes = [8, 32], strides = [1, 1]} : vector<32x32xbf16> to vector<8x32xbf16>
    %cst_223 = arith.constant dense<0.000000e+00> : vector<16x32xf32>
    %758 = tpu.matmul %756, %757, %cst_223 {dimension_numbers = #tpu.dot_dimension_numbers<[1], [0], [0], [1], [0, 0, 1, 1], [], []>} : vector<16x8xbf16>, vector<8x32xbf16>, vector<16x32xf32> -> vector<16x32xf32>
    %759 = arith.addf %737, %758 : vector<16x32xf32>
    %760 = vector.extract_strided_slice %690 {offsets = [0, 0, 24], sizes = [2, 8, 8], strides = [1, 1, 1]} : vector<2x8x32xbf16> to vector<2x8x8xbf16>
    %761 = vector.extract_strided_slice %691 {offsets = [0, 0, 24], sizes = [2, 8, 8], strides = [1, 1, 1]} : vector<2x8x32xbf16> to vector<2x8x8xbf16>
    "tpu.trace_start"() <{level = 10 : i32, message = "bqd,bkd->bqk"}> : () -> ()
    %cst_224 = arith.constant dense<0.000000e+00> : vector<2x8x8xf32>
    %762 = tpu.matmul %760, %761, %cst_224 {dimension_numbers = #tpu.dot_dimension_numbers<[2], [2], [1], [1], [0, 0, 0, 1, 1, 1], [0], [0]>} : vector<2x8x8xbf16>, vector<2x8x8xbf16>, vector<2x8x8xf32> -> vector<2x8x8xf32>
    "tpu.trace_stop"() : () -> ()
    %763 = arith.addf %762, %366 : vector<2x8x8xf32>
    %cst_225 = arith.constant dense<0xFF800000> : vector<2x8xf32>
    %764 = vector.multi_reduction <maximumf>, %763, %cst_225 [2] : vector<2x8x8xf32> to vector<2x8xf32>
    %765 = vector.shape_cast %764 : vector<2x8xf32> to vector<2x8x1xf32>
    %766 = vector.broadcast %765 : vector<2x8x1xf32> to vector<2x8x8xf32>
    %767 = arith.subf %763, %766 : vector<2x8x8xf32>
    %768 = math.exp %767 : vector<2x8x8xf32>
    %cst_226 = arith.constant dense<0.000000e+00> : vector<2x8xf32>
    %769 = vector.multi_reduction <add>, %768, %cst_226 [2] : vector<2x8x8xf32> to vector<2x8xf32>
    %770 = vector.shape_cast %769 : vector<2x8xf32> to vector<2x8x1xf32>
    %771 = tpu.reciprocal %770 : vector<2x8x1xf32> -> vector<2x8x1xf32>
    %772 = vector.broadcast %771 : vector<2x8x1xf32> to vector<2x8x8xf32>
    %773 = arith.mulf %768, %772 : vector<2x8x8xf32>
    %774 = arith.truncf %773 : vector<2x8x8xf32> to vector<2x8x8xbf16>
    %775 = vector.extract_strided_slice %692 {offsets = [0, 0, 24], sizes = [2, 8, 8], strides = [1, 1, 1]} : vector<2x8x32xbf16> to vector<2x8x8xbf16>
    "tpu.trace_start"() <{level = 10 : i32, message = "bqk,bkd->bqd"}> : () -> ()
    %cst_227 = arith.constant dense<0.000000e+00> : vector<2x8x8xf32>
    %776 = tpu.matmul %774, %775, %cst_227 {dimension_numbers = #tpu.dot_dimension_numbers<[2], [1], [1], [2], [0, 0, 0, 1, 1, 2], [0], [0]>} : vector<2x8x8xbf16>, vector<2x8x8xbf16>, vector<2x8x8xf32> -> vector<2x8x8xf32>
    "tpu.trace_stop"() : () -> ()
    %777 = vector.shape_cast %776 : vector<2x8x8xf32> to vector<16x8xf32>
    %778 = arith.truncf %777 : vector<16x8xf32> to vector<16x8xbf16>
    %779 = vector.extract_strided_slice %686 {offsets = [24, 0], sizes = [8, 32], strides = [1, 1]} : vector<32x32xbf16> to vector<8x32xbf16>
    %cst_228 = arith.constant dense<0.000000e+00> : vector<16x32xf32>
    %780 = tpu.matmul %778, %779, %cst_228 {dimension_numbers = #tpu.dot_dimension_numbers<[1], [0], [0], [1], [0, 0, 1, 1], [], []>} : vector<16x8xbf16>, vector<8x32xbf16>, vector<16x32xf32> -> vector<16x32xf32>
    %781 = arith.addf %759, %780 : vector<16x32xf32>
    %782 = vector.broadcast %687 : vector<1x32xf32> to vector<16x32xf32>
    %783 = arith.addf %781, %782 : vector<16x32xf32>
    %784 = arith.addf %675, %783 : vector<16x32xf32>
    %c35 = arith.constant 35 : index
    %c0_229 = arith.constant 0 : index
    %785 = vector.load %arg9[%c35, %c0_229] : memref<48x128xf32, #tpu.memory_space<vmem>>, vector<1x32xf32>
    %c36 = arith.constant 36 : index
    %c0_230 = arith.constant 0 : index
    %786 = vector.load %arg9[%c36, %c0_230] : memref<48x128xf32, #tpu.memory_space<vmem>>, vector<1x32xf32>
    %cst_231 = arith.constant dense<0.000000e+00> : vector<16xf32>
    %787 = vector.multi_reduction <add>, %784, %cst_231 [1] : vector<16x32xf32> to vector<16xf32>
    %788 = vector.shape_cast %787 : vector<16xf32> to vector<16x1xf32>
    %cst_232 = arith.constant 3.200000e+01 : f32
    %789 = vector.broadcast %cst_232 : f32 to vector<16x1xf32>
    %790 = arith.divf %788, %789 : vector<16x1xf32>
    %791 = vector.broadcast %790 : vector<16x1xf32> to vector<16x32xf32>
    %792 = arith.subf %784, %791 : vector<16x32xf32>
    %793 = arith.mulf %792, %792 : vector<16x32xf32>
    %cst_233 = arith.constant dense<0.000000e+00> : vector<16xf32>
    %794 = vector.multi_reduction <add>, %793, %cst_233 [1] : vector<16x32xf32> to vector<16xf32>
    %795 = vector.shape_cast %794 : vector<16xf32> to vector<16x1xf32>
    %cst_234 = arith.constant 3.200000e+01 : f32
    %796 = vector.broadcast %cst_234 : f32 to vector<16x1xf32>
    %797 = arith.divf %795, %796 : vector<16x1xf32>
    %cst_235 = arith.constant 9.99999997E-7 : f32
    %798 = vector.broadcast %cst_235 : f32 to vector<16x1xf32>
    %799 = arith.addf %797, %798 : vector<16x1xf32>
    %800 = math.rsqrt %799 : vector<16x1xf32>
    %801 = vector.broadcast %800 : vector<16x1xf32> to vector<16x32xf32>
    %802 = arith.mulf %792, %801 : vector<16x32xf32>
    %803 = vector.broadcast %785 : vector<1x32xf32> to vector<16x32xf32>
    %804 = arith.mulf %802, %803 : vector<16x32xf32>
    %805 = vector.broadcast %786 : vector<1x32xf32> to vector<16x32xf32>
    %806 = arith.addf %804, %805 : vector<16x32xf32>
    %c736 = arith.constant 736 : index
    %c0_236 = arith.constant 0 : index
    %807 = vector.load %arg8[%c736, %c0_236] : memref<928x128xbf16, #tpu.memory_space<vmem>>, vector<32x32xbf16>
    %c32 = arith.constant 32 : index
    %c0_237 = arith.constant 0 : index
    %808 = vector.load %arg9[%c32, %c0_237] : memref<48x128xf32, #tpu.memory_space<vmem>>, vector<1x32xf32>
    %809 = arith.truncf %806 : vector<16x32xf32> to vector<16x32xbf16>
    %cst_238 = arith.constant dense<0.000000e+00> : vector<16x32xf32>
    %810 = tpu.matmul %809, %807, %cst_238 {dimension_numbers = #tpu.dot_dimension_numbers<[1], [0], [0], [1], [0, 0, 1, 1], [], []>} : vector<16x32xbf16>, vector<32x32xbf16>, vector<16x32xf32> -> vector<16x32xf32>
    %811 = vector.broadcast %808 : vector<1x32xf32> to vector<16x32xf32>
    %812 = arith.addf %810, %811 : vector<16x32xf32>
    %813 = vector.shape_cast %812 : vector<16x32xf32> to vector<2x8x32xf32>
    %814 = vector.shape_cast %352 : vector<2x8x32xf32> to vector<16x32xf32>
    %c768 = arith.constant 768 : index
    %c0_239 = arith.constant 0 : index
    %815 = vector.load %arg8[%c768, %c0_239] : memref<928x128xbf16, #tpu.memory_space<vmem>>, vector<32x64xbf16>
    %c33 = arith.constant 33 : index
    %c0_240 = arith.constant 0 : index
    %816 = vector.load %arg9[%c33, %c0_240] : memref<48x128xf32, #tpu.memory_space<vmem>>, vector<1x64xf32>
    %817 = arith.truncf %814 : vector<16x32xf32> to vector<16x32xbf16>
    %cst_241 = arith.constant dense<0.000000e+00> : vector<16x64xf32>
    %818 = tpu.matmul %817, %815, %cst_241 {dimension_numbers = #tpu.dot_dimension_numbers<[1], [0], [0], [1], [0, 0, 1, 1], [], []>} : vector<16x32xbf16>, vector<32x64xbf16>, vector<16x64xf32> -> vector<16x64xf32>
    %819 = vector.broadcast %816 : vector<1x64xf32> to vector<16x64xf32>
    %820 = arith.addf %818, %819 : vector<16x64xf32>
    %821 = vector.shape_cast %820 : vector<16x64xf32> to vector<2x8x64xf32>
    %822 = vector.extract_strided_slice %821 {offsets = [0, 0, 0], sizes = [2, 8, 32], strides = [1, 1, 1]} : vector<2x8x64xf32> to vector<2x8x32xf32>
    %823 = vector.extract_strided_slice %821 {offsets = [0, 0, 32], sizes = [2, 8, 32], strides = [1, 1, 1]} : vector<2x8x64xf32> to vector<2x8x32xf32>
    %c800 = arith.constant 800 : index
    %c0_242 = arith.constant 0 : index
    %824 = vector.load %arg8[%c800, %c0_242] : memref<928x128xbf16, #tpu.memory_space<vmem>>, vector<32x32xbf16>
    %c34 = arith.constant 34 : index
    %c0_243 = arith.constant 0 : index
    %825 = vector.load %arg9[%c34, %c0_243] : memref<48x128xf32, #tpu.memory_space<vmem>>, vector<1x32xf32>
    %cst_244 = arith.constant 0.353553385 : f32
    %826 = vector.broadcast %cst_244 : f32 to vector<2x8x32xf32>
    %827 = arith.mulf %813, %826 : vector<2x8x32xf32>
    %828 = arith.truncf %827 : vector<2x8x32xf32> to vector<2x8x32xbf16>
    %829 = arith.truncf %822 : vector<2x8x32xf32> to vector<2x8x32xbf16>
    %830 = arith.truncf %823 : vector<2x8x32xf32> to vector<2x8x32xbf16>
    %cst_245 = arith.constant 0.000000e+00 : f32
    %831 = vector.broadcast %cst_245 : f32 to vector<16x32xf32>
    %832 = vector.extract_strided_slice %828 {offsets = [0, 0, 0], sizes = [2, 8, 8], strides = [1, 1, 1]} : vector<2x8x32xbf16> to vector<2x8x8xbf16>
    %833 = vector.extract_strided_slice %829 {offsets = [0, 0, 0], sizes = [2, 8, 8], strides = [1, 1, 1]} : vector<2x8x32xbf16> to vector<2x8x8xbf16>
    "tpu.trace_start"() <{level = 10 : i32, message = "bqd,bkd->bqk"}> : () -> ()
    %cst_246 = arith.constant dense<0.000000e+00> : vector<2x8x8xf32>
    %834 = tpu.matmul %832, %833, %cst_246 {dimension_numbers = #tpu.dot_dimension_numbers<[2], [2], [1], [1], [0, 0, 0, 1, 1, 1], [0], [0]>} : vector<2x8x8xbf16>, vector<2x8x8xbf16>, vector<2x8x8xf32> -> vector<2x8x8xf32>
    "tpu.trace_stop"() : () -> ()
    %835 = arith.addf %834, %365 : vector<2x8x8xf32>
    %cst_247 = arith.constant dense<0xFF800000> : vector<2x8xf32>
    %836 = vector.multi_reduction <maximumf>, %835, %cst_247 [2] : vector<2x8x8xf32> to vector<2x8xf32>
    %837 = vector.shape_cast %836 : vector<2x8xf32> to vector<2x8x1xf32>
    %838 = vector.broadcast %837 : vector<2x8x1xf32> to vector<2x8x8xf32>
    %839 = arith.subf %835, %838 : vector<2x8x8xf32>
    %840 = math.exp %839 : vector<2x8x8xf32>
    %cst_248 = arith.constant dense<0.000000e+00> : vector<2x8xf32>
    %841 = vector.multi_reduction <add>, %840, %cst_248 [2] : vector<2x8x8xf32> to vector<2x8xf32>
    %842 = vector.shape_cast %841 : vector<2x8xf32> to vector<2x8x1xf32>
    %843 = tpu.reciprocal %842 : vector<2x8x1xf32> -> vector<2x8x1xf32>
    %844 = vector.broadcast %843 : vector<2x8x1xf32> to vector<2x8x8xf32>
    %845 = arith.mulf %840, %844 : vector<2x8x8xf32>
    %846 = arith.truncf %845 : vector<2x8x8xf32> to vector<2x8x8xbf16>
    %847 = vector.extract_strided_slice %830 {offsets = [0, 0, 0], sizes = [2, 8, 8], strides = [1, 1, 1]} : vector<2x8x32xbf16> to vector<2x8x8xbf16>
    "tpu.trace_start"() <{level = 10 : i32, message = "bqk,bkd->bqd"}> : () -> ()
    %cst_249 = arith.constant dense<0.000000e+00> : vector<2x8x8xf32>
    %848 = tpu.matmul %846, %847, %cst_249 {dimension_numbers = #tpu.dot_dimension_numbers<[2], [1], [1], [2], [0, 0, 0, 1, 1, 2], [0], [0]>} : vector<2x8x8xbf16>, vector<2x8x8xbf16>, vector<2x8x8xf32> -> vector<2x8x8xf32>
    "tpu.trace_stop"() : () -> ()
    %849 = vector.shape_cast %848 : vector<2x8x8xf32> to vector<16x8xf32>
    %850 = arith.truncf %849 : vector<16x8xf32> to vector<16x8xbf16>
    %851 = vector.extract_strided_slice %824 {offsets = [0, 0], sizes = [8, 32], strides = [1, 1]} : vector<32x32xbf16> to vector<8x32xbf16>
    %cst_250 = arith.constant dense<0.000000e+00> : vector<16x32xf32>
    %852 = tpu.matmul %850, %851, %cst_250 {dimension_numbers = #tpu.dot_dimension_numbers<[1], [0], [0], [1], [0, 0, 1, 1], [], []>} : vector<16x8xbf16>, vector<8x32xbf16>, vector<16x32xf32> -> vector<16x32xf32>
    %853 = arith.addf %831, %852 : vector<16x32xf32>
    %854 = vector.extract_strided_slice %828 {offsets = [0, 0, 8], sizes = [2, 8, 8], strides = [1, 1, 1]} : vector<2x8x32xbf16> to vector<2x8x8xbf16>
    %855 = vector.extract_strided_slice %829 {offsets = [0, 0, 8], sizes = [2, 8, 8], strides = [1, 1, 1]} : vector<2x8x32xbf16> to vector<2x8x8xbf16>
    "tpu.trace_start"() <{level = 10 : i32, message = "bqd,bkd->bqk"}> : () -> ()
    %cst_251 = arith.constant dense<0.000000e+00> : vector<2x8x8xf32>
    %856 = tpu.matmul %854, %855, %cst_251 {dimension_numbers = #tpu.dot_dimension_numbers<[2], [2], [1], [1], [0, 0, 0, 1, 1, 1], [0], [0]>} : vector<2x8x8xbf16>, vector<2x8x8xbf16>, vector<2x8x8xf32> -> vector<2x8x8xf32>
    "tpu.trace_stop"() : () -> ()
    %857 = arith.addf %856, %365 : vector<2x8x8xf32>
    %cst_252 = arith.constant dense<0xFF800000> : vector<2x8xf32>
    %858 = vector.multi_reduction <maximumf>, %857, %cst_252 [2] : vector<2x8x8xf32> to vector<2x8xf32>
    %859 = vector.shape_cast %858 : vector<2x8xf32> to vector<2x8x1xf32>
    %860 = vector.broadcast %859 : vector<2x8x1xf32> to vector<2x8x8xf32>
    %861 = arith.subf %857, %860 : vector<2x8x8xf32>
    %862 = math.exp %861 : vector<2x8x8xf32>
    %cst_253 = arith.constant dense<0.000000e+00> : vector<2x8xf32>
    %863 = vector.multi_reduction <add>, %862, %cst_253 [2] : vector<2x8x8xf32> to vector<2x8xf32>
    %864 = vector.shape_cast %863 : vector<2x8xf32> to vector<2x8x1xf32>
    %865 = tpu.reciprocal %864 : vector<2x8x1xf32> -> vector<2x8x1xf32>
    %866 = vector.broadcast %865 : vector<2x8x1xf32> to vector<2x8x8xf32>
    %867 = arith.mulf %862, %866 : vector<2x8x8xf32>
    %868 = arith.truncf %867 : vector<2x8x8xf32> to vector<2x8x8xbf16>
    %869 = vector.extract_strided_slice %830 {offsets = [0, 0, 8], sizes = [2, 8, 8], strides = [1, 1, 1]} : vector<2x8x32xbf16> to vector<2x8x8xbf16>
    "tpu.trace_start"() <{level = 10 : i32, message = "bqk,bkd->bqd"}> : () -> ()
    %cst_254 = arith.constant dense<0.000000e+00> : vector<2x8x8xf32>
    %870 = tpu.matmul %868, %869, %cst_254 {dimension_numbers = #tpu.dot_dimension_numbers<[2], [1], [1], [2], [0, 0, 0, 1, 1, 2], [0], [0]>} : vector<2x8x8xbf16>, vector<2x8x8xbf16>, vector<2x8x8xf32> -> vector<2x8x8xf32>
    "tpu.trace_stop"() : () -> ()
    %871 = vector.shape_cast %870 : vector<2x8x8xf32> to vector<16x8xf32>
    %872 = arith.truncf %871 : vector<16x8xf32> to vector<16x8xbf16>
    %873 = vector.extract_strided_slice %824 {offsets = [8, 0], sizes = [8, 32], strides = [1, 1]} : vector<32x32xbf16> to vector<8x32xbf16>
    %cst_255 = arith.constant dense<0.000000e+00> : vector<16x32xf32>
    %874 = tpu.matmul %872, %873, %cst_255 {dimension_numbers = #tpu.dot_dimension_numbers<[1], [0], [0], [1], [0, 0, 1, 1], [], []>} : vector<16x8xbf16>, vector<8x32xbf16>, vector<16x32xf32> -> vector<16x32xf32>
    %875 = arith.addf %853, %874 : vector<16x32xf32>
    %876 = vector.extract_strided_slice %828 {offsets = [0, 0, 16], sizes = [2, 8, 8], strides = [1, 1, 1]} : vector<2x8x32xbf16> to vector<2x8x8xbf16>
    %877 = vector.extract_strided_slice %829 {offsets = [0, 0, 16], sizes = [2, 8, 8], strides = [1, 1, 1]} : vector<2x8x32xbf16> to vector<2x8x8xbf16>
    "tpu.trace_start"() <{level = 10 : i32, message = "bqd,bkd->bqk"}> : () -> ()
    %cst_256 = arith.constant dense<0.000000e+00> : vector<2x8x8xf32>
    %878 = tpu.matmul %876, %877, %cst_256 {dimension_numbers = #tpu.dot_dimension_numbers<[2], [2], [1], [1], [0, 0, 0, 1, 1, 1], [0], [0]>} : vector<2x8x8xbf16>, vector<2x8x8xbf16>, vector<2x8x8xf32> -> vector<2x8x8xf32>
    "tpu.trace_stop"() : () -> ()
    %879 = arith.addf %878, %365 : vector<2x8x8xf32>
    %cst_257 = arith.constant dense<0xFF800000> : vector<2x8xf32>
    %880 = vector.multi_reduction <maximumf>, %879, %cst_257 [2] : vector<2x8x8xf32> to vector<2x8xf32>
    %881 = vector.shape_cast %880 : vector<2x8xf32> to vector<2x8x1xf32>
    %882 = vector.broadcast %881 : vector<2x8x1xf32> to vector<2x8x8xf32>
    %883 = arith.subf %879, %882 : vector<2x8x8xf32>
    %884 = math.exp %883 : vector<2x8x8xf32>
    %cst_258 = arith.constant dense<0.000000e+00> : vector<2x8xf32>
    %885 = vector.multi_reduction <add>, %884, %cst_258 [2] : vector<2x8x8xf32> to vector<2x8xf32>
    %886 = vector.shape_cast %885 : vector<2x8xf32> to vector<2x8x1xf32>
    %887 = tpu.reciprocal %886 : vector<2x8x1xf32> -> vector<2x8x1xf32>
    %888 = vector.broadcast %887 : vector<2x8x1xf32> to vector<2x8x8xf32>
    %889 = arith.mulf %884, %888 : vector<2x8x8xf32>
    %890 = arith.truncf %889 : vector<2x8x8xf32> to vector<2x8x8xbf16>
    %891 = vector.extract_strided_slice %830 {offsets = [0, 0, 16], sizes = [2, 8, 8], strides = [1, 1, 1]} : vector<2x8x32xbf16> to vector<2x8x8xbf16>
    "tpu.trace_start"() <{level = 10 : i32, message = "bqk,bkd->bqd"}> : () -> ()
    %cst_259 = arith.constant dense<0.000000e+00> : vector<2x8x8xf32>
    %892 = tpu.matmul %890, %891, %cst_259 {dimension_numbers = #tpu.dot_dimension_numbers<[2], [1], [1], [2], [0, 0, 0, 1, 1, 2], [0], [0]>} : vector<2x8x8xbf16>, vector<2x8x8xbf16>, vector<2x8x8xf32> -> vector<2x8x8xf32>
    "tpu.trace_stop"() : () -> ()
    %893 = vector.shape_cast %892 : vector<2x8x8xf32> to vector<16x8xf32>
    %894 = arith.truncf %893 : vector<16x8xf32> to vector<16x8xbf16>
    %895 = vector.extract_strided_slice %824 {offsets = [16, 0], sizes = [8, 32], strides = [1, 1]} : vector<32x32xbf16> to vector<8x32xbf16>
    %cst_260 = arith.constant dense<0.000000e+00> : vector<16x32xf32>
    %896 = tpu.matmul %894, %895, %cst_260 {dimension_numbers = #tpu.dot_dimension_numbers<[1], [0], [0], [1], [0, 0, 1, 1], [], []>} : vector<16x8xbf16>, vector<8x32xbf16>, vector<16x32xf32> -> vector<16x32xf32>
    %897 = arith.addf %875, %896 : vector<16x32xf32>
    %898 = vector.extract_strided_slice %828 {offsets = [0, 0, 24], sizes = [2, 8, 8], strides = [1, 1, 1]} : vector<2x8x32xbf16> to vector<2x8x8xbf16>
    %899 = vector.extract_strided_slice %829 {offsets = [0, 0, 24], sizes = [2, 8, 8], strides = [1, 1, 1]} : vector<2x8x32xbf16> to vector<2x8x8xbf16>
    "tpu.trace_start"() <{level = 10 : i32, message = "bqd,bkd->bqk"}> : () -> ()
    %cst_261 = arith.constant dense<0.000000e+00> : vector<2x8x8xf32>
    %900 = tpu.matmul %898, %899, %cst_261 {dimension_numbers = #tpu.dot_dimension_numbers<[2], [2], [1], [1], [0, 0, 0, 1, 1, 1], [0], [0]>} : vector<2x8x8xbf16>, vector<2x8x8xbf16>, vector<2x8x8xf32> -> vector<2x8x8xf32>
    "tpu.trace_stop"() : () -> ()
    %901 = arith.addf %900, %365 : vector<2x8x8xf32>
    %cst_262 = arith.constant dense<0xFF800000> : vector<2x8xf32>
    %902 = vector.multi_reduction <maximumf>, %901, %cst_262 [2] : vector<2x8x8xf32> to vector<2x8xf32>
    %903 = vector.shape_cast %902 : vector<2x8xf32> to vector<2x8x1xf32>
    %904 = vector.broadcast %903 : vector<2x8x1xf32> to vector<2x8x8xf32>
    %905 = arith.subf %901, %904 : vector<2x8x8xf32>
    %906 = math.exp %905 : vector<2x8x8xf32>
    %cst_263 = arith.constant dense<0.000000e+00> : vector<2x8xf32>
    %907 = vector.multi_reduction <add>, %906, %cst_263 [2] : vector<2x8x8xf32> to vector<2x8xf32>
    %908 = vector.shape_cast %907 : vector<2x8xf32> to vector<2x8x1xf32>
    %909 = tpu.reciprocal %908 : vector<2x8x1xf32> -> vector<2x8x1xf32>
    %910 = vector.broadcast %909 : vector<2x8x1xf32> to vector<2x8x8xf32>
    %911 = arith.mulf %906, %910 : vector<2x8x8xf32>
    %912 = arith.truncf %911 : vector<2x8x8xf32> to vector<2x8x8xbf16>
    %913 = vector.extract_strided_slice %830 {offsets = [0, 0, 24], sizes = [2, 8, 8], strides = [1, 1, 1]} : vector<2x8x32xbf16> to vector<2x8x8xbf16>
    "tpu.trace_start"() <{level = 10 : i32, message = "bqk,bkd->bqd"}> : () -> ()
    %cst_264 = arith.constant dense<0.000000e+00> : vector<2x8x8xf32>
    %914 = tpu.matmul %912, %913, %cst_264 {dimension_numbers = #tpu.dot_dimension_numbers<[2], [1], [1], [2], [0, 0, 0, 1, 1, 2], [0], [0]>} : vector<2x8x8xbf16>, vector<2x8x8xbf16>, vector<2x8x8xf32> -> vector<2x8x8xf32>
    "tpu.trace_stop"() : () -> ()
    %915 = vector.shape_cast %914 : vector<2x8x8xf32> to vector<16x8xf32>
    %916 = arith.truncf %915 : vector<16x8xf32> to vector<16x8xbf16>
    %917 = vector.extract_strided_slice %824 {offsets = [24, 0], sizes = [8, 32], strides = [1, 1]} : vector<32x32xbf16> to vector<8x32xbf16>
    %cst_265 = arith.constant dense<0.000000e+00> : vector<16x32xf32>
    %918 = tpu.matmul %916, %917, %cst_265 {dimension_numbers = #tpu.dot_dimension_numbers<[1], [0], [0], [1], [0, 0, 1, 1], [], []>} : vector<16x8xbf16>, vector<8x32xbf16>, vector<16x32xf32> -> vector<16x32xf32>
    %919 = arith.addf %897, %918 : vector<16x32xf32>
    %920 = vector.broadcast %825 : vector<1x32xf32> to vector<16x32xf32>
    %921 = arith.addf %919, %920 : vector<16x32xf32>
    %922 = arith.addf %806, %921 : vector<16x32xf32>
    %c37 = arith.constant 37 : index
    %c0_266 = arith.constant 0 : index
    %923 = vector.load %arg9[%c37, %c0_266] : memref<48x128xf32, #tpu.memory_space<vmem>>, vector<1x32xf32>
    %c38 = arith.constant 38 : index
    %c0_267 = arith.constant 0 : index
    %924 = vector.load %arg9[%c38, %c0_267] : memref<48x128xf32, #tpu.memory_space<vmem>>, vector<1x32xf32>
    %cst_268 = arith.constant dense<0.000000e+00> : vector<16xf32>
    %925 = vector.multi_reduction <add>, %922, %cst_268 [1] : vector<16x32xf32> to vector<16xf32>
    %926 = vector.shape_cast %925 : vector<16xf32> to vector<16x1xf32>
    %cst_269 = arith.constant 3.200000e+01 : f32
    %927 = vector.broadcast %cst_269 : f32 to vector<16x1xf32>
    %928 = arith.divf %926, %927 : vector<16x1xf32>
    %929 = vector.broadcast %928 : vector<16x1xf32> to vector<16x32xf32>
    %930 = arith.subf %922, %929 : vector<16x32xf32>
    %931 = arith.mulf %930, %930 : vector<16x32xf32>
    %cst_270 = arith.constant dense<0.000000e+00> : vector<16xf32>
    %932 = vector.multi_reduction <add>, %931, %cst_270 [1] : vector<16x32xf32> to vector<16xf32>
    %933 = vector.shape_cast %932 : vector<16xf32> to vector<16x1xf32>
    %cst_271 = arith.constant 3.200000e+01 : f32
    %934 = vector.broadcast %cst_271 : f32 to vector<16x1xf32>
    %935 = arith.divf %933, %934 : vector<16x1xf32>
    %cst_272 = arith.constant 9.99999997E-7 : f32
    %936 = vector.broadcast %cst_272 : f32 to vector<16x1xf32>
    %937 = arith.addf %935, %936 : vector<16x1xf32>
    %938 = math.rsqrt %937 : vector<16x1xf32>
    %939 = vector.broadcast %938 : vector<16x1xf32> to vector<16x32xf32>
    %940 = arith.mulf %930, %939 : vector<16x32xf32>
    %941 = vector.broadcast %923 : vector<1x32xf32> to vector<16x32xf32>
    %942 = arith.mulf %940, %941 : vector<16x32xf32>
    %943 = vector.broadcast %924 : vector<1x32xf32> to vector<16x32xf32>
    %944 = arith.addf %942, %943 : vector<16x32xf32>
    %c832 = arith.constant 832 : index
    %c0_273 = arith.constant 0 : index
    %945 = vector.load %arg8[%c832, %c0_273] : memref<928x128xbf16, #tpu.memory_space<vmem>>, vector<32x64xbf16>
    %c41 = arith.constant 41 : index
    %c0_274 = arith.constant 0 : index
    %946 = vector.load %arg9[%c41, %c0_274] : memref<48x128xf32, #tpu.memory_space<vmem>>, vector<1x64xf32>
    %947 = arith.truncf %944 : vector<16x32xf32> to vector<16x32xbf16>
    %cst_275 = arith.constant dense<0.000000e+00> : vector<16x64xf32>
    %948 = tpu.matmul %947, %945, %cst_275 {dimension_numbers = #tpu.dot_dimension_numbers<[1], [0], [0], [1], [0, 0, 1, 1], [], []>} : vector<16x32xbf16>, vector<32x64xbf16>, vector<16x64xf32> -> vector<16x64xf32>
    %949 = vector.broadcast %946 : vector<1x64xf32> to vector<16x64xf32>
    %950 = arith.addf %948, %949 : vector<16x64xf32>
    %cst_276 = arith.constant 0.000000e+00 : f32
    %951 = vector.broadcast %cst_276 : f32 to vector<16x64xf32>
    %952 = arith.maximumf %950, %951 : vector<16x64xf32>
    %c864 = arith.constant 864 : index
    %c0_277 = arith.constant 0 : index
    %953 = vector.load %arg8[%c864, %c0_277] : memref<928x128xbf16, #tpu.memory_space<vmem>>, vector<64x32xbf16>
    %c42 = arith.constant 42 : index
    %c0_278 = arith.constant 0 : index
    %954 = vector.load %arg9[%c42, %c0_278] : memref<48x128xf32, #tpu.memory_space<vmem>>, vector<1x32xf32>
    %955 = arith.truncf %952 : vector<16x64xf32> to vector<16x64xbf16>
    %cst_279 = arith.constant dense<0.000000e+00> : vector<16x32xf32>
    %956 = tpu.matmul %955, %953, %cst_279 {dimension_numbers = #tpu.dot_dimension_numbers<[1], [0], [0], [1], [0, 0, 1, 1], [], []>} : vector<16x64xbf16>, vector<64x32xbf16>, vector<16x32xf32> -> vector<16x32xf32>
    %957 = vector.broadcast %954 : vector<1x32xf32> to vector<16x32xf32>
    %958 = arith.addf %956, %957 : vector<16x32xf32>
    %959 = arith.addf %944, %958 : vector<16x32xf32>
    %c39 = arith.constant 39 : index
    %c0_280 = arith.constant 0 : index
    %960 = vector.load %arg9[%c39, %c0_280] : memref<48x128xf32, #tpu.memory_space<vmem>>, vector<1x32xf32>
    %c40 = arith.constant 40 : index
    %c0_281 = arith.constant 0 : index
    %961 = vector.load %arg9[%c40, %c0_281] : memref<48x128xf32, #tpu.memory_space<vmem>>, vector<1x32xf32>
    %cst_282 = arith.constant dense<0.000000e+00> : vector<16xf32>
    %962 = vector.multi_reduction <add>, %959, %cst_282 [1] : vector<16x32xf32> to vector<16xf32>
    %963 = vector.shape_cast %962 : vector<16xf32> to vector<16x1xf32>
    %cst_283 = arith.constant 3.200000e+01 : f32
    %964 = vector.broadcast %cst_283 : f32 to vector<16x1xf32>
    %965 = arith.divf %963, %964 : vector<16x1xf32>
    %966 = vector.broadcast %965 : vector<16x1xf32> to vector<16x32xf32>
    %967 = arith.subf %959, %966 : vector<16x32xf32>
    %968 = arith.mulf %967, %967 : vector<16x32xf32>
    %cst_284 = arith.constant dense<0.000000e+00> : vector<16xf32>
    %969 = vector.multi_reduction <add>, %968, %cst_284 [1] : vector<16x32xf32> to vector<16xf32>
    %970 = vector.shape_cast %969 : vector<16xf32> to vector<16x1xf32>
    %cst_285 = arith.constant 3.200000e+01 : f32
    %971 = vector.broadcast %cst_285 : f32 to vector<16x1xf32>
    %972 = arith.divf %970, %971 : vector<16x1xf32>
    %cst_286 = arith.constant 9.99999997E-7 : f32
    %973 = vector.broadcast %cst_286 : f32 to vector<16x1xf32>
    %974 = arith.addf %972, %973 : vector<16x1xf32>
    %975 = math.rsqrt %974 : vector<16x1xf32>
    %976 = vector.broadcast %975 : vector<16x1xf32> to vector<16x32xf32>
    %977 = arith.mulf %967, %976 : vector<16x32xf32>
    %978 = vector.broadcast %960 : vector<1x32xf32> to vector<16x32xf32>
    %979 = arith.mulf %977, %978 : vector<16x32xf32>
    %980 = vector.broadcast %961 : vector<1x32xf32> to vector<16x32xf32>
    %981 = arith.addf %979, %980 : vector<16x32xf32>
    %982 = vector.shape_cast %981 : vector<16x32xf32> to vector<2x8x32xf32>
    %983 = vector.shape_cast %982 : vector<2x8x32xf32> to vector<16x32xf32>
    %984 = arith.truncf %983 : vector<16x32xf32> to vector<16x32xbf16>
    %c64 = arith.constant 64 : index
    %c0_287 = arith.constant 0 : index
    %985 = vector.load %arg8[%c64, %c0_287] : memref<928x128xbf16, #tpu.memory_space<vmem>>, vector<32x128xbf16>
    %cst_288 = arith.constant dense<0.000000e+00> : vector<16x128xf32>
    %986 = tpu.matmul %984, %985, %cst_288 {dimension_numbers = #tpu.dot_dimension_numbers<[1], [0], [0], [1], [0, 0, 1, 1], [], []>} : vector<16x32xbf16>, vector<32x128xbf16>, vector<16x128xf32> -> vector<16x128xf32>
    %c0_289 = arith.constant 0 : index
    %c0_290 = arith.constant 0 : index
    %987 = vector.load %arg9[%c0_289, %c0_290] : memref<48x128xf32, #tpu.memory_space<vmem>>, vector<1x128xf32>
    %988 = vector.broadcast %987 : vector<1x128xf32> to vector<16x128xf32>
    %989 = arith.addf %986, %988 : vector<16x128xf32>
    %c0_291 = arith.constant 0 : index
    %c0_292 = arith.constant 0 : index
    %990 = vector.load %arg10[%c0_291, %c0_292] : memref<16x128xf32, #tpu.memory_space<vmem>>, vector<16x128xf32>
    tpu.vector_store %arg10[%c0_291, %c0_292], %989 {strides = array<i32>} : memref<16x128xf32, #tpu.memory_space<vmem>>, vector<16x128xf32>,
    return
  }
  func.func @transform_0(%arg0: i32) -> (i32, i32) {
    %c0_i32 = arith.constant 0 : i32
    %c0_i32_0 = arith.constant 0 : i32
    %c0_i32_1 = arith.constant 0 : i32
    return %c0_i32, %c0_i32_0 : i32, i32
  }
  func.func @transform_1(%arg0: i32) -> (i32, i32) {
    %c0_i32 = arith.constant 0 : i32
    %c0_i32_0 = arith.constant 0 : i32
    %c0_i32_1 = arith.constant 0 : i32
    return %c0_i32, %c0_i32_0 : i32, i32
  }
  func.func @transform_2(%arg0: i32) -> (i32, i32) {
    %c0_i32 = arith.constant 0 : i32
    %c0_i32_0 = arith.constant 0 : i32
    %c0_i32_1 = arith.constant 0 : i32
    return %c0_i32, %c0_i32_0 : i32, i32
  }
  func.func @transform_3(%arg0: i32) -> (i32, i32) {
    %c0_i32 = arith.constant 0 : i32
    %c0_i32_0 = arith.constant 0 : i32
    %c0_i32_1 = arith.constant 0 : i32
    return %c0_i32, %c0_i32_0 : i32, i32
  }
  func.func @transform_4(%arg0: i32) -> (i32, i32, i32) {
    %c0_i32 = arith.constant 0 : i32
    %c0_i32_0 = arith.constant 0 : i32
    %c0_i32_1 = arith.constant 0 : i32
    %c0_i32_2 = arith.constant 0 : i32
    return %c0_i32, %c0_i32_0, %c0_i32_1 : i32, i32, i32
  }
  func.func @transform_5(%arg0: i32) -> (i32, i32, i32) {
    %c0_i32 = arith.constant 0 : i32
    %c0_i32_0 = arith.constant 0 : i32
    %c0_i32_1 = arith.constant 0 : i32
    %c0_i32_2 = arith.constant 0 : i32
    return %c0_i32, %c0_i32_0, %c0_i32_1 : i32, i32, i32
  }
  func.func @transform_6(%arg0: i32) -> (i32, i32, i32) {
    %c0_i32 = arith.constant 0 : i32
    %c0_i32_0 = arith.constant 0 : i32
    %c0_i32_1 = arith.constant 0 : i32
    %c0_i32_2 = arith.constant 0 : i32
    return %c0_i32, %c0_i32_0, %c0_i32_1 : i32, i32, i32
  }
  func.func @transform_7(%arg0: i32) -> (i32, i32) {
    %c0_i32 = arith.constant 0 : i32
    %c0_i32_0 = arith.constant 0 : i32
    %c0_i32_1 = arith.constant 0 : i32
    return %c0_i32, %c0_i32_0 : i32, i32
  }
  func.func @transform_8(%arg0: i32) -> (i32, i32) {
    %c0_i32 = arith.constant 0 : i32
    %c0_i32_0 = arith.constant 0 : i32
    %c0_i32_1 = arith.constant 0 : i32
    return %c0_i32, %c0_i32_0 : i32, i32
  }
  func.func @transform_9(%arg0: i32) -> (i32, i32) {
    %c0_i32 = arith.constant 0 : i32
    %c0_i32_0 = arith.constant 0 : i32
    %c0_i32_1 = arith.constant 0 : i32
    return %c0_i32, %c0_i32_0 : i32, i32
  }
}

</mosaic_0001>

<bundles_post_ra>
// kernel: encoder_decoder_forward.1
= control target key start
LH: loop header
LB: loop body
LE: loop exit
PB: predicated region body
PF: predicated region fallthrough
CT: control target
= control target key end

     0   :  { %14 = vsyncpa [#allocation3], 0  ;;  %s6110_s12 = smov [#allocation2]   ;;  %s6111_s14 = smov 64   ;;  %s7459_s0 = inlined_call_operand.vmem [shape: s32[16,1], index: 0, kind: input, shape index: {}]   ;;  %s7460_s1 = inlined_call_operand.vmem [shape: s32[16,1], index: 1, kind: input, shape index: {}]   ;;  %s7461_s2 = inlined_call_operand.vmem [shape: f32[16,32], index: 2, kind: input, shape index: {}, may-alias: {2,3}]   ;;  %s7462_s3 = inlined_call_operand.vmem [shape: f32[16,32], index: 3, kind: input, shape index: {}, may-alias: {2,3}]   ;;  %s7463_s4 = inlined_call_operand.vmem [shape: f32[2,8,8], index: 4, kind: input, shape index: {}, may-alias: {4,5}]   ;;  %s7464_s5 = inlined_call_operand.vmem [shape: f32[2,8,8], index: 5, kind: input, shape index: {}, may-alias: {4,5}]   ;;  %s7465_s6 = inlined_call_operand.vmem [shape: f32[2,8,8], index: 6, kind: input, shape index: {}]   ;;  %s7466_s7 = inlined_call_operand.hbm [shape: bf16[928,128], index: 7, kind: input, shape index: {}]   ;;  %s7467_s8 = inlined_call_operand.vmem [shape: f32[48,128], index: 8, kind: input, shape index: {}]   ;;  %s7468_s9 = inlined_call_operand.vmem [shape: f32[16,128], index: 9, kind: output, shape index: {}]  }
   0x1   :  { %s33_s11 = sshll.u32 %s7466_s7, 4  ;;  %s35_s13 = sshll.u32 %s6110_s12, 4  ;;  %s34_s11 = int_to_ptr.hbm [resolvable:$true] %s33_s11  ;;  %s36_s13 = int_to_ptr.vmem [resolvable:$true] %s35_s13 }
   0x2   :  { %s6112_s15 = smov 4  }
   0x3   :  { %41 = dma.hbm_to_vmem [thread:$0]  %s34_s11, 7424, %s36_s13, [#allocation3], %s6111_s14, %s6111_s14, %s6112_s15  }
   0x4   :  { %6108 = dma.done.wait [#allocation3], 7424  }
   0x5   :  { %6109 = vsyncadd [#allocation3], 4294959872  ;;  %v6113_v0 = vmov 0   ;;  %v49_v1 = vld [vmem:[%s7459_s0] sm:$0xff]  ;;  %v5737_v2 = vld [vmem:[#allocation2 + $0x18] sm:$0xff]  ;;  %v51_v7 = vlaneseq  ;;  %v6114_v11 = vmov 0.0  }
   0x6   :  { %5800 = vset.pattern.permute.xlu0 %v6113_v0  ;;  %108 = vmatpush.bf16.msra.mxu0 %v5737_v2  ;;  %v50_v3 = vld [vmem:[%s7459_s0 + $0x8] sm:$0xff]  ;;  %v5736_v4 = vld [vmem:[#allocation2 + $0x10] sm:$0xff]  ;;  %v5734_v6 = vld [vmem:[#allocation2] sm:$0xff]  ;;  %vm100_vm2 = vcmask 523264   ;;  %vm139_vm3 = vcmask 261120   ;;  %s6116_s24 = smov 96  }
   0x7   :  { %54 = vperm.xlu0 %5800, %v49_v1   ;;  %v5735_v5 = vld [vmem:[#allocation2 + $0x8] sm:$0xff]  ;;  %v6187_v9 = vand.u32 127, %v51_v7  ;;  %v5739_v15 = vld [vmem:[#allocation2 + $0x38] sm:$0xff]  ;;  %v5738_v16 = vld [vmem:[#allocation2 + $0x30] sm:$0xff]  ;;  %s6117_s25 = smov 120   ;;  %vm173_vm4 = vcmask 64512  }
   0x8   :  { %149 = vmatpush.bf16.msra.mxu1 %v5739_v15  ;;  %v74_v18 = vld [vmem:[%s7461_s2] sm:$0xff]  ;;  %v75_v19 = vld [vmem:[%s7461_s2 + $0x8] sm:$0xff]  ;;  %s6115_s2 = smov 88   ;;  %s6118_s28 = smov 56   ;;  %vm272_vm9 = vcmask 1043456  }
   0x9   :  { %v5801_v24 = vld [vmem:[%s7467_s8 + $0x1] ss:$0 sm:$0xff]  ;;  %s6119_s29 = smov 112   ;;  %s6120_s30 = smov 80  }
   0xa   :  { %109 = vmatpush.bf16.msra.mxu0 %v5736_v4  ;;  %v6241_v53 = vld [vmem:[%s7463_s4] sm:$0xff]  ;;  %s6121_s12 = smov 48   ;;  %s6122_s13 = smov 72  }
   0xb   :  { %s6123_s15 = smov 104   ;;  %s6124_s16 = smov 40  }
   0xc   :  { %150 = vmatpush.bf16.msra.mxu1 %v5738_v16 }
   0xe   :  { %110 = vmatpush.bf16.msra.mxu0 %v5735_v5 }
   0xf   :  { %57 = vperm.xlu0 %5800, %v50_v3  }
  0x12   :  { %111 = vmatpush.bf16.msra.mxu0 %v5734_v6 }
  0x79   :  { %v55_v8 = vpop.permute.xlu0 %54 }
  0x7a   :  { %vm59_vm0 = vcmp.eq.s32.totalorder %v6187_v9, %v55_v8 }
  0x7b   :  { %v5391_v12 = vsel %vm59_vm0, 1.0, %v6114_v11 }
  0x81   :  { %v58_v10 = vpop.permute.xlu0 %57 }
  0x82   :  { %vm60_vm1 = vcmp.eq.s32.totalorder %v6187_v9, %v58_v10 }
  0x83   :  { %v5392_v13 = vsel %vm60_vm1, 1.0, %v6114_v11 }
  0x84   :  { %v65_v14 = vpack.c.bf16 %v5392_v13, %v5391_v12 }
  0x86   :  { %5409 = vmatmul.msk.bf16.vlgmr.msra.gmra.mxu0 %vm100_vm2, %v65_v14  ;;  %v6260_v14 = vld [vmem:[%s7463_s4 + $0x8] sm:$0xff] }
 0x103   :  { %v113_v17 = vpop.f32.mrf.mxu0 }
 0x104   :  { %v6200_v21 = vadd.f32 %v113_v17, %v74_v18 }
 0x10b   :  { %v115_v20 = vpop.f32.mrf.mxu0 }
 0x10c   :  { %v6202_v22 = vadd.f32 %v115_v20, %v75_v19 }
 0x10e   :  { %v125_v23 = vpack.c.bf16 %v6202_v22, %v6200_v21 }
 0x110   :  { %5418 = vmatmul.msk.bf16.vlgmr.msra.gmra.mxu1 %vm139_vm3, %v125_v23 }
 0x18d   :  { %v152_v25 = vpop.f32.mrf.mxu1 }
 0x18e   :  { %v153_v26 = vadd.f32 %v5801_v24, %v152_v25 }
 0x190   :  { %v166_v27 = vpack.c.bf16 %v153_v26, %v153_v26  ;;  %v162_v28 = vmul.f32 0.35355338, %v153_v26 }
 0x192   :  { %v169_v29 = vunpack.c.l.b16 %v166_v27  ;;  %v164_v31 = vpack.c.bf16 %v162_v28, %v162_v28 }
 0x194   :  { %v6210_v30 = vpack.c.b16 %v169_v29, %v169_v29  ;;  %v312_v36 = vunpack.c.l.b16 %v164_v31 }
 0x195   :  { %v154_v32 = vpop.f32.mrf.mxu1 }
 0x196   :  { %v155_v33 = vadd.f32 %v5801_v24, %v154_v32  ;;  %316 = vrot.lane.b32.xlu2 %v6210_v30, %s6115_s2  ;;  %171 = vrot.lane.b32.xlu1 %v6210_v30, %s6116_s24  ;;  %v6218_v40 = vpack.c.b16 %v312_v36, %v312_v36 }
 0x198   :  { %v163_v34 = vmul.f32 0.35355338, %v155_v33  ;;  %v167_v35 = vpack.c.bf16 %v155_v33, %v155_v33 }
 0x19a   :  { %v194_v37 = vunpack.c.l.b16 %v167_v35  ;;  %v165_v38 = vpack.c.bf16 %v163_v34, %v163_v34 }
 0x19c   :  { %v6216_v39 = vpack.c.b16 %v194_v37, %v194_v37  ;;  %v338_v41 = vunpack.c.l.b16 %v165_v38 }
 0x19e   :  { %342 = vrot.lane.b32.xlu0 %v6216_v39, %s6115_s2  ;;  %196 = vrot.lane.b32.xlu1 %v6216_v39, %s6116_s24  ;;  %v6226_v42 = vpack.c.b16 %v338_v41, %v338_v41 }
 0x19f   :  { %314 = vrot.lane.b32.xlu2 %v6218_v40, %s6117_s25 }
 0x1a6   :  { %340 = vrot.lane.b32.xlu1 %v6226_v42, %s6117_s25 }
 0x1f0   :  { %v317_v45 = vpop.permute.xlu2 %316 }
 0x1f1   :  { %v322_v50 = vsel %vm173_vm4, %v317_v45, 0 }
 0x1f9   :  { %v315_v52 = vpop.permute.xlu2 %314 }
 0x208   :  { %v172_v43 = vpop.permute.xlu1 %171 }
 0x209   :  { %v178_v44 = vsel %vm173_vm4, %v172_v43, 0 }
 0x20a   :  { %187 = vmatpush.bf16.xpose.msra.mxu2 %v178_v44 }
 0x210   :  { %v343_v46 = vpop.permute.xlu0 %342  ;;  %v197_v47 = vpop.permute.xlu1 %196 }
 0x211   :  { %5419 = vmatmul.msk.bf16.vlgmr.msra.gmra.mxu2 %vm173_vm4, %v164_v31  ;;  %v202_v48 = vsel %vm173_vm4, %v197_v47, 0  ;;  %v348_v49 = vsel %vm173_vm4, %v343_v46, 0 }
 0x212   :  { %211 = vmatpush.bf16.xpose.msra.mxu3 %v202_v48  ;;  %357 = vmatpush.bf16.xpose.msrb.mxu0 %v348_v49 }
 0x218   :  { %v341_v51 = vpop.permute.xlu1 %340 }
 0x219   :  { %5420 = vmatmul.msk.bf16.vlgmr.msra.gmra.mxu3 %vm173_vm4, %v165_v38  ;;  %5424 = vmatmul.msk.bf16.vlgmr.msrb.gmra.mxu0 %vm173_vm4, %v341_v51 }
 0x21a   :  { %331 = vmatpush.bf16.xpose.msrb.mxu3 %v322_v50 }
 0x229   :  { %5423 = vmatmul.msk.bf16.vlgmr.msrb.gmra.mxu3 %vm173_vm4, %v315_v52 }
 0x294   :  { %v189_v54 = vpop.f32.mrf.mxu2 }
 0x295   :  { %v190_v55 = vadd.f32 %v189_v54, %v6241_v53 }
 0x296   :  { %v359_v56 = vpop.f32.mrf.mxu0 }
 0x297   :  { %v217_v57 = vsel %vm173_vm4, %v190_v55, -inf  ;;  %v360_v15 = vadd.f32 %v359_v56, %v6260_v14 }
 0x298   :  { %218 = vmax.xlane.f32.xlu2 %v217_v57 }
 0x299   :  { %v366_v16 = vsel %vm173_vm4, %v360_v15, -inf }
 0x29c   :  { %v191_v58 = vpop.f32.mrf.mxu2  ;;  %v213_v59 = vpop.f32.mrf.mxu3 }
 0x29d   :  { %v6265_v17 = vadd.f32 %v213_v59, %v6260_v14 }
 0x29e   :  { %v361_v60 = vpop.f32.mrf.mxu0 }
 0x29f   :  { %v220_v18 = vsel %vm173_vm4, %v6265_v17, -inf }
 0x2a4   :  { %v215_v61 = vpop.f32.mrf.mxu3 }
 0x2ac   :  { %v333_v62 = vpop.f32.mrf.mxu3 }
 0x2ad   :  { %v334_v63 = vadd.f32 %v333_v62, %v6241_v53 }
 0x2af   :  { %v363_v0 = vsel %vm173_vm4, %v334_v63, -inf }
 0x2b0   :  { %364 = vmax.xlane.f32.xlu0 %v363_v0 }
 0x2b4   :  { %v335_v1 = vpop.f32.mrf.mxu3 }
 0x2c4   :  { %413 = vrot.lane.b32.xlu0 %v6210_v30, %s6118_s28 }
 0x2cc   :  { %496 = vrot.lane.b32.xlu0 %v6218_v40, %s6119_s29 }
 0x30b   :  { %v219_v2 = vpop.xlane.xlu2 %218 }
 0x30c   :  { %v223_v3 = vsub.f32 %v190_v55, %v219_v2 }
 0x30e   :  { %v225_v4 = vmul.f32 1.442695, %v223_v3 }
 0x310   :  { %5844 = vpow2.f32 %v225_v4 }
 0x316   :  { %v5845_v5 = vpop.eup %5844 }
 0x317   :  { %v229_v6 = vsel %vm173_vm4, %v5845_v5, 0.0 }
 0x318   :  { %230 = vadd.xlane.f32.xlu1 %v229_v6 }
 0x323   :  { %v365_v7 = vpop.xlane.xlu0 %364 }
 0x324   :  { %v369_v8 = vsub.f32 %v334_v63, %v365_v7 }
 0x326   :  { %v371_v10 = vmul.f32 1.442695, %v369_v8 }
 0x328   :  { %5846 = vpow2.f32 %v371_v10 }
 0x32e   :  { %v5847_v12 = vpop.eup %5846 }
 0x32f   :  { %v375_v13 = vsel %vm173_vm4, %v5847_v12, 0.0 }
 0x330   :  { %376 = vadd.xlane.f32.xlu2 %v375_v13 }
 0x331   :  { %498 = vrot.lane.b32.xlu1 %v6210_v30, %s6120_s30 }
 0x336   :  { %v414_v35 = vpop.permute.xlu0 %413 }
 0x337   :  { %v419_v43 = vsel %vm272_vm9, %v414_v35, 0 }
 0x33e   :  { %v497_v59 = vpop.permute.xlu0 %496 }
 0x348   :  { %267 = vrot.lane.b32.xlu2 %v6210_v30, %s6111_s14 }
 0x35b   :  { %367 = vmax.xlane.f32.xlu1 %v366_v16 }
 0x371   :  { %221 = vmax.xlane.f32.xlu2 %v220_v18 }
 0x374   :  { %289 = vrot.lane.b32.xlu1 %v6216_v39, %s6111_s14 }
 0x38b   :  { %v231_v19 = vpop.xlane.xlu1 %230 }
 0x38c   :  { %5848 = vrcp.f32 %v231_v19  ;;  %v246_v27 = vand.u32 2147483648, %v231_v19  ;;  %vm240_vm6 = vweird.f32 %v231_v19  ;;  %v244_v28 = vand.u32 2147483647, %v231_v19 }
 0x38e   :  { %v247_v32 = vor.u32 1.1754944e-38, %v246_v27  ;;  %vm245_vm8 = vcmp.eq.f32.partialorder %v244_v28, 8.507059e+37 }
 0x392   :  { %v5849_v20 = vpop.eup %5848 }
 0x393   :  { %v236_v23 = vmul.f32 %v5849_v20, %v231_v19  ;;  %vm241_vm5 = vweird.f32 %v5849_v20 }
 0x394   :  { %vm242_vm7 = vmor %vm240_vm6, %vm241_vm5 }
 0x395   :  { %v237_v24 = vsub.f32 1.0, %v236_v23 }
 0x397   :  { %v238_v25 = vmul.f32 %v5849_v20, %v237_v24 }
 0x399   :  { %v239_v26 = vadd.f32 %v5849_v20, %v238_v25 }
 0x39b   :  { %v243_v31 = vsel %vm242_vm7, %v5849_v20, %v239_v26 }
 0x39c   :  { %v248_v33 = vsel %vm245_vm8, %v247_v32, %v243_v31 }
 0x39d   :  { %v263_v36 = vmul.f32 %v5845_v5, %v248_v33 }
 0x39f   :  { %v265_v46 = vpack.c.bf16 %v263_v36, %v263_v36 }
 0x3a3   :  { %v377_v29 = vpop.xlane.xlu2 %376  ;;  %v499_v44 = vpop.permute.xlu1 %498 }
 0x3a4   :  { %5850 = vrcp.f32 %v377_v29  ;;  %v504_v48 = vsel %vm173_vm4, %v499_v44, 0  ;;  %v392_v50 = vand.u32 2147483648, %v377_v29  ;;  %vm386_vm11 = vweird.f32 %v377_v29 }
 0x3a5   :  { %v390_v51 = vand.u32 2147483647, %v377_v29 }
 0x3a6   :  { %v393_v54 = vor.u32 1.1754944e-38, %v392_v50 }
 0x3a7   :  { %vm391_vm13 = vcmp.eq.f32.partialorder %v390_v51, 8.507059e+37 }
 0x3aa   :  { %v5851_v34 = vpop.eup %5850 }
 0x3ab   :  { %v382_v37 = vmul.f32 %v5851_v34, %v377_v29  ;;  %v268_v38 = vpop.permute.xlu2 %267  ;;  %vm387_vm10 = vweird.f32 %v5851_v34 }
 0x3ac   :  { %v274_v41 = vsel %vm272_vm9, %v268_v38, 0  ;;  %vm388_vm12 = vmor %vm386_vm11, %vm387_vm10 }
 0x3ad   :  { %v383_v45 = vsub.f32 1.0, %v382_v37  ;;  %283 = vmatpush.bf16.msrb.mxu1 %v274_v41 }
 0x3af   :  { %v384_v47 = vmul.f32 %v5851_v34, %v383_v45 }
 0x3b0   :  { %5421 = vmatmul.msk.bf16.vlgmr.msrb.gmra.mxu1 %vm173_vm4, %v265_v46 }
 0x3b1   :  { %428 = vmatpush.bf16.msra.mxu1 %v419_v43  ;;  %v385_v49 = vadd.f32 %v5851_v34, %v384_v47 }
 0x3b3   :  { %v389_v52 = vsel %vm388_vm12, %v5851_v34, %v385_v49 }
 0x3b4   :  { %v394_v55 = vsel %vm391_vm13, %v393_v54, %v389_v52 }
 0x3b5   :  { %513 = vmatpush.bf16.xpose.msrb.mxu1 %v504_v48  ;;  %v409_v56 = vmul.f32 %v5847_v12, %v394_v55 }
 0x3b7   :  { %v411_v57 = vpack.c.bf16 %v409_v56, %v409_v56 }
 0x3c0   :  { %5425 = vmatmul.msk.bf16.vlgmr.msra.gmra.mxu1 %vm173_vm4, %v411_v57 }
 0x3ce   :  { %v368_v58 = vpop.xlane.xlu1 %367 }
 0x3cf   :  { %v370_v60 = vsub.f32 %v360_v15, %v368_v58 }
 0x3d0   :  { %5429 = vmatmul.msk.bf16.vlgmr.msrb.gmra.mxu1 %vm173_vm4, %v497_v59  ;;  %v157_v59 = vld [vmem:[#allocation2 + $0x40] sm:$0xf] }
 0x3d1   :  { %v373_v61 = vmul.f32 1.442695, %v370_v60 }
 0x3d3   :  { %5852 = vpow2.f32 %v373_v61  ;;  %v480_v61 = vsel %vm272_vm9, %v157_v59, 0 }
 0x3d4   :  { %489 = vmatpush.bf16.msra.mxu0 %v480_v61 }
 0x3d9   :  { %v6277_v62 = vpop.eup %5852 }
 0x3da   :  { %v378_v63 = vsel %vm173_vm4, %v6277_v62, 0.0 }
 0x3db   :  { %379 = vadd.xlane.f32.xlu2 %v378_v63 }
 0x3e4   :  { %v222_v0 = vpop.xlane.xlu2 %221 }
 0x3e5   :  { %v224_v1 = vsub.f32 %v6265_v17, %v222_v0 }
 0x3e6   :  { %v290_v2 = vpop.permute.xlu1 %289 }
 0x3e7   :  { %v227_v3 = vmul.f32 1.442695, %v224_v1  ;;  %v295_v4 = vsel %vm272_vm9, %v290_v2, 0 }
 0x3e8   :  { %304 = vmatpush.bf16.msrb.mxu2 %v295_v4 }
 0x3e9   :  { %5854 = vpow2.f32 %v227_v3 }
 0x3ef   :  { %v5855_v5 = vpop.eup %5854 }
 0x3f0   :  { %v232_v6 = vsel %vm173_vm4, %v5855_v5, 0.0 }
 0x3f1   :  { %233 = vadd.xlane.f32.xlu0 %v232_v6 }
 0x3f3   :  { %521 = vrot.lane.b32.xlu2 %v6216_v39, %s6120_s30 }
 0x405   :  { %434 = vrot.lane.b32.xlu0 %v6216_v39, %s6118_s28 }
 0x40d   :  { %519 = vrot.lane.b32.xlu0 %v6226_v42, %s6119_s29 }
 0x415   :  { %592 = vrot.lane.b32.xlu0 %v6210_v30, %s6121_s12 }
 0x41d   :  { %659 = vrot.lane.b32.xlu0 %v6210_v30, %s6122_s13 }
 0x425   :  { %682 = vrot.lane.b32.xlu0 %v6216_v39, %s6122_s13 }
 0x42d   :  { %v6296_v7 = vpop.f32.mrf.mxu1  ;;  %657 = vrot.lane.b32.xlu0 %v6218_v40, %s6123_s15 }
 0x435   :  { %v287_v8 = vpop.f32.mrf.mxu1  ;;  %680 = vrot.lane.b32.xlu0 %v6226_v42, %s6123_s15  ;;  %v158_v42 = vld [vmem:[#allocation2 + $0x44] sm:$0xf] }
 0x436   :  { %v460_v19 = vsel %vm272_vm9, %v158_v42, 0 }
 0x437   :  { %469 = vmatpush.bf16.msra.mxu3 %v460_v19 }
 0x43d   :  { %v6302_v10 = vpop.f32.mrf.mxu1  ;;  %613 = vrot.lane.b32.xlu0 %v6216_v39, %s6121_s12 }
 0x445   :  { %v432_v12 = vpop.f32.mrf.mxu1 }
 0x44d   :  { %v515_v13 = vpop.f32.mrf.mxu1 }
 0x44e   :  { %v6307_v15 = vadd.f32 %v515_v13, %v6241_v53  ;;  %v380_v40 = vpop.xlane.xlu2 %379 }
 0x44f   :  { %5856 = vrcp.f32 %v380_v40  ;;  %v406_v47 = vand.u32 2147483648, %v380_v40  ;;  %vm400_vm6 = vweird.f32 %v380_v40  ;;  %v404_v48 = vand.u32 2147483647, %v380_v40 }
 0x450   :  { %v542_v16 = vsel %vm173_vm4, %v6307_v15, -inf }
 0x451   :  { %543 = vmax.xlane.f32.xlu1 %v542_v16  ;;  %v407_v50 = vor.u32 1.1754944e-38, %v406_v47  ;;  %vm405_vm8 = vcmp.eq.f32.partialorder %v404_v48, 8.507059e+37 }
 0x455   :  { %v517_v17 = vpop.f32.mrf.mxu1  ;;  %v5857_v20 = vpop.eup %5856 }
 0x456   :  { %v396_v25 = vmul.f32 %v5857_v20, %v380_v40  ;;  %v522_v38 = vpop.permute.xlu2 %521  ;;  %vm401_vm5 = vweird.f32 %v5857_v20 }
 0x457   :  { %v527_v46 = vsel %vm173_vm4, %v522_v38, 0  ;;  %vm402_vm7 = vmor %vm400_vm6, %vm401_vm5 }
 0x458   :  { %v397_v31 = vsub.f32 1.0, %v396_v25 }
 0x45a   :  { %v398_v36 = vmul.f32 %v5857_v20, %v397_v31 }
 0x45c   :  { %v399_v45 = vadd.f32 %v5857_v20, %v398_v36 }
 0x45e   :  { %v403_v49 = vsel %vm402_vm7, %v5857_v20, %v399_v45 }
 0x45f   :  { %v408_v52 = vsel %vm405_vm8, %v407_v50, %v403_v49 }
 0x460   :  { %v410_v54 = vmul.f32 %v6277_v62, %v408_v52 }
 0x462   :  { %v412_v57 = vpack.c.bf16 %v410_v54, %v410_v54 }
 0x464   :  { %v234_v18 = vpop.xlane.xlu0 %233 }
 0x465   :  { %5858 = vrcp.f32 %v234_v18  ;;  %v260_v27 = vand.u32 2147483648, %v234_v18  ;;  %v258_v29 = vand.u32 2147483647, %v234_v18  ;;  %vm254_vm15 = vweird.f32 %v234_v18 }
 0x467   :  { %v261_v33 = vor.u32 1.1754944e-38, %v260_v27  ;;  %vm259_vm1 = vcmp.eq.f32.partialorder %v258_v29, 8.507059e+37 }
 0x46b   :  { %v5859_v23 = vpop.eup %5858 }
 0x46c   :  { %v250_v24 = vmul.f32 %v5859_v23, %v234_v18  ;;  %vm255_vm14 = vweird.f32 %v5859_v23 }
 0x46d   :  { %vm256_vm0 = vmor %vm254_vm15, %vm255_vm14 }
 0x46e   :  { %v251_v26 = vsub.f32 1.0, %v250_v24 }
 0x470   :  { %v252_v28 = vmul.f32 %v5859_v23, %v251_v26 }
 0x472   :  { %v253_v32 = vadd.f32 %v5859_v23, %v252_v28 }
 0x474   :  { %v257_v34 = vsel %vm256_vm0, %v5859_v23, %v253_v32 }
 0x475   :  { %v262_v35 = vsel %vm259_vm1, %v261_v33, %v257_v34 }
 0x476   :  { %v264_v37 = vmul.f32 %v5855_v5, %v262_v35 }
 0x477   :  { %v435_v41 = vpop.permute.xlu0 %434 }
 0x478   :  { %v440_v43 = vsel %vm272_vm9, %v435_v41, 0  ;;  %v266_v44 = vpack.c.bf16 %v264_v37, %v264_v37 }
 0x479   :  { %449 = vmatpush.bf16.msra.mxu2 %v440_v43 }
 0x47a   :  { %5422 = vmatmul.msk.bf16.vlgmr.msrb.gmra.mxu2 %vm173_vm4, %v266_v44 }
 0x47d   :  { %536 = vmatpush.bf16.xpose.msrb.mxu2 %v527_v46 }
 0x47f   :  { %v520_v51 = vpop.permute.xlu0 %519 }
 0x487   :  { %v593_v55 = vpop.permute.xlu0 %592 }
 0x488   :  { %v598_v56 = vsel %vm272_vm9, %v593_v55, 0 }
 0x489   :  { %607 = vmatpush.bf16.msrb.mxu3 %v598_v56 }
 0x48a   :  { %5426 = vmatmul.msk.bf16.vlgmr.msra.gmra.mxu2 %vm173_vm4, %v412_v57 }
 0x48f   :  { %v660_v58 = vpop.permute.xlu0 %659 }
 0x490   :  { %v665_v60 = vsel %vm173_vm4, %v660_v58, 0 }
 0x491   :  { %674 = vmatpush.bf16.xpose.msra.mxu2 %v665_v60 }
 0x497   :  { %v683_v63 = vpop.permute.xlu0 %682 }
 0x498   :  { %v688_v18 = vsel %vm173_vm4, %v683_v63, 0 }
 0x49a   :  { %5430 = vmatmul.msk.bf16.vlgmr.msrb.gmra.mxu2 %vm173_vm4, %v520_v51 }
 0x49f   :  { %v658_v0 = vpop.permute.xlu0 %657 }
 0x4a7   :  { %v681_v62 = vpop.permute.xlu0 %680 }
 0x4aa   :  { %5434 = vmatmul.msk.bf16.vlgmr.msra.gmra.mxu2 %vm173_vm4, %v658_v0 }
 0x4af   :  { %v614_v1 = vpop.permute.xlu0 %613 }
 0x4b0   :  { %v619_v2 = vsel %vm272_vm9, %v614_v1, 0 }
 0x4b1   :  { %628 = vmatpush.bf16.msrb.mxu0 %v619_v2 }
 0x4c4   :  { %v544_v3 = vpop.xlane.xlu1 %543 }
 0x4c5   :  { %v548_v4 = vsub.f32 %v6307_v15, %v544_v3 }
 0x4c7   :  { %v550_v5 = vmul.f32 1.442695, %v548_v4 }
 0x4c9   :  { %5860 = vpow2.f32 %v550_v5 }
 0x4cf   :  { %v5861_v6 = vpop.eup %5860 }
 0x4d0   :  { %v554_v8 = vsel %vm173_vm4, %v5861_v6, 0.0 }
 0x4d1   :  { %555 = vadd.xlane.f32.xlu2 %v554_v8 }
 0x4fd   :  { %v306_v12 = vpop.f32.mrf.mxu2 }
 0x4fe   :  { %v310_v13 = vpack.c.bf16 %v306_v12, %v6296_v7 }
 0x500   :  { %5428 = vmatmul.msk.bf16.vlgmr.msra.gmra.mxu0 %vm173_vm4, %v310_v13 }
 0x505   :  { %v308_v16 = vpop.f32.mrf.mxu2 }
 0x50d   :  { %v451_v17 = vpop.f32.mrf.mxu2 }
 0x50e   :  { %v455_v40 = vpack.c.bf16 %v451_v17, %v6302_v10 }
 0x510   :  { %5427 = vmatmul.msk.bf16.vlgmr.msra.gmra.mxu3 %vm173_vm4, %v455_v40 }
 0x511   :  { %697 = vmatpush.bf16.xpose.msra.mxu3 %v688_v18 }
 0x515   :  { %v453_v15 = vpop.f32.mrf.mxu2 }
 0x51d   :  { %v538_v42 = vpop.f32.mrf.mxu2 }
 0x51e   :  { %v539_v19 = vadd.f32 %v538_v42, %v6260_v14 }
 0x520   :  { %v545_v20 = vsel %vm173_vm4, %v539_v19, -inf }
 0x521   :  { %546 = vmax.xlane.f32.xlu1 %v545_v20 }
 0x525   :  { %v540_v23 = vpop.f32.mrf.mxu2 }
 0x52d   :  { %v676_v7 = vpop.f32.mrf.mxu2 }
 0x52e   :  { %v677_v24 = vadd.f32 %v676_v7, %v6241_v53 }
 0x530   :  { %v703_v25 = vsel %vm173_vm4, %v677_v24, -inf }
 0x531   :  { %704 = vmax.xlane.f32.xlu1 %v703_v25 }
 0x535   :  { %v678_v10 = vpop.f32.mrf.mxu2 }
 0x544   :  { %v556_v26 = vpop.xlane.xlu2 %555 }
 0x545   :  { %5862 = vrcp.f32 %v556_v26  ;;  %v571_v31 = vand.u32 2147483648, %v556_v26  ;;  %v569_v33 = vand.u32 2147483647, %v556_v26  ;;  %vm565_vm11 = vweird.f32 %v556_v26 }
 0x547   :  { %v572_v35 = vor.u32 1.1754944e-38, %v571_v31  ;;  %vm570_vm13 = vcmp.eq.f32.partialorder %v569_v33, 8.507059e+37 }
 0x54b   :  { %v5863_v27 = vpop.eup %5862 }
 0x54c   :  { %v561_v28 = vmul.f32 %v5863_v27, %v556_v26  ;;  %vm566_vm10 = vweird.f32 %v5863_v27 }
 0x54d   :  { %vm567_vm12 = vmor %vm565_vm11, %vm566_vm10 }
 0x54e   :  { %v562_v29 = vsub.f32 1.0, %v561_v28 }
 0x550   :  { %v563_v32 = vmul.f32 %v5863_v27, %v562_v29 }
 0x552   :  { %v564_v34 = vadd.f32 %v5863_v27, %v563_v32 }
 0x554   :  { %v568_v36 = vsel %vm567_vm12, %v5863_v27, %v564_v34  ;;  %v159_v34 = vld [vmem:[#allocation2 + $0x48] sm:$0xf] }
 0x555   :  { %v573_v53 = vsel %vm570_vm13, %v572_v35, %v568_v36  ;;  %v639_v35 = vsel %vm272_vm9, %v159_v34, 0 }
 0x556   :  { %v588_v37 = vmul.f32 %v5861_v6, %v573_v53  ;;  %648 = vmatpush.bf16.msra.mxu1 %v639_v35 }
 0x558   :  { %v590_v38 = vpack.c.bf16 %v588_v37, %v588_v37 }
 0x55a   :  { %5431 = vmatmul.msk.bf16.vlgmr.msrb.gmra.mxu3 %vm173_vm4, %v590_v38 }
 0x56a   :  { %5435 = vmatmul.msk.bf16.vlgmr.msra.gmra.mxu3 %vm173_vm4, %v681_v62 }
 0x57d   :  { %v491_v41 = vpop.f32.mrf.mxu0 }
 0x585   :  { %v493_v36 = vpop.f32.mrf.mxu0 }
 0x593   :  { %v471_v43 = vpop.f32.mrf.mxu3 }
 0x594   :  { %v6336_v44 = vadd.f32 %v491_v41, %v471_v43  ;;  %v547_v45 = vpop.xlane.xlu1 %546 }
 0x595   :  { %v549_v46 = vsub.f32 %v539_v19, %v547_v45 }
 0x597   :  { %v552_v47 = vmul.f32 1.442695, %v549_v46 }
 0x599   :  { %5864 = vpow2.f32 %v552_v47 }
 0x59b   :  { %v6340_v56 = vpop.f32.mrf.mxu3 }
 0x59f   :  { %v5865_v48 = vpop.eup %5864 }
 0x5a0   :  { %v557_v49 = vsel %vm173_vm4, %v5865_v48, 0.0 }
 0x5a1   :  { %558 = vadd.xlane.f32.xlu2 %v557_v49 }
 0x5a4   :  { %v705_v50 = vpop.xlane.xlu1 %704 }
 0x5a5   :  { %v709_v51 = vsub.f32 %v677_v24, %v705_v50 }
 0x5a7   :  { %v711_v52 = vmul.f32 1.442695, %v709_v51 }
 0x5a9   :  { %5866 = vpow2.f32 %v711_v52 }
 0x5af   :  { %v5867_v54 = vpop.eup %5866 }
 0x5b0   :  { %v715_v55 = vsel %vm173_vm4, %v5867_v54, 0.0 }
 0x5b1   :  { %716 = vadd.xlane.f32.xlu0 %v715_v55 }
 0x5dd   :  { %v6342_v57 = vpop.f32.mrf.mxu3 }
 0x5e5   :  { %v611_v58 = vpop.f32.mrf.mxu3 }
 0x5ed   :  { %v699_v59 = vpop.f32.mrf.mxu3 }
 0x5ee   :  { %v700_v60 = vadd.f32 %v699_v59, %v6260_v14 }
 0x5f0   :  { %v706_v61 = vsel %vm173_vm4, %v700_v60, -inf }
 0x5f1   :  { %707 = vmax.xlane.f32.xlu2 %v706_v61 }
 0x5f5   :  { %v701_v63 = vpop.f32.mrf.mxu3 }
 0x609   :  { %753 = vrot.lane.b32.xlu2 %v6210_v30, %s6124_s16 }
 0x614   :  { %v559_v0 = vpop.xlane.xlu2 %558 }
 0x615   :  { %5868 = vrcp.f32 %v559_v0  ;;  %v585_v4 = vand.u32 2147483648, %v559_v0  ;;  %v583_v5 = vand.u32 2147483647, %v559_v0  ;;  %vm579_vm15 = vweird.f32 %v559_v0 }
 0x617   :  { %v586_v8 = vor.u32 1.1754944e-38, %v585_v4  ;;  %vm584_vm1 = vcmp.eq.f32.partialorder %v583_v5, 8.507059e+37  ;;  %v5802_v5 = vld [vmem:[%s7467_s8 + $0x2] ss:$0 sm:$0xff] }
 0x61b   :  { %v5869_v62 = vpop.eup %5868 }
 0x61c   :  { %v575_v1 = vmul.f32 %v5869_v62, %v559_v0  ;;  %vm580_vm14 = vweird.f32 %v5869_v62  ;;  %v160_v0 = vld [vmem:[#allocation2 + $0x4c] sm:$0xf] }
 0x61d   :  { %vm581_vm0 = vmor %vm579_vm15, %vm580_vm14 }
 0x61e   :  { %v576_v2 = vsub.f32 1.0, %v575_v1 }
 0x620   :  { %v577_v3 = vmul.f32 %v5869_v62, %v576_v2 }
 0x622   :  { %v578_v6 = vadd.f32 %v5869_v62, %v577_v3 }
 0x624   :  { %v582_v14 = vsel %vm581_vm0, %v5869_v62, %v578_v6  ;;  %v717_v30 = vpop.xlane.xlu0 %716  ;;  %v800_v62 = vsel %vm272_vm9, %v160_v0, 0  ;;  %v5804_v0 = vld [vmem:[%s7467_s8 + $0x4] ss:$0 sm:$0xff] }
 0x625   :  { %v587_v12 = vsel %vm584_vm1, %v586_v8, %v582_v14  ;;  %5870 = vrcp.f32 %v717_v30  ;;  %v732_v19 = vand.u32 2147483648, %v717_v30  ;;  %vm726_vm6 = vweird.f32 %v717_v30  ;;  %809 = vmatpush.bf16.msrb.mxu2 %v800_v62 }
 0x626   :  { %v589_v13 = vmul.f32 %v5865_v48, %v587_v12  ;;  %v730_v20 = vand.u32 2147483647, %v717_v30  ;;  %v494_v12 = vadd.f32 %v493_v36, %v6340_v56  ;;  %v5740_v36 = vld [vmem:[#allocation2 + $0x50] sm:$0xff] }
 0x627   :  { %v733_v25 = vor.u32 1.1754944e-38, %v732_v19 }
 0x628   :  { %v591_v16 = vpack.c.bf16 %v589_v13, %v589_v13  ;;  %vm731_vm8 = vcmp.eq.f32.partialorder %v730_v20, 8.507059e+37 }
 0x62a   :  { %5432 = vmatmul.msk.bf16.vlgmr.msrb.gmra.mxu0 %vm173_vm4, %v591_v16 }
 0x62b   :  { %v5871_v17 = vpop.eup %5870 }
 0x62c   :  { %v722_v40 = vmul.f32 %v5871_v17, %v717_v30  ;;  %vm727_vm5 = vweird.f32 %v5871_v17 }
 0x62d   :  { %vm728_vm7 = vmor %vm726_vm6, %vm727_vm5 }
 0x62e   :  { %v723_v18 = vsub.f32 1.0, %v722_v40 }
 0x630   :  { %v724_v15 = vmul.f32 %v5871_v17, %v723_v18 }
 0x632   :  { %v725_v42 = vadd.f32 %v5871_v17, %v724_v15 }
 0x634   :  { %v729_v7 = vsel %vm728_vm7, %v5871_v17, %v725_v42  ;;  %v6125_v42 = vmov 32.0  }
 0x635   :  { %v734_v26 = vsel %vm731_vm8, %v733_v25, %v729_v7 }
 0x636   :  { %v749_v27 = vmul.f32 %v5867_v54, %v734_v26 }
 0x638   :  { %v751_v32 = vpack.c.bf16 %v749_v27, %v749_v27 }
 0x664   :  { %v708_v23 = vpop.xlane.xlu2 %707 }
 0x665   :  { %v710_v24 = vsub.f32 %v700_v60, %v708_v23 }
 0x667   :  { %v713_v10 = vmul.f32 1.442695, %v710_v24 }
 0x669   :  { %5872 = vpow2.f32 %v713_v10 }
 0x66c   :  { %v754_v28 = vpop.permute.xlu2 %753 }
 0x66d   :  { %v759_v29 = vsel %vm272_vm9, %v754_v28, 0 }
 0x66e   :  { %768 = vmatpush.bf16.msra.mxu0 %v759_v29 }
 0x66f   :  { %v5873_v31 = vpop.eup %5872 }
 0x670   :  { %v718_v33 = vsel %vm173_vm4, %v5873_v31, 0.0 }
 0x671   :  { %719 = vadd.xlane.f32.xlu1 %v718_v33  ;;  %5436 = vmatmul.msk.bf16.vlgmr.msra.gmra.mxu0 %vm173_vm4, %v751_v32  ;;  %v5741_v33 = vld [vmem:[#allocation2 + $0x58] sm:$0xff] }
 0x672   :  { %910 = vmatpush.bf16.msrb.mxu3 %v5741_v33 }
 0x676   :  { %911 = vmatpush.bf16.msrb.mxu3 %v5740_v36 }
 0x68a   :  { %774 = vrot.lane.b32.xlu1 %v6216_v39, %s6124_s16 }
 0x6a7   :  { %v630_v53 = vpop.f32.mrf.mxu0 }
 0x6a8   :  { %v634_v37 = vpack.c.bf16 %v630_v53, %v6342_v57 }
 0x6aa   :  { %5433 = vmatmul.msk.bf16.vlgmr.msra.gmra.mxu1 %vm173_vm4, %v634_v37 }
 0x6af   :  { %v632_v38 = vpop.f32.mrf.mxu0 }
 0x6e4   :  { %v720_v41 = vpop.xlane.xlu1 %719 }
 0x6e5   :  { %5874 = vrcp.f32 %v720_v41  ;;  %v746_v50 = vand.u32 2147483648, %v720_v41  ;;  %vm740_vm11 = vweird.f32 %v720_v41  ;;  %v744_v51 = vand.u32 2147483647, %v720_v41 }
 0x6e6   :  { %5876 = vrcp.f32 %v6125_v42 }
 0x6e7   :  { %v747_v52 = vor.u32 1.1754944e-38, %v746_v50  ;;  %vm745_vm13 = vcmp.eq.f32.partialorder %v744_v51, 8.507059e+37 }
 0x6eb   :  { %v5875_v43 = vpop.eup %5874 }
 0x6ec   :  { %v736_v45 = vmul.f32 %v5875_v43, %v720_v41  ;;  %vm741_vm10 = vweird.f32 %v5875_v43  ;;  %v5877_v19 = vpop.eup %5876 }
 0x6ed   :  { %vm742_vm12 = vmor %vm740_vm11, %vm741_vm10  ;;  %v832_v20 = vmul.f32 32.0, %v5877_v19  ;;  %vm836_vm14 = vweird.f32 %v5877_v19 }
 0x6ee   :  { %v737_v46 = vsub.f32 1.0, %v736_v45  ;;  %v770_v47 = vpop.f32.mrf.mxu0 }
 0x6ef   :  { %v833_v23 = vsub.f32 1.0, %v832_v20 }
 0x6f0   :  { %v738_v48 = vmul.f32 %v5875_v43, %v737_v46 }
 0x6f1   :  { %v834_v56 = vmul.f32 %v5877_v19, %v833_v23 }
 0x6f2   :  { %v739_v49 = vadd.f32 %v5875_v43, %v738_v48 }
 0x6f3   :  { %v835_v7 = vadd.f32 %v5877_v19, %v834_v56 }
 0x6f4   :  { %v743_v39 = vsel %vm742_vm12, %v5875_v43, %v739_v49 }
 0x6f5   :  { %v748_v55 = vsel %vm745_vm13, %v747_v52, %v743_v39 }
 0x6f6   :  { %v772_v54 = vpop.f32.mrf.mxu0  ;;  %v750_v57 = vmul.f32 %v5873_v31, %v748_v55 }
 0x6f8   :  { %v752_v60 = vpack.c.bf16 %v750_v57, %v750_v57  ;;  %v5803_v57 = vld [vmem:[%s7467_s8 + $0x3] ss:$0 sm:$0xff] }
 0x6fc   :  { %v775_v58 = vpop.permute.xlu1 %774 }
 0x6fd   :  { %v780_v59 = vsel %vm272_vm9, %v775_v58, 0 }
 0x6fe   :  { %789 = vmatpush.bf16.msrb.mxu1 %v780_v59 }
 0x701   :  { %5437 = vmatmul.msk.bf16.vlgmr.msrb.gmra.mxu1 %vm173_vm4, %v752_v60 }
 0x727   :  { %v650_v61 = vpop.f32.mrf.mxu1 }
 0x728   :  { %v655_v63 = vadd.f32 %v650_v61, %v6336_v44 }
 0x72f   :  { %v652_v1 = vpop.f32.mrf.mxu1 }
 0x730   :  { %v656_v13 = vadd.f32 %v652_v1, %v494_v12  ;;  %v5805_v12 = vld [vmem:[%s7467_s8 + $0x5] ss:$0 sm:$0xff] }
 0x77e   :  { %v791_v2 = vpop.f32.mrf.mxu1 }
 0x77f   :  { %v795_v3 = vpack.c.bf16 %v791_v2, %v770_v47 }
 0x781   :  { %5438 = vmatmul.msk.bf16.vlgmr.msrb.gmra.mxu2 %vm173_vm4, %v795_v3 }
 0x786   :  { %v793_v4 = vpop.f32.mrf.mxu1 }
 0x787   :  { %v5745_v4 = vld [vmem:[#allocation2 + $0x78] sm:$0xff] }
 0x788   :  { %962 = vmatpush.bf16.msrb.mxu0 %v5745_v4 }
 0x804   :  { %v811_v6 = vpop.f32.mrf.mxu2 }
 0x805   :  { %v816_v14 = vadd.f32 %v811_v6, %v655_v63  ;;  %v5743_v6 = vld [vmem:[#allocation2 + $0x68] sm:$0xff] }
 0x807   :  { %v819_v8 = vadd.f32 %v5802_v5, %v816_v14  ;;  %v5742_v14 = vld [vmem:[#allocation2 + $0x60] sm:$0xff] }
 0x809   :  { %v821_v44 = vadd.f32 %v819_v8, %v6200_v21  ;;  %v6370_v21 = vsel %vm836_vm14, %v5877_v19, %v835_v7 }
 0x80b   :  { %v825_v16 = vsel %vm139_vm3, %v821_v44, 0.0 }
 0x80c   :  { %826 = vadd.xlane.f32.xlu2 %v825_v16  ;;  %v813_v30 = vpop.f32.mrf.mxu2 }
 0x80d   :  { %v817_v17 = vadd.f32 %v813_v30, %v656_v13 }
 0x80f   :  { %v820_v40 = vadd.f32 %v5802_v5, %v817_v17  ;;  %v5744_v5 = vld [vmem:[#allocation2 + $0x70] sm:$0xff] }
 0x810   :  { %963 = vmatpush.bf16.msrb.mxu0 %v5744_v5  ;;  %v5809_v5 = vld [vmem:[%s7467_s8 + $0x9] ss:$0 sm:$0xff] }
 0x811   :  { %v822_v18 = vadd.f32 %v820_v40, %v6202_v22 }
 0x813   :  { %v828_v15 = vsel %vm139_vm3, %v822_v18, 0.0 }
 0x814   :  { %829 = vadd.xlane.f32.xlu1 %v828_v15  ;;  %964 = vmatpush.bf16.msrb.mxu0 %v5743_v6 }
 0x818   :  { %965 = vmatpush.bf16.msrb.mxu0 %v5742_v14 }
 0x87f   :  { %v827_v24 = vpop.xlane.xlu2 %826 }
 0x880   :  { %v838_v25 = vmul.f32 %v6370_v21, %v827_v24 }
 0x882   :  { %v840_v10 = vsub.f32 %v821_v44, %v838_v25 }
 0x884   :  { %v842_v26 = vmul.f32 %v840_v10, %v840_v10 }
 0x886   :  { %v844_v22 = vsel %vm139_vm3, %v842_v26, 0.0 }
 0x887   :  { %845 = vadd.xlane.f32.xlu0 %v844_v22  ;;  %v830_v27 = vpop.xlane.xlu1 %829 }
 0x888   :  { %v839_v28 = vmul.f32 %v6370_v21, %v830_v27 }
 0x88a   :  { %v841_v29 = vsub.f32 %v822_v18, %v839_v28  ;;  %v5806_v18 = vld [vmem:[%s7467_s8 + $0x6] ss:$0 sm:$0xff] }
 0x88c   :  { %v843_v31 = vmul.f32 %v841_v29, %v841_v29 }
 0x88e   :  { %v847_v32 = vsel %vm139_vm3, %v843_v31, 0.0 }
 0x88f   :  { %848 = vadd.xlane.f32.xlu0 %v847_v32 }
 0x8fa   :  { %v846_v34 = vpop.xlane.xlu0 %845 }
 0x8fb   :  { %v850_v35 = vmul.f32 %v846_v34, %v6370_v21  ;;  %v5747_v34 = vld [vmem:[#allocation2 + $0x88] sm:$0xff] }
 0x8fc   :  { %1054 = vmatpush.bf16.msra.mxu1 %v5747_v34  ;;  %v6447_v34 = vld [vmem:[%s7463_s4] sm:$0xff] }
 0x8fd   :  { %v852_v53 = vadd.f32 1e-06, %v850_v35 }
 0x8ff   :  { %5878 = vrsqrt.f32 %v852_v53  ;;  %vm860_vm0 = vweird.f32 %v852_v53 }
 0x902   :  { %v849_v37 = vpop.xlane.xlu0 %848 }
 0x903   :  { %v851_v38 = vmul.f32 %v849_v37, %v6370_v21 }
 0x905   :  { %v5879_v41 = vpop.eup %5878  ;;  %v853_v43 = vadd.f32 1e-06, %v851_v38 }
 0x906   :  { %v855_v45 = vmul.f32 %v5879_v41, %v852_v53  ;;  %vm861_vm15 = vweird.f32 %v5879_v41  ;;  %v5746_v53 = vld [vmem:[#allocation2 + $0x80] sm:$0xff] }
 0x907   :  { %5880 = vrsqrt.f32 %v853_v43  ;;  %vm862_vm1 = vmor %vm860_vm0, %vm861_vm15  ;;  %vm870_vm6 = vweird.f32 %v853_v43  ;;  %1055 = vmatpush.bf16.msra.mxu1 %v5746_v53 }
 0x908   :  { %v856_v46 = vmul.f32 %v5879_v41, %v855_v45 }
 0x90a   :  { %v857_v47 = vmul.f32 0.5, %v856_v46 }
 0x90c   :  { %v858_v48 = vsub.f32 1.5, %v857_v47 }
 0x90d   :  { %v5881_v49 = vpop.eup %5880 }
 0x90e   :  { %v859_v50 = vmul.f32 %v5879_v41, %v858_v48  ;;  %v865_v51 = vmul.f32 %v5881_v49, %v853_v43  ;;  %vm871_vm5 = vweird.f32 %v5881_v49 }
 0x90f   :  { %vm872_vm7 = vmor %vm870_vm6, %vm871_vm5 }
 0x910   :  { %v866_v39 = vmul.f32 %v5881_v49, %v865_v51  ;;  %v863_v52 = vsel %vm862_vm1, %v5879_v41, %v859_v50 }
 0x911   :  { %v874_v58 = vmul.f32 %v863_v52, %v840_v10 }
 0x912   :  { %v867_v54 = vmul.f32 0.5, %v866_v39 }
 0x913   :  { %v877_v61 = vmul.f32 %v5803_v57, %v874_v58  ;;  %v5807_v58 = vld [vmem:[%s7467_s8 + $0x7] ss:$0 sm:$0xff] }
 0x914   :  { %v868_v55 = vsub.f32 1.5, %v867_v54 }
 0x915   :  { %v880_v1 = vadd.f32 %v5804_v0, %v877_v61 }
 0x916   :  { %v869_v59 = vmul.f32 %v5881_v49, %v868_v55 }
 0x918   :  { %v873_v60 = vsel %vm872_vm7, %v5881_v49, %v869_v59 }
 0x919   :  { %v875_v63 = vmul.f32 %v873_v60, %v841_v29 }
 0x91b   :  { %v878_v62 = vmul.f32 %v5803_v57, %v875_v63 }
 0x91d   :  { %v881_v2 = vadd.f32 %v5804_v0, %v878_v62  ;;  %v5808_v62 = vld [vmem:[%s7467_s8 + $0x8] ss:$0 sm:$0xff] }
 0x91f   :  { %v887_v3 = vpack.c.bf16 %v881_v2, %v880_v1 }
 0x921   :  { %5447 = vmatmul.msk.bf16.vlgmr.msrb.gmra.mxu3 %vm139_vm3, %v887_v3 }
 0x9a4   :  { %v913_v8 = vpop.f32.mrf.mxu3 }
 0x9a5   :  { %v914_v44 = vadd.f32 %v5805_v12, %v913_v8 }
 0x9a7   :  { %v918_v30 = vmax.f32 %v914_v44, 0.0 }
 0x9ac   :  { %v915_v13 = vpop.f32.mrf.mxu3 }
 0x9ad   :  { %v916_v16 = vadd.f32 %v5805_v12, %v915_v13 }
 0x9af   :  { %v919_v17 = vmax.f32 %v916_v16, 0.0 }
 0x9b1   :  { %v929_v40 = vpack.c.bf16 %v919_v17, %v918_v30 }
 0x9b3   :  { %5464 = vmatmul.msk.bf16.vlgmr.msrb.gmra.mxu0 %vm100_vm2, %v929_v40 }
 0xa30   :  { %v967_v15 = vpop.f32.mrf.mxu0 }
 0xa31   :  { %v968_v42 = vadd.f32 %v5806_v18, %v967_v15 }
 0xa33   :  { %v972_v19 = vadd.f32 %v968_v42, %v880_v1 }
 0xa35   :  { %v976_v20 = vsel %vm139_vm3, %v972_v19, 0.0 }
 0xa36   :  { %977 = vadd.xlane.f32.xlu0 %v976_v20 }
 0xa38   :  { %v969_v23 = vpop.f32.mrf.mxu0 }
 0xa39   :  { %v970_v56 = vadd.f32 %v5806_v18, %v969_v23 }
 0xa3b   :  { %v973_v7 = vadd.f32 %v970_v56, %v881_v2 }
 0xa3d   :  { %v979_v24 = vsel %vm139_vm3, %v973_v7, 0.0 }
 0xa3e   :  { %980 = vadd.xlane.f32.xlu0 %v979_v24 }
 0xaa9   :  { %v978_v25 = vpop.xlane.xlu0 %977 }
 0xaaa   :  { %v982_v10 = vmul.f32 %v978_v25, %v6370_v21 }
 0xaac   :  { %v984_v26 = vsub.f32 %v972_v19, %v982_v10 }
 0xaae   :  { %v986_v22 = vmul.f32 %v984_v26, %v984_v26 }
 0xab0   :  { %v988_v27 = vsel %vm139_vm3, %v986_v22, 0.0 }
 0xab1   :  { %989 = vadd.xlane.f32.xlu2 %v988_v27  ;;  %v981_v28 = vpop.xlane.xlu0 %980 }
 0xab2   :  { %v983_v29 = vmul.f32 %v981_v28, %v6370_v21 }
 0xab4   :  { %v985_v31 = vsub.f32 %v973_v7, %v983_v29 }
 0xab6   :  { %v987_v32 = vmul.f32 %v985_v31, %v985_v31 }
 0xab8   :  { %v991_v33 = vsel %vm139_vm3, %v987_v32, 0.0 }
 0xab9   :  { %992 = vadd.xlane.f32.xlu0 %v991_v33 }
 0xb24   :  { %v990_v35 = vpop.xlane.xlu2 %989 }
 0xb25   :  { %v994_v36 = vmul.f32 %v990_v35, %v6370_v21 }
 0xb27   :  { %v996_v37 = vadd.f32 1e-06, %v994_v36 }
 0xb29   :  { %5882 = vrsqrt.f32 %v996_v37  ;;  %vm1004_vm10 = vweird.f32 %v996_v37 }
 0xb2c   :  { %v993_v38 = vpop.xlane.xlu0 %992 }
 0xb2d   :  { %v995_v41 = vmul.f32 %v993_v38, %v6370_v21 }
 0xb2f   :  { %v5883_v43 = vpop.eup %5882  ;;  %v997_v45 = vadd.f32 1e-06, %v995_v41 }
 0xb30   :  { %v999_v46 = vmul.f32 %v5883_v43, %v996_v37  ;;  %vm1005_vm8 = vweird.f32 %v5883_v43 }
 0xb31   :  { %5884 = vrsqrt.f32 %v997_v45  ;;  %vm1006_vm11 = vmor %vm1004_vm10, %vm1005_vm8  ;;  %vm1014_vm13 = vweird.f32 %v997_v45 }
 0xb32   :  { %v1000_v47 = vmul.f32 %v5883_v43, %v999_v46 }
 0xb34   :  { %v1001_v48 = vmul.f32 0.5, %v1000_v47 }
 0xb36   :  { %v1002_v49 = vsub.f32 1.5, %v1001_v48 }
 0xb37   :  { %v5885_v50 = vpop.eup %5884 }
 0xb38   :  { %v1003_v51 = vmul.f32 %v5883_v43, %v1002_v49  ;;  %v1009_v39 = vmul.f32 %v5885_v50, %v997_v45  ;;  %vm1015_vm12 = vweird.f32 %v5885_v50  ;;  %v6458_v49 = vld [vmem:[%s7463_s4 + $0x8] sm:$0xff] }
 0xb39   :  { %vm1016_vm14 = vmor %vm1014_vm13, %vm1015_vm12 }
 0xb3a   :  { %v1010_v52 = vmul.f32 %v5885_v50, %v1009_v39  ;;  %v1007_v54 = vsel %vm1006_vm11, %v5883_v43, %v1003_v51 }
 0xb3b   :  { %v1018_v59 = vmul.f32 %v1007_v54, %v984_v26 }
 0xb3c   :  { %v1011_v55 = vmul.f32 0.5, %v1010_v52 }
 0xb3d   :  { %v1021_v63 = vmul.f32 %v5807_v58, %v1018_v59 }
 0xb3e   :  { %v1012_v57 = vsub.f32 1.5, %v1011_v55 }
 0xb3f   :  { %v6406_v2 = vadd.f32 %v5808_v62, %v1021_v63 }
 0xb40   :  { %v1013_v60 = vmul.f32 %v5885_v50, %v1012_v57 }
 0xb42   :  { %v1017_v61 = vsel %vm1016_vm14, %v5885_v50, %v1013_v60 }
 0xb43   :  { %v1019_v0 = vmul.f32 %v1017_v61, %v985_v31 }
 0xb45   :  { %v1022_v1 = vmul.f32 %v5807_v58, %v1019_v0 }
 0xb47   :  { %v6408_v3 = vadd.f32 %v5808_v62, %v1022_v1 }
 0xb49   :  { %v1031_v4 = vpack.c.bf16 %v6408_v3, %v6406_v2 }
 0xb4b   :  { %5473 = vmatmul.msk.bf16.vlgmr.msra.gmra.mxu1 %vm139_vm3, %v1031_v4 }
 0xbc8   :  { %v1057_v6 = vpop.f32.mrf.mxu1 }
 0xbc9   :  { %v1058_v14 = vadd.f32 %v5809_v5, %v1057_v6 }
 0xbcb   :  { %v1067_v8 = vmul.f32 0.35355338, %v1058_v14  ;;  %v1071_v12 = vpack.c.bf16 %v1058_v14, %v1058_v14 }
 0xbcd   :  { %v1069_v44 = vpack.c.bf16 %v1067_v8, %v1067_v8  ;;  %v1074_v13 = vunpack.c.l.b16 %v1071_v12 }
 0xbcf   :  { %v6416_v16 = vpack.c.b16 %v1074_v13, %v1074_v13  ;;  %v1215_v30 = vunpack.c.l.b16 %v1069_v44 }
 0xbd0   :  { %v1059_v17 = vpop.f32.mrf.mxu1 }
 0xbd1   :  { %v1060_v40 = vadd.f32 %v5809_v5, %v1059_v17  ;;  %1219 = vrot.lane.b32.xlu2 %v6416_v16, %s6115_s2  ;;  %1076 = vrot.lane.b32.xlu1 %v6416_v16, %s6116_s24  ;;  %v6422_v18 = vpack.c.b16 %v1215_v30, %v1215_v30 }
 0xbd3   :  { %v1068_v15 = vmul.f32 0.35355338, %v1060_v40  ;;  %v1072_v42 = vpack.c.bf16 %v1060_v40, %v1060_v40  ;;  %1217 = vrot.lane.b32.xlu0 %v6422_v18, %s6117_s25 }
 0xbd5   :  { %v1070_v19 = vpack.c.bf16 %v1068_v15, %v1068_v15  ;;  %v1098_v20 = vunpack.c.l.b16 %v1072_v42 }
 0xbd7   :  { %v6426_v23 = vpack.c.b16 %v1098_v20, %v1098_v20  ;;  %v1241_v56 = vunpack.c.l.b16 %v1070_v19 }
 0xbd9   :  { %1245 = vrot.lane.b32.xlu1 %v6426_v23, %s6115_s2  ;;  %v6430_v7 = vpack.c.b16 %v1241_v56, %v1241_v56 }
 0xbdb   :  { %1243 = vrot.lane.b32.xlu2 %v6430_v7, %s6117_s25  ;;  %1100 = vrot.lane.b32.xlu0 %v6426_v23, %s6116_s24 }
 0xc2b   :  { %v1220_v24 = vpop.permute.xlu2 %1219 }
 0xc2c   :  { %v1225_v26 = vsel %vm173_vm4, %v1220_v24, 0 }
 0xc35   :  { %v1244_v32 = vpop.permute.xlu2 %1243 }
 0xc43   :  { %v1077_v25 = vpop.permute.xlu1 %1076 }
 0xc44   :  { %v1082_v10 = vsel %vm173_vm4, %v1077_v25, 0 }
 0xc45   :  { %1091 = vmatpush.bf16.xpose.msra.mxu2 %v1082_v10  ;;  %v1218_v22 = vpop.permute.xlu0 %1217 }
 0xc4b   :  { %v1246_v27 = vpop.permute.xlu1 %1245 }
 0xc4c   :  { %5474 = vmatmul.msk.bf16.vlgmr.msra.gmra.mxu2 %vm173_vm4, %v1069_v44  ;;  %v1251_v31 = vsel %vm173_vm4, %v1246_v27, 0 }
 0xc4d   :  { %1234 = vmatpush.bf16.xpose.msrb.mxu2 %v1225_v26  ;;  %v1101_v28 = vpop.permute.xlu0 %1100 }
 0xc4e   :  { %v1106_v29 = vsel %vm173_vm4, %v1101_v28, 0 }
 0xc4f   :  { %1115 = vmatpush.bf16.xpose.msra.mxu3 %v1106_v29 }
 0xc56   :  { %5475 = vmatmul.msk.bf16.vlgmr.msra.gmra.mxu3 %vm173_vm4, %v1070_v19 }
 0xc57   :  { %1260 = vmatpush.bf16.xpose.msrb.mxu3 %v1251_v31 }
 0xc5c   :  { %5478 = vmatmul.msk.bf16.vlgmr.msrb.gmra.mxu2 %vm173_vm4, %v1218_v22 }
 0xc66   :  { %5479 = vmatmul.msk.bf16.vlgmr.msrb.gmra.mxu3 %vm173_vm4, %v1244_v32 }
 0xccf   :  { %v1093_v33 = vpop.f32.mrf.mxu2 }
 0xcd0   :  { %v1094_v35 = vadd.f32 %v6447_v34, %v1093_v33 }
 0xcd2   :  { %v1121_v36 = vsel %vm173_vm4, %v1094_v35, -inf }
 0xcd3   :  { %1122 = vmax.xlane.f32.xlu0 %v1121_v36 }
 0xcd7   :  { %v1095_v53 = vpop.f32.mrf.mxu2 }
 0xcd9   :  { %v1117_v37 = vpop.f32.mrf.mxu3 }
 0xcda   :  { %v1118_v50 = vadd.f32 %v6458_v49, %v1117_v37 }
 0xcdc   :  { %v1124_v51 = vsel %vm173_vm4, %v1118_v50, -inf }
 0xcdf   :  { %v1236_v38 = vpop.f32.mrf.mxu2 }
 0xce0   :  { %v1237_v41 = vadd.f32 %v6447_v34, %v1236_v38 }
 0xce1   :  { %v1119_v43 = vpop.f32.mrf.mxu3 }
 0xce2   :  { %v1266_v45 = vsel %vm173_vm4, %v1237_v41, -inf }
 0xce3   :  { %1267 = vmax.xlane.f32.xlu1 %v1266_v45 }
 0xce7   :  { %v1238_v46 = vpop.f32.mrf.mxu2 }
 0xce9   :  { %v1262_v47 = vpop.f32.mrf.mxu3 }
 0xcea   :  { %v1263_v4 = vadd.f32 %v6458_v49, %v1262_v47 }
 0xcec   :  { %v1269_v6 = vsel %vm173_vm4, %v1263_v4, -inf }
 0xcf1   :  { %v1264_v48 = vpop.f32.mrf.mxu3 }
 0xcfc   :  { %1316 = vrot.lane.b32.xlu1 %v6416_v16, %s6118_s28 }
 0xd26   :  { %1125 = vmax.xlane.f32.xlu1 %v1124_v51 }
 0xd46   :  { %v1123_v39 = vpop.xlane.xlu0 %1122 }
 0xd47   :  { %v1127_v52 = vsub.f32 %v1094_v35, %v1123_v39 }
 0xd49   :  { %v1129_v54 = vmul.f32 1.442695, %v1127_v52 }
 0xd4b   :  { %5886 = vpow2.f32 %v1129_v54 }
 0xd51   :  { %v5887_v55 = vpop.eup %5886 }
 0xd52   :  { %v1133_v57 = vsel %vm173_vm4, %v5887_v55, 0.0 }
 0xd53   :  { %1134 = vadd.xlane.f32.xlu2 %v1133_v57 }
 0xd56   :  { %v1268_v58 = vpop.xlane.xlu1 %1267 }
 0xd57   :  { %v1272_v59 = vsub.f32 %v1237_v41, %v1268_v58 }
 0xd59   :  { %v1274_v60 = vmul.f32 1.442695, %v1272_v59 }
 0xd5b   :  { %5888 = vpow2.f32 %v1274_v60 }
 0xd61   :  { %v5889_v61 = vpop.eup %5888 }
 0xd62   :  { %v1278_v63 = vsel %vm173_vm4, %v5889_v61, 0.0 }
 0xd63   :  { %1279 = vadd.xlane.f32.xlu0 %v1278_v63 }
 0xd6b   :  { %1171 = vrot.lane.b32.xlu2 %v6416_v16, %s6111_s14 }
 0xd6e   :  { %v1317_v0 = vpop.permute.xlu1 %1316 }
 0xd6f   :  { %v1322_v40 = vsel %vm272_vm9, %v1317_v0, 0 }
 0xd73   :  { %1399 = vrot.lane.b32.xlu2 %v6422_v18, %s6119_s29 }
 0xd77   :  { %1401 = vrot.lane.b32.xlu0 %v6416_v16, %s6120_s30 }
 0xd99   :  { %v1126_v62 = vpop.xlane.xlu1 %1125 }
 0xd9a   :  { %v1128_v1 = vsub.f32 %v1118_v50, %v1126_v62 }
 0xd9c   :  { %v1131_v5 = vmul.f32 1.442695, %v1128_v1 }
 0xd9e   :  { %5890 = vpow2.f32 %v1131_v5 }
 0xda1   :  { %1270 = vmax.xlane.f32.xlu0 %v1269_v6 }
 0xda4   :  { %v6472_v14 = vpop.eup %5890 }
 0xda5   :  { %v1136_v8 = vsel %vm173_vm4, %v6472_v14, 0.0 }
 0xda6   :  { %1137 = vadd.xlane.f32.xlu2 %v1136_v8 }
 0xdb5   :  { %1192 = vrot.lane.b32.xlu0 %v6426_v23, %s6111_s14 }
 0xdbd   :  { %1422 = vrot.lane.b32.xlu0 %v6430_v7, %s6119_s29 }
 0xdbe   :  { %1337 = vrot.lane.b32.xlu2 %v6426_v23, %s6118_s28 }
 0xdc6   :  { %v1135_v12 = vpop.xlane.xlu2 %1134 }
 0xdc7   :  { %5892 = vrcp.f32 %v1135_v12  ;;  %v1150_v19 = vand.u32 2147483648, %v1135_v12  ;;  %v1148_v20 = vand.u32 2147483647, %v1135_v12  ;;  %vm1144_vm0 = vweird.f32 %v1135_v12 }
 0xdc9   :  { %v1151_v25 = vor.u32 1.1754944e-38, %v1150_v19  ;;  %vm1149_vm5 = vcmp.eq.f32.partialorder %v1148_v20, 8.507059e+37  ;;  %v1062_v20 = vld [vmem:[#allocation2 + $0x90] sm:$0xf] }
 0xdcd   :  { %v5893_v44 = vpop.eup %5892 }
 0xdce   :  { %v1140_v13 = vmul.f32 %v5893_v44, %v1135_v12  ;;  %v1172_v30 = vpop.permute.xlu2 %1171  ;;  %vm1145_vm15 = vweird.f32 %v5893_v44 }
 0xdcf   :  { %v1177_v17 = vsel %vm272_vm9, %v1172_v30, 0  ;;  %vm1146_vm1 = vmor %vm1144_vm0, %vm1145_vm15 }
 0xdd0   :  { %v1141_v15 = vsub.f32 1.0, %v1140_v13  ;;  %1186 = vmatpush.bf16.msra.mxu0 %v1177_v17 }
 0xdd2   :  { %v1142_v42 = vmul.f32 %v5893_v44, %v1141_v15 }
 0xdd4   :  { %1331 = vmatpush.bf16.msrb.mxu0 %v1322_v40  ;;  %v1143_v56 = vadd.f32 %v5893_v44, %v1142_v42 }
 0xdd6   :  { %v1147_v24 = vsel %vm1146_vm1, %v5893_v44, %v1143_v56  ;;  %v1280_v10 = vpop.xlane.xlu0 %1279  ;;  %v1400_v47 = vpop.permute.xlu2 %1399 }
 0xdd7   :  { %5894 = vrcp.f32 %v1280_v10  ;;  %v1152_v26 = vsel %vm1149_vm5, %v1151_v25, %v1147_v24  ;;  %v1295_v32 = vand.u32 2147483648, %v1280_v10  ;;  %v1293_v35 = vand.u32 2147483647, %v1280_v10  ;;  %v1063_v24 = vld [vmem:[#allocation2 + $0x94] sm:$0xf] }
 0xdd8   :  { %v1167_v22 = vmul.f32 %v5887_v55, %v1152_v26  ;;  %vm1289_vm7 = vweird.f32 %v1280_v10 }
 0xdd9   :  { %v1296_v53 = vor.u32 1.1754944e-38, %v1295_v32  ;;  %vm1294_vm10 = vcmp.eq.f32.partialorder %v1293_v35, 8.507059e+37 }
 0xdda   :  { %v1169_v27 = vpack.c.bf16 %v1167_v22, %v1167_v22 }
 0xddc   :  { %5476 = vmatmul.msk.bf16.vlgmr.msra.gmra.mxu0 %vm173_vm4, %v1169_v27 }
 0xddd   :  { %v5895_v28 = vpop.eup %5894 }
 0xdde   :  { %v1285_v29 = vmul.f32 %v5895_v28, %v1280_v10  ;;  %vm1290_vm6 = vweird.f32 %v5895_v28 }
 0xddf   :  { %vm1291_vm8 = vmor %vm1289_vm7, %vm1290_vm6 }
 0xde0   :  { %v1286_v31 = vsub.f32 1.0, %v1285_v29 }
 0xde2   :  { %v1287_v33 = vmul.f32 %v5895_v28, %v1286_v31 }
 0xde4   :  { %v1288_v36 = vadd.f32 %v5895_v28, %v1287_v33 }
 0xde6   :  { %v1292_v37 = vsel %vm1291_vm8, %v5895_v28, %v1288_v36 }
 0xde7   :  { %v1297_v38 = vsel %vm1294_vm10, %v1296_v53, %v1292_v37 }
 0xde8   :  { %v1312_v41 = vmul.f32 %v5889_v61, %v1297_v38 }
 0xde9   :  { %v1402_v43 = vpop.permute.xlu0 %1401 }
 0xdea   :  { %v1407_v45 = vsel %vm173_vm4, %v1402_v43, 0  ;;  %v1314_v46 = vpack.c.bf16 %v1312_v41, %v1312_v41 }
 0xdeb   :  { %1416 = vmatpush.bf16.xpose.msra.mxu0 %v1407_v45 }
 0xdec   :  { %5480 = vmatmul.msk.bf16.vlgmr.msrb.gmra.mxu0 %vm173_vm4, %v1314_v46 }
 0xdfc   :  { %5484 = vmatmul.msk.bf16.vlgmr.msra.gmra.mxu0 %vm173_vm4, %v1400_v47 }
 0xe14   :  { %v1271_v48 = vpop.xlane.xlu0 %1270 }
 0xe15   :  { %v1273_v50 = vsub.f32 %v1263_v4, %v1271_v48 }
 0xe17   :  { %v1276_v51 = vmul.f32 1.442695, %v1273_v50 }
 0xe19   :  { %5896 = vpow2.f32 %v1276_v51  ;;  %v1138_v39 = vpop.xlane.xlu2 %1137 }
 0xe1a   :  { %5898 = vrcp.f32 %v1138_v39  ;;  %v1164_v59 = vand.u32 2147483648, %v1138_v39  ;;  %v1162_v61 = vand.u32 2147483647, %v1138_v39  ;;  %vm1158_vm12 = vweird.f32 %v1138_v39 }
 0xe1c   :  { %v1165_v1 = vor.u32 1.1754944e-38, %v1164_v59  ;;  %vm1163_vm14 = vcmp.eq.f32.partialorder %v1162_v61, 8.507059e+37 }
 0xe1f   :  { %v6488_v52 = vpop.eup %5896 }
 0xe20   :  { %v5899_v54 = vpop.eup %5898  ;;  %v1281_v55 = vsel %vm173_vm4, %v6488_v52, 0.0 }
 0xe21   :  { %v1154_v57 = vmul.f32 %v5899_v54, %v1138_v39  ;;  %1282 = vadd.xlane.f32.xlu1 %v1281_v55  ;;  %vm1159_vm11 = vweird.f32 %v5899_v54  ;;  %v1338_v63 = vpop.permute.xlu2 %1337 }
 0xe22   :  { %vm1160_vm13 = vmor %vm1158_vm12, %vm1159_vm11  ;;  %v1343_v6 = vsel %vm272_vm9, %v1338_v63, 0 }
 0xe23   :  { %v1155_v58 = vsub.f32 1.0, %v1154_v57 }
 0xe25   :  { %v1156_v60 = vmul.f32 %v5899_v54, %v1155_v58 }
 0xe27   :  { %v1157_v0 = vadd.f32 %v5899_v54, %v1156_v60  ;;  %v1193_v62 = vpop.permute.xlu0 %1192 }
 0xe28   :  { %v1198_v4 = vsel %vm272_vm9, %v1193_v62, 0 }
 0xe29   :  { %v1161_v5 = vsel %vm1160_vm13, %v5899_v54, %v1157_v0  ;;  %1207 = vmatpush.bf16.msrb.mxu1 %v1198_v4 }
 0xe2a   :  { %v1166_v8 = vsel %vm1163_vm14, %v1165_v1, %v1161_v5 }
 0xe2b   :  { %v1168_v12 = vmul.f32 %v6472_v14, %v1166_v8 }
 0xe2d   :  { %1352 = vmatpush.bf16.msra.mxu1 %v1343_v6  ;;  %v1170_v44 = vpack.c.bf16 %v1168_v12, %v1168_v12 }
 0xe2f   :  { %5477 = vmatmul.msk.bf16.vlgmr.msrb.gmra.mxu1 %vm173_vm4, %v1170_v44  ;;  %v1423_v47 = vpop.permute.xlu0 %1422 }
 0xe3a   :  { %1424 = vrot.lane.b32.xlu1 %v6426_v23, %s6120_s30 }
 0xe42   :  { %1495 = vrot.lane.b32.xlu1 %v6416_v16, %s6121_s12 }
 0xe4a   :  { %1562 = vrot.lane.b32.xlu1 %v6416_v16, %s6122_s13 }
 0xe52   :  { %1585 = vrot.lane.b32.xlu1 %v6426_v23, %s6122_s13 }
 0xe59   :  { %v1188_v13 = vpop.f32.mrf.mxu0 }
 0xe5a   :  { %1560 = vrot.lane.b32.xlu1 %v6422_v18, %s6123_s15  ;;  %v1383_v18 = vsel %vm272_vm9, %v1062_v20, 0 }
 0xe5b   :  { %1392 = vmatpush.bf16.msra.mxu3 %v1383_v18 }
 0xe61   :  { %v1190_v14 = vpop.f32.mrf.mxu0 }
 0xe62   :  { %1583 = vrot.lane.b32.xlu1 %v6430_v7, %s6123_s15  ;;  %v1363_v7 = vsel %vm272_vm9, %v1063_v24, 0 }
 0xe63   :  { %1372 = vmatpush.bf16.msra.mxu2 %v1363_v7 }
 0xe69   :  { %v6508_v30 = vpop.f32.mrf.mxu0 }
 0xe6a   :  { %1516 = vrot.lane.b32.xlu1 %v6426_v23, %s6121_s12 }
 0xe71   :  { %v1335_v17 = vpop.f32.mrf.mxu0 }
 0xe79   :  { %v1418_v40 = vpop.f32.mrf.mxu0 }
 0xe7a   :  { %v1419_v15 = vadd.f32 %v6447_v34, %v1418_v40 }
 0xe7c   :  { %v1445_v42 = vsel %vm173_vm4, %v1419_v15, -inf }
 0xe7d   :  { %1446 = vmax.xlane.f32.xlu0 %v1445_v42 }
 0xe81   :  { %v1420_v19 = vpop.f32.mrf.mxu0 }
 0xe94   :  { %v1283_v56 = vpop.xlane.xlu1 %1282 }
 0xe95   :  { %5900 = vrcp.f32 %v1283_v56  ;;  %v1309_v22 = vand.u32 2147483648, %v1283_v56  ;;  %v1307_v28 = vand.u32 2147483647, %v1283_v56  ;;  %vm1303_vm0 = vweird.f32 %v1283_v56 }
 0xe97   :  { %v1310_v31 = vor.u32 1.1754944e-38, %v1309_v22  ;;  %vm1308_vm5 = vcmp.eq.f32.partialorder %v1307_v28, 8.507059e+37 }
 0xe9b   :  { %v5901_v25 = vpop.eup %5900 }
 0xe9c   :  { %v1299_v10 = vmul.f32 %v5901_v25, %v1283_v56  ;;  %vm1304_vm15 = vweird.f32 %v5901_v25 }
 0xe9d   :  { %vm1305_vm1 = vmor %vm1303_vm0, %vm1304_vm15 }
 0xe9e   :  { %v1300_v26 = vsub.f32 1.0, %v1299_v10 }
 0xea0   :  { %v1301_v27 = vmul.f32 %v5901_v25, %v1300_v26 }
 0xea2   :  { %v1302_v29 = vadd.f32 %v5901_v25, %v1301_v27 }
 0xea4   :  { %v1306_v32 = vsel %vm1305_vm1, %v5901_v25, %v1302_v29 }
 0xea5   :  { %v1311_v33 = vsel %vm1308_vm5, %v1310_v31, %v1306_v32 }
 0xea6   :  { %v1313_v35 = vmul.f32 %v6488_v52, %v1311_v33 }
 0xea8   :  { %v1315_v36 = vpack.c.bf16 %v1313_v35, %v1313_v35 }
 0xeaa   :  { %5481 = vmatmul.msk.bf16.vlgmr.msra.gmra.mxu1 %vm173_vm4, %v1315_v36 }
 0xeac   :  { %v1425_v53 = vpop.permute.xlu1 %1424  ;;  %v1209_v37 = vpop.f32.mrf.mxu1 }
 0xead   :  { %v1430_v38 = vsel %vm173_vm4, %v1425_v53, 0  ;;  %v1213_v41 = vpack.c.bf16 %v1209_v37, %v1188_v13 }
 0xeae   :  { %1439 = vmatpush.bf16.xpose.msrb.mxu1 %v1430_v38 }
 0xeaf   :  { %5483 = vmatmul.msk.bf16.vlgmr.msra.gmra.mxu3 %vm173_vm4, %v1213_v41 }
 0xeb4   :  { %v1496_v43 = vpop.permute.xlu1 %1495  ;;  %v1211_v45 = vpop.f32.mrf.mxu1 }
 0xeb5   :  { %v1501_v46 = vsel %vm272_vm9, %v1496_v43, 0 }
 0xeb6   :  { %1510 = vmatpush.bf16.msrb.mxu2 %v1501_v46 }
 0xeba   :  { %5485 = vmatmul.msk.bf16.vlgmr.msrb.gmra.mxu1 %vm173_vm4, %v1423_v47 }
 0xebc   :  { %v1563_v48 = vpop.permute.xlu1 %1562 }
 0xebd   :  { %v1568_v50 = vsel %vm173_vm4, %v1563_v48, 0 }
 0xebe   :  { %1577 = vmatpush.bf16.xpose.msra.mxu1 %v1568_v50 }
 0xec4   :  { %v1586_v51 = vpop.permute.xlu1 %1585 }
 0xec5   :  { %v1591_v62 = vsel %vm173_vm4, %v1586_v51, 0  ;;  %v1922_v51 = vld [vmem:[%s7460_s1] sm:$0xff] }
 0xecc   :  { %v1561_v39 = vpop.permute.xlu1 %1560 }
 0xecd   :  { %5489 = vmatmul.msk.bf16.vlgmr.msra.gmra.mxu1 %vm173_vm4, %v1561_v39 }
 0xed4   :  { %v1584_v52 = vpop.permute.xlu1 %1583 }
 0xedc   :  { %v1517_v54 = vpop.permute.xlu1 %1516 }
 0xedd   :  { %v1522_v55 = vsel %vm272_vm9, %v1517_v54, 0 }
 0xede   :  { %1531 = vmatpush.bf16.msrb.mxu3 %v1522_v55 }
 0xef0   :  { %v1447_v57 = vpop.xlane.xlu0 %1446 }
 0xef1   :  { %v1451_v58 = vsub.f32 %v1419_v15, %v1447_v57 }
 0xef3   :  { %v1453_v59 = vmul.f32 1.442695, %v1451_v58 }
 0xef5   :  { %5902 = vpow2.f32 %v1453_v59 }
 0xefb   :  { %v5903_v60 = vpop.eup %5902 }
 0xefc   :  { %v1457_v61 = vsel %vm173_vm4, %v5903_v60, 0.0 }
 0xefd   :  { %1458 = vadd.xlane.f32.xlu2 %v1457_v61 }
 0xf27   :  { %v1354_v63 = vpop.f32.mrf.mxu1 }
 0xf28   :  { %v1358_v0 = vpack.c.bf16 %v1354_v63, %v6508_v30 }
 0xf2a   :  { %5482 = vmatmul.msk.bf16.vlgmr.msra.gmra.mxu2 %vm173_vm4, %v1358_v0 }
 0xf2b   :  { %1600 = vmatpush.bf16.xpose.msra.mxu2 %v1591_v62 }
 0xf2f   :  { %v1356_v1 = vpop.f32.mrf.mxu1 }
 0xf37   :  { %v1441_v4 = vpop.f32.mrf.mxu1 }
 0xf38   :  { %v1442_v5 = vadd.f32 %v6458_v49, %v1441_v4 }
 0xf3a   :  { %v1448_v6 = vsel %vm173_vm4, %v1442_v5, -inf }
 0xf3b   :  { %1449 = vmax.xlane.f32.xlu2 %v1448_v6 }
 0xf3f   :  { %v1443_v8 = vpop.f32.mrf.mxu1 }
 0xf4a   :  { %v1579_v12 = vpop.f32.mrf.mxu1 }
 0xf4b   :  { %v1580_v44 = vadd.f32 %v6447_v34, %v1579_v12 }
 0xf4d   :  { %v1606_v13 = vsel %vm173_vm4, %v1580_v44, -inf }
 0xf4e   :  { %1607 = vmax.xlane.f32.xlu2 %v1606_v13 }
 0xf52   :  { %v1581_v14 = vpop.f32.mrf.mxu1 }
 0xf70   :  { %v1459_v30 = vpop.xlane.xlu2 %1458 }
 0xf71   :  { %5904 = vrcp.f32 %v1459_v30  ;;  %v1474_v42 = vand.u32 2147483648, %v1459_v30  ;;  %v1472_v20 = vand.u32 2147483647, %v1459_v30  ;;  %vm1468_vm7 = vweird.f32 %v1459_v30 }
 0xf73   :  { %v1475_v56 = vor.u32 1.1754944e-38, %v1474_v42  ;;  %vm1473_vm10 = vcmp.eq.f32.partialorder %v1472_v20, 8.507059e+37 }
 0xf77   :  { %v5905_v17 = vpop.eup %5904 }
 0xf78   :  { %v1464_v40 = vmul.f32 %v5905_v17, %v1459_v30  ;;  %vm1469_vm6 = vweird.f32 %v5905_v17 }
 0xf79   :  { %vm1470_vm8 = vmor %vm1468_vm7, %vm1469_vm6 }
 0xf7a   :  { %v1465_v15 = vsub.f32 1.0, %v1464_v40 }
 0xf7c   :  { %v1466_v19 = vmul.f32 %v5905_v17, %v1465_v15 }
 0xf7e   :  { %v1467_v18 = vadd.f32 %v5905_v17, %v1466_v19 }
 0xf80   :  { %v1471_v24 = vsel %vm1470_vm8, %v5905_v17, %v1467_v18  ;;  %v1064_v18 = vld [vmem:[#allocation2 + $0x98] sm:$0xf] }
 0xf81   :  { %v1476_v34 = vsel %vm1473_vm10, %v1475_v56, %v1471_v24  ;;  %v1542_v24 = vsel %vm272_vm9, %v1064_v18, 0 }
 0xf82   :  { %v1491_v7 = vmul.f32 %v5903_v60, %v1476_v34  ;;  %1551 = vmatpush.bf16.msrb.mxu0 %v1542_v24  ;;  %v1394_v34 = vpop.f32.mrf.mxu3 }
 0xf84   :  { %v1493_v25 = vpack.c.bf16 %v1491_v7, %v1491_v7 }
 0xf86   :  { %5486 = vmatmul.msk.bf16.vlgmr.msrb.gmra.mxu2 %vm173_vm4, %v1493_v25 }
 0xf8a   :  { %v6560_v7 = vpop.f32.mrf.mxu3 }
 0xf96   :  { %5490 = vmatmul.msk.bf16.vlgmr.msra.gmra.mxu2 %vm173_vm4, %v1584_v52 }
 0xfad   :  { %v6537_v36 = vpop.f32.mrf.mxu2 }
 0xfae   :  { %v1450_v10 = vpop.xlane.xlu2 %1449 }
 0xfaf   :  { %v1452_v26 = vsub.f32 %v1442_v5, %v1450_v10 }
 0xfb1   :  { %v1455_v22 = vmul.f32 1.442695, %v1452_v26 }
 0xfb3   :  { %5906 = vpow2.f32 %v1455_v22 }
 0xfb5   :  { %v6539_v53 = vpop.f32.mrf.mxu2 }
 0xfb9   :  { %v5907_v27 = vpop.eup %5906 }
 0xfba   :  { %v1460_v28 = vsel %vm173_vm4, %v5907_v27, 0.0 }
 0xfbb   :  { %1461 = vadd.xlane.f32.xlu0 %v1460_v28  ;;  %v5757_v28 = vld [vmem:[#allocation2 + $0x18] sm:$0xff] }
 0xfc1   :  { %v1608_v29 = vpop.xlane.xlu2 %1607 }
 0xfc2   :  { %v1612_v31 = vsub.f32 %v1580_v44, %v1608_v29 }
 0xfc4   :  { %v1614_v32 = vmul.f32 1.442695, %v1612_v31 }
 0xfc6   :  { %5908 = vpow2.f32 %v1614_v32 }
 0xfcc   :  { %v5909_v33 = vpop.eup %5908 }
 0xfcd   :  { %v1618_v35 = vsel %vm173_vm4, %v5909_v33, 0.0 }
 0xfce   :  { %1619 = vadd.xlane.f32.xlu1 %v1618_v35 }
0x1009   :  { %v6541_v37 = vpop.f32.mrf.mxu2 }
0x1011   :  { %v1514_v38 = vpop.f32.mrf.mxu2 }
0x1019   :  { %v1602_v41 = vpop.f32.mrf.mxu2 }
0x101a   :  { %v1603_v43 = vadd.f32 %v6458_v49, %v1602_v41 }
0x101c   :  { %v1609_v45 = vsel %vm173_vm4, %v1603_v43, -inf }
0x101d   :  { %1610 = vmax.xlane.f32.xlu0 %v1609_v45  ;;  %v5755_v45 = vld [vmem:[#allocation2 + $0x8] sm:$0xff] }
0x1021   :  { %v1604_v46 = vpop.f32.mrf.mxu2 }
0x102e   :  { %v1462_v47 = vpop.xlane.xlu0 %1461 }
0x102f   :  { %5910 = vrcp.f32 %v1462_v47  ;;  %v1488_v52 = vand.u32 2147483648, %v1462_v47  ;;  %v1486_v49 = vand.u32 2147483647, %v1462_v47  ;;  %vm1482_vm12 = vweird.f32 %v1462_v47 }
0x1031   :  { %1656 = vrot.lane.b32.xlu0 %v6416_v16, %s6124_s16  ;;  %v1489_v57 = vor.u32 1.1754944e-38, %v1488_v52  ;;  %vm1487_vm14 = vcmp.eq.f32.partialorder %v1486_v49, 8.507059e+37  ;;  %v1923_v16 = vld [vmem:[%s7460_s1 + $0x8] sm:$0xff] }
0x1035   :  { %v5911_v48 = vpop.eup %5910 }
0x1036   :  { %v1478_v50 = vmul.f32 %v5911_v48, %v1462_v47  ;;  %vm1483_vm11 = vweird.f32 %v5911_v48 }
0x1037   :  { %vm1484_vm13 = vmor %vm1482_vm12, %vm1483_vm11 }
0x1038   :  { %v1479_v39 = vsub.f32 1.0, %v1478_v50 }
0x1039   :  { %1925 = vperm.xlu0 %5800, %v1922_v51   ;;  %v5754_v51 = vld [vmem:[#allocation2] sm:$0xff] }
0x103a   :  { %v1480_v54 = vmul.f32 %v5911_v48, %v1479_v39 }
0x103c   :  { %v1481_v55 = vadd.f32 %v5911_v48, %v1480_v54 }
0x103e   :  { %v1485_v58 = vsel %vm1484_vm13, %v5911_v48, %v1481_v55 }
0x103f   :  { %v1490_v59 = vsel %vm1487_vm14, %v1489_v57, %v1485_v58 }
0x1040   :  { %v1492_v60 = vmul.f32 %v5907_v27, %v1490_v59 }
0x1041   :  { %1928 = vperm.xlu0 %5800, %v1923_v16   ;;  %v1620_v63 = vpop.xlane.xlu1 %1619  ;;  %v1395_v16 = vadd.f32 %v1394_v34, %v6537_v36  ;;  %v1945_v36 = vld [vmem:[%s7462_s3] sm:$0xff] }
0x1042   :  { %v1494_v61 = vpack.c.bf16 %v1492_v60, %v1492_v60  ;;  %5912 = vrcp.f32 %v1620_v63  ;;  %v1635_v44 = vand.u32 2147483648, %v1620_v63  ;;  %vm1629_vm0 = vweird.f32 %v1620_v63 }
0x1043   :  { %v1633_v13 = vand.u32 2147483647, %v1620_v63 }
0x1044   :  { %5487 = vmatmul.msk.bf16.vlgmr.msrb.gmra.mxu3 %vm173_vm4, %v1494_v61  ;;  %v1636_v40 = vor.u32 1.1754944e-38, %v1635_v44  ;;  %v1065_v61 = vld [vmem:[#allocation2 + $0x9c] sm:$0xf] }
0x1045   :  { %vm1634_vm5 = vcmp.eq.f32.partialorder %v1633_v13, 8.507059e+37 }
0x1048   :  { %v5913_v0 = vpop.eup %5912 }
0x1049   :  { %v1625_v62 = vmul.f32 %v5913_v0, %v1620_v63  ;;  %vm1630_vm15 = vweird.f32 %v5913_v0  ;;  %v1703_v63 = vsel %vm272_vm9, %v1065_v61, 0  ;;  %v5749_v61 = vld [vmem:[#allocation2 + $0xa8] sm:$0xff] }
0x104a   :  { %vm1631_vm1 = vmor %vm1629_vm0, %vm1630_vm15  ;;  %1712 = vmatpush.bf16.msrb.mxu1 %v1703_v63  ;;  %1806 = vmatpush.bf16.msrb.mxu2 %v5749_v61  ;;  %v5748_v63 = vld [vmem:[#allocation2 + $0xa0] sm:$0xff] }
0x104b   :  { %v1626_v1 = vsub.f32 1.0, %v1625_v62 }
0x104d   :  { %v1627_v8 = vmul.f32 %v5913_v0, %v1626_v1 }
0x104e   :  { %1807 = vmatpush.bf16.msrb.mxu2 %v5748_v63 }
0x104f   :  { %v1628_v12 = vadd.f32 %v5913_v0, %v1627_v8 }
0x1051   :  { %v1632_v30 = vsel %vm1631_vm1, %v5913_v0, %v1628_v12  ;;  %v5759_v0 = vld [vmem:[#allocation2 + $0xd8] sm:$0xff] }
0x1052   :  { %v1637_v15 = vsel %vm1634_vm5, %v1636_v40, %v1632_v30  ;;  %2020 = vmatpush.bf16.msra.mxu1 %v5759_v0 }
0x1053   :  { %v1652_v42 = vmul.f32 %v5909_v33, %v1637_v15  ;;  %v1397_v15 = vadd.f32 %v6560_v7, %v6539_v53 }
0x1055   :  { %v1654_v56 = vpack.c.bf16 %v1652_v42, %v1652_v42 }
0x1090   :  { %v1611_v4 = vpop.xlane.xlu0 %1610 }
0x1091   :  { %v1613_v5 = vsub.f32 %v1603_v43, %v1611_v4 }
0x1093   :  { %v1616_v6 = vmul.f32 1.442695, %v1613_v5 }
0x1095   :  { %5914 = vpow2.f32 %v1616_v6  ;;  %v1946_v6 = vld [vmem:[%s7462_s3 + $0x8] sm:$0xff] }
0x109b   :  { %v5915_v14 = vpop.eup %5914 }
0x109c   :  { %v1621_v17 = vsel %vm173_vm4, %v5915_v14, 0.0 }
0x109d   :  { %1622 = vadd.xlane.f32.xlu2 %v1621_v17 }
0x10a3   :  { %v1657_v19 = vpop.permute.xlu0 %1656 }
0x10a4   :  { %v1662_v20 = vsel %vm272_vm9, %v1657_v19, 0 }
0x10a5   :  { %1671 = vmatpush.bf16.msra.mxu3 %v1662_v20 }
0x10a8   :  { %5491 = vmatmul.msk.bf16.vlgmr.msra.gmra.mxu3 %vm173_vm4, %v1654_v56 }
0x10ab   :  { %v1926_v47 = vpop.permute.xlu0 %1925 }
0x10ac   :  { %vm1930_vm12 = vcmp.eq.s32.totalorder %v6187_v9, %v1926_v47 }
0x10ad   :  { %v5520_v55 = vsel %vm1930_vm12, 1.0, %v6114_v11 }
0x10b3   :  { %v1929_v52 = vpop.permute.xlu0 %1928 }
0x10b4   :  { %vm1931_vm11 = vcmp.eq.s32.totalorder %v6187_v9, %v1929_v52  ;;  %v5758_v9 = vld [vmem:[#allocation2 + $0xd0] sm:$0xff] }
0x10b5   :  { %1677 = vrot.lane.b32.xlu2 %v6426_v23, %s6124_s16  ;;  %v5756_v23 = vld [vmem:[#allocation2 + $0x10] sm:$0xff]  ;;  %v5521_v49 = vsel %vm1931_vm11, 1.0, %v6114_v11  ;;  %2021 = vmatpush.bf16.msra.mxu1 %v5758_v9 }
0x10b6   :  { %v1936_v58 = vpack.c.bf16 %v5521_v49, %v5520_v55 }
0x10c7   :  { %v1533_v25 = vpop.f32.mrf.mxu3 }
0x10c8   :  { %v1537_v10 = vpack.c.bf16 %v1533_v25, %v6541_v37 }
0x10ca   :  { %5488 = vmatmul.msk.bf16.vlgmr.msrb.gmra.mxu0 %vm173_vm4, %v1537_v10  ;;  %v5811_v10 = vld [vmem:[%s7467_s8 + $0x11] ss:$0 sm:$0xff] }
0x10cf   :  { %v1535_v26 = vpop.f32.mrf.mxu3 }
0x1110   :  { %v1623_v22 = vpop.xlane.xlu2 %1622 }
0x1111   :  { %5916 = vrcp.f32 %v1623_v22  ;;  %v1649_v35 = vand.u32 2147483648, %v1623_v22  ;;  %v1647_v41 = vand.u32 2147483647, %v1623_v22  ;;  %vm1643_vm7 = vweird.f32 %v1623_v22 }
0x1113   :  { %v1650_v43 = vor.u32 1.1754944e-38, %v1649_v35  ;;  %vm1648_vm10 = vcmp.eq.f32.partialorder %v1647_v41, 8.507059e+37  ;;  %v5751_v35 = vld [vmem:[#allocation2 + $0xb8] sm:$0xff]  ;;  %v5750_v41 = vld [vmem:[#allocation2 + $0xb0] sm:$0xff] }
0x1117   :  { %v5917_v27 = vpop.eup %5916 }
0x1118   :  { %v1639_v29 = vmul.f32 %v5917_v27, %v1623_v22  ;;  %v1678_v31 = vpop.permute.xlu2 %1677  ;;  %vm1644_vm6 = vweird.f32 %v5917_v27 }
0x1119   :  { %v1683_v32 = vsel %vm272_vm9, %v1678_v31, 0  ;;  %vm1645_vm8 = vmor %vm1643_vm7, %vm1644_vm6 }
0x111a   :  { %v1640_v33 = vsub.f32 1.0, %v1639_v29  ;;  %1692 = vmatpush.bf16.msra.mxu0 %v1683_v32  ;;  %v5753_v32 = vld [vmem:[#allocation2 + $0xc8] sm:$0xff] }
0x111b   :  { %1858 = vmatpush.bf16.msrb.mxu3 %v5753_v32 }
0x111c   :  { %v1641_v38 = vmul.f32 %v5917_v27, %v1640_v33  ;;  %v5752_v33 = vld [vmem:[#allocation2 + $0xc0] sm:$0xff] }
0x111e   :  { %1978 = vmatpush.bf16.msrb.mxu0 %v5757_v28  ;;  %v1642_v37 = vadd.f32 %v5917_v27, %v1641_v38 }
0x111f   :  { %1859 = vmatpush.bf16.msrb.mxu3 %v5752_v33 }
0x1120   :  { %v1646_v46 = vsel %vm1645_vm8, %v5917_v27, %v1642_v37 }
0x1121   :  { %v1651_v48 = vsel %vm1648_vm10, %v1650_v43, %v1646_v46 }
0x1122   :  { %1979 = vmatpush.bf16.msrb.mxu0 %v5756_v23  ;;  %v1653_v50 = vmul.f32 %v5915_v14, %v1651_v48  ;;  %v5810_v14 = vld [vmem:[%s7467_s8 + $0xa] ss:$0 sm:$0xff] }
0x1123   :  { %1860 = vmatpush.bf16.msrb.mxu3 %v5751_v35  ;;  %v5814_v35 = vld [vmem:[%s7467_s8 + $0xd] ss:$0 sm:$0xff] }
0x1124   :  { %v1655_v39 = vpack.c.bf16 %v1653_v50, %v1653_v50 }
0x1126   :  { %1980 = vmatpush.bf16.msrb.mxu0 %v5755_v45 }
0x1127   :  { %5492 = vmatmul.msk.bf16.vlgmr.msra.gmra.mxu0 %vm173_vm4, %v1655_v39  ;;  %1861 = vmatpush.bf16.msrb.mxu3 %v5750_v41 }
0x112a   :  { %1981 = vmatpush.bf16.msrb.mxu0 %v5754_v51 }
0x112b   :  { %v1673_v54 = vpop.f32.mrf.mxu3 }
0x1133   :  { %v1675_v57 = vpop.f32.mrf.mxu3 }
0x1137   :  { %5538 = vmatmul.msk.bf16.vlgmr.msrb.gmra.mxu0 %vm100_vm2, %v1936_v58 }
0x1147   :  { %v1553_v59 = vpop.f32.mrf.mxu0 }
0x1148   :  { %v1558_v60 = vadd.f32 %v1553_v59, %v1395_v16 }
0x114f   :  { %v1555_v62 = vpop.f32.mrf.mxu0 }
0x1150   :  { %v1559_v19 = vadd.f32 %v1555_v62, %v1397_v15 }
0x11a4   :  { %v1694_v1 = vpop.f32.mrf.mxu0 }
0x11a5   :  { %v1698_v4 = vpack.c.bf16 %v1694_v1, %v1673_v54 }
0x11a7   :  { %5493 = vmatmul.msk.bf16.vlgmr.msrb.gmra.mxu1 %vm173_vm4, %v1698_v4 }
0x11ac   :  { %v1696_v11 = vpop.f32.mrf.mxu0 }
0x11b4   :  { %v1983_v5 = vpop.f32.mrf.mxu0 }
0x11b5   :  { %v6580_v12 = vadd.f32 %v1983_v5, %v1945_v36 }
0x11bc   :  { %v1985_v8 = vpop.f32.mrf.mxu0 }
0x11bd   :  { %v6582_v44 = vadd.f32 %v1985_v8, %v1946_v6 }
0x11bf   :  { %v1997_v13 = vpack.c.bf16 %v6582_v44, %v6580_v12 }
0x11c1   :  { %5547 = vmatmul.msk.bf16.vlgmr.msra.gmra.mxu1 %vm139_vm3, %v1997_v13 }
0x1224   :  { %v1714_v30 = vpop.f32.mrf.mxu1 }
0x1225   :  { %v1719_v17 = vadd.f32 %v1714_v30, %v1558_v60 }
0x1227   :  { %v1722_v40 = vadd.f32 %v5810_v14, %v1719_v17 }
0x1229   :  { %v1724_v42 = vadd.f32 %v1722_v40, %v6406_v2 }
0x122b   :  { %v1728_v20 = vsel %vm139_vm3, %v1724_v42, 0.0 }
0x122c   :  { %1729 = vadd.xlane.f32.xlu2 %v1728_v20  ;;  %v1716_v18 = vpop.f32.mrf.mxu1  ;;  %v5812_v20 = vld [vmem:[%s7467_s8 + $0xb] ss:$0 sm:$0xff] }
0x122d   :  { %v1720_v56 = vadd.f32 %v1716_v18, %v1559_v19 }
0x122f   :  { %v1723_v24 = vadd.f32 %v5810_v14, %v1720_v56 }
0x1231   :  { %v1725_v34 = vadd.f32 %v1723_v24, %v6408_v3 }
0x1233   :  { %v1731_v25 = vsel %vm139_vm3, %v1725_v34, 0.0 }
0x1234   :  { %1732 = vadd.xlane.f32.xlu0 %v1731_v25 }
0x123e   :  { %v2023_v26 = vpop.f32.mrf.mxu1 }
0x123f   :  { %v2024_v53 = vadd.f32 %v5811_v10, %v2023_v26 }
0x1241   :  { %v2037_v7 = vpack.c.bf16 %v2024_v53, %v2024_v53  ;;  %v2033_v52 = vmul.f32 0.35355338, %v2024_v53 }
0x1243   :  { %v2040_v2 = vunpack.c.l.b16 %v2037_v7  ;;  %v2035_v49 = vpack.c.bf16 %v2033_v52, %v2033_v52 }
0x1245   :  { %v6599_v22 = vpack.c.b16 %v2040_v2, %v2040_v2  ;;  %v2181_v55 = vunpack.c.l.b16 %v2035_v49 }
0x1246   :  { %v2025_v27 = vpop.f32.mrf.mxu1 }
0x1247   :  { %v2026_v28 = vadd.f32 %v5811_v10, %v2025_v27  ;;  %2185 = vrot.lane.b32.xlu2 %v6599_v22, %s6115_s2  ;;  %v6614_v57 = vpack.c.b16 %v2181_v55, %v2181_v55  ;;  %v5813_v10 = vld [vmem:[%s7467_s8 + $0xc] ss:$0 sm:$0xff] }
0x1249   :  { %v2038_v29 = vpack.c.bf16 %v2026_v28, %v2026_v28  ;;  %v2034_v58 = vmul.f32 0.35355338, %v2026_v28 }
0x124b   :  { %v2064_v3 = vunpack.c.l.b16 %v2038_v29  ;;  %v6618_v16 = vpack.c.bf16 %v2034_v58, %v2034_v58 }
0x124d   :  { %v6603_v31 = vpack.c.b16 %v2064_v3, %v2064_v3  ;;  %v2207_v59 = vunpack.c.l.b16 %v6618_v16 }
0x124f   :  { %2066 = vrot.lane.b32.xlu0 %v6603_v31, %s6116_s24  ;;  %v6623_v60 = vpack.c.b16 %v2207_v59, %v2207_v59 }
0x129f   :  { %v1730_v23 = vpop.xlane.xlu2 %1729 }
0x12a0   :  { %v1734_v38 = vmul.f32 %v1730_v23, %v6370_v21 }
0x12a2   :  { %v1736_v37 = vsub.f32 %v1724_v42, %v1734_v38 }
0x12a4   :  { %v1738_v43 = vmul.f32 %v1736_v37, %v1736_v37 }
0x12a6   :  { %v1740_v45 = vsel %vm139_vm3, %v1738_v43, 0.0 }
0x12a7   :  { %1741 = vadd.xlane.f32.xlu1 %v1740_v45  ;;  %v1733_v46 = vpop.xlane.xlu0 %1732  ;;  %v2186_v28 = vpop.permute.xlu2 %2185 }
0x12a8   :  { %v1735_v47 = vmul.f32 %v1733_v46, %v6370_v21  ;;  %v2191_v3 = vsel %vm173_vm4, %v2186_v28, 0 }
0x12aa   :  { %v1737_v48 = vsub.f32 %v1725_v34, %v1735_v47  ;;  %v6652_v47 = vld [vmem:[%s7465_s6] sm:$0xff] }
0x12ac   :  { %v1739_v50 = vmul.f32 %v1737_v48, %v1737_v48 }
0x12ae   :  { %v1743_v51 = vsel %vm139_vm3, %v1739_v50, 0.0 }
0x12af   :  { %1744 = vadd.xlane.f32.xlu1 %v1743_v51 }
0x12c1   :  { %v2067_v39 = vpop.permute.xlu0 %2066 }
0x12c2   :  { %v2072_v54 = vsel %vm173_vm4, %v2067_v39, 0 }
0x12c3   :  { %2081 = vmatpush.bf16.xpose.msra.mxu3 %v2072_v54 }
0x12c8   :  { %2042 = vrot.lane.b32.xlu1 %v6599_v22, %s6116_s24 }
0x12d0   :  { %2183 = vrot.lane.b32.xlu1 %v6614_v57, %s6117_s25 }
0x12d8   :  { %2211 = vrot.lane.b32.xlu1 %v6603_v31, %s6115_s2 }
0x12e0   :  { %2209 = vrot.lane.b32.xlu1 %v6623_v60, %s6117_s25 }
0x131a   :  { %v1742_v0 = vpop.xlane.xlu1 %1741 }
0x131b   :  { %v1746_v62 = vmul.f32 %v1742_v0, %v6370_v21 }
0x131d   :  { %v1748_v9 = vadd.f32 1e-06, %v1746_v62 }
0x131f   :  { %5918 = vrsqrt.f32 %v1748_v9  ;;  %vm1756_vm14 = vweird.f32 %v1748_v9 }
0x1322   :  { %v1745_v1 = vpop.xlane.xlu1 %1744 }
0x1323   :  { %v1747_v4 = vmul.f32 %v1745_v1, %v6370_v21 }
0x1325   :  { %v5919_v11 = vpop.eup %5918  ;;  %v1749_v5 = vadd.f32 1e-06, %v1747_v4 }
0x1326   :  { %v1751_v36 = vmul.f32 %v5919_v11, %v1748_v9  ;;  %vm1757_vm13 = vweird.f32 %v5919_v11 }
0x1327   :  { %5920 = vrsqrt.f32 %v1749_v5  ;;  %vm1758_vm15 = vmor %vm1756_vm14, %vm1757_vm13  ;;  %vm1766_vm1 = vweird.f32 %v1749_v5 }
0x1328   :  { %v1752_v6 = vmul.f32 %v5919_v11, %v1751_v36  ;;  %v6675_v36 = vld [vmem:[%s7465_s6 + $0x8] sm:$0xff] }
0x132a   :  { %v1753_v8 = vmul.f32 0.5, %v1752_v6 }
0x132c   :  { %v1754_v13 = vsub.f32 1.5, %v1753_v8 }
0x132d   :  { %v5921_v14 = vpop.eup %5920 }
0x132e   :  { %v1755_v30 = vmul.f32 %v5919_v11, %v1754_v13  ;;  %v1761_v17 = vmul.f32 %v5921_v14, %v1749_v5  ;;  %vm1767_vm0 = vweird.f32 %v5921_v14 }
0x132f   :  { %vm1768_vm5 = vmor %vm1766_vm1, %vm1767_vm0 }
0x1330   :  { %v1762_v40 = vmul.f32 %v5921_v14, %v1761_v17  ;;  %v1759_v15 = vsel %vm1758_vm15, %v5919_v11, %v1755_v30 }
0x1331   :  { %v1770_v18 = vmul.f32 %v1759_v15, %v1736_v37 }
0x1332   :  { %v1763_v42 = vmul.f32 0.5, %v1762_v40 }
0x1333   :  { %v1773_v34 = vmul.f32 %v5812_v20, %v1770_v18 }
0x1334   :  { %v1764_v19 = vsub.f32 1.5, %v1763_v42 }
0x1335   :  { %v6636_v2 = vadd.f32 %v5813_v10, %v1773_v34 }
0x1336   :  { %v1765_v56 = vmul.f32 %v5921_v14, %v1764_v19 }
0x1338   :  { %v1769_v24 = vsel %vm1768_vm5, %v5921_v14, %v1765_v56 }
0x1339   :  { %v1771_v25 = vmul.f32 %v1769_v24, %v1737_v48 }
0x133a   :  { %v2043_v26 = vpop.permute.xlu1 %2042 }
0x133b   :  { %v1774_v53 = vmul.f32 %v5812_v20, %v1771_v25  ;;  %v2048_v7 = vsel %vm173_vm4, %v2043_v26, 0 }
0x133c   :  { %2057 = vmatpush.bf16.xpose.msra.mxu2 %v2048_v7 }
0x133d   :  { %v6638_v27 = vadd.f32 %v5813_v10, %v1774_v53 }
0x133f   :  { %v1783_v29 = vpack.c.bf16 %v6638_v27, %v6636_v2 }
0x1341   :  { %5502 = vmatmul.msk.bf16.vlgmr.msrb.gmra.mxu2 %vm139_vm3, %v1783_v29 }
0x1342   :  { %v2184_v32 = vpop.permute.xlu1 %2183 }
0x1344   :  { %2200 = vmatpush.bf16.xpose.msrb.mxu2 %v2191_v3 }
0x134a   :  { %v2212_v45 = vpop.permute.xlu1 %2211 }
0x134b   :  { %v2217_v48 = vsel %vm173_vm4, %v2212_v45, 0 }
0x1351   :  { %5548 = vmatmul.msk.bf16.vlgmr.msra.gmra.mxu2 %vm173_vm4, %v2035_v49 }
0x1352   :  { %v2210_v59 = vpop.permute.xlu1 %2209 }
0x1361   :  { %5552 = vmatmul.msk.bf16.vlgmr.msrb.gmra.mxu2 %vm173_vm4, %v2184_v32 }
0x13c4   :  { %v1809_v33 = vpop.f32.mrf.mxu2 }
0x13c5   :  { %v1810_v23 = vadd.f32 %v5814_v35, %v1809_v33 }
0x13c7   :  { %v1814_v37 = vmax.f32 %v1810_v23, 0.0 }
0x13cc   :  { %v1811_v38 = vpop.f32.mrf.mxu2 }
0x13cd   :  { %v1812_v41 = vadd.f32 %v5814_v35, %v1811_v38 }
0x13cf   :  { %v1815_v43 = vmax.f32 %v1812_v41, 0.0 }
0x13d1   :  { %v1825_v46 = vpack.c.bf16 %v1815_v43, %v1814_v37 }
0x13d3   :  { %5519 = vmatmul.msk.bf16.vlgmr.msrb.gmra.mxu3 %vm100_vm2, %v1825_v46 }
0x13d4   :  { %2226 = vmatpush.bf16.xpose.msrb.mxu3 %v2217_v48  ;;  %v2059_v50 = vpop.f32.mrf.mxu2 }
0x13d5   :  { %v2060_v51 = vadd.f32 %v2059_v50, %v6652_v47 }
0x13d7   :  { %v2087_v39 = vsel %vm173_vm4, %v2060_v51, -inf }
0x13d8   :  { %2088 = vmax.xlane.f32.xlu2 %v2087_v39 }
0x13dc   :  { %v2061_v52 = vpop.f32.mrf.mxu2 }
0x13e3   :  { %5549 = vmatmul.msk.bf16.vlgmr.msra.gmra.mxu3 %vm173_vm4, %v6618_v16 }
0x13e4   :  { %v2202_v54 = vpop.f32.mrf.mxu2 }
0x13e5   :  { %v2203_v49 = vadd.f32 %v2202_v54, %v6652_v47 }
0x13e7   :  { %v2232_v55 = vsel %vm173_vm4, %v2203_v49, -inf }
0x13e8   :  { %2233 = vmax.xlane.f32.xlu0 %v2232_v55 }
0x13ec   :  { %v2204_v58 = vpop.f32.mrf.mxu2 }
0x13f3   :  { %5553 = vmatmul.msk.bf16.vlgmr.msrb.gmra.mxu3 %vm173_vm4, %v2210_v59 }
0x13fc   :  { %2137 = vrot.lane.b32.xlu0 %v6599_v22, %s6111_s14 }
0x1404   :  { %2365 = vrot.lane.b32.xlu0 %v6614_v57, %s6119_s29 }
0x144b   :  { %v2089_v61 = vpop.xlane.xlu2 %2088 }
0x144c   :  { %v2093_v63 = vsub.f32 %v2060_v51, %v2089_v61 }
0x144e   :  { %v2095_v0 = vmul.f32 1.442695, %v2093_v63 }
0x1450   :  { %5922 = vpow2.f32 %v2095_v0 }
0x1456   :  { %v5923_v16 = vpop.eup %5922  ;;  %v6667_v62 = vpop.f32.mrf.mxu3 }
0x1457   :  { %v2099_v9 = vsel %vm173_vm4, %v5923_v16, 0.0 }
0x1458   :  { %2100 = vadd.xlane.f32.xlu1 %v2099_v9 }
0x145b   :  { %v2234_v1 = vpop.xlane.xlu0 %2233 }
0x145c   :  { %v2238_v4 = vsub.f32 %v2203_v49, %v2234_v1 }
0x145e   :  { %v2240_v11 = vmul.f32 1.442695, %v2238_v4  ;;  %v6670_v5 = vpop.f32.mrf.mxu3 }
0x1460   :  { %5924 = vpow2.f32 %v2240_v11 }
0x1466   :  { %v6677_v6 = vpop.eup %5924  ;;  %v2083_v8 = vpop.f32.mrf.mxu3 }
0x1467   :  { %v2084_v13 = vadd.f32 %v2083_v8, %v6675_v36  ;;  %v2244_v14 = vsel %vm173_vm4, %v6677_v6, 0.0 }
0x1468   :  { %2245 = vadd.xlane.f32.xlu2 %v2244_v14 }
0x1469   :  { %v2090_v30 = vsel %vm173_vm4, %v2084_v13, -inf }
0x146a   :  { %2091 = vmax.xlane.f32.xlu0 %v2090_v30  ;;  %v2029_v30 = vld [vmem:[#allocation2 + $0xe4] sm:$0xf] }
0x146e   :  { %v2085_v17 = vpop.f32.mrf.mxu3  ;;  %v2138_v40 = vpop.permute.xlu0 %2137 }
0x146f   :  { %v2143_v15 = vsel %vm272_vm9, %v2138_v40, 0  ;;  %v2329_v17 = vsel %vm272_vm9, %v2029_v30, 0 }
0x1470   :  { %2152 = vmatpush.bf16.msra.mxu0 %v2143_v15  ;;  %2338 = vmatpush.bf16.msra.mxu2 %v2329_v17 }
0x1471   :  { %2282 = vrot.lane.b32.xlu1 %v6599_v22, %s6118_s28 }
0x1476   :  { %v2228_v42 = vpop.f32.mrf.mxu3  ;;  %v2366_v25 = vpop.permute.xlu0 %2365 }
0x1477   :  { %v2229_v20 = vadd.f32 %v2228_v42, %v6675_v36 }
0x1479   :  { %v2235_v18 = vsel %vm173_vm4, %v2229_v20, -inf }
0x147e   :  { %v2230_v19 = vpop.f32.mrf.mxu3 }
0x1480   :  { %2367 = vrot.lane.b32.xlu2 %v6599_v22, %s6120_s30 }
0x149b   :  { %2236 = vmax.xlane.f32.xlu1 %v2235_v18 }
0x14b4   :  { %2158 = vrot.lane.b32.xlu1 %v6603_v31, %s6111_s14 }
0x14cb   :  { %v2101_v56 = vpop.xlane.xlu1 %2100 }
0x14cc   :  { %5926 = vrcp.f32 %v2101_v56  ;;  %v2116_v26 = vand.u32 2147483648, %v2101_v56  ;;  %v2114_v7 = vand.u32 2147483647, %v2101_v56  ;;  %vm2110_vm7 = vweird.f32 %v2101_v56 }
0x14ce   :  { %v2117_v29 = vor.u32 1.1754944e-38, %v2116_v26  ;;  %vm2115_vm10 = vcmp.eq.f32.partialorder %v2114_v7, 8.507059e+37 }
0x14d2   :  { %v5927_v24 = vpop.eup %5926 }
0x14d3   :  { %v2106_v34 = vmul.f32 %v5927_v24, %v2101_v56  ;;  %vm2111_vm6 = vweird.f32 %v5927_v24 }
0x14d4   :  { %vm2112_vm8 = vmor %vm2110_vm7, %vm2111_vm6 }
0x14d5   :  { %v2107_v10 = vsub.f32 1.0, %v2106_v34 }
0x14d7   :  { %v2108_v53 = vmul.f32 %v5927_v24, %v2107_v10 }
0x14d9   :  { %v2109_v28 = vadd.f32 %v5927_v24, %v2108_v53 }
0x14db   :  { %v2113_v3 = vsel %vm2112_vm8, %v5927_v24, %v2109_v28  ;;  %v2246_v32 = vpop.xlane.xlu2 %2245 }
0x14dc   :  { %v2118_v33 = vsel %vm2115_vm10, %v2117_v29, %v2113_v3  ;;  %5928 = vrcp.f32 %v2246_v32  ;;  %v2261_v52 = vand.u32 2147483648, %v2246_v32  ;;  %v2259_v49 = vand.u32 2147483647, %v2246_v32 }
0x14dd   :  { %v2133_v35 = vmul.f32 %v5923_v16, %v2118_v33  ;;  %v2092_v23 = vpop.xlane.xlu0 %2091  ;;  %vm2255_vm12 = vweird.f32 %v2246_v32 }
0x14de   :  { %v2094_v38 = vsub.f32 %v2084_v13, %v2092_v23  ;;  %v2262_v61 = vor.u32 1.1754944e-38, %v2261_v52  ;;  %vm2260_vm14 = vcmp.eq.f32.partialorder %v2259_v49, 8.507059e+37 }
0x14df   :  { %v2135_v41 = vpack.c.bf16 %v2133_v35, %v2133_v35 }
0x14e0   :  { %v2097_v37 = vmul.f32 1.442695, %v2094_v38  ;;  %v2028_v38 = vld [vmem:[#allocation2 + $0xe0] sm:$0xf] }
0x14e1   :  { %5550 = vmatmul.msk.bf16.vlgmr.msra.gmra.mxu0 %vm173_vm4, %v2135_v41 }
0x14e2   :  { %v5929_v43 = vpop.eup %5928  ;;  %5930 = vpow2.f32 %v2097_v37  ;;  %v2349_v37 = vsel %vm272_vm9, %v2028_v38, 0 }
0x14e3   :  { %v2251_v45 = vmul.f32 %v5929_v43, %v2246_v32  ;;  %v2283_v46 = vpop.permute.xlu1 %2282  ;;  %v2368_v48 = vpop.permute.xlu2 %2367  ;;  %vm2256_vm11 = vweird.f32 %v5929_v43  ;;  %2358 = vmatpush.bf16.msra.mxu3 %v2349_v37 }
0x14e4   :  { %v2288_v50 = vsel %vm272_vm9, %v2283_v46, 0  ;;  %v2373_v51 = vsel %vm173_vm4, %v2368_v48, 0  ;;  %vm2257_vm13 = vmor %vm2255_vm12, %vm2256_vm11 }
0x14e5   :  { %v2252_v39 = vsub.f32 1.0, %v2251_v45  ;;  %2297 = vmatpush.bf16.msrb.mxu0 %v2288_v50 }
0x14e7   :  { %v2253_v54 = vmul.f32 %v5929_v43, %v2252_v39 }
0x14e8   :  { %v5931_v55 = vpop.eup %5930 }
0x14e9   :  { %2382 = vmatpush.bf16.xpose.msra.mxu0 %v2373_v51  ;;  %v2254_v58 = vadd.f32 %v5929_v43, %v2253_v54  ;;  %v2102_v59 = vsel %vm173_vm4, %v5931_v55, 0.0 }
0x14ea   :  { %2103 = vadd.xlane.f32.xlu2 %v2102_v59 }
0x14eb   :  { %v2258_v63 = vsel %vm2257_vm13, %v5929_v43, %v2254_v58 }
0x14ec   :  { %v2263_v0 = vsel %vm2260_vm14, %v2262_v61, %v2258_v63 }
0x14ed   :  { %v2278_v16 = vmul.f32 %v6677_v6, %v2263_v0 }
0x14ef   :  { %v2280_v9 = vpack.c.bf16 %v2278_v16, %v2278_v16 }
0x14f1   :  { %5554 = vmatmul.msk.bf16.vlgmr.msrb.gmra.mxu0 %vm173_vm4, %v2280_v9 }
0x1501   :  { %5558 = vmatmul.msk.bf16.vlgmr.msra.gmra.mxu0 %vm173_vm4, %v2366_v25 }
0x1502   :  { %2303 = vrot.lane.b32.xlu2 %v6603_v31, %s6118_s28 }
0x150a   :  { %2388 = vrot.lane.b32.xlu2 %v6623_v60, %s6119_s29 }
0x150e   :  { %v2237_v1 = vpop.xlane.xlu1 %2236 }
0x150f   :  { %v2239_v4 = vsub.f32 %v2229_v20, %v2237_v1 }
0x1511   :  { %v2242_v11 = vmul.f32 1.442695, %v2239_v4 }
0x1512   :  { %2461 = vrot.lane.b32.xlu2 %v6599_v22, %s6121_s12 }
0x1513   :  { %5932 = vpow2.f32 %v2242_v11 }
0x1519   :  { %v6705_v8 = vpop.eup %5932 }
0x151a   :  { %2528 = vrot.lane.b32.xlu2 %v6599_v22, %s6122_s13  ;;  %v2247_v6 = vsel %vm173_vm4, %v6705_v8, 0.0 }
0x151b   :  { %2248 = vadd.xlane.f32.xlu0 %v2247_v6 }
0x1522   :  { %2551 = vrot.lane.b32.xlu2 %v6603_v31, %s6122_s13 }
0x1526   :  { %v2159_v13 = vpop.permute.xlu1 %2158 }
0x1527   :  { %v2164_v14 = vsel %vm272_vm9, %v2159_v13, 0 }
0x1528   :  { %2173 = vmatpush.bf16.msrb.mxu1 %v2164_v14 }
0x152a   :  { %2526 = vrot.lane.b32.xlu2 %v6614_v57, %s6123_s15 }
0x152f   :  { %2390 = vrot.lane.b32.xlu0 %v6603_v31, %s6120_s30 }
0x1532   :  { %2549 = vrot.lane.b32.xlu2 %v6623_v60, %s6123_s15 }
0x153a   :  { %2482 = vrot.lane.b32.xlu2 %v6603_v31, %s6121_s12 }
0x155d   :  { %v2104_v40 = vpop.xlane.xlu2 %2103 }
0x155e   :  { %5934 = vrcp.f32 %v2104_v40  ;;  %v6723_v15 = vpop.f32.mrf.mxu0  ;;  %v2130_v60 = vand.u32 2147483648, %v2104_v40  ;;  %v2128_v34 = vand.u32 2147483647, %v2104_v40  ;;  %vm2124_vm0 = vweird.f32 %v2104_v40 }
0x1560   :  { %v2131_v10 = vor.u32 1.1754944e-38, %v2130_v60  ;;  %vm2129_vm5 = vcmp.eq.f32.partialorder %v2128_v34, 8.507059e+37 }
0x1564   :  { %v5935_v42 = vpop.eup %5934 }
0x1565   :  { %v2120_v19 = vmul.f32 %v5935_v42, %v2104_v40  ;;  %v2304_v57 = vpop.permute.xlu2 %2303  ;;  %vm2125_vm15 = vweird.f32 %v5935_v42 }
0x1566   :  { %v2309_v20 = vsel %vm272_vm9, %v2304_v57, 0  ;;  %v2156_v18 = vpop.f32.mrf.mxu0  ;;  %vm2126_vm1 = vmor %vm2124_vm0, %vm2125_vm15 }
0x1567   :  { %v2121_v56 = vsub.f32 1.0, %v2120_v19  ;;  %2318 = vmatpush.bf16.msra.mxu1 %v2309_v20 }
0x1569   :  { %v2122_v24 = vmul.f32 %v5935_v42, %v2121_v56 }
0x156b   :  { %v2123_v25 = vadd.f32 %v5935_v42, %v2122_v24 }
0x156d   :  { %v2127_v26 = vsel %vm2126_vm1, %v5935_v42, %v2123_v25  ;;  %v2389_v53 = vpop.permute.xlu2 %2388 }
0x156e   :  { %v2132_v7 = vsel %vm2129_vm5, %v2131_v10, %v2127_v26  ;;  %v6726_v28 = vpop.f32.mrf.mxu0 }
0x156f   :  { %v2134_v29 = vmul.f32 %v5931_v55, %v2132_v7 }
0x1571   :  { %v2136_v3 = vpack.c.bf16 %v2134_v29, %v2134_v29 }
0x1573   :  { %5551 = vmatmul.msk.bf16.vlgmr.msrb.gmra.mxu1 %vm173_vm4, %v2136_v3 }
0x1575   :  { %v2462_v32 = vpop.permute.xlu2 %2461 }
0x1576   :  { %v2467_v33 = vsel %vm272_vm9, %v2462_v32, 0  ;;  %v2301_v35 = vpop.f32.mrf.mxu0 }
0x1577   :  { %2476 = vmatpush.bf16.msrb.mxu2 %v2467_v33 }
0x157d   :  { %v2529_v23 = vpop.permute.xlu2 %2528 }
0x157e   :  { %v2384_v41 = vpop.f32.mrf.mxu0  ;;  %v2534_v14 = vsel %vm173_vm4, %v2529_v23, 0 }
0x157f   :  { %v2385_v43 = vadd.f32 %v2384_v41, %v6652_v47 }
0x1581   :  { %v2411_v45 = vsel %vm173_vm4, %v2385_v43, -inf }
0x1582   :  { %2412 = vmax.xlane.f32.xlu1 %v2411_v45 }
0x1585   :  { %v2552_v46 = vpop.permute.xlu2 %2551 }
0x1586   :  { %v2386_v48 = vpop.f32.mrf.mxu0  ;;  %v2557_v60 = vsel %vm173_vm4, %v2552_v46, 0 }
0x158d   :  { %v2527_v50 = vpop.permute.xlu2 %2526 }
0x158e   :  { %v2249_v51 = vpop.xlane.xlu0 %2248 }
0x158f   :  { %5936 = vrcp.f32 %v2249_v51  ;;  %v2275_v55 = vand.u32 2147483648, %v2249_v51  ;;  %v2273_v59 = vand.u32 2147483647, %v2249_v51  ;;  %vm2269_vm7 = vweird.f32 %v2249_v51 }
0x1591   :  { %v2276_v63 = vor.u32 1.1754944e-38, %v2275_v55  ;;  %vm2274_vm10 = vcmp.eq.f32.partialorder %v2273_v59, 8.507059e+37 }
0x1595   :  { %v5937_v39 = vpop.eup %5936  ;;  %v6733_v52 = vpop.permute.xlu2 %2549 }
0x1596   :  { %v2265_v54 = vmul.f32 %v5937_v39, %v2249_v51  ;;  %vm2270_vm6 = vweird.f32 %v5937_v39 }
0x1597   :  { %vm2271_vm8 = vmor %vm2269_vm7, %vm2270_vm6 }
0x1598   :  { %v2266_v49 = vsub.f32 1.0, %v2265_v54 }
0x159a   :  { %v2267_v58 = vmul.f32 %v5937_v39, %v2266_v49 }
0x159c   :  { %v2268_v61 = vadd.f32 %v5937_v39, %v2267_v58 }
0x159d   :  { %v2483_v0 = vpop.permute.xlu2 %2482 }
0x159e   :  { %v2272_v16 = vsel %vm2271_vm8, %v5937_v39, %v2268_v61  ;;  %v2488_v9 = vsel %vm272_vm9, %v2483_v0, 0 }
0x159f   :  { %v2277_v1 = vsel %vm2274_vm10, %v2276_v63, %v2272_v16  ;;  %2497 = vmatpush.bf16.msrb.mxu3 %v2488_v9 }
0x15a0   :  { %v2279_v4 = vmul.f32 %v6705_v8, %v2277_v1 }
0x15a1   :  { %v2391_v11 = vpop.permute.xlu0 %2390 }
0x15a2   :  { %v2281_v6 = vpack.c.bf16 %v2279_v4, %v2279_v4  ;;  %v2396_v13 = vsel %vm173_vm4, %v2391_v11, 0 }
0x15a3   :  { %2405 = vmatpush.bf16.xpose.msrb.mxu1 %v2396_v13 }
0x15a4   :  { %5555 = vmatmul.msk.bf16.vlgmr.msra.gmra.mxu1 %vm173_vm4, %v2281_v6 }
0x15ab   :  { %2543 = vmatpush.bf16.xpose.msra.mxu1 %v2534_v14 }
0x15b4   :  { %5559 = vmatmul.msk.bf16.vlgmr.msrb.gmra.mxu1 %vm173_vm4, %v2389_v53 }
0x15c4   :  { %5563 = vmatmul.msk.bf16.vlgmr.msra.gmra.mxu1 %vm173_vm4, %v2527_v50 }
0x15f0   :  { %v2175_v30 = vpop.f32.mrf.mxu1 }
0x15f1   :  { %v2179_v17 = vpack.c.bf16 %v2175_v30, %v6723_v15 }
0x15f3   :  { %5557 = vmatmul.msk.bf16.vlgmr.msra.gmra.mxu3 %vm173_vm4, %v2179_v17 }
0x15f5   :  { %v2413_v8 = vpop.xlane.xlu1 %2412 }
0x15f6   :  { %v2417_v40 = vsub.f32 %v2385_v43, %v2413_v8 }
0x15f8   :  { %v2419_v42 = vmul.f32 1.442695, %v2417_v40  ;;  %v2177_v19 = vpop.f32.mrf.mxu1 }
0x15fa   :  { %5938 = vpow2.f32 %v2419_v42 }
0x1600   :  { %v5939_v57 = vpop.eup %5938 }
0x1601   :  { %v2423_v20 = vsel %vm173_vm4, %v5939_v57, 0.0 }
0x1602   :  { %2424 = vadd.xlane.f32.xlu0 %v2423_v20 }
0x1621   :  { %v2320_v18 = vpop.f32.mrf.mxu1 }
0x1622   :  { %v2324_v56 = vpack.c.bf16 %v2320_v18, %v6726_v28 }
0x1624   :  { %5556 = vmatmul.msk.bf16.vlgmr.msra.gmra.mxu2 %vm173_vm4, %v2324_v56 }
0x1625   :  { %2566 = vmatpush.bf16.xpose.msra.mxu2 %v2557_v60 }
0x1629   :  { %v2322_v15 = vpop.f32.mrf.mxu1 }
0x162a   :  { %v5815_v15 = vld [vmem:[%s7467_s8 + $0xe] ss:$0 sm:$0xff] }
0x1631   :  { %v2407_v24 = vpop.f32.mrf.mxu1 }
0x1632   :  { %v2408_v34 = vadd.f32 %v2407_v24, %v6675_v36  ;;  %v1864_v24 = vadd.f32 %v5815_v15, %v6667_v62 }
0x1634   :  { %v2414_v25 = vsel %vm173_vm4, %v2408_v34, -inf }
0x1635   :  { %2415 = vmax.xlane.f32.xlu1 %v2414_v25 }
0x1639   :  { %v2409_v10 = vpop.f32.mrf.mxu1 }
0x1641   :  { %v2545_v26 = vpop.f32.mrf.mxu1 }
0x1642   :  { %v2546_v53 = vadd.f32 %v2545_v26, %v6652_v47 }
0x1644   :  { %v2572_v7 = vsel %vm173_vm4, %v2546_v53, -inf }
0x1645   :  { %2573 = vmax.xlane.f32.xlu1 %v2572_v7 }
0x1649   :  { %v2547_v28 = vpop.f32.mrf.mxu1 }
0x1675   :  { %v2425_v29 = vpop.xlane.xlu0 %2424 }
0x1676   :  { %5940 = vrcp.f32 %v2425_v29  ;;  %v2440_v35 = vand.u32 2147483648, %v2425_v29  ;;  %v2438_v38 = vand.u32 2147483647, %v2425_v29  ;;  %vm2434_vm12 = vweird.f32 %v2425_v29  ;;  %v2360_v48 = vpop.f32.mrf.mxu3 }
0x1678   :  { %v2441_v37 = vor.u32 1.1754944e-38, %v2440_v35  ;;  %vm2439_vm14 = vcmp.eq.f32.partialorder %v2438_v38, 8.507059e+37  ;;  %v2030_v35 = vld [vmem:[#allocation2 + $0xe8] sm:$0xf] }
0x167c   :  { %v5941_v3 = vpop.eup %5940 }
0x167d   :  { %v2430_v32 = vmul.f32 %v5941_v3, %v2425_v29  ;;  %vm2435_vm11 = vweird.f32 %v5941_v3 }
0x167e   :  { %vm2436_vm13 = vmor %vm2434_vm12, %vm2435_vm11 }
0x167f   :  { %v2431_v33 = vsub.f32 1.0, %v2430_v32 }
0x1681   :  { %v2432_v23 = vmul.f32 %v5941_v3, %v2431_v33 }
0x1683   :  { %v2433_v41 = vadd.f32 %v5941_v3, %v2432_v23 }
0x1685   :  { %v2437_v43 = vsel %vm2436_vm13, %v5941_v3, %v2433_v41  ;;  %v2508_v41 = vsel %vm272_vm9, %v2030_v35, 0 }
0x1686   :  { %v2442_v47 = vsel %vm2439_vm14, %v2441_v37, %v2437_v43  ;;  %2517 = vmatpush.bf16.msrb.mxu0 %v2508_v41 }
0x1687   :  { %v2457_v45 = vmul.f32 %v5939_v57, %v2442_v47 }
0x1689   :  { %v2459_v46 = vpack.c.bf16 %v2457_v45, %v2457_v45 }
0x168b   :  { %5560 = vmatmul.msk.bf16.vlgmr.msrb.gmra.mxu2 %vm173_vm4, %v2459_v46 }
0x169b   :  { %5564 = vmatmul.msk.bf16.vlgmr.msra.gmra.mxu2 %vm173_vm4, %v6733_v52 }
0x16a7   :  { %v2340_v50 = vpop.f32.mrf.mxu2 }
0x16a8   :  { %v6755_v51 = vadd.f32 %v2360_v48, %v2340_v50  ;;  %v2416_v39 = vpop.xlane.xlu1 %2415  ;;  %v2362_v50 = vpop.f32.mrf.mxu3 }
0x16a9   :  { %v2418_v54 = vsub.f32 %v2408_v34, %v2416_v39  ;;  %v6776_v34 = vadd.f32 %v1864_v24, %v6636_v2 }
0x16ab   :  { %v2421_v49 = vmul.f32 1.442695, %v2418_v54 }
0x16ad   :  { %5942 = vpow2.f32 %v2421_v49 }
0x16af   :  { %v6762_v16 = vpop.f32.mrf.mxu2 }
0x16b3   :  { %v5943_v55 = vpop.eup %5942 }
0x16b4   :  { %v2426_v58 = vsel %vm173_vm4, %v5943_v55, 0.0 }
0x16b5   :  { %2427 = vadd.xlane.f32.xlu0 %v2426_v58 }
0x16b8   :  { %v2574_v59 = vpop.xlane.xlu1 %2573 }
0x16b9   :  { %v2578_v61 = vsub.f32 %v2546_v53, %v2574_v59 }
0x16bb   :  { %v2580_v63 = vmul.f32 1.442695, %v2578_v61 }
0x16bd   :  { %5944 = vpow2.f32 %v2580_v63 }
0x16c3   :  { %v6758_v0 = vpop.eup %5944 }
0x16c4   :  { %v2584_v52 = vsel %vm173_vm4, %v6758_v0, 0.0 }
0x16c5   :  { %2585 = vadd.xlane.f32.xlu2 %v2584_v52 }
0x170e   :  { %v6764_v9 = vpop.f32.mrf.mxu2 }
0x1716   :  { %v2480_v1 = vpop.f32.mrf.mxu2 }
0x171e   :  { %v2568_v4 = vpop.f32.mrf.mxu2 }
0x171f   :  { %v2569_v11 = vadd.f32 %v2568_v4, %v6675_v36 }
0x1721   :  { %v2575_v6 = vsel %vm173_vm4, %v2569_v11, -inf }
0x1722   :  { %2576 = vmax.xlane.f32.xlu0 %v2575_v6 }
0x1726   :  { %v2570_v13 = vpop.f32.mrf.mxu2 }
0x1728   :  { %v2428_v14 = vpop.xlane.xlu0 %2427 }
0x1729   :  { %5946 = vrcp.f32 %v2428_v14  ;;  %v2454_v40 = vand.u32 2147483648, %v2428_v14  ;;  %v2452_v19 = vand.u32 2147483647, %v2428_v14  ;;  %vm2448_vm0 = vweird.f32 %v2428_v14 }
0x172b   :  { %v2455_v36 = vor.u32 1.1754944e-38, %v2454_v40  ;;  %vm2453_vm5 = vcmp.eq.f32.partialorder %v2452_v19, 8.507059e+37  ;;  %v2031_v19 = vld [vmem:[#allocation2 + $0xec] sm:$0xf] }
0x172f   :  { %v5947_v30 = vpop.eup %5946 }
0x1730   :  { %v2444_v17 = vmul.f32 %v5947_v30, %v2428_v14  ;;  %vm2449_vm15 = vweird.f32 %v5947_v30 }
0x1731   :  { %vm2450_vm1 = vmor %vm2448_vm0, %vm2449_vm15 }
0x1732   :  { %v2445_v8 = vsub.f32 1.0, %v2444_v17 }
0x1734   :  { %v2446_v42 = vmul.f32 %v5947_v30, %v2445_v8 }
0x1736   :  { %v2447_v57 = vadd.f32 %v5947_v30, %v2446_v42  ;;  %2622 = vrot.lane.b32.xlu0 %v6599_v22, %s6124_s16  ;;  %v1872_v22 = vsel %vm139_vm3, %v6776_v34, 0.0 }
0x1738   :  { %v2451_v20 = vsel %vm2450_vm1, %v5947_v30, %v2447_v57  ;;  %v2586_v25 = vpop.xlane.xlu2 %2585  ;;  %v2669_v57 = vsel %vm272_vm9, %v2031_v19, 0  ;;  %v5818_v19 = vld [vmem:[%s7467_s8 + $0x10] ss:$0 sm:$0xff] }
0x1739   :  { %v2456_v18 = vsel %vm2453_vm5, %v2455_v36, %v2451_v20  ;;  %5948 = vrcp.f32 %v2586_v25  ;;  %v2601_v62 = vand.u32 2147483648, %v2586_v25  ;;  %vm2595_vm7 = vweird.f32 %v2586_v25  ;;  %2678 = vmatpush.bf16.msrb.mxu1 %v2669_v57 }
0x173a   :  { %v2458_v56 = vmul.f32 %v5943_v55, %v2456_v18  ;;  %v2599_v2 = vand.u32 2147483647, %v2586_v25  ;;  %v1866_v55 = vadd.f32 %v5815_v15, %v6670_v5 }
0x173b   :  { %v2602_v37 = vor.u32 1.1754944e-38, %v2601_v62 }
0x173c   :  { %v2460_v60 = vpack.c.bf16 %v2458_v56, %v2458_v56  ;;  %vm2600_vm10 = vcmp.eq.f32.partialorder %v2599_v2, 8.507059e+37  ;;  %v1869_v58 = vadd.f32 %v1866_v55, %v6638_v27 }
0x173e   :  { %5561 = vmatmul.msk.bf16.vlgmr.msrb.gmra.mxu3 %vm173_vm4, %v2460_v60  ;;  %v1875_v59 = vsel %vm139_vm3, %v1869_v58, 0.0  ;;  %v5816_v60 = vld [vmem:[%s7467_s8 + $0x12] ss:$0 sm:$0xff] }
0x173f   :  { %v5949_v10 = vpop.eup %5948 }
0x1740   :  { %v2591_v26 = vmul.f32 %v5949_v10, %v2586_v25  ;;  %vm2596_vm6 = vweird.f32 %v5949_v10  ;;  %v2363_v25 = vadd.f32 %v2362_v50, %v6762_v16 }
0x1741   :  { %vm2597_vm8 = vmor %vm2595_vm7, %vm2596_vm6 }
0x1742   :  { %v2592_v53 = vsub.f32 1.0, %v2591_v26 }
0x1744   :  { %v2593_v3 = vmul.f32 %v5949_v10, %v2592_v53 }
0x1746   :  { %v2594_v32 = vadd.f32 %v5949_v10, %v2593_v3 }
0x1748   :  { %v2598_v23 = vsel %vm2597_vm8, %v5949_v10, %v2594_v32 }
0x1749   :  { %v2603_v43 = vsel %vm2600_vm10, %v2602_v37, %v2598_v23 }
0x174a   :  { %v2618_v47 = vmul.f32 %v6758_v0, %v2603_v43 }
0x174c   :  { %v2620_v48 = vpack.c.bf16 %v2618_v47, %v2618_v47 }
0x1760   :  { %1873 = vadd.xlane.f32.xlu0 %v1872_v22 }
0x1795   :  { %v2577_v7 = vpop.xlane.xlu0 %2576 }
0x1796   :  { %v2579_v28 = vsub.f32 %v2569_v11, %v2577_v7 }
0x1798   :  { %v2582_v29 = vmul.f32 1.442695, %v2579_v28 }
0x179a   :  { %5950 = vpow2.f32 %v2582_v29 }
0x17a0   :  { %v5951_v33 = vpop.eup %5950 }
0x17a1   :  { %v2587_v38 = vsel %vm173_vm4, %v5951_v33, 0.0 }
0x17a2   :  { %2588 = vadd.xlane.f32.xlu1 %v2587_v38 }
0x17a8   :  { %v2623_v45 = vpop.permute.xlu0 %2622 }
0x17a9   :  { %v2628_v46 = vsel %vm272_vm9, %v2623_v45, 0 }
0x17aa   :  { %2637 = vmatpush.bf16.msra.mxu3 %v2628_v46 }
0x17ad   :  { %5565 = vmatmul.msk.bf16.vlgmr.msra.gmra.mxu3 %vm173_vm4, %v2620_v48 }
0x17bb   :  { %2643 = vrot.lane.b32.xlu1 %v6603_v31, %s6124_s16 }
0x17c1   :  { %v2499_v39 = vpop.f32.mrf.mxu3 }
0x17c2   :  { %v2503_v54 = vpack.c.bf16 %v2499_v39, %v6764_v9 }
0x17c4   :  { %5562 = vmatmul.msk.bf16.vlgmr.msrb.gmra.mxu0 %vm173_vm4, %v2503_v54  ;;  %v5763_v54 = vld [vmem:[#allocation2 + $0x108] sm:$0xff] }
0x17c5   :  { %2808 = vmatpush.bf16.msrb.mxu3 %v5763_v54 }
0x17c9   :  { %v2501_v49 = vpop.f32.mrf.mxu3 }
0x17d3   :  { %v1874_v53 = vpop.xlane.xlu0 %1873 }
0x17d4   :  { %v1878_v29 = vmul.f32 %v1874_v53, %v6370_v21 }
0x17d6   :  { %v1880_v62 = vsub.f32 %v6776_v34, %v1878_v29 }
0x17d8   :  { %v1882_v16 = vmul.f32 %v1880_v62, %v1880_v62 }
0x17da   :  { %v1884_v23 = vsel %vm139_vm3, %v1882_v16, 0.0 }
0x17e5   :  { %1876 = vadd.xlane.f32.xlu1 %v1875_v59  ;;  %v5762_v59 = vld [vmem:[#allocation2 + $0x100] sm:$0xff] }
0x17e6   :  { %2809 = vmatpush.bf16.msrb.mxu3 %v5762_v59 }
0x1815   :  { %v2589_v61 = vpop.xlane.xlu1 %2588 }
0x1816   :  { %5952 = vrcp.f32 %v2589_v61  ;;  %v2615_v4 = vand.u32 2147483648, %v2589_v61  ;;  %vm2609_vm12 = vweird.f32 %v2589_v61  ;;  %v2613_v9 = vand.u32 2147483647, %v2589_v61 }
0x1818   :  { %v2616_v6 = vor.u32 1.1754944e-38, %v2615_v4  ;;  %vm2614_vm14 = vcmp.eq.f32.partialorder %v2613_v9, 8.507059e+37 }
0x181c   :  { %v5953_v63 = vpop.eup %5952 }
0x181d   :  { %v2605_v0 = vmul.f32 %v5953_v63, %v2589_v61  ;;  %vm2610_vm11 = vweird.f32 %v5953_v63 }
0x181e   :  { %vm2611_vm13 = vmor %vm2609_vm12, %vm2610_vm11 }
0x181f   :  { %v2606_v52 = vsub.f32 1.0, %v2605_v0 }
0x1821   :  { %v2607_v1 = vmul.f32 %v5953_v63, %v2606_v52 }
0x1823   :  { %v2608_v31 = vadd.f32 %v5953_v63, %v2607_v1 }
0x1825   :  { %v2612_v11 = vsel %vm2611_vm13, %v5953_v63, %v2608_v31 }
0x1826   :  { %v2617_v5 = vsel %vm2614_vm14, %v2616_v6, %v2612_v11 }
0x1827   :  { %v2619_v27 = vmul.f32 %v5951_v33, %v2617_v5 }
0x1829   :  { %v2621_v30 = vpack.c.bf16 %v2619_v27, %v2619_v27 }
0x182d   :  { %v2644_v13 = vpop.permute.xlu1 %2643 }
0x182e   :  { %v2649_v14 = vsel %vm272_vm9, %v2644_v13, 0 }
0x182f   :  { %2658 = vmatpush.bf16.msra.mxu0 %v2649_v14 }
0x1830   :  { %v2639_v17 = vpop.f32.mrf.mxu3 }
0x1832   :  { %5566 = vmatmul.msk.bf16.vlgmr.msra.gmra.mxu0 %vm173_vm4, %v2621_v30 }
0x1838   :  { %v2641_v8 = vpop.f32.mrf.mxu3 }
0x1841   :  { %v2519_v40 = vpop.f32.mrf.mxu0 }
0x1842   :  { %v2524_v42 = vadd.f32 %v2519_v40, %v6755_v51 }
0x1849   :  { %v2521_v36 = vpop.f32.mrf.mxu0 }
0x184a   :  { %v2525_v10 = vadd.f32 %v2521_v36, %v2363_v25 }
0x1858   :  { %v1877_v33 = vpop.xlane.xlu1 %1876 }
0x18af   :  { %v2660_v20 = vpop.f32.mrf.mxu0 }
0x18b0   :  { %v2664_v18 = vpack.c.bf16 %v2660_v20, %v2639_v17  ;;  %v5817_v17 = vld [vmem:[%s7467_s8 + $0xf] ss:$0 sm:$0xff] }
0x18b2   :  { %5567 = vmatmul.msk.bf16.vlgmr.msrb.gmra.mxu1 %vm173_vm4, %v2664_v18 }
0x18b7   :  { %v2662_v56 = vpop.f32.mrf.mxu0 }
0x192f   :  { %v2680_v15 = vpop.f32.mrf.mxu1 }
0x1930   :  { %v2685_v24 = vadd.f32 %v2680_v15, %v2524_v42  ;;  %v5761_v15 = vld [vmem:[#allocation2 + $0xf8] sm:$0xff] }
0x1931   :  { %2772 = vmatpush.bf16.msrb.mxu2 %v5761_v15  ;;  %v6883_v15 = vld [vmem:[%s7464_s5] sm:$0xff] }
0x1932   :  { %v2688_v22 = vadd.f32 %v5816_v60, %v2685_v24 }
0x1934   :  { %v2690_v51 = vadd.f32 %v2688_v22, %v6580_v12  ;;  %v1879_v12 = vmul.f32 %v1877_v33, %v6370_v21 }
0x1936   :  { %v2694_v26 = vsel %vm139_vm3, %v2690_v51, 0.0  ;;  %v1881_v35 = vsub.f32 %v1869_v58, %v1879_v12 }
0x1937   :  { %2695 = vadd.xlane.f32.xlu2 %v2694_v26  ;;  %v2682_v7 = vpop.f32.mrf.mxu1 }
0x1938   :  { %v2686_v28 = vadd.f32 %v2682_v7, %v2525_v10  ;;  %v1883_v38 = vmul.f32 %v1881_v35, %v1881_v35 }
0x193a   :  { %v2689_v3 = vadd.f32 %v5816_v60, %v2686_v28  ;;  %v1887_v41 = vsel %vm139_vm3, %v1883_v38, 0.0  ;;  %v5819_v38 = vld [vmem:[%s7467_s8 + $0x16] ss:$0 sm:$0xff] }
0x193c   :  { %v2691_v32 = vadd.f32 %v2689_v3, %v6582_v44 }
0x193e   :  { %v2697_v2 = vsel %vm139_vm3, %v2691_v32, 0.0 }
0x193f   :  { %2698 = vadd.xlane.f32.xlu2 %v2697_v2 }
0x1947   :  { %1885 = vadd.xlane.f32.xlu2 %v1884_v23 }
0x194f   :  { %1888 = vadd.xlane.f32.xlu2 %v1887_v41 }
0x19aa   :  { %v2696_v37 = vpop.xlane.xlu2 %2695 }
0x19ab   :  { %v2700_v44 = vmul.f32 %v2696_v37, %v6370_v21 }
0x19ad   :  { %v6811_v43 = vsub.f32 %v2690_v51, %v2700_v44  ;;  %v5760_v51 = vld [vmem:[#allocation2 + $0xf0] sm:$0xff] }
0x19ae   :  { %2773 = vmatpush.bf16.msrb.mxu2 %v5760_v51 }
0x19af   :  { %v2704_v34 = vmul.f32 %v6811_v43, %v6811_v43 }
0x19b1   :  { %v2706_v47 = vsel %vm139_vm3, %v2704_v34, 0.0  ;;  %v5820_v34 = vld [vmem:[%s7467_s8 + $0x17] ss:$0 sm:$0xff] }
0x19b2   :  { %2707 = vadd.xlane.f32.xlu0 %v2706_v47  ;;  %v2699_v45 = vpop.xlane.xlu2 %2698 }
0x19b3   :  { %v2701_v46 = vmul.f32 %v2699_v45, %v6370_v21 }
0x19b5   :  { %v6817_v48 = vsub.f32 %v2691_v32, %v2701_v46 }
0x19b7   :  { %v2705_v50 = vmul.f32 %v6817_v48, %v6817_v48 }
0x19b9   :  { %v2709_v39 = vsel %vm139_vm3, %v2705_v50, 0.0 }
0x19ba   :  { %2710 = vadd.xlane.f32.xlu2 %v2709_v39  ;;  %v1886_v49 = vpop.xlane.xlu2 %1885 }
0x19bb   :  { %v1890_v55 = vmul.f32 %v1886_v49, %v6370_v21 }
0x19bd   :  { %v1892_v58 = vadd.f32 1e-06, %v1890_v55 }
0x19bf   :  { %5954 = vrsqrt.f32 %v1892_v58  ;;  %vm1900_vm0 = vweird.f32 %v1892_v58 }
0x19c2   :  { %v1889_v61 = vpop.xlane.xlu2 %1888 }
0x19c3   :  { %v1891_v63 = vmul.f32 %v1889_v61, %v6370_v21 }
0x19c5   :  { %v5955_v0 = vpop.eup %5954  ;;  %v1893_v52 = vadd.f32 1e-06, %v1891_v63 }
0x19c6   :  { %v1895_v1 = vmul.f32 %v5955_v0, %v1892_v58  ;;  %vm1901_vm15 = vweird.f32 %v5955_v0 }
0x19c7   :  { %5956 = vrsqrt.f32 %v1893_v52  ;;  %vm1902_vm1 = vmor %vm1900_vm0, %vm1901_vm15  ;;  %vm1910_vm6 = vweird.f32 %v1893_v52 }
0x19c8   :  { %v1896_v31 = vmul.f32 %v5955_v0, %v1895_v1 }
0x19ca   :  { %v1897_v4 = vmul.f32 0.5, %v1896_v31 }
0x19cc   :  { %v1898_v9 = vsub.f32 1.5, %v1897_v4 }
0x19cd   :  { %v5957_v11 = vpop.eup %5956 }
0x19ce   :  { %v1899_v6 = vmul.f32 %v5955_v0, %v1898_v9  ;;  %v1905_v5 = vmul.f32 %v5957_v11, %v1893_v52  ;;  %vm1911_vm5 = vweird.f32 %v5957_v11  ;;  %v5822_v9 = vld [vmem:[%s7467_s8 + $0x13] ss:$0 sm:$0xff] }
0x19cf   :  { %vm1912_vm7 = vmor %vm1910_vm6, %vm1911_vm5 }
0x19d0   :  { %v1906_v27 = vmul.f32 %v5957_v11, %v1905_v5  ;;  %v1903_v13 = vsel %vm1902_vm1, %v5955_v0, %v1899_v6 }
0x19d1   :  { %v1914_v8 = vmul.f32 %v1903_v13, %v1880_v62 }
0x19d2   :  { %v1907_v14 = vmul.f32 0.5, %v1906_v27 }
0x19d3   :  { %v1917_v57 = vmul.f32 %v5817_v17, %v1914_v8 }
0x19d4   :  { %v1908_v30 = vsub.f32 1.5, %v1907_v14 }
0x19d5   :  { %v1920_v18 = vadd.f32 %v5818_v19, %v1917_v57 }
0x19d6   :  { %v1909_v40 = vmul.f32 %v5957_v11, %v1908_v30 }
0x19d8   :  { %v1913_v42 = vsel %vm1912_vm7, %v5957_v11, %v1909_v40 }
0x19d9   :  { %v1915_v36 = vmul.f32 %v1913_v42, %v1881_v35 }
0x19db   :  { %v1918_v20 = vmul.f32 %v5817_v17, %v1915_v36 }
0x19dd   :  { %v1921_v56 = vadd.f32 %v5818_v19, %v1918_v20 }
0x19df   :  { %v6830_v60 = vpack.c.bf16 %v1921_v56, %v1920_v18 }
0x19e1   :  { %5585 = vmatmul.msk.bf16.vlgmr.msrb.gmra.mxu3 %vm139_vm3, %v6830_v60 }
0x1a25   :  { %v2708_v24 = vpop.xlane.xlu0 %2707 }
0x1a26   :  { %v2712_v22 = vmul.f32 %v2708_v24, %v6370_v21 }
0x1a28   :  { %v2714_v25 = vadd.f32 1e-06, %v2712_v22 }
0x1a2a   :  { %5958 = vrsqrt.f32 %v2714_v25  ;;  %vm2722_vm10 = vweird.f32 %v2714_v25 }
0x1a2d   :  { %v2711_v10 = vpop.xlane.xlu2 %2710 }
0x1a2e   :  { %v2713_v26 = vmul.f32 %v2711_v10, %v6370_v21 }
0x1a30   :  { %v5959_v53 = vpop.eup %5958  ;;  %v2715_v7 = vadd.f32 1e-06, %v2713_v26 }
0x1a31   :  { %v2717_v28 = vmul.f32 %v5959_v53, %v2714_v25  ;;  %vm2723_vm8 = vweird.f32 %v5959_v53 }
0x1a32   :  { %5960 = vrsqrt.f32 %v2715_v7  ;;  %vm2724_vm11 = vmor %vm2722_vm10, %vm2723_vm8  ;;  %vm2732_vm13 = vweird.f32 %v2715_v7 }
0x1a33   :  { %v2718_v29 = vmul.f32 %v5959_v53, %v2717_v28 }
0x1a35   :  { %v2719_v3 = vmul.f32 0.5, %v2718_v29 }
0x1a37   :  { %v2720_v32 = vsub.f32 1.5, %v2719_v3 }
0x1a38   :  { %v5961_v62 = vpop.eup %5960 }
0x1a39   :  { %v2721_v2 = vmul.f32 %v5959_v53, %v2720_v32  ;;  %v2727_v33 = vmul.f32 %v5961_v62, %v2715_v7  ;;  %vm2733_vm12 = vweird.f32 %v5961_v62 }
0x1a3a   :  { %vm2734_vm14 = vmor %vm2732_vm13, %vm2733_vm12 }
0x1a3b   :  { %v2728_v12 = vmul.f32 %v5961_v62, %v2727_v33  ;;  %v2725_v16 = vsel %vm2724_vm11, %v5959_v53, %v2721_v2 }
0x1a3c   :  { %v2736_v41 = vmul.f32 %v2725_v16, %v6811_v43  ;;  %v5821_v43 = vld [vmem:[%s7467_s8 + $0x14] ss:$0 sm:$0xff] }
0x1a3d   :  { %v2729_v35 = vmul.f32 0.5, %v2728_v12 }
0x1a3e   :  { %v2739_v47 = vmul.f32 %v5819_v38, %v2736_v41 }
0x1a3f   :  { %v2730_v23 = vsub.f32 1.5, %v2729_v35 }
0x1a40   :  { %v6844_v50 = vadd.f32 %v5820_v34, %v2739_v47 }
0x1a41   :  { %v2731_v37 = vmul.f32 %v5961_v62, %v2730_v23  ;;  %v6900_v23 = vld [vmem:[%s7464_s5 + $0x8] sm:$0xff] }
0x1a43   :  { %v2735_v44 = vsel %vm2734_vm14, %v5961_v62, %v2731_v37 }
0x1a44   :  { %v2737_v45 = vmul.f32 %v2735_v44, %v6817_v48 }
0x1a46   :  { %v2740_v46 = vmul.f32 %v5819_v38, %v2737_v45 }
0x1a48   :  { %v6846_v39 = vadd.f32 %v5820_v34, %v2740_v46 }
0x1a4a   :  { %v2749_v54 = vpack.c.bf16 %v6846_v39, %v6844_v50 }
0x1a4c   :  { %5576 = vmatmul.msk.bf16.vlgmr.msrb.gmra.mxu2 %vm139_vm3, %v2749_v54 }
0x1a64   :  { %v2811_v49 = vpop.f32.mrf.mxu3 }
0x1a65   :  { %v2812_v55 = vadd.f32 %v5821_v43, %v2811_v49 }
0x1a67   :  { %v2825_v58 = vpack.c.bf16 %v2812_v55, %v2812_v55 }
0x1a69   :  { %v2831_v59 = vsel %vm173_vm4, %v2825_v58, 0  ;;  %v2916_v48 = vunpack.c.l.b16 %v2825_v58 }
0x1a6a   :  { %2840 = vmatpush.bf16.xpose.msrb.mxu0 %v2831_v59 }
0x1a6b   :  { %v6855_v61 = vpack.c.b16 %v2916_v48, %v2916_v48 }
0x1a6c   :  { %v2813_v63 = vpop.f32.mrf.mxu3 }
0x1a6d   :  { %v2814_v0 = vadd.f32 %v5821_v43, %v2813_v63  ;;  %2969 = vrot.lane.b32.xlu0 %v6855_v61, %s6117_s25 }
0x1a6f   :  { %v2826_v52 = vpack.c.bf16 %v2814_v0, %v2814_v0 }
0x1a71   :  { %v2940_v1 = vunpack.c.l.b16 %v2826_v52  ;;  %v2850_v31 = vsel %vm173_vm4, %v2826_v52, 0 }
0x1a72   :  { %2859 = vmatpush.bf16.xpose.msra.mxu1 %v2850_v31 }
0x1a73   :  { %v6860_v4 = vpack.c.b16 %v2940_v1, %v2940_v1 }
0x1a75   :  { %2995 = vrot.lane.b32.xlu2 %v6860_v4, %s6117_s25 }
0x1acf   :  { %v2775_v11 = vpop.f32.mrf.mxu2  ;;  %v2996_v6 = vpop.permute.xlu2 %2995 }
0x1ad0   :  { %v2776_v5 = vadd.f32 %v5822_v9, %v2775_v11  ;;  %v3001_v27 = vsel %vm173_vm4, %v2996_v6, 0 }
0x1ad1   :  { %3010 = vmatpush.bf16.xpose.msrb.mxu1 %v3001_v27 }
0x1ad2   :  { %v2821_v13 = vmul.f32 0.35355338, %v2776_v5 }
0x1ad4   :  { %v2823_v14 = vpack.c.bf16 %v2821_v13, %v2821_v13 }
0x1ad6   :  { %v2965_v30 = vunpack.c.l.b16 %v2823_v14  ;;  %5586 = vmatmul.msk.bf16.vlgmr.msrb.gmra.mxu0 %vm173_vm4, %v2823_v14 }
0x1ad7   :  { %v2777_v17 = vpop.f32.mrf.mxu2 }
0x1ad8   :  { %v2778_v8 = vadd.f32 %v5822_v9, %v2777_v17  ;;  %v6869_v40 = vpack.c.b16 %v2965_v30, %v2965_v30 }
0x1ada   :  { %v2822_v42 = vmul.f32 0.35355338, %v2778_v8  ;;  %2967 = vrot.lane.b32.xlu1 %v6869_v40, %s6117_s25 }
0x1adc   :  { %v2824_v19 = vpack.c.bf16 %v2822_v42, %v2822_v42 }
0x1ade   :  { %v2991_v57 = vunpack.c.l.b16 %v2824_v19  ;;  %5587 = vmatmul.msk.bf16.vlgmr.msra.gmra.mxu1 %vm173_vm4, %v2824_v19 }
0x1adf   :  { %v2970_v36 = vpop.permute.xlu0 %2969 }
0x1ae0   :  { %v6874_v20 = vpack.c.b16 %v2991_v57, %v2991_v57  ;;  %v2975_v18 = vsel %vm173_vm4, %v2970_v36, 0 }
0x1ae1   :  { %2984 = vmatpush.bf16.xpose.msra.mxu0 %v2975_v18 }
0x1ae2   :  { %2993 = vrot.lane.b32.xlu0 %v6874_v20, %s6117_s25 }
0x1b4c   :  { %v2968_v56 = vpop.permute.xlu1 %2967 }
0x1b4d   :  { %5590 = vmatmul.msk.bf16.vlgmr.msra.gmra.mxu0 %vm173_vm4, %v2968_v56 }
0x1b53   :  { %v2842_v24 = vpop.f32.mrf.mxu0 }
0x1b54   :  { %v2843_v22 = vadd.f32 %v2842_v24, %v6883_v15  ;;  %v2994_v25 = vpop.permute.xlu0 %2993 }
0x1b55   :  { %5591 = vmatmul.msk.bf16.vlgmr.msrb.gmra.mxu1 %vm173_vm4, %v2994_v25 }
0x1b56   :  { %v2865_v51 = vsel %vm173_vm4, %v2843_v22, -inf }
0x1b57   :  { %2866 = vmax.xlane.f32.xlu1 %v2865_v51 }
0x1b5b   :  { %v2844_v10 = vpop.f32.mrf.mxu0  ;;  %v2861_v26 = vpop.f32.mrf.mxu1 }
0x1b5c   :  { %v2862_v41 = vadd.f32 %v2861_v26, %v6900_v23 }
0x1b5e   :  { %v2868_v44 = vsel %vm173_vm4, %v2862_v41, -inf }
0x1b63   :  { %v2863_v53 = vpop.f32.mrf.mxu1 }
0x1bca   :  { %v2986_v7 = vpop.f32.mrf.mxu0  ;;  %v2867_v28 = vpop.xlane.xlu1 %2866 }
0x1bcb   :  { %v2987_v29 = vadd.f32 %v2986_v7, %v6883_v15  ;;  %v2871_v3 = vsub.f32 %v2843_v22, %v2867_v28 }
0x1bcd   :  { %v2873_v32 = vmul.f32 1.442695, %v2871_v3  ;;  %v3016_v62 = vsel %vm173_vm4, %v2987_v29, -inf }
0x1bce   :  { %3017 = vmax.xlane.f32.xlu0 %v3016_v62 }
0x1bcf   :  { %5962 = vpow2.f32 %v2873_v32 }
0x1bd2   :  { %v2988_v2 = vpop.f32.mrf.mxu0  ;;  %v3012_v33 = vpop.f32.mrf.mxu1 }
0x1bd3   :  { %v3013_v38 = vadd.f32 %v3012_v33, %v6900_v23 }
0x1bd5   :  { %v5963_v12 = vpop.eup %5962  ;;  %v3019_v37 = vsel %vm173_vm4, %v3013_v38, -inf }
0x1bd6   :  { %v2877_v16 = vsel %vm173_vm4, %v5963_v12, 0.0 }
0x1bd7   :  { %2878 = vadd.xlane.f32.xlu2 %v2877_v16 }
0x1bda   :  { %v3014_v35 = vpop.f32.mrf.mxu1 }
0x1be2   :  { %2918 = vrot.lane.b32.xlu0 %v6855_v61, %s6116_s24 }
0x1bea   :  { %3149 = vrot.lane.b32.xlu0 %v6869_v40, %s6119_s29 }
0x1bef   :  { %3066 = vrot.lane.b32.xlu2 %v6855_v61, %s6115_s2 }
0x1c14   :  { %3020 = vmax.xlane.f32.xlu0 %v3019_v37 }
0x1c18   :  { %2869 = vmax.xlane.f32.xlu2 %v2868_v44  ;;  %v2817_v44 = vld [vmem:[#allocation2 + $0x114] sm:$0xf] }
0x1c28   :  { %2942 = vrot.lane.b32.xlu0 %v6860_v4, %s6116_s24 }
0x1c30   :  { %3172 = vrot.lane.b32.xlu0 %v6874_v20, %s6119_s29 }
0x1c41   :  { %v3018_v34 = vpop.xlane.xlu0 %3017 }
0x1c42   :  { %v3022_v47 = vsub.f32 %v2987_v29, %v3018_v34  ;;  %v3113_v34 = vsel %vm272_vm9, %v2817_v44, 0 }
0x1c43   :  { %3122 = vmatpush.bf16.msrb.mxu0 %v3113_v34 }
0x1c44   :  { %v3024_v45 = vmul.f32 1.442695, %v3022_v47 }
0x1c46   :  { %5964 = vpow2.f32 %v3024_v45 }
0x1c4a   :  { %v2879_v46 = vpop.xlane.xlu2 %2878 }
0x1c4b   :  { %5966 = vrcp.f32 %v2879_v46  ;;  %v2894_v63 = vand.u32 2147483648, %v2879_v46  ;;  %v2892_v1 = vand.u32 2147483647, %v2879_v46  ;;  %vm2888_vm0 = vweird.f32 %v2879_v46 }
0x1c4c   :  { %v6910_v54 = vpop.eup %5964 }
0x1c4d   :  { %v3028_v43 = vsel %vm173_vm4, %v6910_v54, 0.0  ;;  %v2895_v11 = vor.u32 1.1754944e-38, %v2894_v63  ;;  %vm2893_vm5 = vcmp.eq.f32.partialorder %v2892_v1, 8.507059e+37 }
0x1c4e   :  { %3029 = vadd.xlane.f32.xlu1 %v3028_v43 }
0x1c51   :  { %v5967_v49 = vpop.eup %5966 }
0x1c52   :  { %v2884_v55 = vmul.f32 %v5967_v49, %v2879_v46  ;;  %v3067_v58 = vpop.permute.xlu2 %3066  ;;  %vm2889_vm15 = vweird.f32 %v5967_v49 }
0x1c53   :  { %v3072_v31 = vsel %vm272_vm9, %v3067_v58, 0  ;;  %vm2890_vm1 = vmor %vm2888_vm0, %vm2889_vm15 }
0x1c54   :  { %v2885_v59 = vsub.f32 1.0, %v2884_v55  ;;  %v2919_v48 = vpop.permute.xlu0 %2918 }
0x1c55   :  { %v2924_v0 = vsel %vm272_vm9, %v2919_v48, 0 }
0x1c56   :  { %v2886_v52 = vmul.f32 %v5967_v49, %v2885_v59  ;;  %2933 = vmatpush.bf16.msra.mxu2 %v2924_v0 }
0x1c58   :  { %v2887_v9 = vadd.f32 %v5967_v49, %v2886_v52 }
0x1c5a   :  { %3081 = vmatpush.bf16.msrb.mxu2 %v3072_v31  ;;  %v2891_v6 = vsel %vm2890_vm1, %v5967_v49, %v2887_v9 }
0x1c5b   :  { %v2896_v5 = vsel %vm2893_vm5, %v2895_v11, %v2891_v6 }
0x1c5c   :  { %v2911_v27 = vmul.f32 %v5963_v12, %v2896_v5  ;;  %v3150_v14 = vpop.permute.xlu0 %3149 }
0x1c5e   :  { %v2913_v13 = vpack.c.bf16 %v2911_v27, %v2911_v27 }
0x1c60   :  { %5588 = vmatmul.msk.bf16.vlgmr.msra.gmra.mxu2 %vm173_vm4, %v2913_v13 }
0x1c67   :  { %3151 = vrot.lane.b32.xlu1 %v6855_v61, %s6119_s29 }
0x1c87   :  { %v3021_v30 = vpop.xlane.xlu0 %3020 }
0x1c88   :  { %v3023_v17 = vsub.f32 %v3013_v38, %v3021_v30 }
0x1c8a   :  { %v3026_v8 = vmul.f32 1.442695, %v3023_v17 }
0x1c8b   :  { %v2870_v42 = vpop.xlane.xlu2 %2869 }
0x1c8c   :  { %5968 = vpow2.f32 %v3026_v8  ;;  %v2872_v19 = vsub.f32 %v2862_v41, %v2870_v42 }
0x1c8e   :  { %v2875_v57 = vmul.f32 1.442695, %v2872_v19 }
0x1c90   :  { %5970 = vpow2.f32 %v2875_v57 }
0x1c92   :  { %v6919_v36 = vpop.eup %5968 }
0x1c93   :  { %v3031_v18 = vsel %vm173_vm4, %v6919_v36, 0.0 }
0x1c94   :  { %3032 = vadd.xlane.f32.xlu2 %v3031_v18 }
0x1c96   :  { %v6923_v56 = vpop.eup %5970 }
0x1c97   :  { %v2880_v24 = vsel %vm173_vm4, %v6923_v56, 0.0 }
0x1c98   :  { %2881 = vadd.xlane.f32.xlu1 %v2880_v24 }
0x1c9a   :  { %v2943_v22 = vpop.permute.xlu0 %2942 }
0x1c9b   :  { %v2948_v25 = vsel %vm272_vm9, %v2943_v22, 0 }
0x1c9c   :  { %2957 = vmatpush.bf16.msra.mxu3 %v2948_v25 }
0x1ca2   :  { %v3173_v22 = vpop.permute.xlu0 %3172 }
0x1cac   :  { %3087 = vrot.lane.b32.xlu2 %v6860_v4, %s6115_s2 }
0x1cb1   :  { %3174 = vrot.lane.b32.xlu1 %v6860_v4, %s6119_s29 }
0x1cb9   :  { %3245 = vrot.lane.b32.xlu1 %v6855_v61, %s6120_s30 }
0x1cc1   :  { %3312 = vrot.lane.b32.xlu1 %v6855_v61, %s6123_s15  ;;  %v3030_v51 = vpop.xlane.xlu1 %3029 }
0x1cc2   :  { %5972 = vrcp.f32 %v3030_v51  ;;  %v3045_v7 = vand.u32 2147483648, %v3030_v51  ;;  %v3043_v29 = vand.u32 2147483647, %v3030_v51  ;;  %vm3039_vm7 = vweird.f32 %v3030_v51 }
0x1cc4   :  { %v3046_v32 = vor.u32 1.1754944e-38, %v3045_v7  ;;  %vm3044_vm10 = vcmp.eq.f32.partialorder %v3043_v29, 8.507059e+37  ;;  %v2816_v29 = vld [vmem:[#allocation2 + $0x110] sm:$0xf] }
0x1cc8   :  { %v5973_v10 = vpop.eup %5972 }
0x1cc9   :  { %v3035_v26 = vmul.f32 %v5973_v10, %v3030_v51  ;;  %3335 = vrot.lane.b32.xlu1 %v6860_v4, %s6123_s15  ;;  %vm3040_vm6 = vweird.f32 %v5973_v10 }
0x1cca   :  { %vm3041_vm8 = vmor %vm3039_vm7, %vm3040_vm6 }
0x1ccb   :  { %v3036_v53 = vsub.f32 1.0, %v3035_v26 }
0x1ccd   :  { %v3037_v28 = vmul.f32 %v5973_v10, %v3036_v53 }
0x1ccf   :  { %v3038_v3 = vadd.f32 %v5973_v10, %v3037_v28 }
0x1cd1   :  { %v3042_v62 = vsel %vm3041_vm8, %v5973_v10, %v3038_v3  ;;  %3310 = vrot.lane.b32.xlu1 %v6869_v40, %s6123_s15  ;;  %v3133_v3 = vsel %vm272_vm9, %v2816_v29, 0 }
0x1cd2   :  { %v3047_v2 = vsel %vm3044_vm10, %v3046_v32, %v3042_v62  ;;  %3142 = vmatpush.bf16.msra.mxu1 %v3133_v3 }
0x1cd3   :  { %v3062_v33 = vmul.f32 %v6910_v54, %v3047_v2 }
0x1cd5   :  { %v3064_v12 = vpack.c.bf16 %v3062_v33, %v3062_v33 }
0x1cd7   :  { %5592 = vmatmul.msk.bf16.vlgmr.msrb.gmra.mxu2 %vm173_vm4, %v3064_v12 }
0x1cd9   :  { %3333 = vrot.lane.b32.xlu1 %v6874_v20, %s6123_s15  ;;  %v3152_v16 = vpop.permute.xlu1 %3151 }
0x1cda   :  { %v3157_v35 = vsel %vm173_vm4, %v3152_v16, 0 }
0x1cdb   :  { %3166 = vmatpush.bf16.xpose.msra.mxu2 %v3157_v35 }
0x1ce3   :  { %v6945_v38 = vpop.f32.mrf.mxu2 }
0x1ce7   :  { %5596 = vmatmul.msk.bf16.vlgmr.msra.gmra.mxu2 %vm173_vm4, %v3150_v14 }
0x1ceb   :  { %v2937_v41 = vpop.f32.mrf.mxu2 }
0x1d07   :  { %v3033_v37 = vpop.xlane.xlu2 %3032 }
0x1d08   :  { %5974 = vrcp.f32 %v3033_v37  ;;  %v3059_v5 = vand.u32 2147483648, %v3033_v37  ;;  %vm3053_vm0 = vweird.f32 %v3033_v37  ;;  %v3057_v27 = vand.u32 2147483647, %v3033_v37 }
0x1d0a   :  { %v3060_v17 = vor.u32 1.1754944e-38, %v3059_v5  ;;  %vm3058_vm5 = vcmp.eq.f32.partialorder %v3057_v27, 8.507059e+37 }
0x1d0b   :  { %v2882_v40 = vpop.xlane.xlu1 %2881 }
0x1d0c   :  { %5976 = vrcp.f32 %v2882_v40  ;;  %v2908_v55 = vand.u32 2147483648, %v2882_v40  ;;  %v2906_v59 = vand.u32 2147483647, %v2882_v40  ;;  %vm2902_vm12 = vweird.f32 %v2882_v40 }
0x1d0e   :  { %v5975_v45 = vpop.eup %5974  ;;  %v2909_v0 = vor.u32 1.1754944e-38, %v2908_v55  ;;  %vm2907_vm14 = vcmp.eq.f32.partialorder %v2906_v59, 8.507059e+37 }
0x1d0f   :  { %v3088_v47 = vpop.permute.xlu2 %3087  ;;  %v3049_v43 = vmul.f32 %v5975_v45, %v3033_v37  ;;  %vm3054_vm15 = vweird.f32 %v5975_v45 }
0x1d10   :  { %v3093_v20 = vsel %vm272_vm9, %v3088_v47, 0  ;;  %vm3055_vm1 = vmor %vm3053_vm0, %vm3054_vm15 }
0x1d11   :  { %3102 = vmatpush.bf16.msrb.mxu3 %v3093_v20  ;;  %v3050_v48 = vsub.f32 1.0, %v3049_v43 }
0x1d12   :  { %v5977_v46 = vpop.eup %5976 }
0x1d13   :  { %v2898_v54 = vmul.f32 %v5977_v46, %v2882_v40  ;;  %vm2903_vm11 = vweird.f32 %v5977_v46  ;;  %v3051_v31 = vmul.f32 %v5975_v45, %v3050_v48 }
0x1d14   :  { %vm2904_vm13 = vmor %vm2902_vm12, %vm2903_vm11 }
0x1d15   :  { %v2899_v49 = vsub.f32 1.0, %v2898_v54  ;;  %v3052_v6 = vadd.f32 %v5975_v45, %v3051_v31 }
0x1d17   :  { %v2900_v58 = vmul.f32 %v5977_v46, %v2899_v49  ;;  %v3056_v30 = vsel %vm3055_vm1, %v5975_v45, %v3052_v6 }
0x1d18   :  { %v3061_v8 = vsel %vm3058_vm5, %v3060_v17, %v3056_v30 }
0x1d19   :  { %v2901_v63 = vadd.f32 %v5977_v46, %v2900_v58  ;;  %v3063_v42 = vmul.f32 %v6919_v36, %v3061_v8 }
0x1d1b   :  { %v2905_v52 = vsel %vm2904_vm13, %v5977_v46, %v2901_v63  ;;  %v3065_v18 = vpack.c.bf16 %v3063_v42, %v3063_v42 }
0x1d1c   :  { %v2910_v1 = vsel %vm2907_vm14, %v2909_v0, %v2905_v52 }
0x1d1d   :  { %v2912_v9 = vmul.f32 %v6923_v56, %v2910_v1 }
0x1d1f   :  { %v2914_v11 = vpack.c.bf16 %v2912_v9, %v2912_v9 }
0x1d21   :  { %5589 = vmatmul.msk.bf16.vlgmr.msra.gmra.mxu3 %vm173_vm4, %v2914_v11 }
0x1d23   :  { %v3175_v13 = vpop.permute.xlu1 %3174 }
0x1d24   :  { %v3180_v14 = vsel %vm173_vm4, %v3175_v13, 0 }
0x1d25   :  { %3189 = vmatpush.bf16.xpose.msra.mxu3 %v3180_v14 }
0x1d2b   :  { %v3246_v19 = vpop.permute.xlu1 %3245 }
0x1d2c   :  { %v3251_v57 = vsel %vm272_vm9, %v3246_v19, 0 }
0x1d2d   :  { %3260 = vmatpush.bf16.msra.mxu0 %v3251_v57 }
0x1d31   :  { %5593 = vmatmul.msk.bf16.vlgmr.msrb.gmra.mxu3 %vm173_vm4, %v3065_v18 }
0x1d33   :  { %v3313_v56 = vpop.permute.xlu1 %3312 }
0x1d34   :  { %v3318_v24 = vsel %vm173_vm4, %v3313_v56, 0 }
0x1d35   :  { %3327 = vmatpush.bf16.xpose.msrb.mxu3 %v3318_v24 }
0x1d3b   :  { %v3336_v25 = vpop.permute.xlu1 %3335 }
0x1d3c   :  { %v3341_v16 = vsel %vm173_vm4, %v3336_v25, 0 }
0x1d41   :  { %5597 = vmatmul.msk.bf16.vlgmr.msra.gmra.mxu3 %vm173_vm4, %v3173_v22 }
0x1d43   :  { %v3311_v51 = vpop.permute.xlu1 %3310 }
0x1d4b   :  { %v3334_v19 = vpop.permute.xlu1 %3333 }
0x1d51   :  { %5601 = vmatmul.msk.bf16.vlgmr.msrb.gmra.mxu3 %vm173_vm4, %v3311_v51 }
0x1d5a   :  { %v3083_v10 = vpop.f32.mrf.mxu2 }
0x1d62   :  { %v3085_v36 = vpop.f32.mrf.mxu2 }
0x1d6a   :  { %v3168_v26 = vpop.f32.mrf.mxu2 }
0x1d6b   :  { %v3169_v53 = vadd.f32 %v3168_v26, %v6883_v15 }
0x1d6d   :  { %v3195_v7 = vsel %vm173_vm4, %v3169_v53, -inf }
0x1d6e   :  { %3196 = vmax.xlane.f32.xlu2 %v3195_v7 }
0x1d72   :  { %v3170_v28 = vpop.f32.mrf.mxu2 }
0x1da4   :  { %v2959_v32 = vpop.f32.mrf.mxu3 }
0x1da5   :  { %v2963_v62 = vpack.c.bf16 %v2959_v32, %v6945_v38 }
0x1da7   :  { %5595 = vmatmul.msk.bf16.vlgmr.msra.gmra.mxu1 %vm173_vm4, %v2963_v62 }
0x1dac   :  { %v2961_v2 = vpop.f32.mrf.mxu3 }
0x1db4   :  { %v3104_v33 = vpop.f32.mrf.mxu3 }
0x1db5   :  { %v3108_v12 = vpack.c.bf16 %v3104_v33, %v3083_v10 }
0x1db7   :  { %5594 = vmatmul.msk.bf16.vlgmr.msrb.gmra.mxu0 %vm173_vm4, %v3108_v12 }
0x1db8   :  { %3350 = vmatpush.bf16.xpose.msrb.mxu0 %v3341_v16 }
0x1dbc   :  { %v3106_v35 = vpop.f32.mrf.mxu3 }
0x1dc4   :  { %v3191_v41 = vpop.f32.mrf.mxu3 }
0x1dc5   :  { %v3192_v37 = vadd.f32 %v3191_v41, %v6900_v23 }
0x1dc7   :  { %v3198_v40 = vsel %vm173_vm4, %v3192_v37, -inf }
0x1dc8   :  { %3199 = vmax.xlane.f32.xlu2 %v3198_v40  ;;  %v2818_v40 = vld [vmem:[#allocation2 + $0x118] sm:$0xf] }
0x1dcc   :  { %v3193_v44 = vpop.f32.mrf.mxu3 }
0x1dcd   :  { %v3292_v44 = vsel %vm272_vm9, %v2818_v40, 0 }
0x1dce   :  { %3301 = vmatpush.bf16.msrb.mxu2 %v3292_v44 }
0x1dd4   :  { %v6968_v34 = vpop.f32.mrf.mxu3 }
0x1dd5   :  { %v3330_v35 = vadd.f32 %v6968_v34, %v6883_v15 }
0x1ddc   :  { %v3331_v38 = vpop.f32.mrf.mxu3 }
0x1de1   :  { %v3197_v47 = vpop.xlane.xlu2 %3196 }
0x1de2   :  { %v3201_v20 = vsub.f32 %v3169_v53, %v3197_v47 }
0x1de4   :  { %v3203_v45 = vmul.f32 1.442695, %v3201_v20 }
0x1de6   :  { %5978 = vpow2.f32 %v3203_v45 }
0x1dec   :  { %v5979_v46 = vpop.eup %5978 }
0x1ded   :  { %v3207_v54 = vsel %vm173_vm4, %v5979_v46, 0.0 }
0x1dee   :  { %3208 = vadd.xlane.f32.xlu0 %v3207_v54 }
0x1e02   :  { %3266 = vrot.lane.b32.xlu0 %v6860_v4, %s6120_s30 }
0x1e24   :  { %v3144_v43 = vpop.f32.mrf.mxu1 }
0x1e2c   :  { %v6991_v38 = vpop.f32.mrf.mxu1 }
0x1e34   :  { %v3124_v49 = vpop.f32.mrf.mxu0 }
0x1e35   :  { %v6973_v55 = vadd.f32 %v3144_v43, %v3124_v49 }
0x1e3b   :  { %v3200_v58 = vpop.xlane.xlu2 %3199 }
0x1e3c   :  { %v3202_v59 = vsub.f32 %v3192_v37, %v3200_v58  ;;  %v6983_v32 = vpop.f32.mrf.mxu0  ;;  %v3356_v37 = vsel %vm173_vm4, %v3330_v35, -inf }
0x1e3e   :  { %v3205_v48 = vmul.f32 1.442695, %v3202_v59 }
0x1e40   :  { %5980 = vpow2.f32 %v3205_v48 }
0x1e46   :  { %v5981_v63 = vpop.eup %5980 }
0x1e47   :  { %v3210_v0 = vsel %vm173_vm4, %v5981_v63, 0.0 }
0x1e48   :  { %3211 = vadd.xlane.f32.xlu1 %v3210_v0 }
0x1e61   :  { %v3209_v52 = vpop.xlane.xlu0 %3208  ;;  %3406 = vrot.lane.b32.xlu1 %v6855_v61, %s6122_s13 }
0x1e62   :  { %5982 = vrcp.f32 %v3209_v52  ;;  %v3224_v11 = vand.u32 2147483648, %v3209_v52  ;;  %v3222_v5 = vand.u32 2147483647, %v3209_v52  ;;  %vm3218_vm7 = vweird.f32 %v3209_v52 }
0x1e64   :  { %v3225_v13 = vor.u32 1.1754944e-38, %v3224_v11  ;;  %vm3223_vm10 = vcmp.eq.f32.partialorder %v3222_v5, 8.507059e+37 }
0x1e68   :  { %v5983_v1 = vpop.eup %5982 }
0x1e69   :  { %v3214_v31 = vmul.f32 %v5983_v1, %v3209_v52  ;;  %vm3219_vm6 = vweird.f32 %v5983_v1 }
0x1e6a   :  { %vm3220_vm8 = vmor %vm3218_vm7, %vm3219_vm6 }
0x1e6b   :  { %v3215_v9 = vsub.f32 1.0, %v3214_v31 }
0x1e6d   :  { %v3216_v6 = vmul.f32 %v5983_v1, %v3215_v9 }
0x1e6f   :  { %v3217_v27 = vadd.f32 %v5983_v1, %v3216_v6 }
0x1e71   :  { %v3221_v14 = vsel %vm3220_vm8, %v5983_v1, %v3217_v27 }
0x1e72   :  { %v3226_v30 = vsel %vm3223_vm10, %v3225_v13, %v3221_v14 }
0x1e73   :  { %v3241_v17 = vmul.f32 %v5979_v46, %v3226_v30 }
0x1e74   :  { %v3267_v8 = vpop.permute.xlu0 %3266 }
0x1e75   :  { %v3243_v42 = vpack.c.bf16 %v3241_v17, %v3241_v17  ;;  %v3272_v61 = vsel %vm272_vm9, %v3267_v8, 0 }
0x1e76   :  { %3281 = vmatpush.bf16.msrb.mxu1 %v3272_v61 }
0x1e77   :  { %5598 = vmatmul.msk.bf16.vlgmr.msra.gmra.mxu0 %vm173_vm4, %v3243_v42 }
0x1e87   :  { %5602 = vmatmul.msk.bf16.vlgmr.msrb.gmra.mxu0 %vm173_vm4, %v3334_v19 }
0x1ebb   :  { %v3212_v57 = vpop.xlane.xlu1 %3211 }
0x1ebc   :  { %5984 = vrcp.f32 %v3212_v57  ;;  %v3238_v22 = vand.u32 2147483648, %v3212_v57  ;;  %v3236_v51 = vand.u32 2147483647, %v3212_v57  ;;  %vm3232_vm12 = vweird.f32 %v3212_v57 }
0x1ebe   :  { %v3239_v36 = vor.u32 1.1754944e-38, %v3238_v22  ;;  %vm3237_vm14 = vcmp.eq.f32.partialorder %v3236_v51, 8.507059e+37 }
0x1ec2   :  { %v5985_v18 = vpop.eup %5984 }
0x1ec3   :  { %v3228_v56 = vmul.f32 %v5985_v18, %v3212_v57  ;;  %vm3233_vm11 = vweird.f32 %v5985_v18 }
0x1ec4   :  { %vm3234_vm13 = vmor %vm3232_vm12, %vm3233_vm11 }
0x1ec5   :  { %v3229_v24 = vsub.f32 1.0, %v3228_v56 }
0x1ec7   :  { %v3230_v25 = vmul.f32 %v5985_v18, %v3229_v24 }
0x1ec9   :  { %v3231_v10 = vadd.f32 %v5985_v18, %v3230_v25 }
0x1ecb   :  { %v3235_v26 = vsel %vm3234_vm13, %v5985_v18, %v3231_v10 }
0x1ecc   :  { %v3240_v53 = vsel %vm3237_vm14, %v3239_v36, %v3235_v26 }
0x1ecd   :  { %v3242_v7 = vmul.f32 %v5981_v63, %v3240_v53  ;;  %v2819_v53 = vld [vmem:[#allocation2 + $0x11c] sm:$0xf] }
0x1ecf   :  { %v3244_v28 = vpack.c.bf16 %v3242_v7, %v3242_v7  ;;  %v3453_v7 = vsel %vm272_vm9, %v2819_v53, 0  ;;  %v5769_v53 = vld [vmem:[#allocation2 + $0x148] sm:$0xff] }
0x1ed0   :  { %3462 = vmatpush.bf16.msra.mxu3 %v3453_v7  ;;  %v5768_v7 = vld [vmem:[#allocation2 + $0x140] sm:$0xff] }
0x1ed1   :  { %5599 = vmatmul.msk.bf16.vlgmr.msrb.gmra.mxu1 %vm173_vm4, %v3244_v28 }
0x1ed3   :  { %v3407_v29 = vpop.permute.xlu1 %3406 }
0x1ed4   :  { %v3412_v3 = vsel %vm272_vm9, %v3407_v29, 0 }
0x1ed5   :  { %3421 = vmatpush.bf16.msra.mxu1 %v3412_v3 }
0x1ed9   :  { %3608 = vmatpush.bf16.msrb.mxu1 %v5769_v53  ;;  %v5830_v53 = vld [vmem:[%s7467_s8 + $0x1e] ss:$0 sm:$0xff] }
0x1edd   :  { %3609 = vmatpush.bf16.msrb.mxu1 %v5768_v7 }
0x1ef4   :  { %v3262_v62 = vpop.f32.mrf.mxu0 }
0x1efc   :  { %v3264_v2 = vpop.f32.mrf.mxu0 }
0x1f04   :  { %v3352_v33 = vpop.f32.mrf.mxu0 }
0x1f05   :  { %v3353_v12 = vadd.f32 %v3352_v33, %v6900_v23 }
0x1f07   :  { %v3359_v16 = vsel %vm173_vm4, %v3353_v12, -inf }
0x1f08   :  { %3360 = vmax.xlane.f32.xlu2 %v3359_v16 }
0x1f0c   :  { %v3354_v41 = vpop.f32.mrf.mxu0 }
0x1f10   :  { %3357 = vmax.xlane.f32.xlu2 %v3356_v37  ;;  %v3147_v37 = vadd.f32 %v6991_v38, %v6983_v32 }
0x1f4e   :  { %v3283_v47 = vpop.f32.mrf.mxu1 }
0x1f4f   :  { %v3287_v20 = vpack.c.bf16 %v3283_v47, %v3262_v62 }
0x1f51   :  { %5600 = vmatmul.msk.bf16.vlgmr.msrb.gmra.mxu2 %vm173_vm4, %v3287_v20 }
0x1f56   :  { %v3285_v23 = vpop.f32.mrf.mxu1 }
0x1f7b   :  { %v3361_v45 = vpop.xlane.xlu2 %3360 }
0x1f7c   :  { %v3363_v46 = vsub.f32 %v3353_v12, %v3361_v45  ;;  %v5823_v12 = vld [vmem:[%s7467_s8 + $0x15] ss:$0 sm:$0xff] }
0x1f7e   :  { %v3366_v54 = vmul.f32 1.442695, %v3363_v46 }
0x1f80   :  { %5986 = vpow2.f32 %v3366_v54 }
0x1f83   :  { %v3358_v15 = vpop.xlane.xlu2 %3357 }
0x1f84   :  { %v3362_v34 = vsub.f32 %v3330_v35, %v3358_v15 }
0x1f86   :  { %v5987_v43 = vpop.eup %5986  ;;  %v3364_v49 = vmul.f32 1.442695, %v3362_v34 }
0x1f87   :  { %v3371_v58 = vsel %vm173_vm4, %v5987_v43, 0.0 }
0x1f88   :  { %5988 = vpow2.f32 %v3364_v49  ;;  %3372 = vadd.xlane.f32.xlu0 %v3371_v58 }
0x1f8e   :  { %v5989_v59 = vpop.eup %5988 }
0x1f8f   :  { %v3368_v48 = vsel %vm173_vm4, %v5989_v59, 0.0 }
0x1f90   :  { %3369 = vadd.xlane.f32.xlu2 %v3368_v48 }
0x1fa8   :  { %3427 = vrot.lane.b32.xlu2 %v6860_v4, %s6122_s13 }
0x1fd4   :  { %v3303_v63 = vpop.f32.mrf.mxu2 }
0x1fd5   :  { %v3308_v0 = vadd.f32 %v3303_v63, %v6973_v55 }
0x1fdc   :  { %v3305_v28 = vpop.f32.mrf.mxu2 }
0x1fdd   :  { %v3309_v44 = vadd.f32 %v3305_v28, %v3147_v37  ;;  %v5767_v28 = vld [vmem:[#allocation2 + $0x138] sm:$0xff] }
0x1fde   :  { %3610 = vmatpush.bf16.msrb.mxu1 %v5767_v28  ;;  %v5827_v37 = vld [vmem:[%s7467_s8 + $0x1d] ss:$0 sm:$0xff] }
0x1ffb   :  { %v3373_v52 = vpop.xlane.xlu0 %3372 }
0x1ffc   :  { %5990 = vrcp.f32 %v3373_v52  ;;  %v3399_v6 = vand.u32 2147483648, %v3373_v52  ;;  %v3397_v27 = vand.u32 2147483647, %v3373_v52  ;;  %vm3393_vm0 = vweird.f32 %v3373_v52 }
0x1ffe   :  { %v3400_v30 = vor.u32 1.1754944e-38, %v3399_v6  ;;  %vm3398_vm5 = vcmp.eq.f32.partialorder %v3397_v27, 8.507059e+37 }
0x2002   :  { %v5991_v1 = vpop.eup %5990 }
0x2003   :  { %v3389_v31 = vmul.f32 %v5991_v1, %v3373_v52  ;;  %v3370_v9 = vpop.xlane.xlu2 %3369  ;;  %vm3394_vm15 = vweird.f32 %v5991_v1 }
0x2004   :  { %5992 = vrcp.f32 %v3370_v9  ;;  %vm3395_vm1 = vmor %vm3393_vm0, %vm3394_vm15  ;;  %v3385_v57 = vand.u32 2147483648, %v3370_v9  ;;  %v3383_v24 = vand.u32 2147483647, %v3370_v9  ;;  %vm3379_vm7 = vweird.f32 %v3370_v9 }
0x2005   :  { %v3390_v11 = vsub.f32 1.0, %v3389_v31 }
0x2006   :  { %v3386_v25 = vor.u32 1.1754944e-38, %v3385_v57  ;;  %vm3384_vm10 = vcmp.eq.f32.partialorder %v3383_v24, 8.507059e+37  ;;  %v5825_v24 = vld [vmem:[%s7467_s8 + $0x19] ss:$0 sm:$0xff] }
0x2007   :  { %v3391_v5 = vmul.f32 %v5991_v1, %v3390_v11 }
0x2009   :  { %v3392_v13 = vadd.f32 %v5991_v1, %v3391_v5 }
0x200a   :  { %v5993_v14 = vpop.eup %5992 }
0x200b   :  { %v3396_v4 = vsel %vm3395_vm1, %v5991_v1, %v3392_v13  ;;  %v3375_v17 = vmul.f32 %v5993_v14, %v3370_v9  ;;  %v3428_v55 = vpop.permute.xlu2 %3427  ;;  %vm3380_vm6 = vweird.f32 %v5993_v14  ;;  %v5764_v1 = vld [vmem:[#allocation2 + $0x120] sm:$0xff] }
0x200c   :  { %v3401_v8 = vsel %vm3398_vm5, %v3400_v30, %v3396_v4  ;;  %v3433_v42 = vsel %vm272_vm9, %v3428_v55, 0  ;;  %vm3381_vm8 = vmor %vm3379_vm7, %vm3380_vm6 }
0x200d   :  { %v3403_v61 = vmul.f32 %v5987_v43, %v3401_v8  ;;  %v3376_v19 = vsub.f32 1.0, %v3375_v17  ;;  %3442 = vmatpush.bf16.msra.mxu2 %v3433_v42 }
0x200f   :  { %v3405_v18 = vpack.c.bf16 %v3403_v61, %v3403_v61  ;;  %v3377_v56 = vmul.f32 %v5993_v14, %v3376_v19  ;;  %v5824_v19 = vld [vmem:[%s7467_s8 + $0x18] ss:$0 sm:$0xff] }
0x2011   :  { %v3378_v22 = vadd.f32 %v5993_v14, %v3377_v56  ;;  %5604 = vmatmul.msk.bf16.vlgmr.msra.gmra.mxu2 %vm173_vm4, %v3405_v18 }
0x2013   :  { %v3382_v51 = vsel %vm3381_vm8, %v5993_v14, %v3378_v22 }
0x2014   :  { %v3387_v10 = vsel %vm3384_vm10, %v3386_v25, %v3382_v51 }
0x2015   :  { %v3402_v36 = vmul.f32 %v5989_v59, %v3387_v10 }
0x2017   :  { %v3404_v26 = vpack.c.bf16 %v3402_v36, %v3402_v36 }
0x2019   :  { %5603 = vmatmul.msk.bf16.vlgmr.msra.gmra.mxu1 %vm173_vm4, %v3404_v26 }
0x2094   :  { %v3444_v29 = vpop.f32.mrf.mxu2 }
0x2096   :  { %v3423_v3 = vpop.f32.mrf.mxu1 }
0x2097   :  { %v3448_v62 = vpack.c.bf16 %v3444_v29, %v3423_v3  ;;  %v5766_v29 = vld [vmem:[#allocation2 + $0x130] sm:$0xff] }
0x2098   :  { %3611 = vmatpush.bf16.msrb.mxu1 %v5766_v29 }
0x2099   :  { %5605 = vmatmul.msk.bf16.vlgmr.msra.gmra.mxu3 %vm173_vm4, %v3448_v62  ;;  %v5826_v62 = vld [vmem:[%s7467_s8 + $0x1c] ss:$0 sm:$0xff] }
0x209c   :  { %v3446_v2 = vpop.f32.mrf.mxu2 }
0x209e   :  { %v3425_v33 = vpop.f32.mrf.mxu1 }
0x211c   :  { %v3464_v16 = vpop.f32.mrf.mxu3 }
0x211d   :  { %v3469_v35 = vadd.f32 %v3464_v16, %v3308_v0 }
0x211f   :  { %v3472_v41 = vadd.f32 %v5823_v12, %v3469_v35 }
0x2121   :  { %v3474_v40 = vadd.f32 %v3472_v41, %v6844_v50 }
0x2123   :  { %v3478_v47 = vsel %vm139_vm3, %v3474_v40, 0.0 }
0x2124   :  { %3479 = vadd.xlane.f32.xlu2 %v3478_v47  ;;  %v3466_v20 = vpop.f32.mrf.mxu3 }
0x2125   :  { %v3470_v23 = vadd.f32 %v3466_v20, %v3309_v44 }
0x2127   :  { %v3473_v45 = vadd.f32 %v5823_v12, %v3470_v23 }
0x2129   :  { %v3475_v46 = vadd.f32 %v3473_v45, %v6846_v39  ;;  %v5765_v39 = vld [vmem:[#allocation2 + $0x128] sm:$0xff] }
0x212a   :  { %3556 = vmatpush.bf16.msra.mxu0 %v5765_v39  ;;  %v5771_v39 = vld [vmem:[#allocation2 + $0x158] sm:$0xff] }
0x212b   :  { %v3481_v54 = vsel %vm139_vm3, %v3475_v46, 0.0  ;;  %3700 = vmatpush.bf16.msrb.mxu2 %v5771_v39 }
0x212c   :  { %3482 = vadd.xlane.f32.xlu0 %v3481_v54 }
0x212e   :  { %3557 = vmatpush.bf16.msra.mxu0 %v5764_v1  ;;  %v5770_v1 = vld [vmem:[#allocation2 + $0x150] sm:$0xff] }
0x212f   :  { %3701 = vmatpush.bf16.msrb.mxu2 %v5770_v1 }
0x2197   :  { %v3480_v15 = vpop.xlane.xlu2 %3479 }
0x2198   :  { %v3484_v34 = vmul.f32 %v3480_v15, %v6370_v21 }
0x219a   :  { %v3486_v43 = vsub.f32 %v3474_v40, %v3484_v34 }
0x219c   :  { %v3488_v49 = vmul.f32 %v3486_v43, %v3486_v43 }
0x219e   :  { %v3490_v32 = vsel %vm139_vm3, %v3488_v49, 0.0 }
0x219f   :  { %3491 = vadd.xlane.f32.xlu1 %v3490_v32  ;;  %v3483_v50 = vpop.xlane.xlu0 %3482 }
0x21a0   :  { %v3485_v38 = vmul.f32 %v3483_v50, %v6370_v21 }
0x21a2   :  { %v3487_v58 = vsub.f32 %v3475_v46, %v3485_v38 }
0x21a4   :  { %v3489_v59 = vmul.f32 %v3487_v58, %v3487_v58 }
0x21a6   :  { %v3493_v48 = vsel %vm139_vm3, %v3489_v59, 0.0 }
0x21a7   :  { %3494 = vadd.xlane.f32.xlu0 %v3493_v48 }
0x2212   :  { %v3492_v63 = vpop.xlane.xlu1 %3491 }
0x2213   :  { %v3496_v0 = vmul.f32 %v3492_v63, %v6370_v21 }
0x2215   :  { %v3498_v52 = vadd.f32 1e-06, %v3496_v0 }
0x2217   :  { %5994 = vrsqrt.f32 %v3498_v52  ;;  %vm3506_vm12 = vweird.f32 %v3498_v52 }
0x221a   :  { %v3495_v31 = vpop.xlane.xlu0 %3494 }
0x221b   :  { %v3497_v9 = vmul.f32 %v3495_v31, %v6370_v21 }
0x221d   :  { %v5995_v11 = vpop.eup %5994  ;;  %v3499_v6 = vadd.f32 1e-06, %v3497_v9 }
0x221e   :  { %v3501_v5 = vmul.f32 %v5995_v11, %v3498_v52  ;;  %vm3507_vm11 = vweird.f32 %v5995_v11 }
0x221f   :  { %5996 = vrsqrt.f32 %v3499_v6  ;;  %vm3508_vm13 = vmor %vm3506_vm12, %vm3507_vm11  ;;  %vm3516_vm15 = vweird.f32 %v3499_v6 }
0x2220   :  { %v3502_v27 = vmul.f32 %v5995_v11, %v3501_v5 }
0x2222   :  { %v3503_v13 = vmul.f32 0.5, %v3502_v27 }
0x2224   :  { %v3504_v14 = vsub.f32 1.5, %v3503_v13 }
0x2225   :  { %v5997_v30 = vpop.eup %5996 }
0x2226   :  { %v3505_v4 = vmul.f32 %v5995_v11, %v3504_v14  ;;  %v3511_v17 = vmul.f32 %v5997_v30, %v3499_v6  ;;  %vm3517_vm14 = vweird.f32 %v5997_v30 }
0x2227   :  { %vm3518_vm0 = vmor %vm3516_vm15, %vm3517_vm14 }
0x2228   :  { %v3512_v55 = vmul.f32 %v5997_v30, %v3511_v17  ;;  %v3509_v8 = vsel %vm3508_vm13, %v5995_v11, %v3505_v4 }
0x2229   :  { %v3520_v57 = vmul.f32 %v3509_v8, %v3486_v43 }
0x222a   :  { %v3513_v42 = vmul.f32 0.5, %v3512_v55 }
0x222b   :  { %v3523_v22 = vmul.f32 %v5824_v19, %v3520_v57 }
0x222c   :  { %v3514_v61 = vsub.f32 1.5, %v3513_v42 }
0x222d   :  { %v3526_v10 = vadd.f32 %v5825_v24, %v3523_v22 }
0x222e   :  { %v3515_v18 = vmul.f32 %v5997_v30, %v3514_v61 }
0x2230   :  { %v3519_v56 = vsel %vm3518_vm0, %v5997_v30, %v3515_v18 }
0x2231   :  { %v3521_v25 = vmul.f32 %v3519_v56, %v3487_v58 }
0x2233   :  { %v3524_v51 = vmul.f32 %v5824_v19, %v3521_v25  ;;  %v5828_v19 = vld [vmem:[%s7467_s8 + $0x1a] ss:$0 sm:$0xff] }
0x2235   :  { %v3527_v36 = vadd.f32 %v5825_v24, %v3524_v51  ;;  %v5829_v24 = vld [vmem:[%s7467_s8 + $0x1b] ss:$0 sm:$0xff] }
0x2237   :  { %v3533_v26 = vpack.c.bf16 %v3527_v36, %v3526_v10 }
0x2239   :  { %5614 = vmatmul.msk.bf16.vlgmr.msra.gmra.mxu0 %vm139_vm3, %v3533_v26 }
0x22b6   :  { %v3559_v3 = vpop.f32.mrf.mxu0 }
0x22b7   :  { %v3560_v2 = vadd.f32 %v5826_v62, %v3559_v3 }
0x22b9   :  { %v3564_v16 = vmax.f32 %v3560_v2, 0.0 }
0x22be   :  { %v3561_v33 = vpop.f32.mrf.mxu0 }
0x22bf   :  { %v3562_v12 = vadd.f32 %v5826_v62, %v3561_v33 }
0x22c1   :  { %v3565_v35 = vmax.f32 %v3562_v12, 0.0 }
0x22c3   :  { %v3575_v41 = vpack.c.bf16 %v3565_v35, %v3564_v16 }
0x22c5   :  { %5631 = vmatmul.msk.bf16.vlgmr.msrb.gmra.mxu1 %vm100_vm2, %v3575_v41 }
0x2342   :  { %v3613_v40 = vpop.f32.mrf.mxu1 }
0x2343   :  { %v3614_v44 = vadd.f32 %v5827_v37, %v3613_v40 }
0x2345   :  { %v3618_v47 = vadd.f32 %v3614_v44, %v3526_v10 }
0x2347   :  { %v3622_v20 = vsel %vm139_vm3, %v3618_v47, 0.0 }
0x2348   :  { %3623 = vadd.xlane.f32.xlu0 %v3622_v20 }
0x234a   :  { %v3615_v23 = vpop.f32.mrf.mxu1 }
0x234b   :  { %v3616_v45 = vadd.f32 %v5827_v37, %v3615_v23 }
0x234d   :  { %v3619_v46 = vadd.f32 %v3616_v45, %v3527_v36 }
0x234f   :  { %v3625_v54 = vsel %vm139_vm3, %v3619_v46, 0.0 }
0x2350   :  { %3626 = vadd.xlane.f32.xlu0 %v3625_v54 }
0x23bb   :  { %v3624_v15 = vpop.xlane.xlu0 %3623 }
0x23bc   :  { %v3628_v34 = vmul.f32 %v3624_v15, %v6370_v21 }
0x23be   :  { %v3630_v43 = vsub.f32 %v3618_v47, %v3628_v34 }
0x23c0   :  { %v3632_v49 = vmul.f32 %v3630_v43, %v3630_v43 }
0x23c2   :  { %v3634_v32 = vsel %vm139_vm3, %v3632_v49, 0.0 }
0x23c3   :  { %3635 = vadd.xlane.f32.xlu0 %v3634_v32  ;;  %v3627_v50 = vpop.xlane.xlu0 %3626 }
0x23c4   :  { %v3629_v38 = vmul.f32 %v3627_v50, %v6370_v21 }
0x23c6   :  { %v3631_v58 = vsub.f32 %v3619_v46, %v3629_v38 }
0x23c8   :  { %v3633_v59 = vmul.f32 %v3631_v58, %v3631_v58 }
0x23ca   :  { %v3637_v48 = vsel %vm139_vm3, %v3633_v59, 0.0 }
0x23cb   :  { %3638 = vadd.xlane.f32.xlu2 %v3637_v48  ;;  %v7088_v48 = vld [vmem:[%s7465_s6] sm:$0xff] }
0x2436   :  { %v3636_v63 = vpop.xlane.xlu0 %3635 }
0x2437   :  { %v3640_v0 = vmul.f32 %v3636_v63, %v6370_v21 }
0x2439   :  { %v3642_v52 = vadd.f32 1e-06, %v3640_v0 }
0x243b   :  { %5998 = vrsqrt.f32 %v3642_v52  ;;  %vm3650_vm5 = vweird.f32 %v3642_v52 }
0x243e   :  { %v3639_v31 = vpop.xlane.xlu2 %3638 }
0x243f   :  { %v3641_v9 = vmul.f32 %v3639_v31, %v6370_v21 }
0x2441   :  { %v5999_v11 = vpop.eup %5998  ;;  %v3643_v6 = vadd.f32 1e-06, %v3641_v9 }
0x2442   :  { %v3645_v5 = vmul.f32 %v5999_v11, %v3642_v52  ;;  %vm3651_vm1 = vweird.f32 %v5999_v11 }
0x2443   :  { %6000 = vrsqrt.f32 %v3643_v6  ;;  %vm3652_vm6 = vmor %vm3650_vm5, %vm3651_vm1  ;;  %vm3660_vm8 = vweird.f32 %v3643_v6 }
0x2444   :  { %v3646_v27 = vmul.f32 %v5999_v11, %v3645_v5 }
0x2446   :  { %v3647_v13 = vmul.f32 0.5, %v3646_v27 }
0x2448   :  { %v3648_v14 = vsub.f32 1.5, %v3647_v13  ;;  %v7099_v13 = vld [vmem:[%s7465_s6 + $0x8] sm:$0xff] }
0x2449   :  { %v6001_v30 = vpop.eup %6000 }
0x244a   :  { %v3649_v4 = vmul.f32 %v5999_v11, %v3648_v14  ;;  %v3655_v17 = vmul.f32 %v6001_v30, %v3643_v6  ;;  %vm3661_vm7 = vweird.f32 %v6001_v30 }
0x244b   :  { %vm3662_vm10 = vmor %vm3660_vm8, %vm3661_vm7 }
0x244c   :  { %v3656_v55 = vmul.f32 %v6001_v30, %v3655_v17  ;;  %v3653_v8 = vsel %vm3652_vm6, %v5999_v11, %v3649_v4 }
0x244d   :  { %v3664_v57 = vmul.f32 %v3653_v8, %v3630_v43 }
0x244e   :  { %v3657_v42 = vmul.f32 0.5, %v3656_v55 }
0x244f   :  { %v3667_v22 = vmul.f32 %v5828_v19, %v3664_v57 }
0x2450   :  { %v3658_v61 = vsub.f32 1.5, %v3657_v42 }
0x2451   :  { %v7047_v10 = vadd.f32 %v5829_v24, %v3667_v22 }
0x2452   :  { %v3659_v18 = vmul.f32 %v6001_v30, %v3658_v61 }
0x2454   :  { %v3663_v56 = vsel %vm3662_vm10, %v6001_v30, %v3659_v18 }
0x2455   :  { %v3665_v25 = vmul.f32 %v3663_v56, %v3631_v58 }
0x2457   :  { %v3668_v51 = vmul.f32 %v5828_v19, %v3665_v25 }
0x2459   :  { %v7049_v36 = vadd.f32 %v5829_v24, %v3668_v51 }
0x245b   :  { %v3677_v26 = vpack.c.bf16 %v7049_v36, %v7047_v10 }
0x245d   :  { %5640 = vmatmul.msk.bf16.vlgmr.msrb.gmra.mxu2 %vm139_vm3, %v3677_v26 }
0x24e0   :  { %v3703_v7 = vpop.f32.mrf.mxu2 }
0x24e1   :  { %v3704_v28 = vadd.f32 %v5830_v53, %v3703_v7 }
0x24e3   :  { %v3713_v29 = vmul.f32 0.35355338, %v3704_v28  ;;  %v3717_v3 = vpack.c.bf16 %v3704_v28, %v3704_v28 }
0x24e5   :  { %v3715_v62 = vpack.c.bf16 %v3713_v29, %v3713_v29  ;;  %v3720_v2 = vunpack.c.l.b16 %v3717_v3 }
0x24e7   :  { %v7057_v33 = vpack.c.b16 %v3720_v2, %v3720_v2  ;;  %v3861_v12 = vunpack.c.l.b16 %v3715_v62 }
0x24e8   :  { %v3705_v16 = vpop.f32.mrf.mxu2 }
0x24e9   :  { %v7059_v35 = vpack.c.b16 %v3861_v12, %v3861_v12  ;;  %v3706_v41 = vadd.f32 %v5830_v53, %v3705_v16  ;;  %3865 = vrot.lane.b32.xlu2 %v7057_v33, %s6115_s2  ;;  %3722 = vrot.lane.b32.xlu0 %v7057_v33, %s6116_s24 }
0x24eb   :  { %v3714_v37 = vmul.f32 0.35355338, %v3706_v41  ;;  %v3718_v40 = vpack.c.bf16 %v3706_v41, %v3706_v41  ;;  %3863 = vrot.lane.b32.xlu1 %v7059_v35, %s6117_s25 }
0x24ed   :  { %v3744_v44 = vunpack.c.l.b16 %v3718_v40  ;;  %v3716_v47 = vpack.c.bf16 %v3714_v37, %v3714_v37 }
0x24ef   :  { %v7067_v20 = vpack.c.b16 %v3744_v44, %v3744_v44  ;;  %v3887_v23 = vunpack.c.l.b16 %v3716_v47 }
0x24f1   :  { %3891 = vrot.lane.b32.xlu2 %v7067_v20, %s6115_s2  ;;  %3746 = vrot.lane.b32.xlu0 %v7067_v20, %s6116_s24  ;;  %v7073_v45 = vpack.c.b16 %v3887_v23, %v3887_v23 }
0x24f9   :  { %3889 = vrot.lane.b32.xlu0 %v7073_v45, %s6117_s25 }
0x2543   :  { %v3866_v46 = vpop.permute.xlu2 %3865 }
0x2544   :  { %v3871_v34 = vsel %vm173_vm4, %v3866_v46, 0 }
0x254b   :  { %v3892_v43 = vpop.permute.xlu2 %3891 }
0x254c   :  { %v3897_v50 = vsel %vm173_vm4, %v3892_v43, 0 }
0x255b   :  { %v3723_v54 = vpop.permute.xlu0 %3722 }
0x255c   :  { %v3728_v15 = vsel %vm173_vm4, %v3723_v54, 0 }
0x255d   :  { %3737 = vmatpush.bf16.xpose.msrb.mxu3 %v3728_v15  ;;  %v3864_v38 = vpop.permute.xlu1 %3863 }
0x2563   :  { %v3747_v49 = vpop.permute.xlu0 %3746 }
0x2564   :  { %v3752_v32 = vsel %vm173_vm4, %v3747_v49, 0  ;;  %5641 = vmatmul.msk.bf16.vlgmr.msrb.gmra.mxu3 %vm173_vm4, %v3715_v62 }
0x2565   :  { %3880 = vmatpush.bf16.xpose.msra.mxu3 %v3871_v34  ;;  %3761 = vmatpush.bf16.xpose.msrb.mxu0 %v3752_v32 }
0x256b   :  { %v3890_v58 = vpop.permute.xlu0 %3889 }
0x256c   :  { %5642 = vmatmul.msk.bf16.vlgmr.msrb.gmra.mxu0 %vm173_vm4, %v3716_v47 }
0x256d   :  { %3906 = vmatpush.bf16.xpose.msra.mxu0 %v3897_v50 }
0x2574   :  { %5645 = vmatmul.msk.bf16.vlgmr.msra.gmra.mxu3 %vm173_vm4, %v3864_v38 }
0x257c   :  { %5646 = vmatmul.msk.bf16.vlgmr.msra.gmra.mxu0 %vm173_vm4, %v3890_v58 }
0x25e7   :  { %v3739_v59 = vpop.f32.mrf.mxu3 }
0x25e8   :  { %v3740_v39 = vadd.f32 %v7088_v48, %v3739_v59 }
0x25e9   :  { %v3763_v63 = vpop.f32.mrf.mxu0 }
0x25ea   :  { %v3767_v0 = vsel %vm173_vm4, %v3740_v39, -inf  ;;  %v3764_v14 = vadd.f32 %v7099_v13, %v3763_v63 }
0x25eb   :  { %3768 = vmax.xlane.f32.xlu1 %v3767_v0 }
0x25ec   :  { %v3770_v30 = vsel %vm173_vm4, %v3764_v14, -inf }
0x25ef   :  { %v3741_v52 = vpop.f32.mrf.mxu3 }
0x25f1   :  { %v3765_v1 = vpop.f32.mrf.mxu0 }
0x25f7   :  { %v3882_v31 = vpop.f32.mrf.mxu3 }
0x25f8   :  { %v3883_v9 = vadd.f32 %v7088_v48, %v3882_v31 }
0x25f9   :  { %v3908_v11 = vpop.f32.mrf.mxu0 }
0x25fa   :  { %v3912_v6 = vsel %vm173_vm4, %v3883_v9, -inf  ;;  %v7116_v25 = vadd.f32 %v7099_v13, %v3908_v11 }
0x25fb   :  { %3913 = vmax.xlane.f32.xlu2 %v3912_v6 }
0x25fc   :  { %v3915_v53 = vsel %vm173_vm4, %v7116_v25, -inf }
0x25ff   :  { %v3884_v5 = vpop.f32.mrf.mxu3 }
0x2601   :  { %v3910_v27 = vpop.f32.mrf.mxu0 }
0x2602   :  { %v3709_v27 = vld [vmem:[#allocation2 + $0x164] sm:$0xf] }
0x2613   :  { %3817 = vrot.lane.b32.xlu2 %v7057_v33, %s6111_s14 }
0x263c   :  { %3771 = vmax.xlane.f32.xlu2 %v3770_v30 }
0x265e   :  { %v3769_v4 = vpop.xlane.xlu1 %3768 }
0x265f   :  { %v3773_v17 = vsub.f32 %v3740_v39, %v3769_v4 }
0x2661   :  { %v3775_v55 = vmul.f32 1.442695, %v3773_v17 }
0x2663   :  { %6002 = vpow2.f32 %v3775_v55 }
0x2669   :  { %v6003_v8 = vpop.eup %6002 }
0x266a   :  { %v3779_v42 = vsel %vm173_vm4, %v6003_v8, 0.0 }
0x266b   :  { %3780 = vadd.xlane.f32.xlu0 %v3779_v42 }
0x266e   :  { %v3914_v61 = vpop.xlane.xlu2 %3913 }
0x266f   :  { %v3918_v19 = vsub.f32 %v3883_v9, %v3914_v61 }
0x2671   :  { %v3920_v57 = vmul.f32 1.442695, %v3918_v19  ;;  %v3708_v19 = vld [vmem:[#allocation2 + $0x160] sm:$0xf] }
0x2673   :  { %6004 = vpow2.f32 %v3920_v57  ;;  %v4029_v57 = vsel %vm272_vm9, %v3708_v19, 0 }
0x2674   :  { %4038 = vmatpush.bf16.msrb.mxu0 %v4029_v57 }
0x2676   :  { %v3818_v18 = vpop.permute.xlu2 %3817 }
0x2677   :  { %v3823_v56 = vsel %vm272_vm9, %v3818_v18, 0 }
0x2678   :  { %3832 = vmatpush.bf16.msra.mxu1 %v3823_v56 }
0x2679   :  { %v7105_v24 = vpop.eup %6004 }
0x267a   :  { %v3924_v22 = vsel %vm173_vm4, %v7105_v24, 0.0 }
0x267b   :  { %3925 = vadd.xlane.f32.xlu1 %v3924_v22 }
0x267f   :  { %3962 = vrot.lane.b32.xlu0 %v7057_v33, %s6118_s28 }
0x2687   :  { %4045 = vrot.lane.b32.xlu0 %v7059_v35, %s6119_s29 }
0x2694   :  { %4047 = vrot.lane.b32.xlu1 %v7057_v33, %s6120_s30 }
0x26af   :  { %v3772_v51 = vpop.xlane.xlu2 %3771 }
0x26b0   :  { %v3774_v26 = vsub.f32 %v3764_v14, %v3772_v51  ;;  %v4009_v14 = vsel %vm272_vm9, %v3709_v27, 0 }
0x26b1   :  { %3916 = vmax.xlane.f32.xlu0 %v3915_v53  ;;  %4018 = vmatpush.bf16.msrb.mxu3 %v4009_v14 }
0x26b2   :  { %v3777_v7 = vmul.f32 1.442695, %v3774_v26 }
0x26b4   :  { %6006 = vpow2.f32 %v3777_v7 }
0x26ba   :  { %v7120_v28 = vpop.eup %6006 }
0x26bb   :  { %v3782_v29 = vsel %vm173_vm4, %v7120_v28, 0.0 }
0x26be   :  { %3783 = vadd.xlane.f32.xlu1 %v3782_v29 }
0x26c5   :  { %3983 = vrot.lane.b32.xlu0 %v7067_v20, %s6118_s28 }
0x26cd   :  { %4068 = vrot.lane.b32.xlu0 %v7073_v45, %s6119_s29 }
0x26d5   :  { %4141 = vrot.lane.b32.xlu0 %v7057_v33, %s6121_s12 }
0x26d7   :  { %4070 = vrot.lane.b32.xlu1 %v7067_v20, %s6120_s30 }
0x26dd   :  { %4208 = vrot.lane.b32.xlu0 %v7057_v33, %s6122_s13 }
0x26de   :  { %v3781_v3 = vpop.xlane.xlu0 %3780 }
0x26df   :  { %6008 = vrcp.f32 %v3781_v3  ;;  %v3796_v16 = vand.u32 2147483648, %v3781_v3  ;;  %v3794_v37 = vand.u32 2147483647, %v3781_v3  ;;  %vm3790_vm12 = vweird.f32 %v3781_v3 }
0x26e1   :  { %v3797_v44 = vor.u32 1.1754944e-38, %v3796_v16  ;;  %vm3795_vm14 = vcmp.eq.f32.partialorder %v3794_v37, 8.507059e+37 }
0x26e5   :  { %v6009_v62 = vpop.eup %6008  ;;  %4231 = vrot.lane.b32.xlu0 %v7067_v20, %s6122_s13 }
0x26e6   :  { %v3786_v2 = vmul.f32 %v6009_v62, %v3781_v3  ;;  %vm3791_vm11 = vweird.f32 %v6009_v62 }
0x26e7   :  { %vm3792_vm13 = vmor %vm3790_vm12, %vm3791_vm11 }
0x26e8   :  { %v3787_v12 = vsub.f32 1.0, %v3786_v2 }
0x26ea   :  { %v3788_v41 = vmul.f32 %v6009_v62, %v3787_v12 }
0x26ec   :  { %v3789_v40 = vadd.f32 %v6009_v62, %v3788_v41 }
0x26ed   :  { %4206 = vrot.lane.b32.xlu0 %v7059_v35, %s6123_s15 }
0x26ee   :  { %v3793_v47 = vsel %vm3792_vm13, %v6009_v62, %v3789_v40  ;;  %v3926_v23 = vpop.xlane.xlu1 %3925 }
0x26ef   :  { %v3798_v46 = vsel %vm3795_vm14, %v3797_v44, %v3793_v47  ;;  %6010 = vrcp.f32 %v3926_v23  ;;  %v3941_v35 = vand.u32 2147483648, %v3926_v23  ;;  %v3939_v58 = vand.u32 2147483647, %v3926_v23 }
0x26f0   :  { %v3813_v54 = vmul.f32 %v6003_v8, %v3798_v46  ;;  %vm3935_vm0 = vweird.f32 %v3926_v23 }
0x26f1   :  { %v3963_v15 = vpop.permute.xlu0 %3962  ;;  %v3942_v39 = vor.u32 1.1754944e-38, %v3941_v35  ;;  %vm3940_vm5 = vcmp.eq.f32.partialorder %v3939_v58, 8.507059e+37 }
0x26f2   :  { %v3815_v34 = vpack.c.bf16 %v3813_v54, %v3813_v54  ;;  %v3968_v43 = vsel %vm272_vm9, %v3963_v15, 0 }
0x26f3   :  { %3977 = vmatpush.bf16.msrb.mxu1 %v3968_v43 }
0x26f4   :  { %5643 = vmatmul.msk.bf16.vlgmr.msra.gmra.mxu1 %vm173_vm4, %v3815_v34 }
0x26f5   :  { %v6011_v49 = vpop.eup %6010  ;;  %4229 = vrot.lane.b32.xlu0 %v7073_v45, %s6123_s15 }
0x26f6   :  { %v3931_v32 = vmul.f32 %v6011_v49, %v3926_v23  ;;  %vm3936_vm15 = vweird.f32 %v6011_v49 }
0x26f7   :  { %vm3937_vm1 = vmor %vm3935_vm0, %vm3936_vm15 }
0x26f8   :  { %v3932_v50 = vsub.f32 1.0, %v3931_v32 }
0x26f9   :  { %v4046_v9 = vpop.permute.xlu0 %4045 }
0x26fa   :  { %v3933_v38 = vmul.f32 %v6011_v49, %v3932_v50 }
0x26fc   :  { %v3934_v59 = vadd.f32 %v6011_v49, %v3933_v38 }
0x26fd   :  { %4162 = vrot.lane.b32.xlu0 %v7067_v20, %s6121_s12 }
0x26fe   :  { %v3938_v63 = vsel %vm3937_vm1, %v6011_v49, %v3934_v59 }
0x26ff   :  { %v3943_v0 = vsel %vm3940_vm5, %v3942_v39, %v3938_v63 }
0x2700   :  { %v3958_v52 = vmul.f32 %v7105_v24, %v3943_v0 }
0x2702   :  { %v3960_v1 = vpack.c.bf16 %v3958_v52, %v3958_v52 }
0x2704   :  { %5647 = vmatmul.msk.bf16.vlgmr.msrb.gmra.mxu1 %vm173_vm4, %v3960_v1 }
0x2706   :  { %v4048_v45 = vpop.permute.xlu1 %4047 }
0x2707   :  { %v4053_v31 = vsel %vm173_vm4, %v4048_v45, 0 }
0x2708   :  { %4062 = vmatpush.bf16.xpose.msra.mxu1 %v4053_v31 }
0x2714   :  { %5651 = vmatmul.msk.bf16.vlgmr.msra.gmra.mxu1 %vm173_vm4, %v4046_v9 }
0x2724   :  { %v3917_v11 = vpop.xlane.xlu0 %3916 }
0x2725   :  { %v3919_v6 = vsub.f32 %v7116_v25, %v3917_v11 }
0x2727   :  { %v3922_v5 = vmul.f32 1.442695, %v3919_v6 }
0x2729   :  { %6012 = vpow2.f32 %v3922_v5 }
0x272f   :  { %v7150_v30 = vpop.eup %6012 }
0x2730   :  { %v3927_v4 = vsel %vm173_vm4, %v7150_v30, 0.0 }
0x2731   :  { %3928 = vadd.xlane.f32.xlu2 %v3927_v4  ;;  %v3784_v7 = vpop.xlane.xlu1 %3783 }
0x2732   :  { %6014 = vrcp.f32 %v3784_v7  ;;  %v3810_v47 = vand.u32 2147483648, %v3784_v7  ;;  %vm3804_vm7 = vweird.f32 %v3784_v7  ;;  %v3808_v23 = vand.u32 2147483647, %v3784_v7 }
0x2734   :  { %v3811_v15 = vor.u32 1.1754944e-38, %v3810_v47  ;;  %vm3809_vm10 = vcmp.eq.f32.partialorder %v3808_v23, 8.507059e+37 }
0x2737   :  { %v3984_v17 = vpop.permute.xlu0 %3983 }
0x2738   :  { %v6015_v62 = vpop.eup %6014  ;;  %v3989_v38 = vsel %vm272_vm9, %v3984_v17, 0 }
0x2739   :  { %v3800_v16 = vmul.f32 %v6015_v62, %v3784_v7  ;;  %vm3805_vm6 = vweird.f32 %v6015_v62 }
0x273a   :  { %vm3806_vm8 = vmor %vm3804_vm7, %vm3805_vm6 }
0x273b   :  { %v3801_v41 = vsub.f32 1.0, %v3800_v16 }
0x273d   :  { %v3802_v40 = vmul.f32 %v6015_v62, %v3801_v41 }
0x273f   :  { %v7154_v55 = vpop.permute.xlu0 %4068  ;;  %v3803_v44 = vadd.f32 %v6015_v62, %v3802_v40 }
0x2741   :  { %v3807_v54 = vsel %vm3806_vm8, %v6015_v62, %v3803_v44 }
0x2742   :  { %v3812_v34 = vsel %vm3809_vm10, %v3811_v15, %v3807_v54 }
0x2743   :  { %v3814_v49 = vmul.f32 %v7120_v28, %v3812_v34 }
0x2745   :  { %v3816_v39 = vpack.c.bf16 %v3814_v49, %v3814_v49 }
0x2747   :  { %v4142_v8 = vpop.permute.xlu0 %4141 }
0x2748   :  { %v4147_v42 = vsel %vm272_vm9, %v4142_v8, 0 }
0x2749   :  { %3838 = vrot.lane.b32.xlu2 %v7067_v20, %s6111_s14  ;;  %4156 = vmatpush.bf16.msra.mxu3 %v4147_v42  ;;  %v4071_v58 = vpop.permute.xlu1 %4070 }
0x274a   :  { %v4076_v0 = vsel %vm173_vm4, %v4071_v58, 0 }
0x274f   :  { %v7159_v61 = vpop.permute.xlu0 %4208 }
0x2750   :  { %v4214_v5 = vsel %vm173_vm4, %v7159_v61, 0 }
0x2757   :  { %v7162_v18 = vpop.permute.xlu0 %4231 }
0x2758   :  { %v4237_v57 = vsel %vm173_vm4, %v7162_v18, 0 }
0x275f   :  { %v7164_v56 = vpop.permute.xlu0 %4206 }
0x2767   :  { %v7166_v24 = vpop.permute.xlu0 %4229 }
0x276f   :  { %v4163_v22 = vpop.permute.xlu0 %4162 }
0x2770   :  { %v4168_v25 = vsel %vm272_vm9, %v4163_v22, 0 }
0x2771   :  { %v7169_v51 = vpop.f32.mrf.mxu1  ;;  %4177 = vmatpush.bf16.msra.mxu0 %v4168_v25 }
0x2779   :  { %v3836_v26 = vpop.f32.mrf.mxu1 }
0x2781   :  { %v7171_v53 = vpop.f32.mrf.mxu1 }
0x2789   :  { %v3981_v29 = vpop.f32.mrf.mxu1 }
0x2791   :  { %v4064_v3 = vpop.f32.mrf.mxu1 }
0x2792   :  { %v4065_v2 = vadd.f32 %v7088_v48, %v4064_v3 }
0x2794   :  { %v4091_v12 = vsel %vm173_vm4, %v4065_v2, -inf }
0x2795   :  { %4092 = vmax.xlane.f32.xlu2 %v4091_v12 }
0x2799   :  { %v4066_v37 = vpop.f32.mrf.mxu1 }
0x27a4   :  { %v3929_v46 = vpop.xlane.xlu2 %3928 }
0x27a5   :  { %6016 = vrcp.f32 %v3929_v46  ;;  %v3955_v1 = vand.u32 2147483648, %v3929_v46  ;;  %vm3949_vm12 = vweird.f32 %v3929_v46  ;;  %v3953_v28 = vand.u32 2147483647, %v3929_v46 }
0x27a7   :  { %v3956_v31 = vor.u32 1.1754944e-38, %v3955_v1  ;;  %vm3954_vm14 = vcmp.eq.f32.partialorder %v3953_v28, 8.507059e+37 }
0x27ab   :  { %v6017_v43 = vpop.eup %6016 }
0x27ac   :  { %v3945_v32 = vmul.f32 %v6017_v43, %v3929_v46  ;;  %v3839_v50 = vpop.permute.xlu2 %3838  ;;  %vm3950_vm11 = vweird.f32 %v6017_v43 }
0x27ad   :  { %v3844_v35 = vsel %vm272_vm9, %v3839_v50, 0  ;;  %vm3951_vm13 = vmor %vm3949_vm12, %vm3950_vm11 }
0x27ae   :  { %v3946_v59 = vsub.f32 1.0, %v3945_v32  ;;  %3853 = vmatpush.bf16.msra.mxu2 %v3844_v35 }
0x27b0   :  { %v3947_v63 = vmul.f32 %v6017_v43, %v3946_v59 }
0x27b1   :  { %5644 = vmatmul.msk.bf16.vlgmr.msra.gmra.mxu2 %vm173_vm4, %v3816_v39 }
0x27b2   :  { %3998 = vmatpush.bf16.msrb.mxu2 %v3989_v38  ;;  %v3948_v52 = vadd.f32 %v6017_v43, %v3947_v63 }
0x27b4   :  { %v3952_v45 = vsel %vm3951_vm13, %v6017_v43, %v3948_v52 }
0x27b5   :  { %v3957_v9 = vsel %vm3954_vm14, %v3956_v31, %v3952_v45 }
0x27b6   :  { %4085 = vmatpush.bf16.xpose.msra.mxu2 %v4076_v0  ;;  %v3959_v11 = vmul.f32 %v7150_v30, %v3957_v9 }
0x27b8   :  { %v3961_v6 = vpack.c.bf16 %v3959_v11, %v3959_v11 }
0x27c1   :  { %5648 = vmatmul.msk.bf16.vlgmr.msrb.gmra.mxu2 %vm173_vm4, %v3961_v6 }
0x27c2   :  { %4223 = vmatpush.bf16.xpose.msrb.mxu2 %v4214_v5 }
0x27d1   :  { %5652 = vmatmul.msk.bf16.vlgmr.msra.gmra.mxu2 %vm173_vm4, %v7154_v55 }
0x27e1   :  { %5656 = vmatmul.msk.bf16.vlgmr.msrb.gmra.mxu2 %vm173_vm4, %v7164_v56 }
0x2808   :  { %v4093_v27 = vpop.xlane.xlu2 %4092 }
0x2809   :  { %v4097_v14 = vsub.f32 %v4065_v2, %v4093_v27 }
0x280b   :  { %v4099_v4 = vmul.f32 1.442695, %v4097_v14 }
0x280d   :  { %6018 = vpow2.f32 %v4099_v4 }
0x2813   :  { %v6019_v17 = vpop.eup %6018 }
0x2814   :  { %v4103_v30 = vsel %vm173_vm4, %v6019_v17, 0.0 }
0x2815   :  { %4104 = vadd.xlane.f32.xlu1 %v4103_v30 }
0x2834   :  { %v3855_v8 = vpop.f32.mrf.mxu2 }
0x2835   :  { %v3859_v42 = vpack.c.bf16 %v3855_v8, %v7169_v51 }
0x2837   :  { %5650 = vmatmul.msk.bf16.vlgmr.msrb.gmra.mxu0 %vm173_vm4, %v3859_v42 }
0x283c   :  { %v3857_v61 = vpop.f32.mrf.mxu2 }
0x2844   :  { %v4000_v19 = vpop.f32.mrf.mxu2 }
0x2845   :  { %v4004_v55 = vpack.c.bf16 %v4000_v19, %v7171_v53 }
0x2847   :  { %5649 = vmatmul.msk.bf16.vlgmr.msrb.gmra.mxu3 %vm173_vm4, %v4004_v55 }
0x2848   :  { %4246 = vmatpush.bf16.xpose.msrb.mxu3 %v4237_v57 }
0x284c   :  { %v4002_v56 = vpop.f32.mrf.mxu2 }
0x2854   :  { %v4087_v22 = vpop.f32.mrf.mxu2 }
0x2855   :  { %v4088_v25 = vadd.f32 %v7099_v13, %v4087_v22 }
0x2857   :  { %v4094_v26 = vsel %vm173_vm4, %v4088_v25, -inf }
0x2858   :  { %4095 = vmax.xlane.f32.xlu2 %v4094_v26 }
0x285c   :  { %v4089_v51 = vpop.f32.mrf.mxu2 }
0x2864   :  { %v4225_v7 = vpop.f32.mrf.mxu2 }
0x2865   :  { %v4226_v29 = vadd.f32 %v7088_v48, %v4225_v7 }
0x2867   :  { %v4252_v3 = vsel %vm173_vm4, %v4226_v29, -inf }
0x2868   :  { %4253 = vmax.xlane.f32.xlu2 %v4252_v3 }
0x286c   :  { %v4227_v53 = vpop.f32.mrf.mxu2 }
0x2888   :  { %v4105_v62 = vpop.xlane.xlu1 %4104 }
0x2889   :  { %6020 = vrcp.f32 %v4105_v62  ;;  %v4120_v16 = vand.u32 2147483648, %v4105_v62  ;;  %v4118_v37 = vand.u32 2147483647, %v4105_v62  ;;  %vm4114_vm0 = vweird.f32 %v4105_v62 }
0x288b   :  { %v4121_v44 = vor.u32 1.1754944e-38, %v4120_v16  ;;  %vm4119_vm5 = vcmp.eq.f32.partialorder %v4118_v37, 8.507059e+37  ;;  %v5775_v37 = vld [vmem:[#allocation2 + $0x188] sm:$0xff] }
0x288f   :  { %v6021_v18 = vpop.eup %6020 }
0x2890   :  { %v4110_v2 = vmul.f32 %v6021_v18, %v4105_v62  ;;  %vm4115_vm15 = vweird.f32 %v6021_v18 }
0x2891   :  { %vm4116_vm1 = vmor %vm4114_vm0, %vm4115_vm15 }
0x2892   :  { %v4111_v12 = vsub.f32 1.0, %v4110_v2 }
0x2894   :  { %v4112_v41 = vmul.f32 %v6021_v18, %v4111_v12  ;;  %v3710_v12 = vld [vmem:[#allocation2 + $0x168] sm:$0xf] }
0x2895   :  { %v4188_v16 = vsel %vm272_vm9, %v3710_v12, 0 }
0x2896   :  { %v4113_v40 = vadd.f32 %v6021_v18, %v4112_v41  ;;  %4197 = vmatpush.bf16.msrb.mxu1 %v4188_v16 }
0x2898   :  { %v4117_v47 = vsel %vm4116_vm1, %v6021_v18, %v4113_v40 }
0x2899   :  { %v4122_v48 = vsel %vm4119_vm5, %v4121_v44, %v4117_v47 }
0x289a   :  { %v4137_v23 = vmul.f32 %v6019_v17, %v4122_v48  ;;  %v5774_v48 = vld [vmem:[#allocation2 + $0x180] sm:$0xff] }
0x289c   :  { %v4139_v46 = vpack.c.bf16 %v4137_v23, %v4137_v23 }
0x289e   :  { %5653 = vmatmul.msk.bf16.vlgmr.msra.gmra.mxu3 %vm173_vm4, %v4139_v46 }
0x28ae   :  { %5657 = vmatmul.msk.bf16.vlgmr.msrb.gmra.mxu3 %vm173_vm4, %v7166_v24 }
0x28b4   :  { %v4040_v54 = vpop.f32.mrf.mxu0 }
0x28bc   :  { %v4042_v23 = vpop.f32.mrf.mxu0 }
0x28ca   :  { %v4020_v15 = vpop.f32.mrf.mxu3 }
0x28cb   :  { %v7202_v34 = vadd.f32 %v4040_v54, %v4020_v15  ;;  %v4096_v43 = vpop.xlane.xlu2 %4095 }
0x28cc   :  { %v4098_v49 = vsub.f32 %v4088_v25, %v4096_v43 }
0x28ce   :  { %v4101_v32 = vmul.f32 1.442695, %v4098_v49 }
0x28d0   :  { %6022 = vpow2.f32 %v4101_v32 }
0x28d2   :  { %v7206_v24 = vpop.f32.mrf.mxu3 }
0x28d6   :  { %v6023_v50 = vpop.eup %6022 }
0x28d7   :  { %v4106_v35 = vsel %vm173_vm4, %v6023_v50, 0.0 }
0x28d8   :  { %4107 = vadd.xlane.f32.xlu1 %v4106_v35 }
0x28db   :  { %v4254_v38 = vpop.xlane.xlu2 %4253 }
0x28dc   :  { %v4258_v58 = vsub.f32 %v4226_v29, %v4254_v38 }
0x28de   :  { %v4260_v59 = vmul.f32 1.442695, %v4258_v58 }
0x28e0   :  { %6024 = vpow2.f32 %v4260_v59 }
0x28e6   :  { %v6025_v39 = vpop.eup %6024 }
0x28e7   :  { %v4264_v63 = vsel %vm173_vm4, %v6025_v39, 0.0 }
0x28e8   :  { %4265 = vadd.xlane.f32.xlu0 %v4264_v63 }
0x2921   :  { %v7208_v0 = vpop.f32.mrf.mxu3 }
0x2929   :  { %v4160_v52 = vpop.f32.mrf.mxu3 }
0x2931   :  { %v4248_v1 = vpop.f32.mrf.mxu3 }
0x2932   :  { %v4249_v28 = vadd.f32 %v7099_v13, %v4248_v1 }
0x2934   :  { %v4255_v45 = vsel %vm173_vm4, %v4249_v28, -inf }
0x2935   :  { %4256 = vmax.xlane.f32.xlu1 %v4255_v45 }
0x2939   :  { %v4250_v31 = vpop.f32.mrf.mxu3 }
0x294b   :  { %v4108_v9 = vpop.xlane.xlu1 %4107 }
0x294c   :  { %6026 = vrcp.f32 %v4108_v9  ;;  %v4134_v27 = vand.u32 2147483648, %v4108_v9  ;;  %v4132_v4 = vand.u32 2147483647, %v4108_v9  ;;  %vm4128_vm7 = vweird.f32 %v4108_v9 }
0x294e   :  { %4302 = vrot.lane.b32.xlu1 %v7057_v33, %s6124_s16  ;;  %v4135_v13 = vor.u32 1.1754944e-38, %v4134_v27  ;;  %vm4133_vm10 = vcmp.eq.f32.partialorder %v4132_v4, 8.507059e+37 }
0x2952   :  { %v6027_v11 = vpop.eup %6026 }
0x2953   :  { %v4124_v6 = vmul.f32 %v6027_v11, %v4108_v9  ;;  %vm4129_vm6 = vweird.f32 %v6027_v11 }
0x2954   :  { %vm4130_vm8 = vmor %vm4128_vm7, %vm4129_vm6 }
0x2955   :  { %v4125_v5 = vsub.f32 1.0, %v4124_v6 }
0x2957   :  { %v4126_v14 = vmul.f32 %v6027_v11, %v4125_v5 }
0x2959   :  { %v4127_v17 = vadd.f32 %v6027_v11, %v4126_v14 }
0x295b   :  { %v4131_v30 = vsel %vm4130_vm8, %v6027_v11, %v4127_v17  ;;  %v4266_v19 = vpop.xlane.xlu0 %4265  ;;  %v5831_v11 = vld [vmem:[%s7467_s8 + $0x21] ss:$0 sm:$0xff] }
0x295c   :  { %v4136_v8 = vsel %vm4133_vm10, %v4135_v13, %v4131_v30  ;;  %6028 = vrcp.f32 %v4266_v19  ;;  %v4281_v3 = vand.u32 2147483648, %v4266_v19  ;;  %vm4275_vm12 = vweird.f32 %v4266_v19 }
0x295d   :  { %v4138_v42 = vmul.f32 %v6023_v50, %v4136_v8  ;;  %v4279_v53 = vand.u32 2147483647, %v4266_v19 }
0x295e   :  { %v4282_v18 = vor.u32 1.1754944e-38, %v4281_v3 }
0x295f   :  { %v4140_v61 = vpack.c.bf16 %v4138_v42, %v4138_v42  ;;  %vm4280_vm14 = vcmp.eq.f32.partialorder %v4279_v53, 8.507059e+37 }
0x2961   :  { %5654 = vmatmul.msk.bf16.vlgmr.msra.gmra.mxu0 %vm173_vm4, %v4140_v61 }
0x2962   :  { %v6029_v33 = vpop.eup %6028 }
0x2963   :  { %v4271_v57 = vmul.f32 %v6029_v33, %v4266_v19  ;;  %vm4276_vm11 = vweird.f32 %v6029_v33 }
0x2964   :  { %vm4277_vm13 = vmor %vm4275_vm12, %vm4276_vm11 }
0x2965   :  { %v4272_v25 = vsub.f32 1.0, %v4271_v57  ;;  %v5832_v57 = vld [vmem:[%s7467_s8 + $0x1f] ss:$0 sm:$0xff] }
0x2967   :  { %v4273_v26 = vmul.f32 %v6029_v33, %v4272_v25 }
0x2969   :  { %v4274_v29 = vadd.f32 %v6029_v33, %v4273_v26  ;;  %v4043_v26 = vadd.f32 %v4042_v23, %v7206_v24 }
0x296b   :  { %v4278_v62 = vsel %vm4277_vm13, %v6029_v33, %v4274_v29 }
0x296c   :  { %v4283_v2 = vsel %vm4280_vm14, %v4282_v18, %v4278_v62 }
0x296d   :  { %v4298_v41 = vmul.f32 %v6025_v39, %v4283_v2 }
0x296f   :  { %v4300_v47 = vpack.c.bf16 %v4298_v41, %v4298_v41 }
0x29a8   :  { %v4257_v55 = vpop.xlane.xlu1 %4256 }
0x29a9   :  { %v4259_v56 = vsub.f32 %v4249_v28, %v4257_v55  ;;  %v3711_v28 = vld [vmem:[#allocation2 + $0x16c] sm:$0xf] }
0x29aa   :  { %v4349_v45 = vsel %vm272_vm9, %v3711_v28, 0 }
0x29ab   :  { %v4262_v22 = vmul.f32 1.442695, %v4259_v56  ;;  %4358 = vmatpush.bf16.msra.mxu2 %v4349_v45 }
0x29ad   :  { %6030 = vpow2.f32 %v4262_v22 }
0x29b3   :  { %v6031_v51 = vpop.eup %6030 }
0x29b4   :  { %v4267_v7 = vsel %vm173_vm4, %v6031_v51, 0.0 }
0x29b5   :  { %4268 = vadd.xlane.f32.xlu2 %v4267_v7 }
0x29c0   :  { %v4303_v40 = vpop.permute.xlu1 %4302 }
0x29c1   :  { %v4308_v44 = vsel %vm272_vm9, %v4303_v40, 0 }
0x29c2   :  { %4317 = vmatpush.bf16.msrb.mxu0 %v4308_v44 }
0x29c5   :  { %5658 = vmatmul.msk.bf16.vlgmr.msrb.gmra.mxu0 %vm173_vm4, %v4300_v47 }
0x29c6   :  { %4484 = vmatpush.bf16.msra.mxu0 %v5775_v37 }
0x29ca   :  { %4485 = vmatpush.bf16.msra.mxu0 %v5774_v48 }
0x29cd   :  { %4323 = vrot.lane.b32.xlu2 %v7067_v20, %s6124_s16 }
0x29d5   :  { %5678 = vmatmul.msk.bf16.vlgmr.msra.gmra.mxu0 %vm139_vm3, %v6830_v60 }
0x29de   :  { %v4179_v46 = vpop.f32.mrf.mxu0 }
0x29df   :  { %v4183_v54 = vpack.c.bf16 %v4179_v46, %v7208_v0 }
0x29e1   :  { %5655 = vmatmul.msk.bf16.vlgmr.msrb.gmra.mxu1 %vm173_vm4, %v4183_v54 }
0x29e6   :  { %v4181_v15 = vpop.f32.mrf.mxu0 }
0x2a28   :  { %v4269_v43 = vpop.xlane.xlu2 %4268 }
0x2a29   :  { %6032 = vrcp.f32 %v4269_v43  ;;  %v4295_v20 = vand.u32 2147483648, %v4269_v43  ;;  %v4293_v60 = vand.u32 2147483647, %v4269_v43  ;;  %vm4289_vm0 = vweird.f32 %v4269_v43 }
0x2a2b   :  { %v4296_v39 = vor.u32 1.1754944e-38, %v4295_v20  ;;  %vm4294_vm5 = vcmp.eq.f32.partialorder %v4293_v60, 8.507059e+37 }
0x2a2f   :  { %v6033_v49 = vpop.eup %6032 }
0x2a30   :  { %v4285_v32 = vmul.f32 %v6033_v49, %v4269_v43  ;;  %v4324_v50 = vpop.permute.xlu2 %4323  ;;  %vm4290_vm15 = vweird.f32 %v6033_v49  ;;  %v5773_v43 = vld [vmem:[#allocation2 + $0x178] sm:$0xff] }
0x2a31   :  { %v4329_v35 = vsel %vm272_vm9, %v4324_v50, 0  ;;  %vm4291_vm1 = vmor %vm4289_vm0, %vm4290_vm15  ;;  %4452 = vmatpush.bf16.msra.mxu3 %v5773_v43 }
0x2a32   :  { %v4286_v38 = vsub.f32 1.0, %v4285_v32  ;;  %4338 = vmatpush.bf16.msra.mxu1 %v4329_v35  ;;  %v5772_v35 = vld [vmem:[#allocation2 + $0x170] sm:$0xff] }
0x2a34   :  { %v4287_v58 = vmul.f32 %v6033_v49, %v4286_v38 }
0x2a35   :  { %4453 = vmatpush.bf16.msra.mxu3 %v5772_v35 }
0x2a36   :  { %v4288_v59 = vadd.f32 %v6033_v49, %v4287_v58 }
0x2a38   :  { %v4292_v63 = vsel %vm4291_vm1, %v6033_v49, %v4288_v59 }
0x2a39   :  { %v4297_v0 = vsel %vm4294_vm5, %v4296_v39, %v4292_v63 }
0x2a3a   :  { %v4299_v52 = vmul.f32 %v6031_v51, %v4297_v0 }
0x2a3c   :  { %v4301_v1 = vpack.c.bf16 %v4299_v52, %v4299_v52 }
0x2a3e   :  { %5659 = vmatmul.msk.bf16.vlgmr.msra.gmra.mxu1 %vm173_vm4, %v4301_v1 }
0x2a42   :  { %v4319_v31 = vpop.f32.mrf.mxu0 }
0x2a4a   :  { %v4321_v9 = vpop.f32.mrf.mxu0 }
0x2a52   :  { %v4487_v6 = vpop.f32.mrf.mxu0 }
0x2a53   :  { %v4488_v5 = vadd.f32 %v5831_v11, %v4487_v6  ;;  %v5833_v6 = vld [vmem:[%s7467_s8 + $0x23] ss:$0 sm:$0xff] }
0x2a55   :  { %v4501_v27 = vpack.c.bf16 %v4488_v5, %v4488_v5 }
0x2a57   :  { %v4507_v14 = vsel %vm173_vm4, %v4501_v27, 0  ;;  %v4592_v54 = vunpack.c.l.b16 %v4501_v27 }
0x2a58   :  { %4516 = vmatpush.bf16.xpose.msrb.mxu1 %v4507_v14 }
0x2a59   :  { %v7252_v15 = vpack.c.b16 %v4592_v54, %v4592_v54 }
0x2a5a   :  { %v4489_v4 = vpop.f32.mrf.mxu0 }
0x2a5b   :  { %v4490_v17 = vadd.f32 %v5831_v11, %v4489_v4 }
0x2a5d   :  { %v4502_v13 = vpack.c.bf16 %v4490_v17, %v4490_v17 }
0x2a5e   :  { %v4199_v30 = vpop.f32.mrf.mxu1 }
0x2a5f   :  { %v4526_v8 = vsel %vm173_vm4, %v4502_v13, 0  ;;  %v4204_v42 = vadd.f32 %v4199_v30, %v7202_v34  ;;  %v4616_v2 = vunpack.c.l.b16 %v4502_v13  ;;  %v5834_v13 = vld [vmem:[%s7467_s8 + $0x24] ss:$0 sm:$0xff] }
0x2a60   :  { %4535 = vmatpush.bf16.xpose.msrb.mxu2 %v4526_v8 }
0x2a61   :  { %v7243_v12 = vpack.c.b16 %v4616_v2, %v4616_v2 }
0x2a66   :  { %v4201_v61 = vpop.f32.mrf.mxu1 }
0x2a67   :  { %v4205_v7 = vadd.f32 %v4201_v61, %v4043_v26 }
0x2abb   :  { %v4340_v19 = vpop.f32.mrf.mxu1 }
0x2abc   :  { %v4344_v33 = vpack.c.bf16 %v4340_v19, %v4319_v31 }
0x2abe   :  { %5660 = vmatmul.msk.bf16.vlgmr.msra.gmra.mxu2 %vm173_vm4, %v4344_v33 }
0x2ac3   :  { %v4342_v55 = vpop.f32.mrf.mxu1 }
0x2ac4   :  { %v5835_v55 = vld [vmem:[%s7467_s8 + $0x20] ss:$0 sm:$0xff] }
0x2b41   :  { %v4360_v56 = vpop.f32.mrf.mxu2 }
0x2b42   :  { %v4365_v22 = vadd.f32 %v4360_v56, %v4204_v42 }
0x2b44   :  { %v4368_v25 = vadd.f32 %v5832_v57, %v4365_v22 }
0x2b46   :  { %v4370_v51 = vadd.f32 %v4368_v25, %v7047_v10 }
0x2b48   :  { %v4374_v34 = vsel %vm139_vm3, %v4370_v51, 0.0 }
0x2b49   :  { %4375 = vadd.xlane.f32.xlu1 %v4374_v34  ;;  %v4362_v29 = vpop.f32.mrf.mxu2 }
0x2b4a   :  { %v4366_v3 = vadd.f32 %v4362_v29, %v4205_v7 }
0x2b4c   :  { %v4369_v53 = vadd.f32 %v5832_v57, %v4366_v3 }
0x2b4e   :  { %v4371_v62 = vadd.f32 %v4369_v53, %v7049_v36 }
0x2b50   :  { %v4377_v18 = vsel %vm139_vm3, %v4371_v62, 0.0 }
0x2b51   :  { %4378 = vadd.xlane.f32.xlu2 %v4377_v18 }
0x2b69   :  { %4671 = vrot.lane.b32.xlu2 %v7243_v12, %s6117_s25 }
0x2bbc   :  { %v4376_v24 = vpop.xlane.xlu1 %4375 }
0x2bbd   :  { %v4380_v10 = vmul.f32 %v4376_v24, %v6370_v21  ;;  %v7289_v24 = vld [vmem:[%s7464_s5] sm:$0xff] }
0x2bbf   :  { %v4382_v16 = vsub.f32 %v4370_v51, %v4380_v10 }
0x2bc1   :  { %v4384_v41 = vmul.f32 %v4382_v16, %v4382_v16 }
0x2bc3   :  { %v4386_v37 = vsel %vm139_vm3, %v4384_v41, 0.0 }
0x2bc4   :  { %4387 = vadd.xlane.f32.xlu0 %v4386_v37  ;;  %v4379_v40 = vpop.xlane.xlu2 %4378 }
0x2bc5   :  { %v4381_v36 = vmul.f32 %v4379_v40, %v6370_v21 }
0x2bc7   :  { %v4383_v44 = vsub.f32 %v4371_v62, %v4381_v36 }
0x2bc9   :  { %v4385_v47 = vmul.f32 %v4383_v44, %v4383_v44 }
0x2bcb   :  { %v4389_v48 = vsel %vm139_vm3, %v4385_v47, 0.0 }
0x2bcc   :  { %4390 = vadd.xlane.f32.xlu0 %v4389_v48  ;;  %v4672_v23 = vpop.permute.xlu2 %4671 }
0x2bcd   :  { %v4677_v46 = vsel %vm173_vm4, %v4672_v23, 0 }
0x2bce   :  { %4686 = vmatpush.bf16.xpose.msra.mxu2 %v4677_v46 }
0x2be0   :  { %4645 = vrot.lane.b32.xlu0 %v7252_v15, %s6117_s25 }
0x2c37   :  { %v4388_v49 = vpop.xlane.xlu0 %4387 }
0x2c38   :  { %v4392_v32 = vmul.f32 %v4388_v49, %v6370_v21 }
0x2c3a   :  { %v4394_v50 = vadd.f32 1e-06, %v4392_v32 }
0x2c3c   :  { %6034 = vrsqrt.f32 %v4394_v50  ;;  %vm4402_vm7 = vweird.f32 %v4394_v50 }
0x2c3f   :  { %v4391_v38 = vpop.xlane.xlu0 %4390 }
0x2c40   :  { %v4393_v20 = vmul.f32 %v4391_v38, %v6370_v21 }
0x2c42   :  { %v6035_v58 = vpop.eup %6034  ;;  %v4395_v60 = vadd.f32 1e-06, %v4393_v20 }
0x2c43   :  { %v4397_v59 = vmul.f32 %v6035_v58, %v4394_v50  ;;  %vm4403_vm6 = vweird.f32 %v6035_v58 }
0x2c44   :  { %6036 = vrsqrt.f32 %v4395_v60  ;;  %vm4404_vm8 = vmor %vm4402_vm7, %vm4403_vm6  ;;  %vm4412_vm11 = vweird.f32 %v4395_v60 }
0x2c45   :  { %v4398_v39 = vmul.f32 %v6035_v58, %v4397_v59 }
0x2c47   :  { %v4399_v63 = vmul.f32 0.5, %v4398_v39 }
0x2c49   :  { %v4400_v0 = vsub.f32 1.5, %v4399_v63 }
0x2c4a   :  { %v6037_v52 = vpop.eup %6036 }
0x2c4b   :  { %v4401_v1 = vmul.f32 %v6035_v58, %v4400_v0  ;;  %v4407_v28 = vmul.f32 %v6037_v52, %v4395_v60  ;;  %vm4413_vm10 = vweird.f32 %v6037_v52 }
0x2c4c   :  { %vm4414_vm12 = vmor %vm4412_vm11, %vm4413_vm10 }
0x2c4d   :  { %v4408_v45 = vmul.f32 %v6037_v52, %v4407_v28  ;;  %v4405_v31 = vsel %vm4404_vm8, %v6035_v58, %v4401_v1  ;;  %v7307_v58 = vld [vmem:[%s7464_s5 + $0x8] sm:$0xff] }
0x2c4e   :  { %v4416_v5 = vmul.f32 %v4405_v31, %v4382_v16 }
0x2c4f   :  { %v4409_v9 = vmul.f32 0.5, %v4408_v45 }
0x2c50   :  { %v4419_v30 = vmul.f32 %v5833_v6, %v4416_v5 }
0x2c51   :  { %v4410_v11 = vsub.f32 1.5, %v4409_v9 }
0x2c52   :  { %v4646_v27 = vpop.permute.xlu0 %4645  ;;  %v7265_v61 = vadd.f32 %v5834_v13, %v4419_v30 }
0x2c53   :  { %v4411_v14 = vmul.f32 %v6037_v52, %v4410_v11  ;;  %v4651_v4 = vsel %vm173_vm4, %v4646_v27, 0 }
0x2c54   :  { %4660 = vmatpush.bf16.xpose.msra.mxu1 %v4651_v4 }
0x2c55   :  { %v4415_v17 = vsel %vm4414_vm12, %v6037_v52, %v4411_v14 }
0x2c56   :  { %v4417_v8 = vmul.f32 %v4415_v17, %v4383_v44 }
0x2c58   :  { %v4420_v42 = vmul.f32 %v5833_v6, %v4417_v8 }
0x2c5a   :  { %v7267_v19 = vadd.f32 %v5834_v13, %v4420_v42 }
0x2c5c   :  { %v4429_v33 = vpack.c.bf16 %v7267_v19, %v7265_v61 }
0x2c5e   :  { %5669 = vmatmul.msk.bf16.vlgmr.msra.gmra.mxu3 %vm139_vm3, %v4429_v33 }
0x2ce1   :  { %v4455_v57 = vpop.f32.mrf.mxu3 }
0x2ce2   :  { %v4456_v56 = vadd.f32 %v5835_v55, %v4455_v57 }
0x2ce4   :  { %v4497_v22 = vmul.f32 0.35355338, %v4456_v56 }
0x2ce6   :  { %v4499_v25 = vpack.c.bf16 %v4497_v22, %v4497_v22 }
0x2ce8   :  { %v4641_v26 = vunpack.c.l.b16 %v4499_v25  ;;  %5679 = vmatmul.msk.bf16.vlgmr.msrb.gmra.mxu1 %vm173_vm4, %v4499_v25 }
0x2ce9   :  { %v4457_v51 = vpop.f32.mrf.mxu3 }
0x2cea   :  { %v7276_v7 = vpack.c.b16 %v4641_v26, %v4641_v26  ;;  %v4458_v34 = vadd.f32 %v5835_v55, %v4457_v51 }
0x2cec   :  { %v4498_v29 = vmul.f32 0.35355338, %v4458_v34  ;;  %4643 = vrot.lane.b32.xlu1 %v7276_v7, %s6117_s25 }
0x2cee   :  { %v4500_v3 = vpack.c.bf16 %v4498_v29, %v4498_v29 }
0x2cf0   :  { %v4667_v53 = vunpack.c.l.b16 %v4500_v3  ;;  %5680 = vmatmul.msk.bf16.vlgmr.msrb.gmra.mxu2 %vm173_vm4, %v4500_v3 }
0x2cf2   :  { %v7281_v62 = vpack.c.b16 %v4667_v53, %v4667_v53 }
0x2cf4   :  { %4669 = vrot.lane.b32.xlu0 %v7281_v62, %s6117_s25 }
0x2d5e   :  { %v4644_v18 = vpop.permute.xlu1 %4643 }
0x2d5f   :  { %5683 = vmatmul.msk.bf16.vlgmr.msra.gmra.mxu1 %vm173_vm4, %v4644_v18 }
0x2d65   :  { %v4518_v2 = vpop.f32.mrf.mxu1 }
0x2d66   :  { %v4519_v10 = vadd.f32 %v7289_v24, %v4518_v2  ;;  %v4670_v16 = vpop.permute.xlu0 %4669 }
0x2d67   :  { %5684 = vmatmul.msk.bf16.vlgmr.msra.gmra.mxu2 %vm173_vm4, %v4670_v16 }
0x2d68   :  { %v4541_v41 = vsel %vm173_vm4, %v4519_v10, -inf }
0x2d69   :  { %4542 = vmax.xlane.f32.xlu0 %v4541_v41 }
0x2d6d   :  { %v4520_v37 = vpop.f32.mrf.mxu1 }
0x2d73   :  { %v4537_v40 = vpop.f32.mrf.mxu2 }
0x2d74   :  { %v4538_v22 = vadd.f32 %v7307_v58, %v4537_v40 }
0x2d76   :  { %v4544_v26 = vsel %vm173_vm4, %v4538_v22, -inf }
0x2d7b   :  { %v4539_v36 = vpop.f32.mrf.mxu2 }
0x2d7d   :  { %4594 = vrot.lane.b32.xlu0 %v7252_v15, %s6116_s24 }
0x2ddc   :  { %v4662_v44 = vpop.f32.mrf.mxu1  ;;  %v4543_v47 = vpop.xlane.xlu0 %4542 }
0x2ddd   :  { %v4663_v48 = vadd.f32 %v7289_v24, %v4662_v44  ;;  %v4547_v23 = vsub.f32 %v4519_v10, %v4543_v47 }
0x2ddf   :  { %v4549_v46 = vmul.f32 1.442695, %v4547_v23  ;;  %v4692_v54 = vsel %vm173_vm4, %v4663_v48, -inf }
0x2de0   :  { %4693 = vmax.xlane.f32.xlu1 %v4692_v54 }
0x2de1   :  { %6038 = vpow2.f32 %v4549_v46 }
0x2de4   :  { %v4664_v43 = vpop.f32.mrf.mxu1 }
0x2de7   :  { %v6039_v49 = vpop.eup %6038 }
0x2de8   :  { %v4553_v32 = vsel %vm173_vm4, %v6039_v49, 0.0 }
0x2de9   :  { %4554 = vadd.xlane.f32.xlu2 %v4553_v32 }
0x2dea   :  { %v4688_v50 = vpop.f32.mrf.mxu2 }
0x2deb   :  { %v4689_v60 = vadd.f32 %v7307_v58, %v4688_v50 }
0x2ded   :  { %v4695_v59 = vsel %vm173_vm4, %v4689_v60, -inf }
0x2def   :  { %v4595_v35 = vpop.permute.xlu0 %4594 }
0x2df0   :  { %v4600_v38 = vsel %vm272_vm9, %v4595_v35, 0 }
0x2df1   :  { %4609 = vmatpush.bf16.msrb.mxu3 %v4600_v38 }
0x2df2   :  { %v4690_v20 = vpop.f32.mrf.mxu2 }
0x2df9   :  { %4742 = vrot.lane.b32.xlu1 %v7252_v15, %s6115_s2 }
0x2e01   :  { %4827 = vrot.lane.b32.xlu2 %v7252_v15, %s6119_s29 }
0x2e23   :  { %4696 = vmax.xlane.f32.xlu1 %v4695_v59 }
0x2e3c   :  { %4763 = vrot.lane.b32.xlu1 %v7243_v12, %s6115_s2 }
0x2e53   :  { %v4694_v39 = vpop.xlane.xlu1 %4693 }
0x2e54   :  { %v4698_v63 = vsub.f32 %v4663_v48, %v4694_v39 }
0x2e56   :  { %v4700_v0 = vmul.f32 1.442695, %v4698_v63  ;;  %v4493_v63 = vld [vmem:[#allocation2 + $0x194] sm:$0xf] }
0x2e58   :  { %6040 = vpow2.f32 %v4700_v0 }
0x2e5c   :  { %v4555_v52 = vpop.xlane.xlu2 %4554 }
0x2e5d   :  { %6042 = vrcp.f32 %v4555_v52  ;;  %v4570_v11 = vand.u32 2147483648, %v4555_v52  ;;  %v4568_v5 = vand.u32 2147483647, %v4555_v52  ;;  %vm4564_vm14 = vweird.f32 %v4555_v52 }
0x2e5e   :  { %v6041_v1 = vpop.eup %6040 }
0x2e5f   :  { %v4704_v28 = vsel %vm173_vm4, %v6041_v1, 0.0  ;;  %v4571_v14 = vor.u32 1.1754944e-38, %v4570_v11  ;;  %vm4569_vm0 = vcmp.eq.f32.partialorder %v4568_v5, 8.507059e+37 }
0x2e60   :  { %4705 = vadd.xlane.f32.xlu0 %v4704_v28 }
0x2e63   :  { %v6043_v45 = vpop.eup %6042 }
0x2e64   :  { %v4560_v31 = vmul.f32 %v6043_v45, %v4555_v52  ;;  %vm4565_vm13 = vweird.f32 %v6043_v45  ;;  %v4828_v42 = vpop.permute.xlu2 %4827 }
0x2e65   :  { %vm4566_vm15 = vmor %vm4564_vm14, %vm4565_vm13  ;;  %v4833_v55 = vsel %vm173_vm4, %v4828_v42, 0 }
0x2e66   :  { %v4561_v9 = vsub.f32 1.0, %v4560_v31 }
0x2e68   :  { %v4562_v6 = vmul.f32 %v6043_v45, %v4561_v9 }
0x2e6a   :  { %v4563_v27 = vadd.f32 %v6043_v45, %v4562_v6 }
0x2e6b   :  { %v4743_v4 = vpop.permute.xlu1 %4742 }
0x2e6c   :  { %v4567_v17 = vsel %vm4566_vm15, %v6043_v45, %v4563_v27  ;;  %v4748_v13 = vsel %vm272_vm9, %v4743_v4, 0 }
0x2e6d   :  { %v4572_v30 = vsel %vm4569_vm0, %v4571_v14, %v4567_v17  ;;  %4757 = vmatpush.bf16.msra.mxu3 %v4748_v13 }
0x2e6e   :  { %v4587_v8 = vmul.f32 %v6039_v49, %v4572_v30 }
0x2e70   :  { %v4589_v33 = vpack.c.bf16 %v4587_v8, %v4587_v8 }
0x2e72   :  { %5681 = vmatmul.msk.bf16.vlgmr.msrb.gmra.mxu3 %vm173_vm4, %v4589_v33 }
0x2e73   :  { %4842 = vmatpush.bf16.xpose.msrb.mxu3 %v4833_v55 }
0x2e74   :  { %4825 = vrot.lane.b32.xlu0 %v7276_v7, %s6119_s29 }
0x2e96   :  { %v4697_v57 = vpop.xlane.xlu1 %4696 }
0x2e97   :  { %v4699_v56 = vsub.f32 %v4689_v60, %v4697_v57 }
0x2e99   :  { %v4702_v25 = vmul.f32 1.442695, %v4699_v56 }
0x2e9b   :  { %6044 = vpow2.f32 %v4702_v25 }
0x2e9e   :  { %4545 = vmax.xlane.f32.xlu0 %v4544_v26 }
0x2ea1   :  { %v7321_v51 = vpop.eup %6044 }
0x2ea2   :  { %v4707_v34 = vsel %vm173_vm4, %v7321_v51, 0.0 }
0x2ea6   :  { %4708 = vadd.xlane.f32.xlu0 %v4707_v34 }
0x2eae   :  { %v4764_v28 = vpop.permute.xlu1 %4763 }
0x2eaf   :  { %v4769_v11 = vsel %vm272_vm9, %v4764_v28, 0 }
0x2eba   :  { %4850 = vrot.lane.b32.xlu0 %v7243_v12, %s6119_s29 }
0x2ed3   :  { %v4706_v29 = vpop.xlane.xlu0 %4705 }
0x2ed4   :  { %6046 = vrcp.f32 %v4706_v29  ;;  %v4721_v2 = vand.u32 2147483648, %v4706_v29  ;;  %v4719_v16 = vand.u32 2147483647, %v4706_v29  ;;  %vm4715_vm5 = vweird.f32 %v4706_v29 }
0x2ed6   :  { %v4722_v37 = vor.u32 1.1754944e-38, %v4721_v2  ;;  %vm4720_vm7 = vcmp.eq.f32.partialorder %v4719_v16, 8.507059e+37 }
0x2eda   :  { %v6047_v3 = vpop.eup %6046 }
0x2edb   :  { %v4711_v53 = vmul.f32 %v6047_v3, %v4706_v29  ;;  %vm4716_vm1 = vweird.f32 %v6047_v3 }
0x2edc   :  { %vm4717_vm6 = vmor %vm4715_vm5, %vm4716_vm1 }
0x2edd   :  { %v4712_v18 = vsub.f32 1.0, %v4711_v53 }
0x2edf   :  { %v4713_v10 = vmul.f32 %v6047_v3, %v4712_v18 }
0x2ee1   :  { %v4714_v41 = vadd.f32 %v6047_v3, %v4713_v10 }
0x2ee3   :  { %v4718_v40 = vsel %vm4717_vm6, %v6047_v3, %v4714_v41 }
0x2ee4   :  { %v4723_v36 = vsel %vm4720_vm7, %v4722_v37, %v4718_v40  ;;  %v4492_v37 = vld [vmem:[#allocation2 + $0x190] sm:$0xf] }
0x2ee5   :  { %v4738_v44 = vmul.f32 %v6041_v1, %v4723_v36  ;;  %v4809_v40 = vsel %vm272_vm9, %v4492_v37, 0 }
0x2ee6   :  { %v4826_v23 = vpop.permute.xlu0 %4825  ;;  %4818 = vmatpush.bf16.msrb.mxu2 %v4809_v40 }
0x2ee7   :  { %v4740_v47 = vpack.c.bf16 %v4738_v44, %v4738_v44 }
0x2ee9   :  { %5685 = vmatmul.msk.bf16.vlgmr.msra.gmra.mxu3 %vm173_vm4, %v4740_v47 }
0x2ef5   :  { %v7328_v48 = vpop.f32.mrf.mxu3 }
0x2ef9   :  { %5689 = vmatmul.msk.bf16.vlgmr.msrb.gmra.mxu3 %vm173_vm4, %v4826_v23 }
0x2efd   :  { %v4613_v46 = vpop.f32.mrf.mxu3 }
0x2f11   :  { %v4546_v54 = vpop.xlane.xlu0 %4545 }
0x2f12   :  { %v4548_v43 = vsub.f32 %v4538_v22, %v4546_v54 }
0x2f14   :  { %v4551_v49 = vmul.f32 1.442695, %v4548_v43 }
0x2f16   :  { %6048 = vpow2.f32 %v4551_v49 }
0x2f1c   :  { %v6049_v32 = vpop.eup %6048 }
0x2f1d   :  { %v4556_v50 = vsel %vm173_vm4, %v6049_v32, 0.0 }
0x2f1e   :  { %4557 = vadd.xlane.f32.xlu2 %v4556_v50 }
0x2f36   :  { %4618 = vrot.lane.b32.xlu2 %v7243_v12, %s6116_s24 }
0x2f3e   :  { %4848 = vrot.lane.b32.xlu2 %v7281_v62, %s6119_s29 }
0x2f46   :  { %4921 = vrot.lane.b32.xlu2 %v7252_v15, %s6120_s30 }
0x2f4e   :  { %4988 = vrot.lane.b32.xlu2 %v7252_v15, %s6123_s15 }
0x2f56   :  { %5011 = vrot.lane.b32.xlu2 %v7243_v12, %s6123_s15 }
0x2f5e   :  { %4986 = vrot.lane.b32.xlu2 %v7276_v7, %s6123_s15  ;;  %v4789_v7 = vsel %vm272_vm9, %v4493_v63, 0 }
0x2f5f   :  { %4798 = vmatpush.bf16.msrb.mxu1 %v4789_v7 }
0x2f66   :  { %5009 = vrot.lane.b32.xlu2 %v7281_v62, %s6123_s15  ;;  %v4709_v62 = vpop.xlane.xlu0 %4708 }
0x2f67   :  { %6050 = vrcp.f32 %v4709_v62  ;;  %v4735_v34 = vand.u32 2147483648, %v4709_v62  ;;  %vm4729_vm14 = vweird.f32 %v4709_v62  ;;  %v4733_v29 = vand.u32 2147483647, %v4709_v62 }
0x2f69   :  { %v4736_v2 = vor.u32 1.1754944e-38, %v4735_v34  ;;  %vm4734_vm0 = vcmp.eq.f32.partialorder %v4733_v29, 8.507059e+37 }
0x2f6c   :  { %v7346_v35 = vpop.f32.mrf.mxu3 }
0x2f6d   :  { %v6051_v52 = vpop.eup %6050 }
0x2f6e   :  { %4942 = vrot.lane.b32.xlu2 %v7243_v12, %s6120_s30  ;;  %v4725_v6 = vmul.f32 %v6051_v52, %v4709_v62  ;;  %v4851_v56 = vpop.permute.xlu0 %4850  ;;  %vm4730_vm13 = vweird.f32 %v6051_v52 }
0x2f6f   :  { %v4856_v26 = vsel %vm173_vm4, %v4851_v56, 0  ;;  %vm4731_vm15 = vmor %vm4729_vm14, %vm4730_vm13 }
0x2f70   :  { %v4726_v17 = vsub.f32 1.0, %v4725_v6 }
0x2f72   :  { %v4727_v55 = vmul.f32 %v6051_v52, %v4726_v17 }
0x2f74   :  { %v4761_v38 = vpop.f32.mrf.mxu3  ;;  %v4728_v25 = vadd.f32 %v6051_v52, %v4727_v55 }
0x2f76   :  { %v4732_v18 = vsel %vm4731_vm15, %v6051_v52, %v4728_v25 }
0x2f77   :  { %v4737_v10 = vsel %vm4734_vm0, %v4736_v2, %v4732_v18 }
0x2f78   :  { %v4739_v16 = vmul.f32 %v7321_v51, %v4737_v10 }
0x2f7a   :  { %v4741_v36 = vpack.c.bf16 %v4739_v16, %v4739_v16 }
0x2f7c   :  { %v4844_v20 = vpop.f32.mrf.mxu3 }
0x2f7d   :  { %v7351_v60 = vadd.f32 %v7289_v24, %v4844_v20 }
0x2f7f   :  { %v4871_v59 = vsel %vm173_vm4, %v7351_v60, -inf }
0x2f80   :  { %4872 = vmax.xlane.f32.xlu1 %v4871_v59 }
0x2f84   :  { %v4846_v39 = vpop.f32.mrf.mxu3 }
0x2f91   :  { %v4558_v0 = vpop.xlane.xlu2 %4557 }
0x2f92   :  { %6052 = vrcp.f32 %v4558_v0  ;;  %v4584_v27 = vand.u32 2147483648, %v4558_v0  ;;  %v4582_v4 = vand.u32 2147483647, %v4558_v0  ;;  %vm4578_vm10 = vweird.f32 %v4558_v0 }
0x2f94   :  { %v4585_v30 = vor.u32 1.1754944e-38, %v4584_v27  ;;  %vm4583_vm12 = vcmp.eq.f32.partialorder %v4582_v4, 8.507059e+37 }
0x2f98   :  { %v6053_v1 = vpop.eup %6052 }
0x2f99   :  { %v4574_v45 = vmul.f32 %v6053_v1, %v4558_v0  ;;  %v4619_v31 = vpop.permute.xlu2 %4618  ;;  %vm4579_vm8 = vweird.f32 %v6053_v1 }
0x2f9a   :  { %v4624_v9 = vsel %vm272_vm9, %v4619_v31, 0  ;;  %vm4580_vm11 = vmor %vm4578_vm10, %vm4579_vm8 }
0x2f9b   :  { %v4575_v5 = vsub.f32 1.0, %v4574_v45  ;;  %4633 = vmatpush.bf16.msrb.mxu0 %v4624_v9 }
0x2f9d   :  { %v4576_v14 = vmul.f32 %v6053_v1, %v4575_v5 }
0x2f9f   :  { %4778 = vmatpush.bf16.msra.mxu0 %v4769_v11  ;;  %v4577_v13 = vadd.f32 %v6053_v1, %v4576_v14 }
0x2fa1   :  { %v4581_v8 = vsel %vm4580_vm11, %v6053_v1, %v4577_v13  ;;  %v4849_v42 = vpop.permute.xlu2 %4848 }
0x2fa2   :  { %v4586_v33 = vsel %vm4583_vm12, %v4585_v30, %v4581_v8 }
0x2fa3   :  { %v4588_v57 = vmul.f32 %v6049_v32, %v4586_v33 }
0x2fa5   :  { %v4590_v22 = vpack.c.bf16 %v4588_v57, %v4588_v57 }
0x2fa7   :  { %5682 = vmatmul.msk.bf16.vlgmr.msrb.gmra.mxu0 %vm173_vm4, %v4590_v22 }
0x2fa8   :  { %4865 = vmatpush.bf16.xpose.msrb.mxu0 %v4856_v26 }
0x2fa9   :  { %v4922_v3 = vpop.permute.xlu2 %4921 }
0x2faa   :  { %v4927_v53 = vsel %vm272_vm9, %v4922_v3, 0 }
0x2fab   :  { %4936 = vmatpush.bf16.msra.mxu1 %v4927_v53 }
0x2fb1   :  { %v4989_v41 = vpop.permute.xlu2 %4988 }
0x2fb2   :  { %v4994_v44 = vsel %vm173_vm4, %v4989_v41, 0 }
0x2fb7   :  { %5686 = vmatmul.msk.bf16.vlgmr.msra.gmra.mxu0 %vm173_vm4, %v4741_v36 }
0x2fb8   :  { %5003 = vmatpush.bf16.xpose.msra.mxu0 %v4994_v44 }
0x2fb9   :  { %v5012_v47 = vpop.permute.xlu2 %5011 }
0x2fba   :  { %v5017_v62 = vsel %vm173_vm4, %v5012_v47, 0 }
0x2fc1   :  { %v4987_v23 = vpop.permute.xlu2 %4986 }
0x2fc7   :  { %5690 = vmatmul.msk.bf16.vlgmr.msrb.gmra.mxu0 %vm173_vm4, %v4849_v42 }
0x2fc9   :  { %v5010_v46 = vpop.permute.xlu2 %5009 }
0x2fd1   :  { %v4943_v54 = vpop.permute.xlu2 %4942 }
0x2fd2   :  { %v4948_v43 = vsel %vm272_vm9, %v4943_v54, 0 }
0x2fd3   :  { %4957 = vmatpush.bf16.msra.mxu2 %v4948_v43 }
0x2fd7   :  { %5694 = vmatmul.msk.bf16.vlgmr.msra.gmra.mxu0 %vm173_vm4, %v4987_v23 }
0x2ff3   :  { %v4873_v51 = vpop.xlane.xlu1 %4872 }
0x2ff4   :  { %v4877_v49 = vsub.f32 %v7351_v60, %v4873_v51 }
0x2ff6   :  { %v4879_v32 = vmul.f32 1.442695, %v4877_v49 }
0x2ff8   :  { %6054 = vpow2.f32 %v4879_v32 }
0x2ffe   :  { %v6055_v50 = vpop.eup %6054 }
0x2fff   :  { %v4883_v38 = vsel %vm173_vm4, %v6055_v50, 0.0 }
0x3000   :  { %4884 = vadd.xlane.f32.xlu0 %v4883_v38 }
0x3024   :  { %v4635_v20 = vpop.f32.mrf.mxu0 }
0x3025   :  { %v4639_v59 = vpack.c.bf16 %v4635_v20, %v7328_v48 }
0x3027   :  { %5688 = vmatmul.msk.bf16.vlgmr.msrb.gmra.mxu2 %vm173_vm4, %v4639_v59 }
0x302c   :  { %v4637_v39 = vpop.f32.mrf.mxu0 }
0x3034   :  { %v4780_v63 = vpop.f32.mrf.mxu0 }
0x3035   :  { %v4784_v7 = vpack.c.bf16 %v4780_v63, %v7346_v35 }
0x3037   :  { %5687 = vmatmul.msk.bf16.vlgmr.msrb.gmra.mxu1 %vm173_vm4, %v4784_v7 }
0x3038   :  { %5026 = vmatpush.bf16.xpose.msrb.mxu1 %v5017_v62 }
0x303c   :  { %v4782_v60 = vpop.f32.mrf.mxu0 }
0x3044   :  { %v4867_v0 = vpop.f32.mrf.mxu0 }
0x3045   :  { %v4868_v52 = vadd.f32 %v7307_v58, %v4867_v0 }
0x3047   :  { %v4874_v1 = vsel %vm173_vm4, %v4868_v52, -inf }
0x3048   :  { %4875 = vmax.xlane.f32.xlu1 %v4874_v1 }
0x304c   :  { %v4869_v28 = vpop.f32.mrf.mxu0 }
0x3054   :  { %v5005_v48 = vpop.f32.mrf.mxu0 }
0x3055   :  { %v5006_v45 = vadd.f32 %v7289_v24, %v5005_v48 }
0x3057   :  { %v5032_v31 = vsel %vm173_vm4, %v5006_v45, -inf }
0x3058   :  { %5033 = vmax.xlane.f32.xlu1 %v5032_v31 }
0x305c   :  { %v5007_v35 = vpop.f32.mrf.mxu0 }
0x3073   :  { %v4885_v9 = vpop.xlane.xlu0 %4884 }
0x3074   :  { %6056 = vrcp.f32 %v4885_v9  ;;  %v4900_v27 = vand.u32 2147483648, %v4885_v9  ;;  %v4898_v4 = vand.u32 2147483647, %v4885_v9  ;;  %vm4894_vm5 = vweird.f32 %v4885_v9 }
0x3076   :  { %v4901_v13 = vor.u32 1.1754944e-38, %v4900_v27  ;;  %vm4899_vm7 = vcmp.eq.f32.partialorder %v4898_v4, 8.507059e+37  ;;  %v4494_v4 = vld [vmem:[#allocation2 + $0x198] sm:$0xf] }
0x307a   :  { %v6057_v11 = vpop.eup %6056 }
0x307b   :  { %v4890_v6 = vmul.f32 %v6057_v11, %v4885_v9  ;;  %vm4895_vm1 = vweird.f32 %v6057_v11 }
0x307c   :  { %vm4896_vm6 = vmor %vm4894_vm5, %vm4895_vm1 }
0x307d   :  { %v4891_v5 = vsub.f32 1.0, %v4890_v6 }
0x307f   :  { %v4892_v14 = vmul.f32 %v6057_v11, %v4891_v5 }
0x3081   :  { %v4893_v17 = vadd.f32 %v6057_v11, %v4892_v14 }
0x3083   :  { %v4897_v30 = vsel %vm4896_vm6, %v6057_v11, %v4893_v17  ;;  %v4968_v17 = vsel %vm272_vm9, %v4494_v4, 0 }
0x3084   :  { %v4902_v24 = vsel %vm4899_vm7, %v4901_v13, %v4897_v30  ;;  %4977 = vmatpush.bf16.msra.mxu3 %v4968_v17 }
0x3085   :  { %v4917_v8 = vmul.f32 %v6055_v50, %v4902_v24 }
0x3087   :  { %v4919_v42 = vpack.c.bf16 %v4917_v8, %v4917_v8 }
0x3089   :  { %5691 = vmatmul.msk.bf16.vlgmr.msra.gmra.mxu1 %vm173_vm4, %v4919_v42 }
0x3099   :  { %5695 = vmatmul.msk.bf16.vlgmr.msrb.gmra.mxu1 %vm173_vm4, %v5010_v46 }
0x30aa   :  { %v4820_v33 = vpop.f32.mrf.mxu2 }
0x30b2   :  { %v4822_v13 = vpop.f32.mrf.mxu2 }
0x30b4   :  { %v4800_v55 = vpop.f32.mrf.mxu1 }
0x30b5   :  { %v7381_v57 = vadd.f32 %v4820_v33, %v4800_v55 }
0x30bb   :  { %v4876_v56 = vpop.xlane.xlu1 %4875 }
0x30bc   :  { %v4878_v22 = vsub.f32 %v4868_v52, %v4876_v56  ;;  %v7385_v10 = vpop.f32.mrf.mxu1 }
0x30be   :  { %v4881_v25 = vmul.f32 1.442695, %v4878_v22 }
0x30c0   :  { %6058 = vpow2.f32 %v4881_v25 }
0x30c6   :  { %v6059_v26 = vpop.eup %6058 }
0x30c7   :  { %v4886_v34 = vsel %vm173_vm4, %v6059_v26, 0.0 }
0x30c8   :  { %4887 = vadd.xlane.f32.xlu0 %v4886_v34 }
0x30cb   :  { %v5034_v29 = vpop.xlane.xlu1 %5033 }
0x30cc   :  { %v5038_v3 = vsub.f32 %v5006_v45, %v5034_v29 }
0x30ce   :  { %v5040_v53 = vmul.f32 1.442695, %v5038_v3 }
0x30d0   :  { %6060 = vpow2.f32 %v5040_v53 }
0x30d6   :  { %v6061_v18 = vpop.eup %6060 }
0x30d7   :  { %v5044_v2 = vsel %vm173_vm4, %v6061_v18, 0.0 }
0x30d8   :  { %5045 = vadd.xlane.f32.xlu2 %v5044_v2 }
0x3106   :  { %v7387_v16 = vpop.f32.mrf.mxu1 }
0x310e   :  { %v4940_v41 = vpop.f32.mrf.mxu1 }
0x3116   :  { %v5028_v37 = vpop.f32.mrf.mxu1 }
0x3117   :  { %v5029_v40 = vadd.f32 %v7307_v58, %v5028_v37 }
0x3119   :  { %v5035_v36 = vsel %vm173_vm4, %v5029_v40, -inf }
0x311a   :  { %5036 = vmax.xlane.f32.xlu0 %v5035_v36 }
0x311e   :  { %v5030_v44 = vpop.f32.mrf.mxu1 }
0x311f   :  { %v4495_v44 = vld [vmem:[#allocation2 + $0x19c] sm:$0xf] }
0x312e   :  { %5082 = vrot.lane.b32.xlu0 %v7252_v15, %s6122_s13 }
0x313b   :  { %v4888_v47 = vpop.xlane.xlu0 %4887 }
0x313c   :  { %6062 = vrcp.f32 %v4888_v47  ;;  %v4914_v43 = vand.u32 2147483648, %v4888_v47  ;;  %v4912_v49 = vand.u32 2147483647, %v4888_v47  ;;  %vm4908_vm10 = vweird.f32 %v4888_v47 }
0x313e   :  { %v4915_v58 = vor.u32 1.1754944e-38, %v4914_v43  ;;  %vm4913_vm12 = vcmp.eq.f32.partialorder %v4912_v49, 8.507059e+37 }
0x3142   :  { %v6063_v23 = vpop.eup %6062 }
0x3143   :  { %v4904_v46 = vmul.f32 %v6063_v23, %v4888_v47  ;;  %vm4909_vm8 = vweird.f32 %v6063_v23  ;;  %v5129_v47 = vsel %vm272_vm9, %v4495_v44, 0  ;;  %v5778_v44 = vld [vmem:[#allocation2 + $0x1b0] sm:$0xff] }
0x3144   :  { %vm4910_vm11 = vmor %vm4908_vm10, %vm4909_vm8  ;;  %5138 = vmatpush.bf16.msrb.mxu0 %v5129_v47 }
0x3145   :  { %v4905_v54 = vsub.f32 1.0, %v4904_v46 }
0x3147   :  { %v4906_v51 = vmul.f32 %v6063_v23, %v4905_v54 }
0x3149   :  { %v4907_v32 = vadd.f32 %v6063_v23, %v4906_v51  ;;  %v5836_v51 = vld [vmem:[%s7467_s8 + $0x22] ss:$0 sm:$0xff] }
0x314b   :  { %v4911_v50 = vsel %vm4910_vm11, %v6063_v23, %v4907_v32  ;;  %v5046_v15 = vpop.xlane.xlu2 %5045 }
0x314c   :  { %v4916_v38 = vsel %vm4913_vm12, %v4915_v58, %v4911_v50  ;;  %6064 = vrcp.f32 %v5046_v15  ;;  %v5061_v28 = vand.u32 2147483648, %v5046_v15  ;;  %vm5055_vm14 = vweird.f32 %v5046_v15 }
0x314d   :  { %v4918_v20 = vmul.f32 %v6059_v26, %v4916_v38  ;;  %v5059_v48 = vand.u32 2147483647, %v5046_v15  ;;  %v4823_v50 = vadd.f32 %v4822_v13, %v7385_v10 }
0x314e   :  { %v5062_v9 = vor.u32 1.1754944e-38, %v5061_v28 }
0x314f   :  { %v4920_v59 = vpack.c.bf16 %v4918_v20, %v4918_v20  ;;  %vm5060_vm0 = vcmp.eq.f32.partialorder %v5059_v48, 8.507059e+37 }
0x3151   :  { %5692 = vmatmul.msk.bf16.vlgmr.msra.gmra.mxu2 %vm173_vm4, %v4920_v59 }
0x3152   :  { %v6065_v39 = vpop.eup %6064 }
0x3153   :  { %v5051_v63 = vmul.f32 %v6065_v39, %v5046_v15  ;;  %vm5056_vm13 = vweird.f32 %v6065_v39 }
0x3154   :  { %vm5057_vm15 = vmor %vm5055_vm14, %vm5056_vm13 }
0x3155   :  { %v5052_v7 = vsub.f32 1.0, %v5051_v63 }
0x3157   :  { %v5053_v52 = vmul.f32 %v6065_v39, %v5052_v7 }
0x3159   :  { %v5054_v1 = vadd.f32 %v6065_v39, %v5053_v52 }
0x315b   :  { %v5058_v31 = vsel %vm5057_vm15, %v6065_v39, %v5054_v1 }
0x315c   :  { %v5063_v11 = vsel %vm5060_vm0, %v5062_v9, %v5058_v31 }
0x315d   :  { %v5078_v6 = vmul.f32 %v6061_v18, %v5063_v11  ;;  %v5776_v11 = vld [vmem:[#allocation2 + $0x1a0] sm:$0xff] }
0x315f   :  { %v5080_v14 = vpack.c.bf16 %v5078_v6, %v5078_v6 }
0x318d   :  { %v5037_v62 = vpop.xlane.xlu0 %5036 }
0x318e   :  { %v5039_v60 = vsub.f32 %v5029_v40, %v5037_v62 }
0x3190   :  { %v5042_v0 = vmul.f32 1.442695, %v5039_v60 }
0x3192   :  { %6066 = vpow2.f32 %v5042_v0 }
0x3198   :  { %v6067_v45 = vpop.eup %6066 }
0x3199   :  { %v5047_v35 = vsel %vm173_vm4, %v6067_v45, 0.0 }
0x319a   :  { %5048 = vadd.xlane.f32.xlu1 %v5047_v35 }
0x31a0   :  { %v5083_v5 = vpop.permute.xlu0 %5082 }
0x31a1   :  { %v5088_v27 = vsel %vm272_vm9, %v5083_v5, 0 }
0x31a2   :  { %5097 = vmatpush.bf16.msrb.mxu2 %v5088_v27 }
0x31a5   :  { %5696 = vmatmul.msk.bf16.vlgmr.msrb.gmra.mxu2 %vm173_vm4, %v5080_v14 }
0x31b3   :  { %5103 = vrot.lane.b32.xlu1 %v7243_v12, %s6122_s13 }
0x31d4   :  { %v4959_v30 = vpop.f32.mrf.mxu2 }
0x31d5   :  { %v4963_v24 = vpack.c.bf16 %v4959_v30, %v7387_v16 }
0x31d7   :  { %5693 = vmatmul.msk.bf16.vlgmr.msra.gmra.mxu3 %vm173_vm4, %v4963_v24 }
0x31dc   :  { %v4961_v8 = vpop.f32.mrf.mxu2 }
0x320d   :  { %v5049_v42 = vpop.xlane.xlu1 %5048 }
0x320e   :  { %6068 = vrcp.f32 %v5049_v42  ;;  %v5075_v12 = vand.u32 2147483648, %v5049_v42  ;;  %vm5069_vm5 = vweird.f32 %v5049_v42  ;;  %v5073_v26 = vand.u32 2147483647, %v5049_v42 }
0x3210   :  { %v5076_v29 = vor.u32 1.1754944e-38, %v5075_v12  ;;  %vm5074_vm7 = vcmp.eq.f32.partialorder %v5073_v26, 8.507059e+37 }
0x3214   :  { %v6069_v33 = vpop.eup %6068 }
0x3215   :  { %v5065_v55 = vmul.f32 %v6069_v33, %v5049_v42  ;;  %vm5070_vm1 = vweird.f32 %v6069_v33 }
0x3216   :  { %vm5071_vm6 = vmor %vm5069_vm5, %vm5070_vm1 }
0x3217   :  { %v5066_v56 = vsub.f32 1.0, %v5065_v55 }
0x3219   :  { %v5067_v22 = vmul.f32 %v6069_v33, %v5066_v56 }
0x321b   :  { %v5068_v25 = vadd.f32 %v6069_v33, %v5067_v22 }
0x321d   :  { %v5072_v34 = vsel %vm5071_vm6, %v6069_v33, %v5068_v25  ;;  %v5837_v25 = vld [vmem:[%s7467_s8 + $0x25] ss:$0 sm:$0xff] }
0x321e   :  { %v5077_v3 = vsel %vm5074_vm7, %v5076_v29, %v5072_v34  ;;  %v5838_v29 = vld [vmem:[%s7467_s8 + $0x26] ss:$0 sm:$0xff] }
0x321f   :  { %v5079_v53 = vmul.f32 %v6067_v45, %v5077_v3 }
0x3221   :  { %v5081_v16 = vpack.c.bf16 %v5079_v53, %v5079_v53 }
0x3225   :  { %v5104_v18 = vpop.permute.xlu1 %5103 }
0x3226   :  { %v5109_v2 = vsel %vm272_vm9, %v5104_v18, 0 }
0x3227   :  { %5118 = vmatpush.bf16.msrb.mxu3 %v5109_v2 }
0x3228   :  { %v5099_v41 = vpop.f32.mrf.mxu2 }
0x322a   :  { %5697 = vmatmul.msk.bf16.vlgmr.msrb.gmra.mxu3 %vm173_vm4, %v5081_v16 }
0x3230   :  { %v5101_v37 = vpop.f32.mrf.mxu2 }
0x3231   :  { %v5781_v37 = vld [vmem:[#allocation2 + $0x1c8] sm:$0xff] }
0x3232   :  { %5284 = vmatpush.bf16.msra.mxu2 %v5781_v37 }
0x325a   :  { %v4979_v40 = vpop.f32.mrf.mxu3 }
0x325b   :  { %v4984_v36 = vadd.f32 %v4979_v40, %v7381_v57  ;;  %v5780_v40 = vld [vmem:[#allocation2 + $0x1c0] sm:$0xff] }
0x325c   :  { %5285 = vmatpush.bf16.msra.mxu2 %v5780_v40 }
0x3262   :  { %v4981_v23 = vpop.f32.mrf.mxu3 }
0x3263   :  { %v4985_v38 = vadd.f32 %v4981_v23, %v4823_v50  ;;  %v5839_v23 = vld [vmem:[%s7467_s8 + $0x29] ss:$0 sm:$0xff] }
0x32ad   :  { %v5120_v46 = vpop.f32.mrf.mxu3 }
0x32ae   :  { %v5124_v54 = vpack.c.bf16 %v5120_v46, %v5099_v41 }
0x32b0   :  { %5698 = vmatmul.msk.bf16.vlgmr.msrb.gmra.mxu0 %vm173_vm4, %v5124_v54 }
0x32b5   :  { %v5122_v43 = vpop.f32.mrf.mxu3 }
0x332d   :  { %v5140_v49 = vpop.f32.mrf.mxu0 }
0x332e   :  { %v5145_v32 = vadd.f32 %v5140_v49, %v4984_v36  ;;  %v5779_v36 = vld [vmem:[#allocation2 + $0x1b8] sm:$0xff] }
0x332f   :  { %5286 = vmatpush.bf16.msra.mxu2 %v5779_v36 }
0x3330   :  { %v5148_v58 = vadd.f32 %v5836_v51, %v5145_v32 }
0x3332   :  { %v5150_v57 = vadd.f32 %v5148_v58, %v7265_v61  ;;  %v5840_v58 = vld [vmem:[%s7467_s8 + $0x2a] ss:$0 sm:$0xff] }
0x3333   :  { %5287 = vmatpush.bf16.msra.mxu2 %v5778_v44 }
0x3334   :  { %v5154_v20 = vsel %vm139_vm3, %v5150_v57, 0.0 }
0x3335   :  { %5155 = vadd.xlane.f32.xlu0 %v5154_v20  ;;  %v5142_v59 = vpop.f32.mrf.mxu0 }
0x3336   :  { %v5146_v15 = vadd.f32 %v5142_v59, %v4985_v38 }
0x3338   :  { %v5149_v39 = vadd.f32 %v5836_v51, %v5146_v15 }
0x333a   :  { %v5151_v63 = vadd.f32 %v5149_v39, %v7267_v19  ;;  %v5777_v19 = vld [vmem:[#allocation2 + $0x1a8] sm:$0xff] }
0x333b   :  { %5232 = vmatpush.bf16.msra.mxu1 %v5777_v19 }
0x333c   :  { %v5157_v7 = vsel %vm139_vm3, %v5151_v63, 0.0 }
0x333d   :  { %5158 = vadd.xlane.f32.xlu1 %v5157_v7 }
0x333f   :  { %5233 = vmatpush.bf16.msra.mxu1 %v5776_v11 }
0x33a8   :  { %v5156_v62 = vpop.xlane.xlu0 %5155 }
0x33a9   :  { %v5160_v60 = vmul.f32 %v5156_v62, %v6370_v21 }
0x33ab   :  { %v5162_v0 = vsub.f32 %v5150_v57, %v5160_v60 }
0x33ad   :  { %v5164_v52 = vmul.f32 %v5162_v0, %v5162_v0 }
0x33af   :  { %v5166_v10 = vsel %vm139_vm3, %v5164_v52, 0.0 }
0x33b0   :  { %5167 = vadd.xlane.f32.xlu2 %v5166_v10  ;;  %v5159_v61 = vpop.xlane.xlu1 %5158 }
0x33b1   :  { %v5161_v1 = vmul.f32 %v5159_v61, %v6370_v21 }
0x33b3   :  { %v5163_v28 = vsub.f32 %v5151_v63, %v5161_v1 }
0x33b5   :  { %v5165_v48 = vmul.f32 %v5163_v28, %v5163_v28 }
0x33b7   :  { %v5169_v45 = vsel %vm139_vm3, %v5165_v48, 0.0 }
0x33b8   :  { %5170 = vadd.xlane.f32.xlu2 %v5169_v45  ;;  %v5783_v45 = vld [vmem:[#allocation2 + $0x28] sm:$0xff] }
0x33b9   :  { %5376 = vmatpush.bf16.msra.mxu3 %v5783_v45 }
0x3423   :  { %v5168_v31 = vpop.xlane.xlu2 %5167 }
0x3424   :  { %v5172_v35 = vmul.f32 %v5168_v31, %v6370_v21 }
0x3426   :  { %v5174_v9 = vadd.f32 1e-06, %v5172_v35 }
0x3428   :  { %6070 = vrsqrt.f32 %v5174_v9  ;;  %vm5182_vm9 = vweird.f32 %v5174_v9 }
0x342b   :  { %v5171_v6 = vpop.xlane.xlu2 %5170 }
0x342c   :  { %v5173_v5 = vmul.f32 %v5171_v6, %v6370_v21 }
0x342e   :  { %v6071_v27 = vpop.eup %6070  ;;  %v5175_v14 = vadd.f32 1e-06, %v5173_v5 }
0x342f   :  { %v5177_v4 = vmul.f32 %v6071_v27, %v5174_v9  ;;  %vm5183_vm4 = vweird.f32 %v6071_v27  ;;  %v5782_v9 = vld [vmem:[#allocation2 + $0x20] sm:$0xff] }
0x3430   :  { %6072 = vrsqrt.f32 %v5175_v14  ;;  %vm5184_vm8 = vmor %vm5182_vm9, %vm5183_vm4  ;;  %vm5192_vm11 = vweird.f32 %v5175_v14  ;;  %5377 = vmatpush.bf16.msra.mxu3 %v5782_v9 }
0x3431   :  { %v5178_v17 = vmul.f32 %v6071_v27, %v5177_v4 }
0x3433   :  { %v5179_v13 = vmul.f32 0.5, %v5178_v17 }
0x3435   :  { %v5180_v30 = vsub.f32 1.5, %v5179_v13 }
0x3436   :  { %v6073_v24 = vpop.eup %6072 }
0x3437   :  { %v5181_v8 = vmul.f32 %v6071_v27, %v5180_v30  ;;  %v5187_v42 = vmul.f32 %v6073_v24, %v5175_v14  ;;  %vm5193_vm10 = vweird.f32 %v6073_v24 }
0x3438   :  { %vm5194_vm12 = vmor %vm5192_vm11, %vm5193_vm10 }
0x3439   :  { %v5188_v33 = vmul.f32 %v6073_v24, %v5187_v42  ;;  %v5185_v55 = vsel %vm5184_vm8, %v6071_v27, %v5181_v8 }
0x343a   :  { %v5196_v12 = vmul.f32 %v5185_v55, %v5162_v0 }
0x343b   :  { %v5189_v56 = vmul.f32 0.5, %v5188_v33 }
0x343c   :  { %v5199_v3 = vmul.f32 %v5837_v25, %v5196_v12 }
0x343d   :  { %v5190_v22 = vsub.f32 1.5, %v5189_v56 }
0x343e   :  { %v5202_v2 = vadd.f32 %v5838_v29, %v5199_v3 }
0x343f   :  { %v5191_v26 = vmul.f32 %v6073_v24, %v5190_v22 }
0x3441   :  { %v5195_v34 = vsel %vm5194_vm12, %v6073_v24, %v5191_v26  ;;  %v5842_v26 = vld [vmem:[%s7467_s8 + $0x28] ss:$0 sm:$0xff] }
0x3442   :  { %v5197_v53 = vmul.f32 %v5195_v34, %v5163_v28 }
0x3444   :  { %v5200_v18 = vmul.f32 %v5837_v25, %v5197_v53 }
0x3446   :  { %v5203_v16 = vadd.f32 %v5838_v29, %v5200_v18 }
0x3448   :  { %v5209_v41 = vpack.c.bf16 %v5203_v16, %v5202_v2 }
0x344a   :  { %5707 = vmatmul.msk.bf16.vlgmr.msra.gmra.mxu1 %vm139_vm3, %v5209_v41 }
0x34c7   :  { %v5235_v47 = vpop.f32.mrf.mxu1 }
0x34c8   :  { %v5236_v46 = vadd.f32 %v5839_v23, %v5235_v47 }
0x34ca   :  { %v5240_v51 = vmax.f32 %v5236_v46, 0.0 }
0x34cf   :  { %v5237_v54 = vpop.f32.mrf.mxu1 }
0x34d0   :  { %v5238_v43 = vadd.f32 %v5839_v23, %v5237_v54 }
0x34d2   :  { %v5241_v49 = vmax.f32 %v5238_v43, 0.0 }
0x34d4   :  { %v5251_v32 = vpack.c.bf16 %v5241_v49, %v5240_v51 }
0x34d6   :  { %5724 = vmatmul.msk.bf16.vlgmr.msra.gmra.mxu2 %vm100_vm2, %v5251_v32 }
0x3559   :  { %v5289_v50 = vpop.f32.mrf.mxu2 }
0x355a   :  { %v5290_v57 = vadd.f32 %v5840_v58, %v5289_v50 }
0x355c   :  { %v5294_v38 = vadd.f32 %v5290_v57, %v5202_v2 }
0x355e   :  { %v5298_v20 = vsel %vm139_vm3, %v5294_v38, 0.0 }
0x355f   :  { %5299 = vadd.xlane.f32.xlu2 %v5298_v20 }
0x3561   :  { %v5291_v59 = vpop.f32.mrf.mxu2 }
0x3562   :  { %v5292_v15 = vadd.f32 %v5840_v58, %v5291_v59 }
0x3564   :  { %v5295_v39 = vadd.f32 %v5292_v15, %v5203_v16  ;;  %v5843_v16 = vld [vmem:[%s7467_s8] ss:$0 sm:$0xff] }
0x3566   :  { %v5301_v63 = vsel %vm139_vm3, %v5295_v39, 0.0 }
0x3567   :  { %5302 = vadd.xlane.f32.xlu2 %v5301_v63 }
0x35d2   :  { %v5300_v7 = vpop.xlane.xlu2 %5299 }
0x35d3   :  { %v5304_v62 = vmul.f32 %v5300_v7, %v6370_v21 }
0x35d5   :  { %v5306_v60 = vsub.f32 %v5294_v38, %v5304_v62 }
0x35d7   :  { %v5308_v0 = vmul.f32 %v5306_v60, %v5306_v60 }
0x35d9   :  { %v5310_v52 = vsel %vm139_vm3, %v5308_v0, 0.0 }
0x35da   :  { %5311 = vadd.xlane.f32.xlu0 %v5310_v52  ;;  %v5303_v10 = vpop.xlane.xlu2 %5302 }
0x35db   :  { %v5305_v61 = vmul.f32 %v5303_v10, %v6370_v21 }
0x35dd   :  { %v5307_v1 = vsub.f32 %v5295_v39, %v5305_v61 }
0x35df   :  { %v5309_v28 = vmul.f32 %v5307_v1, %v5307_v1 }
0x35e1   :  { %v5313_v48 = vsel %vm139_vm3, %v5309_v28, 0.0 }
0x35e2   :  { %5314 = vadd.xlane.f32.xlu2 %v5313_v48 }
0x364d   :  { %v5312_v19 = vpop.xlane.xlu0 %5311 }
0x364e   :  { %v5316_v31 = vmul.f32 %v5312_v19, %v6370_v21 }
0x3650   :  { %v5318_v35 = vadd.f32 1e-06, %v5316_v31 }
0x3652   :  { %6074 = vrsqrt.f32 %v5318_v35  ;;  %vm5326_vm13 = vweird.f32 %v5318_v35 }
0x3655   :  { %v5315_v11 = vpop.xlane.xlu2 %5314 }
0x3656   :  { %v5317_v6 = vmul.f32 %v5315_v11, %v6370_v21  ;;  %v5841_v21 = vld [vmem:[%s7467_s8 + $0x27] ss:$0 sm:$0xff] }
0x3658   :  { %v6075_v5 = vpop.eup %6074  ;;  %v5319_v27 = vadd.f32 1e-06, %v5317_v6 }
0x3659   :  { %v5321_v14 = vmul.f32 %v6075_v5, %v5318_v35  ;;  %vm5327_vm2 = vweird.f32 %v6075_v5 }
0x365a   :  { %6076 = vrsqrt.f32 %v5319_v27  ;;  %vm5328_vm14 = vmor %vm5326_vm13, %vm5327_vm2  ;;  %vm5336_vm0 = vweird.f32 %v5319_v27 }
0x365b   :  { %v5322_v4 = vmul.f32 %v6075_v5, %v5321_v14 }
0x365d   :  { %v5323_v17 = vmul.f32 0.5, %v5322_v4 }
0x365f   :  { %v5324_v13 = vsub.f32 1.5, %v5323_v17 }
0x3660   :  { %v6077_v30 = vpop.eup %6076 }
0x3661   :  { %v5325_v24 = vmul.f32 %v6075_v5, %v5324_v13  ;;  %v5331_v8 = vmul.f32 %v6077_v30, %v5319_v27  ;;  %vm5337_vm15 = vweird.f32 %v6077_v30 }
0x3662   :  { %vm5338_vm1 = vmor %vm5336_vm0, %vm5337_vm15 }
0x3663   :  { %v5332_v42 = vmul.f32 %v6077_v30, %v5331_v8  ;;  %v5329_v33 = vsel %vm5328_vm14, %v6075_v5, %v5325_v24 }
0x3664   :  { %v5340_v22 = vmul.f32 %v5329_v33, %v5306_v60 }
0x3665   :  { %v5333_v55 = vmul.f32 0.5, %v5332_v42 }
0x3666   :  { %v5343_v34 = vmul.f32 %v5841_v21, %v5340_v22 }
0x3667   :  { %v5334_v56 = vsub.f32 1.5, %v5333_v55 }
0x3668   :  { %v5346_v53 = vadd.f32 %v5842_v26, %v5343_v34 }
0x3669   :  { %v5335_v25 = vmul.f32 %v6077_v30, %v5334_v56 }
0x366b   :  { %v5339_v12 = vsel %vm5338_vm1, %v6077_v30, %v5335_v25 }
0x366c   :  { %v5341_v29 = vmul.f32 %v5339_v12, %v5307_v1 }
0x366e   :  { %v5344_v3 = vmul.f32 %v5841_v21, %v5341_v29 }
0x3670   :  { %v5347_v18 = vadd.f32 %v5842_v26, %v5344_v3 }
0x3672   :  { %v5348_v2 = vpack.c.bf16 %v5347_v18, %v5346_v53 }
0x3674   :  { %5733 = vmatmul.msk.bf16.vlgmr.msra.gmra.mxu3 %vm139_vm3, %v5348_v2 }
0x36f7   :  { %v5379_v41 = vpop.f32.mrf.mxu3 }
0x36f8   :  { %v5380_v37 = vadd.f32 %v5843_v16, %v5379_v41 }
0x36fa   :  { %5384 = vst [vmem:[%s7468_s9] sm:$0xff] %v5380_v37 }
0x36ff   :  { %v5381_v40 = vpop.f32.mrf.mxu3 }
0x3700   :  { %v5382_v36 = vadd.f32 %v5843_v16, %v5381_v40 }
0x3702   :  { %5385 = vst [vmem:[%s7468_s9 + $0x8] sm:$0xff] %v5382_v36 }
0x3703   :  { %5390 = vsyncpa [#allocation3], 1 }

</bundles_post_ra>
